<compile_context>
chip_gen: v7x
topology: tpu7x:2x2x1
jax: 0.10.0
libtpu: 0.0.40
codegen_flags: <defaults>
</compile_context>

<pallas_src>
import functools

import jax
import jax.numpy as jnp
from jax.experimental import pallas as pl
from jax.experimental.pallas import tpu as pltpu

BN_EPS = 1e-3
COMPUTE_DTYPE = jnp.bfloat16

SMALL_M = 64                      # below this, pallas_call overhead > compute
SMALL_FLOPS = 2 * 1024 * 1024     # ~2 MFLOP: jnp.dot fallback threshold
VMEM_LIMIT = 32 * 1024 * 1024     # safe on v5e / v6e / v7x
TILE_BUDGET = 20 * 1024 * 1024    # double-buffered tile budget under the limit
W_TILE_LIMIT = 8 * 1024 * 1024    # max double-buffered weight tile -> full-K block
MEGACORE_SPLIT_M = 256            # split M into >=2 blocks above this (v7x 2 TCs)


def _round_up(x, m):
    return ((x + m - 1) // m) * m


def _cdiv(a, b):
    return -(-a // b)


# --------------------------------------------------------------------------
# Pallas matmul kernels (bias + ReLU fused, f32 accumulation)
# --------------------------------------------------------------------------
def _mm_bias_kernel(x_ref, w_ref, b_ref, o_ref, *, relu):
    # Single full-K block: one pass, no accumulator scratch, no pl.when.
    r = jnp.dot(x_ref[...], w_ref[...],
                preferred_element_type=jnp.float32) + b_ref[...]
    if relu:
        r = jnp.maximum(r, 0.0)
    o_ref[...] = r.astype(o_ref.dtype)


def _mm_bias_acc_kernel(x_ref, w_ref, b_ref, o_ref, acc_ref, *, relu):
    # General K-split path (not hit at batch-2/75x75; kept for robustness).
    kk = pl.program_id(2)

    @pl.when(kk == 0)
    def _():
        acc_ref[...] = jnp.zeros_like(acc_ref)

    acc_ref[...] += jnp.dot(x_ref[...], w_ref[...],
                            preferred_element_type=jnp.float32)

    @pl.when(kk == pl.num_programs(2) - 1)
    def _():
        r = acc_ref[...] + b_ref[...]
        if relu:
            r = jnp.maximum(r, 0.0)
        o_ref[...] = r.astype(o_ref.dtype)


def _derive_tn(np_):
    if np_ <= 512:
        return np_
    for t in (512, 384, 256, 128):
        if np_ % t == 0:
            return t
    return 128


def _derive_tk(kp, tn):
    # Full-K single block unless the double-buffered weight tile gets too big.
    if 2 * kp * tn * 2 <= W_TILE_LIMIT:
        return kp
    return 512


def matmul_bias_act(x, wp, bp, n, relu=True, out_dtype=COMPUTE_DTYPE):
    """x: (M, K); wp: (Kp, Np) pre-packed bf16; bp: (1, Np) f32 -> (M, n)."""
    m, k = x.shape
    kp, np_ = wp.shape
    flops = 2 * m * k * n
    if m <= SMALL_M or flops < SMALL_FLOPS:
        # Tiny matmuls (all Mixed_6/7 layers at batch-2/75x75): pallas_call
        # fixed cost dwarfs the compute; let XLA fuse dot + bias + ReLU.
        out = jnp.dot(x.astype(COMPUTE_DTYPE), wp,
                      preferred_element_type=jnp.float32) + bp
        if relu:
            out = jnp.maximum(out, 0.0)
        out = out.astype(out_dtype)
        return out if np_ == n else out[:, :n]

    x = x.astype(COMPUTE_DTYPE)
    if k != kp:
        x = jnp.pad(x, ((0, 0), (0, kp - k)))   # only the K=27 stem conv

    tn = _derive_tn(np_)
    tk = _derive_tk(kp, tn)
    grid_n = np_ // tn
    grid_k = kp // tk

    def tiles_bytes(tm):
        b = 2 * 2 * (tm * tk + tk * tn + tm * tn)
        if grid_k > 1:
            b += tm * tn * 4
        return b

    # Minimize grid steps under the VMEM budget; split the big stem matmuls
    # into 2 M blocks so both v7x TensorCores get work (megacore parallel).
    tm_max = 2048
    while tm_max > 16 and tiles_bytes(tm_max) > TILE_BUDGET:
        tm_max //= 2
    gm = _cdiv(m, tm_max)
    if gm == 1 and grid_n == 1 and m > MEGACORE_SPLIT_M:
        gm = 2
    tm = _round_up(_cdiv(m, gm), 16)
    mp = tm * gm
    if mp != m:
        x = jnp.pad(x, ((0, mp - m), (0, 0)))

    if grid_k == 1:
        out = pl.pallas_call(
            functools.partial(_mm_bias_kernel, relu=relu),
            out_shape=jax.ShapeDtypeStruct((mp, np_), out_dtype),
            grid=(gm, grid_n),
            in_specs=[
                pl.BlockSpec((tm, tk), lambda i, j: (i, 0)),
                pl.BlockSpec((tk, tn), lambda i, j: (0, j)),
                pl.BlockSpec((1, tn), lambda i, j: (0, j)),
            ],
            out_specs=pl.BlockSpec((tm, tn), lambda i, j: (i, j)),
            compiler_params=pltpu.CompilerParams(
                dimension_semantics=("parallel", "parallel"),
                vmem_limit_bytes=VMEM_LIMIT),
        )(x, wp, bp)
    else:
        out = pl.pallas_call(
            functools.partial(_mm_bias_acc_kernel, relu=relu),
            out_shape=jax.ShapeDtypeStruct((mp, np_), out_dtype),
            grid=(gm, grid_n, grid_k),
            in_specs=[
                pl.BlockSpec((tm, tk), lambda i, j, kk: (i, kk)),
                pl.BlockSpec((tk, tn), lambda i, j, kk: (kk, j)),
                pl.BlockSpec((1, tn), lambda i, j, kk: (0, j)),
            ],
            out_specs=pl.BlockSpec((tm, tn), lambda i, j, kk: (i, j)),
            scratch_shapes=[pltpu.VMEM((tm, tn), jnp.float32)],
            compiler_params=pltpu.CompilerParams(
                dimension_semantics=("parallel", "parallel", "arbitrary"),
                vmem_limit_bytes=VMEM_LIMIT),
        )(x, wp, bp)

    if mp != m or np_ != n:
        out = out[:m, :n]
    return out


# --------------------------------------------------------------------------
# Conv / pool wrappers (NHWC; glue in plain JAX, FLOPs in the Pallas matmul)
# --------------------------------------------------------------------------
def basic_conv(x, pk, k=(1, 1), stride=(1, 1), padding=(0, 0)):
    """BasicConv2d (conv + folded BN + ReLU) on NHWC input, pre-packed weights."""
    kh, kw = k
    n_, h, w_, cin = x.shape
    nco = pk["b0"].shape[0]
    sh, sw = stride
    ph, pw = padding
    ho = (h + 2 * ph - kh) // sh + 1
    wo = (w_ + 2 * pw - kw) // sw + 1

    if (kh, kw) == (1, 1) and stride == (1, 1) and padding == (0, 0):
        out = matmul_bias_act(x.reshape(n_ * h * w_, cin),
                              pk["wp"], pk["bp"], nco)
        return out.reshape(n_, h, w_, nco)

    xp = jnp.pad(x, ((0, 0), (ph, ph), (pw, pw), (0, 0))) if (ph or pw) else x
    # TODO(synk): im2col patches still materialize in HBM; moving the tap loop
    # into the Pallas grid (accumulated shifted 1x1 matmuls) needs element-
    # offset index maps — at batch-2/75x75 the patches are <=1.5 MB per conv
    # so the remaining win is small.
    cols = []
    for i in range(kh):
        for j in range(kw):
            cols.append(xp[:, i:i + (ho - 1) * sh + 1:sh,
                           j:j + (wo - 1) * sw + 1:sw, :])
    patches = cols[0] if len(cols) == 1 else jnp.concatenate(cols, axis=-1)
    patches = patches.reshape(n_ * ho * wo, kh * kw * cin)
    out = matmul_bias_act(patches, pk["wp"], pk["bp"], nco)
    return out.reshape(n_, ho, wo, nco)


def fused_1x1(x, pk):
    """Several 1x1 BasicConv2d heads sharing one input, pre-concatenated at
    init into a single packed matmul; outputs split back by channel."""
    n_, h, w_, cin = x.shape
    sizes = [b.shape[0] for b in pk["b0s"]]
    total = sum(sizes)
    out = matmul_bias_act(x.reshape(n_ * h * w_, cin), pk["wp"], pk["bp"], total)
    out = out.reshape(n_, h, w_, total)
    outs, off = [], 0
    for s in sizes:
        outs.append(out[..., off:off + s])
        off += s
    return outs


def pool2d_nhwc(x, k, stride, padding, mode):
    """mode='max' -> MaxPool2d(k, stride); mode='mean' -> F.avg_pool2d with
    count_include_pad=True (PyTorch default used by inception_v3)."""
    n_, h, w_, c = x.shape
    sh = sw = stride
    ph = pw = padding
    ho = (h + 2 * ph - k) // sh + 1
    wo = (w_ + 2 * pw - k) // sw + 1
    xp = jnp.pad(x, ((0, 0), (ph, ph), (pw, pw), (0, 0))) if padding else x
    # Running max/mean over the k*k shifted strided views (no window stack).
    acc = None
    for i in range(k):
        for j in range(k):
            v = xp[:, i:i + (ho - 1) * sh + 1:sh, j:j + (wo - 1) * sw + 1:sw, :]
            if mode == "max":
                acc = v if acc is None else jnp.maximum(acc, v)
            else:
                v = v.astype(jnp.float32)
                acc = v if acc is None else acc + v
    if mode == "mean":
        acc = (acc / float(k * k)).astype(x.dtype)
    return acc


# --------------------------------------------------------------------------
# Deterministic parameter construction + pre-packing (BN folded at init)
# --------------------------------------------------------------------------
class ParamGen:
    def __init__(self, seed=0):
        self.key = jax.random.PRNGKey(seed)
        self.count = 0

    def next(self):
        self.count += 1
        return jax.random.fold_in(self.key, self.count)


def _folded_conv_wb(pg, cin, cout, kh, kw):
    fan_in = cin * kh * kw
    w = jax.random.normal(pg.next(), (cout, cin, kh, kw),
                          jnp.float32) * jnp.sqrt(2.0 / fan_in)
    gamma = 1.0 + 0.1 * jax.random.normal(pg.next(), (cout,), jnp.float32)
    beta = 0.1 * jax.random.normal(pg.next(), (cout,), jnp.float32)
    mean = 0.1 * jax.random.normal(pg.next(), (cout,), jnp.float32)
    var = 0.5 + jax.random.uniform(pg.next(), (cout,), jnp.float32)
    scale = gamma / jnp.sqrt(var + BN_EPS)
    return w * scale[:, None, None, None], beta - mean * scale


def pack_matmul(wmat, bias):
    """wmat (K, N), bias (N,) f32 -> bf16 weight padded to (Kp, Np) + f32 bias
    padded to (1, Np), laid out once at init (zero per-forward repacking)."""
    k, n = wmat.shape
    np_ = _round_up(n, 128)
    tn = _derive_tn(np_)
    kp = _round_up(k, 16)
    if 2 * kp * tn * 2 > W_TILE_LIMIT:      # would be K-split -> tile-aligned Kp
        kp = _round_up(k, 512)
    wp = jnp.zeros((kp, np_), COMPUTE_DTYPE).at[:k, :n].set(
        wmat.astype(COMPUTE_DTYPE))
    bp = jnp.zeros((1, np_), jnp.float32).at[0, :n].set(
        bias.astype(jnp.float32))
    return {"wp": wp, "bp": bp}


def basic_conv_params(pg, cin, cout, kh, kw):
    w, b = _folded_conv_wb(pg, cin, cout, kh, kw)
    wmat = jnp.transpose(w, (2, 3, 1, 0)).reshape(kh * kw * cin, cout)
    d = pack_matmul(wmat, b)
    d["b0"] = b          # un-padded bias: its shape carries true Cout statically
    return d


def fused_1x1_params(convs):
    ws = [jnp.transpose(w.reshape(w.shape[0], w.shape[1])) for w, _ in convs]
    wmat = jnp.concatenate(ws, axis=1)                    # (Cin, sum Cout)
    bias = jnp.concatenate([b for _, b in convs])
    d = pack_matmul(wmat, bias)
    d["b0s"] = tuple(b for _, b in convs)                 # shapes give splits
    return d


def inception_a_params(pg, cin, pool_features):
    h1 = _folded_conv_wb(pg, cin, 64, 1, 1)
    h5 = _folded_conv_wb(pg, cin, 48, 1, 1)
    h3 = _folded_conv_wb(pg, cin, 64, 1, 1)
    return {
        "fused": fused_1x1_params([h1, h5, h3]),
        "b5x5_2": basic_conv_params(pg, 48, 64, 5, 5),
        "b3x3dbl_2": basic_conv_params(pg, 64, 96, 3, 3),
        "b3x3dbl_3": basic_conv_params(pg, 96, 96, 3, 3),
        "bpool": basic_conv_params(pg, cin, pool_features, 1, 1),
    }


def inception_a(x, p):
    b1, b5, b3 = fused_1x1(x, p["fused"])
    b5 = basic_conv(b5, p["b5x5_2"], k=(5, 5), padding=(2, 2))
    b3 = basic_conv(b3, p["b3x3dbl_2"], k=(3, 3), padding=(1, 1))
    b3 = basic_conv(b3, p["b3x3dbl_3"], k=(3, 3), padding=(1, 1))
    # TODO(synk): folding avg-pool+1x1 into one 3x3 conv only pays off with
    # in-kernel im2col; with materialized patches it would add HBM traffic.
    bp = pool2d_nhwc(x, 3, 1, 1, "mean")
    bp = basic_conv(bp, p["bpool"])
    return jnp.concatenate([b1, b5, b3, bp], axis=-1)


def inception_b_params(pg, cin):
    return {
        "b3x3": basic_conv_params(pg, cin, 384, 3, 3),
        "b3x3dbl_1": basic_conv_params(pg, cin, 64, 1, 1),
        "b3x3dbl_2": basic_conv_params(pg, 64, 96, 3, 3),
        "b3x3dbl_3": basic_conv_params(pg, 96, 96, 3, 3),
    }


def inception_b(x, p):
    b3 = basic_conv(x, p["b3x3"], k=(3, 3), stride=(2, 2))
    bd = basic_conv(x, p["b3x3dbl_1"])
    bd = basic_conv(bd, p["b3x3dbl_2"], k=(3, 3), padding=(1, 1))
    bd = basic_conv(bd, p["b3x3dbl_3"], k=(3, 3), stride=(2, 2))
    bp = pool2d_nhwc(x, 3, 2, 0, "max")
    return jnp.concatenate([b3, bd, bp], axis=-1)


def inception_c_params(pg, cin, c7):
    h1 = _folded_conv_wb(pg, cin, 192, 1, 1)
    h7 = _folded_conv_wb(pg, cin, c7, 1, 1)
    hd = _folded_conv_wb(pg, cin, c7, 1, 1)
    return {
        "fused": fused_1x1_params([h1, h7, hd]),
        "b7x7_2": basic_conv_params(pg, c7, c7, 1, 7),
        "b7x7_3": basic_conv_params(pg, c7, 192, 7, 1),
        "b7x7dbl_2": basic_conv_params(pg, c7, c7, 7, 1),
        "b7x7dbl_3": basic_conv_params(pg, c7, c7, 1, 7),
        "b7x7dbl_4": basic_conv_params(pg, c7, c7, 7, 1),
        "b7x7dbl_5": basic_conv_params(pg, c7, 192, 1, 7),
        "bpool": basic_conv_params(pg, cin, 192, 1, 1),
    }


def inception_c(x, p):
    b1, b7, bd = fused_1x1(x, p["fused"])
    b7 = basic_conv(b7, p["b7x7_2"], k=(1, 7), padding=(0, 3))
    b7 = basic_conv(b7, p["b7x7_3"], k=(7, 1), padding=(3, 0))
    bd = basic_conv(bd, p["b7x7dbl_2"], k=(7, 1), padding=(3, 0))
    bd = basic_conv(bd, p["b7x7dbl_3"], k=(1, 7), padding=(0, 3))
    bd = basic_conv(bd, p["b7x7dbl_4"], k=(7, 1), padding=(3, 0))
    bd = basic_conv(bd, p["b7x7dbl_5"], k=(1, 7), padding=(0, 3))
    bp = pool2d_nhwc(x, 3, 1, 1, "mean")
    bp = basic_conv(bp, p["bpool"])
    return jnp.concatenate([b1, b7, bd, bp], axis=-1)


def inception_d_params(pg, cin):
    h3 = _folded_conv_wb(pg, cin, 192, 1, 1)
    h7 = _folded_conv_wb(pg, cin, 192, 1, 1)
    return {
        "fused": fused_1x1_params([h3, h7]),
        "b3x3_2": basic_conv_params(pg, 192, 320, 3, 3),
        "b7x7x3_2": basic_conv_params(pg, 192, 192, 1, 7),
        "b7x7x3_3": basic_conv_params(pg, 192, 192, 7, 1),
        "b7x7x3_4": basic_conv_params(pg, 192, 192, 3, 3),
    }


def inception_d(x, p):
    b3, b7 = fused_1x1(x, p["fused"])
    b3 = basic_conv(b3, p["b3x3_2"], k=(3, 3), stride=(2, 2))
    b7 = basic_conv(b7, p["b7x7x3_2"], k=(1, 7), padding=(0, 3))
    b7 = basic_conv(b7, p["b7x7x3_3"], k=(7, 1), padding=(3, 0))
    b7 = basic_conv(b7, p["b7x7x3_4"], k=(3, 3), stride=(2, 2))
    bp = pool2d_nhwc(x, 3, 2, 0, "max")
    return jnp.concatenate([b3, b7, bp], axis=-1)


def inception_e_params(pg, cin):
    h1 = _folded_conv_wb(pg, cin, 320, 1, 1)
    h3 = _folded_conv_wb(pg, cin, 384, 1, 1)
    hd = _folded_conv_wb(pg, cin, 448, 1, 1)
    return {
        "fused": fused_1x1_params([h1, h3, hd]),
        "b3x3_2a": basic_conv_params(pg, 384, 384, 1, 3),
        "b3x3_2b": basic_conv_params(pg, 384, 384, 3, 1),
        "b3x3dbl_2": basic_conv_params(pg, 448, 384, 3, 3),
        "b3x3dbl_3a": basic_conv_params(pg, 384, 384, 1, 3),
        "b3x3dbl_3b": basic_conv_params(pg, 384, 384, 3, 1),
        "bpool": basic_conv_params(pg, cin, 192, 1, 1),
    }


def inception_e(x, p):
    b1, b3, bd = fused_1x1(x, p["fused"])
    b3 = jnp.concatenate([
        basic_conv(b3, p["b3x3_2a"], k=(1, 3), padding=(0, 1)),
        basic_conv(b3, p["b3x3_2b"], k=(3, 1), padding=(1, 0)),
    ], axis=-1)
    bd = basic_conv(bd, p["b3x3dbl_2"], k=(3, 3), padding=(1, 1))
    bd = jnp.concatenate([
        basic_conv(bd, p["b3x3dbl_3a"], k=(1, 3), padding=(0, 1)),
        basic_conv(bd, p["b3x3dbl_3b"], k=(3, 1), padding=(1, 0)),
    ], axis=-1)
    bp = pool2d_nhwc(x, 3, 1, 1, "mean")
    bp = basic_conv(bp, p["bpool"])
    return jnp.concatenate([b1, b3, bd, bp], axis=-1)


def init_inception_transfer_params(num_class=3, seed=0):
    pg = ParamGen(seed)
    p = {
        "Conv2d_1a_3x3": basic_conv_params(pg, 3, 32, 3, 3),
        "Conv2d_2a_3x3": basic_conv_params(pg, 32, 32, 3, 3),
        "Conv2d_2b_3x3": basic_conv_params(pg, 32, 64, 3, 3),
        "Conv2d_3b_1x1": basic_conv_params(pg, 64, 80, 1, 1),
        "Conv2d_4a_3x3": basic_conv_params(pg, 80, 192, 3, 3),
        "Mixed_5b": inception_a_params(pg, 192, 32),
        "Mixed_5c": inception_a_params(pg, 256, 64),
        "Mixed_5d": inception_a_params(pg, 288, 64),
        "Mixed_6a": inception_b_params(pg, 288),
        "Mixed_6b": inception_c_params(pg, 768, 128),
        "Mixed_6c": inception_c_params(pg, 768, 160),
        "Mixed_6d": inception_c_params(pg, 768, 160),
        "Mixed_6e": inception_c_params(pg, 768, 192),
        "Mixed_7a": inception_d_params(pg, 768),
        "Mixed_7b": inception_e_params(pg, 1280),
        "Mixed_7c": inception_e_params(pg, 2048),
    }
    # TODO(synk): the reference code sets model.fc = nn.Linear(1280, num_class),
    # which is shape-incompatible with inception_v3's 2048-dim pooled features
    # and would raise at runtime in PyTorch; the working in_features=2048 is used.
    fc_w = jax.random.normal(pg.next(), (num_class, 2048),
                             jnp.float32) / jnp.sqrt(2048.0)
    fc_b = 0.01 * jax.random.normal(pg.next(), (num_class,), jnp.float32)
    p["fc"] = {"w": fc_w, "b": fc_b}
    return p


def inception_transfer_forward(params, x):
    """x: NCHW float32, spatial >= 75 (minimum valid for inception_v3)."""
    x = jnp.transpose(x, (0, 2, 3, 1)).astype(COMPUTE_DTYPE)  # NCHW -> NHWC once
    x = basic_conv(x, params["Conv2d_1a_3x3"], k=(3, 3), stride=(2, 2))
    x = basic_conv(x, params["Conv2d_2a_3x3"], k=(3, 3))
    x = basic_conv(x, params["Conv2d_2b_3x3"], k=(3, 3), padding=(1, 1))
    x = pool2d_nhwc(x, 3, 2, 0, "max")
    x = basic_conv(x, params["Conv2d_3b_1x1"])
    x = basic_conv(x, params["Conv2d_4a_3x3"], k=(3, 3))
    x = pool2d_nhwc(x, 3, 2, 0, "max")
    x = inception_a(x, params["Mixed_5b"])
    x = inception_a(x, params["Mixed_5c"])
    x = inception_a(x, params["Mixed_5d"])
    x = inception_b(x, params["Mixed_6a"])
    x = inception_c(x, params["Mixed_6b"])
    x = inception_c(x, params["Mixed_6c"])
    x = inception_c(x, params["Mixed_6d"])
    x = inception_c(x, params["Mixed_6e"])
    # TODO(synk): AuxLogits branch (training-mode extra output) not implemented;
    # eval-mode semantics (single logits tensor) are reproduced.
    x = inception_d(x, params["Mixed_7a"])
    x = inception_e(x, params["Mixed_7b"])
    x = inception_e(x, params["Mixed_7c"])
    feats = jnp.mean(x.astype(jnp.float32), axis=(1, 2))  # AdaptiveAvgPool2d((1,1))
    # TODO(synk): Dropout(p=0.5) is identity in eval mode; training dropout omitted.
    # Final FC is 2x2048 @ 2048x3: plain jnp dot (MXU-tile padding would be waste).
    logits = feats @ params["fc"]["w"].T + params["fc"]["b"]
    return logits


if __name__ == "__main__":
    key = jax.random.PRNGKey(0)
    # 75x75 is the minimum spatial size the inception_v3 graph supports.
    x = jax.random.normal(key, (2, 3, 75, 75), jnp.float32)
    params = init_inception_transfer_params(num_class=3, seed=0)
    fwd = jax.jit(inception_transfer_forward)
    out = jax.block_until_ready(fwd(params, x))
    assert out.shape == (2, 3), out.shape
    assert bool(jnp.all(jnp.isfinite(out)))
    print("KERNEL_OK")
</pallas_src>

<mosaic_0001>
module attributes {stable_mosaic.version = 11 : i64} {
  func.func @_mm_bias_kernel(%arg0: i32, %arg1: i32, %arg2: memref<1376x32xbf16, #tpu.memory_space<vmem>>, %arg3: memref<32x128xbf16, #tpu.memory_space<vmem>>, %arg4: memref<1x128xf32, #tpu.memory_space<vmem>>, %arg5: memref<1376x128xbf16, #tpu.memory_space<vmem>>) attributes {dimension_semantics = [#tpu.dimension_semantics<parallel>, #tpu.dimension_semantics<parallel>], iteration_bounds = array<i64: 2, 1>, scalar_prefetch = 0 : i64, scratch_operands = 0 : i64, tpu.core_type = #tpu.core_type<tc>, window_params = [{transform_indices = @transform_0, window_bounds = array<i64: 1376, 32>}, {transform_indices = @transform_1, window_bounds = array<i64: 32, 128>}, {transform_indices = @transform_2, window_bounds = array<i64: 1, 128>}, {transform_indices = @transform_3, window_bounds = array<i64: 1376, 128>}]} {
    %c0 = arith.constant 0 : index
    %c0_0 = arith.constant 0 : index
    %0 = vector.load %arg2[%c0, %c0_0] : memref<1376x32xbf16, #tpu.memory_space<vmem>>, vector<1376x32xbf16>
    %c0_1 = arith.constant 0 : index
    %c0_2 = arith.constant 0 : index
    %1 = vector.load %arg3[%c0_1, %c0_2] : memref<32x128xbf16, #tpu.memory_space<vmem>>, vector<32x128xbf16>
    %cst = arith.constant dense<0.000000e+00> : vector<1376x128xf32>
    %2 = tpu.matmul %0, %1, %cst {dimension_numbers = #tpu.dot_dimension_numbers<[1], [0], [0], [1], [0, 0, 1, 1], [], []>} : vector<1376x32xbf16>, vector<32x128xbf16>, vector<1376x128xf32> -> vector<1376x128xf32>
    %c0_3 = arith.constant 0 : index
    %c0_4 = arith.constant 0 : index
    %3 = vector.load %arg4[%c0_3, %c0_4] : memref<1x128xf32, #tpu.memory_space<vmem>>, vector<1x128xf32>
    %4 = vector.broadcast %3 : vector<1x128xf32> to vector<1376x128xf32>
    %5 = arith.addf %2, %4 : vector<1376x128xf32>
    %cst_5 = arith.constant 0.000000e+00 : f32
    %6 = vector.broadcast %cst_5 : f32 to vector<1376x128xf32>
    %7 = arith.maximumf %5, %6 : vector<1376x128xf32>
    %8 = arith.truncf %7 : vector<1376x128xf32> to vector<1376x128xbf16>
    %c0_6 = arith.constant 0 : index
    %c0_7 = arith.constant 0 : index
    %9 = vector.load %arg5[%c0_6, %c0_7] : memref<1376x128xbf16, #tpu.memory_space<vmem>>, vector<1376x128xbf16>
    tpu.vector_store %arg5[%c0_6, %c0_7], %8 {strides = array<i32>} : memref<1376x128xbf16, #tpu.memory_space<vmem>>, vector<1376x128xbf16>,
    return
  }
  func.func @transform_0(%arg0: i32, %arg1: i32) -> (i32, i32) {
    %c0_i32 = arith.constant 0 : i32
    %c0_i32_0 = arith.constant 0 : i32
    return %arg0, %c0_i32 : i32, i32
  }
  func.func @transform_1(%arg0: i32, %arg1: i32) -> (i32, i32) {
    %c0_i32 = arith.constant 0 : i32
    %c0_i32_0 = arith.constant 0 : i32
    return %c0_i32, %arg1 : i32, i32
  }
  func.func @transform_2(%arg0: i32, %arg1: i32) -> (i32, i32) {
    %c0_i32 = arith.constant 0 : i32
    %c0_i32_0 = arith.constant 0 : i32
    return %c0_i32, %arg1 : i32, i32
  }
  func.func @transform_3(%arg0: i32, %arg1: i32) -> (i32, i32) {
    %c0_i32 = arith.constant 0 : i32
    return %arg0, %arg1 : i32, i32
  }
}

module attributes {stable_mosaic.version = 11 : i64} {
  func.func @_mm_bias_kernel(%arg0: i32, %arg1: i32, %arg2: memref<1232x288xbf16, #tpu.memory_space<vmem>>, %arg3: memref<288x128xbf16, #tpu.memory_space<vmem>>, %arg4: memref<1x128xf32, #tpu.memory_space<vmem>>, %arg5: memref<1232x128xbf16, #tpu.memory_space<vmem>>) attributes {dimension_semantics = [#tpu.dimension_semantics<parallel>, #tpu.dimension_semantics<parallel>], iteration_bounds = array<i64: 2, 1>, scalar_prefetch = 0 : i64, scratch_operands = 0 : i64, tpu.core_type = #tpu.core_type<tc>, window_params = [{transform_indices = @transform_0, window_bounds = array<i64: 1232, 288>}, {transform_indices = @transform_1, window_bounds = array<i64: 288, 128>}, {transform_indices = @transform_2, window_bounds = array<i64: 1, 128>}, {transform_indices = @transform_3, window_bounds = array<i64: 1232, 128>}]} {
    %c0 = arith.constant 0 : index
    %c0_0 = arith.constant 0 : index
    %0 = vector.load %arg2[%c0, %c0_0] : memref<1232x288xbf16, #tpu.memory_space<vmem>>, vector<1232x288xbf16>
    %c0_1 = arith.constant 0 : index
    %c0_2 = arith.constant 0 : index
    %1 = vector.load %arg3[%c0_1, %c0_2] : memref<288x128xbf16, #tpu.memory_space<vmem>>, vector<288x128xbf16>
    %cst = arith.constant dense<0.000000e+00> : vector<1232x128xf32>
    %2 = tpu.matmul %0, %1, %cst {dimension_numbers = #tpu.dot_dimension_numbers<[1], [0], [0], [1], [0, 0, 1, 1], [], []>} : vector<1232x288xbf16>, vector<288x128xbf16>, vector<1232x128xf32> -> vector<1232x128xf32>
    %c0_3 = arith.constant 0 : index
    %c0_4 = arith.constant 0 : index
    %3 = vector.load %arg4[%c0_3, %c0_4] : memref<1x128xf32, #tpu.memory_space<vmem>>, vector<1x128xf32>
    %4 = vector.broadcast %3 : vector<1x128xf32> to vector<1232x128xf32>
    %5 = arith.addf %2, %4 : vector<1232x128xf32>
    %cst_5 = arith.constant 0.000000e+00 : f32
    %6 = vector.broadcast %cst_5 : f32 to vector<1232x128xf32>
    %7 = arith.maximumf %5, %6 : vector<1232x128xf32>
    %8 = arith.truncf %7 : vector<1232x128xf32> to vector<1232x128xbf16>
    %c0_6 = arith.constant 0 : index
    %c0_7 = arith.constant 0 : index
    %9 = vector.load %arg5[%c0_6, %c0_7] : memref<1232x128xbf16, #tpu.memory_space<vmem>>, vector<1232x128xbf16>
    tpu.vector_store %arg5[%c0_6, %c0_7], %8 {strides = array<i32>} : memref<1232x128xbf16, #tpu.memory_space<vmem>>, vector<1232x128xbf16>,
    return
  }
  func.func @transform_0(%arg0: i32, %arg1: i32) -> (i32, i32) {
    %c0_i32 = arith.constant 0 : i32
    %c0_i32_0 = arith.constant 0 : i32
    return %arg0, %c0_i32 : i32, i32
  }
  func.func @transform_1(%arg0: i32, %arg1: i32) -> (i32, i32) {
    %c0_i32 = arith.constant 0 : i32
    %c0_i32_0 = arith.constant 0 : i32
    return %c0_i32, %arg1 : i32, i32
  }
  func.func @transform_2(%arg0: i32, %arg1: i32) -> (i32, i32) {
    %c0_i32 = arith.constant 0 : i32
    %c0_i32_0 = arith.constant 0 : i32
    return %c0_i32, %arg1 : i32, i32
  }
  func.func @transform_3(%arg0: i32, %arg1: i32) -> (i32, i32) {
    %c0_i32 = arith.constant 0 : i32
    return %arg0, %arg1 : i32, i32
  }
}

module attributes {stable_mosaic.version = 11 : i64} {
  func.func @_mm_bias_kernel(%arg0: i32, %arg1: i32, %arg2: memref<304x64xbf16, #tpu.memory_space<vmem>>, %arg3: memref<64x128xbf16, #tpu.memory_space<vmem>>, %arg4: memref<1x128xf32, #tpu.memory_space<vmem>>, %arg5: memref<304x128xbf16, #tpu.memory_space<vmem>>) attributes {dimension_semantics = [#tpu.dimension_semantics<parallel>, #tpu.dimension_semantics<parallel>], iteration_bounds = array<i64: 2, 1>, scalar_prefetch = 0 : i64, scratch_operands = 0 : i64, tpu.core_type = #tpu.core_type<tc>, window_params = [{transform_indices = @transform_0, window_bounds = array<i64: 304, 64>}, {transform_indices = @transform_1, window_bounds = array<i64: 64, 128>}, {transform_indices = @transform_2, window_bounds = array<i64: 1, 128>}, {transform_indices = @transform_3, window_bounds = array<i64: 304, 128>}]} {
    %c0 = arith.constant 0 : index
    %c0_0 = arith.constant 0 : index
    %0 = vector.load %arg2[%c0, %c0_0] : memref<304x64xbf16, #tpu.memory_space<vmem>>, vector<304x64xbf16>
    %c0_1 = arith.constant 0 : index
    %c0_2 = arith.constant 0 : index
    %1 = vector.load %arg3[%c0_1, %c0_2] : memref<64x128xbf16, #tpu.memory_space<vmem>>, vector<64x128xbf16>
    %cst = arith.constant dense<0.000000e+00> : vector<304x128xf32>
    %2 = tpu.matmul %0, %1, %cst {dimension_numbers = #tpu.dot_dimension_numbers<[1], [0], [0], [1], [0, 0, 1, 1], [], []>} : vector<304x64xbf16>, vector<64x128xbf16>, vector<304x128xf32> -> vector<304x128xf32>
    %c0_3 = arith.constant 0 : index
    %c0_4 = arith.constant 0 : index
    %3 = vector.load %arg4[%c0_3, %c0_4] : memref<1x128xf32, #tpu.memory_space<vmem>>, vector<1x128xf32>
    %4 = vector.broadcast %3 : vector<1x128xf32> to vector<304x128xf32>
    %5 = arith.addf %2, %4 : vector<304x128xf32>
    %cst_5 = arith.constant 0.000000e+00 : f32
    %6 = vector.broadcast %cst_5 : f32 to vector<304x128xf32>
    %7 = arith.maximumf %5, %6 : vector<304x128xf32>
    %8 = arith.truncf %7 : vector<304x128xf32> to vector<304x128xbf16>
    %c0_6 = arith.constant 0 : index
    %c0_7 = arith.constant 0 : index
    %9 = vector.load %arg5[%c0_6, %c0_7] : memref<304x128xbf16, #tpu.memory_space<vmem>>, vector<304x128xbf16>
    tpu.vector_store %arg5[%c0_6, %c0_7], %8 {strides = array<i32>} : memref<304x128xbf16, #tpu.memory_space<vmem>>, vector<304x128xbf16>,
    return
  }
  func.func @transform_0(%arg0: i32, %arg1: i32) -> (i32, i32) {
    %c0_i32 = arith.constant 0 : i32
    %c0_i32_0 = arith.constant 0 : i32
    return %arg0, %c0_i32 : i32, i32
  }
  func.func @transform_1(%arg0: i32, %arg1: i32) -> (i32, i32) {
    %c0_i32 = arith.constant 0 : i32
    %c0_i32_0 = arith.constant 0 : i32
    return %c0_i32, %arg1 : i32, i32
  }
  func.func @transform_2(%arg0: i32, %arg1: i32) -> (i32, i32) {
    %c0_i32 = arith.constant 0 : i32
    %c0_i32_0 = arith.constant 0 : i32
    return %c0_i32, %arg1 : i32, i32
  }
  func.func @transform_3(%arg0: i32, %arg1: i32) -> (i32, i32) {
    %c0_i32 = arith.constant 0 : i32
    return %arg0, %arg1 : i32, i32
  }
}

module attributes {stable_mosaic.version = 11 : i64} {
  func.func @_mm_bias_kernel(%arg0: i32, %arg1: i32, %arg2: memref<240x720xbf16, #tpu.memory_space<vmem>>, %arg3: memref<720x256xbf16, #tpu.memory_space<vmem>>, %arg4: memref<1x256xf32, #tpu.memory_space<vmem>>, %arg5: memref<240x256xbf16, #tpu.memory_space<vmem>>) attributes {dimension_semantics = [#tpu.dimension_semantics<parallel>, #tpu.dimension_semantics<parallel>], iteration_bounds = array<i64: 2, 1>, scalar_prefetch = 0 : i64, scratch_operands = 0 : i64, tpu.core_type = #tpu.core_type<tc>, window_params = [{transform_indices = @transform_0, window_bounds = array<i64: 240, 720>}, {transform_indices = @transform_1, window_bounds = array<i64: 720, 256>}, {transform_indices = @transform_2, window_bounds = array<i64: 1, 256>}, {transform_indices = @transform_3, window_bounds = array<i64: 240, 256>}]} {
    %c0 = arith.constant 0 : index
    %c0_0 = arith.constant 0 : index
    %0 = vector.load %arg2[%c0, %c0_0] : memref<240x720xbf16, #tpu.memory_space<vmem>>, vector<240x720xbf16>
    %c0_1 = arith.constant 0 : index
    %c0_2 = arith.constant 0 : index
    %1 = vector.load %arg3[%c0_1, %c0_2] : memref<720x256xbf16, #tpu.memory_space<vmem>>, vector<720x256xbf16>
    %cst = arith.constant dense<0.000000e+00> : vector<240x256xf32>
    %2 = tpu.matmul %0, %1, %cst {dimension_numbers = #tpu.dot_dimension_numbers<[1], [0], [0], [1], [0, 0, 1, 1], [], []>} : vector<240x720xbf16>, vector<720x256xbf16>, vector<240x256xf32> -> vector<240x256xf32>
    %c0_3 = arith.constant 0 : index
    %c0_4 = arith.constant 0 : index
    %3 = vector.load %arg4[%c0_3, %c0_4] : memref<1x256xf32, #tpu.memory_space<vmem>>, vector<1x256xf32>
    %4 = vector.broadcast %3 : vector<1x256xf32> to vector<240x256xf32>
    %5 = arith.addf %2, %4 : vector<240x256xf32>
    %cst_5 = arith.constant 0.000000e+00 : f32
    %6 = vector.broadcast %cst_5 : f32 to vector<240x256xf32>
    %7 = arith.maximumf %5, %6 : vector<240x256xf32>
    %8 = arith.truncf %7 : vector<240x256xf32> to vector<240x256xbf16>
    %c0_6 = arith.constant 0 : index
    %c0_7 = arith.constant 0 : index
    %9 = vector.load %arg5[%c0_6, %c0_7] : memref<240x256xbf16, #tpu.memory_space<vmem>>, vector<240x256xbf16>
    tpu.vector_store %arg5[%c0_6, %c0_7], %8 {strides = array<i32>} : memref<240x256xbf16, #tpu.memory_space<vmem>>, vector<240x256xbf16>,
    return
  }
  func.func @transform_0(%arg0: i32, %arg1: i32) -> (i32, i32) {
    %c0_i32 = arith.constant 0 : i32
    %c0_i32_0 = arith.constant 0 : i32
    return %arg0, %c0_i32 : i32, i32
  }
  func.func @transform_1(%arg0: i32, %arg1: i32) -> (i32, i32) {
    %c0_i32 = arith.constant 0 : i32
    %c0_i32_0 = arith.constant 0 : i32
    return %c0_i32, %arg1 : i32, i32
  }
  func.func @transform_2(%arg0: i32, %arg1: i32) -> (i32, i32) {
    %c0_i32 = arith.constant 0 : i32
    %c0_i32_0 = arith.constant 0 : i32
    return %c0_i32, %arg1 : i32, i32
  }
  func.func @transform_3(%arg0: i32, %arg1: i32) -> (i32, i32) {
    %c0_i32 = arith.constant 0 : i32
    return %arg0, %arg1 : i32, i32
  }
}

module attributes {stable_mosaic.version = 11 : i64} {
  func.func @_mm_bias_kernel(%arg0: i32, %arg1: i32, %arg2: memref<112x192xbf16, #tpu.memory_space<vmem>>, %arg3: memref<192x256xbf16, #tpu.memory_space<vmem>>, %arg4: memref<1x256xf32, #tpu.memory_space<vmem>>, %arg5: memref<112x256xbf16, #tpu.memory_space<vmem>>) attributes {dimension_semantics = [#tpu.dimension_semantics<parallel>, #tpu.dimension_semantics<parallel>], iteration_bounds = array<i64: 1, 1>, scalar_prefetch = 0 : i64, scratch_operands = 0 : i64, tpu.core_type = #tpu.core_type<tc>, window_params = [{transform_indices = @transform_0, window_bounds = array<i64: 112, 192>}, {transform_indices = @transform_1, window_bounds = array<i64: 192, 256>}, {transform_indices = @transform_2, window_bounds = array<i64: 1, 256>}, {transform_indices = @transform_3, window_bounds = array<i64: 112, 256>}]} {
    %c0 = arith.constant 0 : index
    %c0_0 = arith.constant 0 : index
    %0 = vector.load %arg2[%c0, %c0_0] : memref<112x192xbf16, #tpu.memory_space<vmem>>, vector<112x192xbf16>
    %c0_1 = arith.constant 0 : index
    %c0_2 = arith.constant 0 : index
    %1 = vector.load %arg3[%c0_1, %c0_2] : memref<192x256xbf16, #tpu.memory_space<vmem>>, vector<192x256xbf16>
    %cst = arith.constant dense<0.000000e+00> : vector<112x256xf32>
    %2 = tpu.matmul %0, %1, %cst {dimension_numbers = #tpu.dot_dimension_numbers<[1], [0], [0], [1], [0, 0, 1, 1], [], []>} : vector<112x192xbf16>, vector<192x256xbf16>, vector<112x256xf32> -> vector<112x256xf32>
    %c0_3 = arith.constant 0 : index
    %c0_4 = arith.constant 0 : index
    %3 = vector.load %arg4[%c0_3, %c0_4] : memref<1x256xf32, #tpu.memory_space<vmem>>, vector<1x256xf32>
    %4 = vector.broadcast %3 : vector<1x256xf32> to vector<112x256xf32>
    %5 = arith.addf %2, %4 : vector<112x256xf32>
    %cst_5 = arith.constant 0.000000e+00 : f32
    %6 = vector.broadcast %cst_5 : f32 to vector<112x256xf32>
    %7 = arith.maximumf %5, %6 : vector<112x256xf32>
    %8 = arith.truncf %7 : vector<112x256xf32> to vector<112x256xbf16>
    %c0_6 = arith.constant 0 : index
    %c0_7 = arith.constant 0 : index
    %9 = vector.load %arg5[%c0_6, %c0_7] : memref<112x256xbf16, #tpu.memory_space<vmem>>, vector<112x256xbf16>
    tpu.vector_store %arg5[%c0_6, %c0_7], %8 {strides = array<i32>} : memref<112x256xbf16, #tpu.memory_space<vmem>>, vector<112x256xbf16>,
    return
  }
  func.func @transform_0(%arg0: i32, %arg1: i32) -> (i32, i32) {
    %c0_i32 = arith.constant 0 : i32
    %c0_i32_0 = arith.constant 0 : i32
    return %arg0, %c0_i32 : i32, i32
  }
  func.func @transform_1(%arg0: i32, %arg1: i32) -> (i32, i32) {
    %c0_i32 = arith.constant 0 : i32
    %c0_i32_0 = arith.constant 0 : i32
    return %c0_i32, %arg1 : i32, i32
  }
  func.func @transform_2(%arg0: i32, %arg1: i32) -> (i32, i32) {
    %c0_i32 = arith.constant 0 : i32
    %c0_i32_0 = arith.constant 0 : i32
    return %c0_i32, %arg1 : i32, i32
  }
  func.func @transform_3(%arg0: i32, %arg1: i32) -> (i32, i32) {
    %c0_i32 = arith.constant 0 : i32
    return %arg0, %arg1 : i32, i32
  }
}

module attributes {stable_mosaic.version = 11 : i64} {
  func.func @_mm_bias_kernel(%arg0: i32, %arg1: i32, %arg2: memref<112x1200xbf16, #tpu.memory_space<vmem>>, %arg3: memref<1200x128xbf16, #tpu.memory_space<vmem>>, %arg4: memref<1x128xf32, #tpu.memory_space<vmem>>, %arg5: memref<112x128xbf16, #tpu.memory_space<vmem>>) attributes {dimension_semantics = [#tpu.dimension_semantics<parallel>, #tpu.dimension_semantics<parallel>], iteration_bounds = array<i64: 1, 1>, scalar_prefetch = 0 : i64, scratch_operands = 0 : i64, tpu.core_type = #tpu.core_type<tc>, window_params = [{transform_indices = @transform_0, window_bounds = array<i64: 112, 1200>}, {transform_indices = @transform_1, window_bounds = array<i64: 1200, 128>}, {transform_indices = @transform_2, window_bounds = array<i64: 1, 128>}, {transform_indices = @transform_3, window_bounds = array<i64: 112, 128>}]} {
    %c0 = arith.constant 0 : index
    %c0_0 = arith.constant 0 : index
    %0 = vector.load %arg2[%c0, %c0_0] : memref<112x1200xbf16, #tpu.memory_space<vmem>>, vector<112x1200xbf16>
    %c0_1 = arith.constant 0 : index
    %c0_2 = arith.constant 0 : index
    %1 = vector.load %arg3[%c0_1, %c0_2] : memref<1200x128xbf16, #tpu.memory_space<vmem>>, vector<1200x128xbf16>
    %cst = arith.constant dense<0.000000e+00> : vector<112x128xf32>
    %2 = tpu.matmul %0, %1, %cst {dimension_numbers = #tpu.dot_dimension_numbers<[1], [0], [0], [1], [0, 0, 1, 1], [], []>} : vector<112x1200xbf16>, vector<1200x128xbf16>, vector<112x128xf32> -> vector<112x128xf32>
    %c0_3 = arith.constant 0 : index
    %c0_4 = arith.constant 0 : index
    %3 = vector.load %arg4[%c0_3, %c0_4] : memref<1x128xf32, #tpu.memory_space<vmem>>, vector<1x128xf32>
    %4 = vector.broadcast %3 : vector<1x128xf32> to vector<112x128xf32>
    %5 = arith.addf %2, %4 : vector<112x128xf32>
    %cst_5 = arith.constant 0.000000e+00 : f32
    %6 = vector.broadcast %cst_5 : f32 to vector<112x128xf32>
    %7 = arith.maximumf %5, %6 : vector<112x128xf32>
    %8 = arith.truncf %7 : vector<112x128xf32> to vector<112x128xbf16>
    %c0_6 = arith.constant 0 : index
    %c0_7 = arith.constant 0 : index
    %9 = vector.load %arg5[%c0_6, %c0_7] : memref<112x128xbf16, #tpu.memory_space<vmem>>, vector<112x128xbf16>
    tpu.vector_store %arg5[%c0_6, %c0_7], %8 {strides = array<i32>} : memref<112x128xbf16, #tpu.memory_space<vmem>>, vector<112x128xbf16>,
    return
  }
  func.func @transform_0(%arg0: i32, %arg1: i32) -> (i32, i32) {
    %c0_i32 = arith.constant 0 : i32
    %c0_i32_0 = arith.constant 0 : i32
    return %arg0, %c0_i32 : i32, i32
  }
  func.func @transform_1(%arg0: i32, %arg1: i32) -> (i32, i32) {
    %c0_i32 = arith.constant 0 : i32
    %c0_i32_0 = arith.constant 0 : i32
    return %c0_i32, %arg1 : i32, i32
  }
  func.func @transform_2(%arg0: i32, %arg1: i32) -> (i32, i32) {
    %c0_i32 = arith.constant 0 : i32
    %c0_i32_0 = arith.constant 0 : i32
    return %c0_i32, %arg1 : i32, i32
  }
  func.func @transform_3(%arg0: i32, %arg1: i32) -> (i32, i32) {
    %c0_i32 = arith.constant 0 : i32
    return %arg0, %arg1 : i32, i32
  }
}

module attributes {stable_mosaic.version = 11 : i64} {
  func.func @_mm_bias_kernel(%arg0: i32, %arg1: i32, %arg2: memref<112x576xbf16, #tpu.memory_space<vmem>>, %arg3: memref<576x128xbf16, #tpu.memory_space<vmem>>, %arg4: memref<1x128xf32, #tpu.memory_space<vmem>>, %arg5: memref<112x128xbf16, #tpu.memory_space<vmem>>) attributes {dimension_semantics = [#tpu.dimension_semantics<parallel>, #tpu.dimension_semantics<parallel>], iteration_bounds = array<i64: 1, 1>, scalar_prefetch = 0 : i64, scratch_operands = 0 : i64, tpu.core_type = #tpu.core_type<tc>, window_params = [{transform_indices = @transform_0, window_bounds = array<i64: 112, 576>}, {transform_indices = @transform_1, window_bounds = array<i64: 576, 128>}, {transform_indices = @transform_2, window_bounds = array<i64: 1, 128>}, {transform_indices = @transform_3, window_bounds = array<i64: 112, 128>}]} {
    %c0 = arith.constant 0 : index
    %c0_0 = arith.constant 0 : index
    %0 = vector.load %arg2[%c0, %c0_0] : memref<112x576xbf16, #tpu.memory_space<vmem>>, vector<112x576xbf16>
    %c0_1 = arith.constant 0 : index
    %c0_2 = arith.constant 0 : index
    %1 = vector.load %arg3[%c0_1, %c0_2] : memref<576x128xbf16, #tpu.memory_space<vmem>>, vector<576x128xbf16>
    %cst = arith.constant dense<0.000000e+00> : vector<112x128xf32>
    %2 = tpu.matmul %0, %1, %cst {dimension_numbers = #tpu.dot_dimension_numbers<[1], [0], [0], [1], [0, 0, 1, 1], [], []>} : vector<112x576xbf16>, vector<576x128xbf16>, vector<112x128xf32> -> vector<112x128xf32>
    %c0_3 = arith.constant 0 : index
    %c0_4 = arith.constant 0 : index
    %3 = vector.load %arg4[%c0_3, %c0_4] : memref<1x128xf32, #tpu.memory_space<vmem>>, vector<1x128xf32>
    %4 = vector.broadcast %3 : vector<1x128xf32> to vector<112x128xf32>
    %5 = arith.addf %2, %4 : vector<112x128xf32>
    %cst_5 = arith.constant 0.000000e+00 : f32
    %6 = vector.broadcast %cst_5 : f32 to vector<112x128xf32>
    %7 = arith.maximumf %5, %6 : vector<112x128xf32>
    %8 = arith.truncf %7 : vector<112x128xf32> to vector<112x128xbf16>
    %c0_6 = arith.constant 0 : index
    %c0_7 = arith.constant 0 : index
    %9 = vector.load %arg5[%c0_6, %c0_7] : memref<112x128xbf16, #tpu.memory_space<vmem>>, vector<112x128xbf16>
    tpu.vector_store %arg5[%c0_6, %c0_7], %8 {strides = array<i32>} : memref<112x128xbf16, #tpu.memory_space<vmem>>, vector<112x128xbf16>,
    return
  }
  func.func @transform_0(%arg0: i32, %arg1: i32) -> (i32, i32) {
    %c0_i32 = arith.constant 0 : i32
    %c0_i32_0 = arith.constant 0 : i32
    return %arg0, %c0_i32 : i32, i32
  }
  func.func @transform_1(%arg0: i32, %arg1: i32) -> (i32, i32) {
    %c0_i32 = arith.constant 0 : i32
    %c0_i32_0 = arith.constant 0 : i32
    return %c0_i32, %arg1 : i32, i32
  }
  func.func @transform_2(%arg0: i32, %arg1: i32) -> (i32, i32) {
    %c0_i32 = arith.constant 0 : i32
    %c0_i32_0 = arith.constant 0 : i32
    return %c0_i32, %arg1 : i32, i32
  }
  func.func @transform_3(%arg0: i32, %arg1: i32) -> (i32, i32) {
    %c0_i32 = arith.constant 0 : i32
    return %arg0, %arg1 : i32, i32
  }
}

module attributes {stable_mosaic.version = 11 : i64} {
  func.func @_mm_bias_kernel(%arg0: i32, %arg1: i32, %arg2: memref<112x864xbf16, #tpu.memory_space<vmem>>, %arg3: memref<864x128xbf16, #tpu.memory_space<vmem>>, %arg4: memref<1x128xf32, #tpu.memory_space<vmem>>, %arg5: memref<112x128xbf16, #tpu.memory_space<vmem>>) attributes {dimension_semantics = [#tpu.dimension_semantics<parallel>, #tpu.dimension_semantics<parallel>], iteration_bounds = array<i64: 1, 1>, scalar_prefetch = 0 : i64, scratch_operands = 0 : i64, tpu.core_type = #tpu.core_type<tc>, window_params = [{transform_indices = @transform_0, window_bounds = array<i64: 112, 864>}, {transform_indices = @transform_1, window_bounds = array<i64: 864, 128>}, {transform_indices = @transform_2, window_bounds = array<i64: 1, 128>}, {transform_indices = @transform_3, window_bounds = array<i64: 112, 128>}]} {
    %c0 = arith.constant 0 : index
    %c0_0 = arith.constant 0 : index
    %0 = vector.load %arg2[%c0, %c0_0] : memref<112x864xbf16, #tpu.memory_space<vmem>>, vector<112x864xbf16>
    %c0_1 = arith.constant 0 : index
    %c0_2 = arith.constant 0 : index
    %1 = vector.load %arg3[%c0_1, %c0_2] : memref<864x128xbf16, #tpu.memory_space<vmem>>, vector<864x128xbf16>
    %cst = arith.constant dense<0.000000e+00> : vector<112x128xf32>
    %2 = tpu.matmul %0, %1, %cst {dimension_numbers = #tpu.dot_dimension_numbers<[1], [0], [0], [1], [0, 0, 1, 1], [], []>} : vector<112x864xbf16>, vector<864x128xbf16>, vector<112x128xf32> -> vector<112x128xf32>
    %c0_3 = arith.constant 0 : index
    %c0_4 = arith.constant 0 : index
    %3 = vector.load %arg4[%c0_3, %c0_4] : memref<1x128xf32, #tpu.memory_space<vmem>>, vector<1x128xf32>
    %4 = vector.broadcast %3 : vector<1x128xf32> to vector<112x128xf32>
    %5 = arith.addf %2, %4 : vector<112x128xf32>
    %cst_5 = arith.constant 0.000000e+00 : f32
    %6 = vector.broadcast %cst_5 : f32 to vector<112x128xf32>
    %7 = arith.maximumf %5, %6 : vector<112x128xf32>
    %8 = arith.truncf %7 : vector<112x128xf32> to vector<112x128xbf16>
    %c0_6 = arith.constant 0 : index
    %c0_7 = arith.constant 0 : index
    %9 = vector.load %arg5[%c0_6, %c0_7] : memref<112x128xbf16, #tpu.memory_space<vmem>>, vector<112x128xbf16>
    tpu.vector_store %arg5[%c0_6, %c0_7], %8 {strides = array<i32>} : memref<112x128xbf16, #tpu.memory_space<vmem>>, vector<112x128xbf16>,
    return
  }
  func.func @transform_0(%arg0: i32, %arg1: i32) -> (i32, i32) {
    %c0_i32 = arith.constant 0 : i32
    %c0_i32_0 = arith.constant 0 : i32
    return %arg0, %c0_i32 : i32, i32
  }
  func.func @transform_1(%arg0: i32, %arg1: i32) -> (i32, i32) {
    %c0_i32 = arith.constant 0 : i32
    %c0_i32_0 = arith.constant 0 : i32
    return %c0_i32, %arg1 : i32, i32
  }
  func.func @transform_2(%arg0: i32, %arg1: i32) -> (i32, i32) {
    %c0_i32 = arith.constant 0 : i32
    %c0_i32_0 = arith.constant 0 : i32
    return %c0_i32, %arg1 : i32, i32
  }
  func.func @transform_3(%arg0: i32, %arg1: i32) -> (i32, i32) {
    %c0_i32 = arith.constant 0 : i32
    return %arg0, %arg1 : i32, i32
  }
}

module attributes {stable_mosaic.version = 11 : i64} {
  func.func @_mm_bias_kernel(%arg0: i32, %arg1: i32, %arg2: memref<112x256xbf16, #tpu.memory_space<vmem>>, %arg3: memref<256x256xbf16, #tpu.memory_space<vmem>>, %arg4: memref<1x256xf32, #tpu.memory_space<vmem>>, %arg5: memref<112x256xbf16, #tpu.memory_space<vmem>>) attributes {dimension_semantics = [#tpu.dimension_semantics<parallel>, #tpu.dimension_semantics<parallel>], iteration_bounds = array<i64: 1, 1>, scalar_prefetch = 0 : i64, scratch_operands = 0 : i64, tpu.core_type = #tpu.core_type<tc>, window_params = [{transform_indices = @transform_0, window_bounds = array<i64: 112, 256>}, {transform_indices = @transform_1, window_bounds = array<i64: 256, 256>}, {transform_indices = @transform_2, window_bounds = array<i64: 1, 256>}, {transform_indices = @transform_3, window_bounds = array<i64: 112, 256>}]} {
    %c0 = arith.constant 0 : index
    %c0_0 = arith.constant 0 : index
    %0 = vector.load %arg2[%c0, %c0_0] : memref<112x256xbf16, #tpu.memory_space<vmem>>, vector<112x256xbf16>
    %c0_1 = arith.constant 0 : index
    %c0_2 = arith.constant 0 : index
    %1 = vector.load %arg3[%c0_1, %c0_2] : memref<256x256xbf16, #tpu.memory_space<vmem>>, vector<256x256xbf16>
    %cst = arith.constant dense<0.000000e+00> : vector<112x256xf32>
    %2 = tpu.matmul %0, %1, %cst {dimension_numbers = #tpu.dot_dimension_numbers<[1], [0], [0], [1], [0, 0, 1, 1], [], []>} : vector<112x256xbf16>, vector<256x256xbf16>, vector<112x256xf32> -> vector<112x256xf32>
    %c0_3 = arith.constant 0 : index
    %c0_4 = arith.constant 0 : index
    %3 = vector.load %arg4[%c0_3, %c0_4] : memref<1x256xf32, #tpu.memory_space<vmem>>, vector<1x256xf32>
    %4 = vector.broadcast %3 : vector<1x256xf32> to vector<112x256xf32>
    %5 = arith.addf %2, %4 : vector<112x256xf32>
    %cst_5 = arith.constant 0.000000e+00 : f32
    %6 = vector.broadcast %cst_5 : f32 to vector<112x256xf32>
    %7 = arith.maximumf %5, %6 : vector<112x256xf32>
    %8 = arith.truncf %7 : vector<112x256xf32> to vector<112x256xbf16>
    %c0_6 = arith.constant 0 : index
    %c0_7 = arith.constant 0 : index
    %9 = vector.load %arg5[%c0_6, %c0_7] : memref<112x256xbf16, #tpu.memory_space<vmem>>, vector<112x256xbf16>
    tpu.vector_store %arg5[%c0_6, %c0_7], %8 {strides = array<i32>} : memref<112x256xbf16, #tpu.memory_space<vmem>>, vector<112x256xbf16>,
    return
  }
  func.func @transform_0(%arg0: i32, %arg1: i32) -> (i32, i32) {
    %c0_i32 = arith.constant 0 : i32
    %c0_i32_0 = arith.constant 0 : i32
    return %arg0, %c0_i32 : i32, i32
  }
  func.func @transform_1(%arg0: i32, %arg1: i32) -> (i32, i32) {
    %c0_i32 = arith.constant 0 : i32
    %c0_i32_0 = arith.constant 0 : i32
    return %c0_i32, %arg1 : i32, i32
  }
  func.func @transform_2(%arg0: i32, %arg1: i32) -> (i32, i32) {
    %c0_i32 = arith.constant 0 : i32
    %c0_i32_0 = arith.constant 0 : i32
    return %c0_i32, %arg1 : i32, i32
  }
  func.func @transform_3(%arg0: i32, %arg1: i32) -> (i32, i32) {
    %c0_i32 = arith.constant 0 : i32
    return %arg0, %arg1 : i32, i32
  }
}

module attributes {stable_mosaic.version = 11 : i64} {
  func.func @_mm_bias_kernel(%arg0: i32, %arg1: i32, %arg2: memref<112x256xbf16, #tpu.memory_space<vmem>>, %arg3: memref<256x128xbf16, #tpu.memory_space<vmem>>, %arg4: memref<1x128xf32, #tpu.memory_space<vmem>>, %arg5: memref<112x128xbf16, #tpu.memory_space<vmem>>) attributes {dimension_semantics = [#tpu.dimension_semantics<parallel>, #tpu.dimension_semantics<parallel>], iteration_bounds = array<i64: 1, 1>, scalar_prefetch = 0 : i64, scratch_operands = 0 : i64, tpu.core_type = #tpu.core_type<tc>, window_params = [{transform_indices = @transform_0, window_bounds = array<i64: 112, 256>}, {transform_indices = @transform_1, window_bounds = array<i64: 256, 128>}, {transform_indices = @transform_2, window_bounds = array<i64: 1, 128>}, {transform_indices = @transform_3, window_bounds = array<i64: 112, 128>}]} {
    %c0 = arith.constant 0 : index
    %c0_0 = arith.constant 0 : index
    %0 = vector.load %arg2[%c0, %c0_0] : memref<112x256xbf16, #tpu.memory_space<vmem>>, vector<112x256xbf16>
    %c0_1 = arith.constant 0 : index
    %c0_2 = arith.constant 0 : index
    %1 = vector.load %arg3[%c0_1, %c0_2] : memref<256x128xbf16, #tpu.memory_space<vmem>>, vector<256x128xbf16>
    %cst = arith.constant dense<0.000000e+00> : vector<112x128xf32>
    %2 = tpu.matmul %0, %1, %cst {dimension_numbers = #tpu.dot_dimension_numbers<[1], [0], [0], [1], [0, 0, 1, 1], [], []>} : vector<112x256xbf16>, vector<256x128xbf16>, vector<112x128xf32> -> vector<112x128xf32>
    %c0_3 = arith.constant 0 : index
    %c0_4 = arith.constant 0 : index
    %3 = vector.load %arg4[%c0_3, %c0_4] : memref<1x128xf32, #tpu.memory_space<vmem>>, vector<1x128xf32>
    %4 = vector.broadcast %3 : vector<1x128xf32> to vector<112x128xf32>
    %5 = arith.addf %2, %4 : vector<112x128xf32>
    %cst_5 = arith.constant 0.000000e+00 : f32
    %6 = vector.broadcast %cst_5 : f32 to vector<112x128xf32>
    %7 = arith.maximumf %5, %6 : vector<112x128xf32>
    %8 = arith.truncf %7 : vector<112x128xf32> to vector<112x128xbf16>
    %c0_6 = arith.constant 0 : index
    %c0_7 = arith.constant 0 : index
    %9 = vector.load %arg5[%c0_6, %c0_7] : memref<112x128xbf16, #tpu.memory_space<vmem>>, vector<112x128xbf16>
    tpu.vector_store %arg5[%c0_6, %c0_7], %8 {strides = array<i32>} : memref<112x128xbf16, #tpu.memory_space<vmem>>, vector<112x128xbf16>,
    return
  }
  func.func @transform_0(%arg0: i32, %arg1: i32) -> (i32, i32) {
    %c0_i32 = arith.constant 0 : i32
    %c0_i32_0 = arith.constant 0 : i32
    return %arg0, %c0_i32 : i32, i32
  }
  func.func @transform_1(%arg0: i32, %arg1: i32) -> (i32, i32) {
    %c0_i32 = arith.constant 0 : i32
    %c0_i32_0 = arith.constant 0 : i32
    return %c0_i32, %arg1 : i32, i32
  }
  func.func @transform_2(%arg0: i32, %arg1: i32) -> (i32, i32) {
    %c0_i32 = arith.constant 0 : i32
    %c0_i32_0 = arith.constant 0 : i32
    return %c0_i32, %arg1 : i32, i32
  }
  func.func @transform_3(%arg0: i32, %arg1: i32) -> (i32, i32) {
    %c0_i32 = arith.constant 0 : i32
    return %arg0, %arg1 : i32, i32
  }
}

module attributes {stable_mosaic.version = 11 : i64} {
  func.func @_mm_bias_kernel(%arg0: i32, %arg1: i32, %arg2: memref<112x288xbf16, #tpu.memory_space<vmem>>, %arg3: memref<288x256xbf16, #tpu.memory_space<vmem>>, %arg4: memref<1x256xf32, #tpu.memory_space<vmem>>, %arg5: memref<112x256xbf16, #tpu.memory_space<vmem>>) attributes {dimension_semantics = [#tpu.dimension_semantics<parallel>, #tpu.dimension_semantics<parallel>], iteration_bounds = array<i64: 1, 1>, scalar_prefetch = 0 : i64, scratch_operands = 0 : i64, tpu.core_type = #tpu.core_type<tc>, window_params = [{transform_indices = @transform_0, window_bounds = array<i64: 112, 288>}, {transform_indices = @transform_1, window_bounds = array<i64: 288, 256>}, {transform_indices = @transform_2, window_bounds = array<i64: 1, 256>}, {transform_indices = @transform_3, window_bounds = array<i64: 112, 256>}]} {
    %c0 = arith.constant 0 : index
    %c0_0 = arith.constant 0 : index
    %0 = vector.load %arg2[%c0, %c0_0] : memref<112x288xbf16, #tpu.memory_space<vmem>>, vector<112x288xbf16>
    %c0_1 = arith.constant 0 : index
    %c0_2 = arith.constant 0 : index
    %1 = vector.load %arg3[%c0_1, %c0_2] : memref<288x256xbf16, #tpu.memory_space<vmem>>, vector<288x256xbf16>
    %cst = arith.constant dense<0.000000e+00> : vector<112x256xf32>
    %2 = tpu.matmul %0, %1, %cst {dimension_numbers = #tpu.dot_dimension_numbers<[1], [0], [0], [1], [0, 0, 1, 1], [], []>} : vector<112x288xbf16>, vector<288x256xbf16>, vector<112x256xf32> -> vector<112x256xf32>
    %c0_3 = arith.constant 0 : index
    %c0_4 = arith.constant 0 : index
    %3 = vector.load %arg4[%c0_3, %c0_4] : memref<1x256xf32, #tpu.memory_space<vmem>>, vector<1x256xf32>
    %4 = vector.broadcast %3 : vector<1x256xf32> to vector<112x256xf32>
    %5 = arith.addf %2, %4 : vector<112x256xf32>
    %cst_5 = arith.constant 0.000000e+00 : f32
    %6 = vector.broadcast %cst_5 : f32 to vector<112x256xf32>
    %7 = arith.maximumf %5, %6 : vector<112x256xf32>
    %8 = arith.truncf %7 : vector<112x256xf32> to vector<112x256xbf16>
    %c0_6 = arith.constant 0 : index
    %c0_7 = arith.constant 0 : index
    %9 = vector.load %arg5[%c0_6, %c0_7] : memref<112x256xbf16, #tpu.memory_space<vmem>>, vector<112x256xbf16>
    tpu.vector_store %arg5[%c0_6, %c0_7], %8 {strides = array<i32>} : memref<112x256xbf16, #tpu.memory_space<vmem>>, vector<112x256xbf16>,
    return
  }
  func.func @transform_0(%arg0: i32, %arg1: i32) -> (i32, i32) {
    %c0_i32 = arith.constant 0 : i32
    %c0_i32_0 = arith.constant 0 : i32
    return %arg0, %c0_i32 : i32, i32
  }
  func.func @transform_1(%arg0: i32, %arg1: i32) -> (i32, i32) {
    %c0_i32 = arith.constant 0 : i32
    %c0_i32_0 = arith.constant 0 : i32
    return %c0_i32, %arg1 : i32, i32
  }
  func.func @transform_2(%arg0: i32, %arg1: i32) -> (i32, i32) {
    %c0_i32 = arith.constant 0 : i32
    %c0_i32_0 = arith.constant 0 : i32
    return %c0_i32, %arg1 : i32, i32
  }
  func.func @transform_3(%arg0: i32, %arg1: i32) -> (i32, i32) {
    %c0_i32 = arith.constant 0 : i32
    return %arg0, %arg1 : i32, i32
  }
}

module attributes {stable_mosaic.version = 11 : i64} {
  func.func @_mm_bias_kernel(%arg0: i32, %arg1: i32, %arg2: memref<112x288xbf16, #tpu.memory_space<vmem>>, %arg3: memref<288x128xbf16, #tpu.memory_space<vmem>>, %arg4: memref<1x128xf32, #tpu.memory_space<vmem>>, %arg5: memref<112x128xbf16, #tpu.memory_space<vmem>>) attributes {dimension_semantics = [#tpu.dimension_semantics<parallel>, #tpu.dimension_semantics<parallel>], iteration_bounds = array<i64: 1, 1>, scalar_prefetch = 0 : i64, scratch_operands = 0 : i64, tpu.core_type = #tpu.core_type<tc>, window_params = [{transform_indices = @transform_0, window_bounds = array<i64: 112, 288>}, {transform_indices = @transform_1, window_bounds = array<i64: 288, 128>}, {transform_indices = @transform_2, window_bounds = array<i64: 1, 128>}, {transform_indices = @transform_3, window_bounds = array<i64: 112, 128>}]} {
    %c0 = arith.constant 0 : index
    %c0_0 = arith.constant 0 : index
    %0 = vector.load %arg2[%c0, %c0_0] : memref<112x288xbf16, #tpu.memory_space<vmem>>, vector<112x288xbf16>
    %c0_1 = arith.constant 0 : index
    %c0_2 = arith.constant 0 : index
    %1 = vector.load %arg3[%c0_1, %c0_2] : memref<288x128xbf16, #tpu.memory_space<vmem>>, vector<288x128xbf16>
    %cst = arith.constant dense<0.000000e+00> : vector<112x128xf32>
    %2 = tpu.matmul %0, %1, %cst {dimension_numbers = #tpu.dot_dimension_numbers<[1], [0], [0], [1], [0, 0, 1, 1], [], []>} : vector<112x288xbf16>, vector<288x128xbf16>, vector<112x128xf32> -> vector<112x128xf32>
    %c0_3 = arith.constant 0 : index
    %c0_4 = arith.constant 0 : index
    %3 = vector.load %arg4[%c0_3, %c0_4] : memref<1x128xf32, #tpu.memory_space<vmem>>, vector<1x128xf32>
    %4 = vector.broadcast %3 : vector<1x128xf32> to vector<112x128xf32>
    %5 = arith.addf %2, %4 : vector<112x128xf32>
    %cst_5 = arith.constant 0.000000e+00 : f32
    %6 = vector.broadcast %cst_5 : f32 to vector<112x128xf32>
    %7 = arith.maximumf %5, %6 : vector<112x128xf32>
    %8 = arith.truncf %7 : vector<112x128xf32> to vector<112x128xbf16>
    %c0_6 = arith.constant 0 : index
    %c0_7 = arith.constant 0 : index
    %9 = vector.load %arg5[%c0_6, %c0_7] : memref<112x128xbf16, #tpu.memory_space<vmem>>, vector<112x128xbf16>
    tpu.vector_store %arg5[%c0_6, %c0_7], %8 {strides = array<i32>} : memref<112x128xbf16, #tpu.memory_space<vmem>>, vector<112x128xbf16>,
    return
  }
  func.func @transform_0(%arg0: i32, %arg1: i32) -> (i32, i32) {
    %c0_i32 = arith.constant 0 : i32
    %c0_i32_0 = arith.constant 0 : i32
    return %arg0, %c0_i32 : i32, i32
  }
  func.func @transform_1(%arg0: i32, %arg1: i32) -> (i32, i32) {
    %c0_i32 = arith.constant 0 : i32
    %c0_i32_0 = arith.constant 0 : i32
    return %c0_i32, %arg1 : i32, i32
  }
  func.func @transform_2(%arg0: i32, %arg1: i32) -> (i32, i32) {
    %c0_i32 = arith.constant 0 : i32
    %c0_i32_0 = arith.constant 0 : i32
    return %c0_i32, %arg1 : i32, i32
  }
  func.func @transform_3(%arg0: i32, %arg1: i32) -> (i32, i32) {
    %c0_i32 = arith.constant 0 : i32
    return %arg0, %arg1 : i32, i32
  }
}

</mosaic_0001>

<bundles_post_ra>
// kernel: inception_transfer_forward.21
= control target key start
LH: loop header
LB: loop body
LE: loop exit
PB: predicated region body
PF: predicated region fallthrough
CT: control target
= control target key end

     0   :  { %s4435_s12 = smov 0   ;;  %s4437_s13 = smov 0   ;;  %s4925_s0 = inlined_call_operand.vmem [shape: bf16[2752,32], index: 0, kind: input, shape index: {}]   ;;  %s4926_s1 = inlined_call_operand.vmem [shape: bf16[32,128], index: 1, kind: input, shape index: {}]   ;;  %s4927_s2 = inlined_call_operand.vmem [shape: f32[1,128], index: 2, kind: input, shape index: {}]   ;;  %s4928_s3 = inlined_call_operand.vmem [shape: bf16[2752,128], index: 3, kind: output, shape index: {}]  }
   0x1   :  { %s4439_s14 = smov 0  }
   0x2 LB: > { %s25_s15 = sadd.s32 1, %s4409_s13  ;;  %p2971_p0 = scmp.ge.s32.totalorder %s4413_s14, 1  ;;  %s4413_s14 = sphi %s4439_s14, %s13_s14   ;;  %s4409_s13 = sphi %s4437_s13, %s4930_s13   ;;  %s4405_s12 = sphi %s4435_s12, %s4929_s12  }
   0x3   : > { %p27_p1 = scmp.ge.s32.totalorder %s25_s15, 2  ;;  %p169_p2 = scmp.lt.s32.totalorder %s4413_s14, 3 }
   0x5   : > { %s4932_s15 = smov (%p27_p1, %s25_s15), 0  ;;  %p170_p3 = pnand %p2971_p0, %p169_p2 }
   0x6   : > { %v4302_v0 = vld [vmem:[%s4926_s1] sm:$0xff] (!%p170_p3)   ;;  %s203_s18 = smul.u32 (!%p170_p3), 172, %s4405_s12  ;;  %v4303_v1 = vld [vmem:[%s4926_s1 + $0x8] sm:$0xff] (!%p170_p3)   ;;  %vm851_vm0 = vcmask (!%p170_p3), 261120  }
   0x7   : > { %173 = sbr.rel (%p170_p3) target bundleno = 409 (0x199), region = 32  ;;  %4098 = vmatprep.subr.bf16.mxu0 (!%p170_p3), %v4302_v0  ;;  %4274 = vmatprep.subr.bf16.mxu1 (!%p170_p3), %v4302_v0 }
   0x8   : > { %p204_p4 = scmp.lt.s32.totalorder (!%p170_p3), %s203_s18, 343  ;;  %4099 = vmatpush3.bf16.msra.mxu0 (!%p170_p3), %v4302_v0  ;;  %4276 = vmatpush3.bf16.msra.mxu1 (!%p170_p3), %v4302_v0 }
   0x9   : > { %4100 = vmatprep.subr.bf16.mxu0 (!%p170_p3), %v4303_v1  ;;  %4275 = vmatprep.subr.bf16.mxu1 (!%p170_p3), %v4303_v1 }
   0xc   : > { %4101 = vmatpush3.bf16.msra.mxu0 (!%p170_p3), %v4303_v1  ;;  %4277 = vmatpush3.bf16.msra.mxu1 (!%p170_p3), %v4303_v1 }
   0xe   : > { %s4934_s18 = smov (!%p204_p4, %s203_s18), 343 }
   0xf   : > { %s2972_s21 = sshll.u32 %s4934_s18, 2 }
  0x10   : > { %s4467_s24 = scalar_lea.vmem %s4925_s0, %s2972_s21  ;;  %s4658_s29 = scalar_lea.vmem %s4928_s3, %s2972_s21 }
  0x11   : > { %v4304_v2 = vld [vmem:[%s4467_s24] sm:$0xff]   ;;  %v4305_v3 = vld [vmem:[%s4467_s24 + $0x8] sm:$0xff]   ;;  %v4308_v6 = vld [vmem:[%s4467_s24 + $0x10] sm:$0xff]  }
  0x12   : > { %4102 = vmatprep.mubr.msk.bf16.mxu0 %vm851_vm0, %v4304_v2  ;;  %v4306_v4 = vld [vmem:[%s4467_s24 + $0x160] sm:$0xff]   ;;  %v4307_v5 = vld [vmem:[%s4467_s24 + $0x168] sm:$0xff]   ;;  %v4310_v7 = vld [vmem:[%s4467_s24 + $0x170] sm:$0xff]  }
  0x13   : > { %4103 = vmatmul.mubr.msk.bf16.vlgmr.msra.gmra.mrb[0].mxu0 %vm851_vm0, %v4305_v3  ;;  %4190 = vmatprep.mubr.msk.bf16.mxu1 %vm851_vm0, %v4306_v4  ;;  %v4309_v8 = vld [vmem:[%s4467_s24 + $0x18] sm:$0xff]   ;;  %v4312_v9 = vld [vmem:[%s4467_s24 + $0x20] sm:$0xff]   ;;  %v4313_v12 = vld [vmem:[%s4467_s24 + $0x28] sm:$0xff]  }
  0x14   : > { %4191 = vmatmul.mubr.msk.bf16.vlgmr.msra.gmra.mrb[0].mxu1 %vm851_vm0, %v4307_v5  ;;  %4106 = vmatprep.mubr.msk.bf16.mxu0 %vm851_vm0, %v4308_v6  ;;  %v4311_v10 = vld [vmem:[%s4467_s24 + $0x178] sm:$0xff]   ;;  %v4314_v11 = vld [vmem:[%s4467_s24 + $0x180] sm:$0xff]   ;;  %v4316_v13 = vld [vmem:[%s4467_s24 + $0x30] sm:$0xff]  }
  0x15   : > { %4194 = vmatprep.mubr.msk.bf16.mxu1 %vm851_vm0, %v4310_v7  ;;  %v4315_v14 = vld [vmem:[%s4467_s24 + $0x188] sm:$0xff]   ;;  %v4318_v15 = vld [vmem:[%s4467_s24 + $0x190] sm:$0xff]   ;;  %v4317_v16 = vld [vmem:[%s4467_s24 + $0x38] sm:$0xff]  }
  0x16   : > { %v4320_v17 = vld [vmem:[%s4467_s24 + $0x40] sm:$0xff]   ;;  %v4319_v18 = vld [vmem:[%s4467_s24 + $0x198] sm:$0xff]   ;;  %v4321_v20 = vld [vmem:[%s4467_s24 + $0x48] sm:$0xff]  }
  0x17   : > { %v4322_v19 = vld [vmem:[%s4467_s24 + $0x1a0] sm:$0xff]   ;;  %v4324_v21 = vld [vmem:[%s4467_s24 + $0x50] sm:$0xff]   ;;  %v4323_v22 = vld [vmem:[%s4467_s24 + $0x1a8] sm:$0xff]  }
  0x18   : > { %v4326_v23 = vld [vmem:[%s4467_s24 + $0x1b0] sm:$0xff]   ;;  %v4325_v24 = vld [vmem:[%s4467_s24 + $0x58] sm:$0xff]   ;;  %v4328_v25 = vld [vmem:[%s4467_s24 + $0x60] sm:$0xff]  }
  0x19   : > { %v4327_v26 = vld [vmem:[%s4467_s24 + $0x1b8] sm:$0xff]   ;;  %v4330_v27 = vld [vmem:[%s4467_s24 + $0x1c0] sm:$0xff]   ;;  %v4329_v28 = vld [vmem:[%s4467_s24 + $0x68] sm:$0xff]  }
  0x1a   : > { %v4332_v29 = vld [vmem:[%s4467_s24 + $0x70] sm:$0xff]   ;;  %v4331_v30 = vld [vmem:[%s4467_s24 + $0x1c8] sm:$0xff]   ;;  %v4333_v32 = vld [vmem:[%s4467_s24 + $0x78] sm:$0xff]  }
  0x1b   : > { %4107 = vmatmul.mubr.msk.bf16.gmra.mrb[4].mxu0 %vm851_vm0, %v4309_v8  ;;  %v4334_v31 = vld [vmem:[%s4467_s24 + $0x1d0] sm:$0xff]   ;;  %v4336_v33 = vld [vmem:[%s4467_s24 + $0x80] sm:$0xff]   ;;  %v4335_v34 = vld [vmem:[%s4467_s24 + $0x1d8] sm:$0xff]  }
  0x1c   : > { %4110 = vmatprep.mubr.msk.bf16.mxu0 %vm851_vm0, %v4312_v9  ;;  %4195 = vmatmul.mubr.msk.bf16.gmra.mrb[4].mxu1 %vm851_vm0, %v4311_v10  ;;  %v4338_v35 = vld [vmem:[%s4467_s24 + $0x1e0] sm:$0xff]   ;;  %v4337_v36 = vld [vmem:[%s4467_s24 + $0x88] sm:$0xff]   ;;  %v4340_v37 = vld [vmem:[%s4467_s24 + $0x90] sm:$0xff]  }
  0x1d   : > { %4198 = vmatprep.mubr.msk.bf16.mxu1 %vm851_vm0, %v4314_v11  ;;  %v4339_v38 = vld [vmem:[%s4467_s24 + $0x1e8] sm:$0xff]   ;;  %v4342_v39 = vld [vmem:[%s4467_s24 + $0x1f0] sm:$0xff]   ;;  %v4341_v40 = vld [vmem:[%s4467_s24 + $0x98] sm:$0xff]  }
  0x1e   : > { %v4344_v41 = vld [vmem:[%s4467_s24 + $0xa0] sm:$0xff]   ;;  %v4343_v42 = vld [vmem:[%s4467_s24 + $0x1f8] sm:$0xff]   ;;  %v4345_v44 = vld [vmem:[%s4467_s24 + $0xa8] sm:$0xff]  }
  0x1f   : > { %v4346_v43 = vld [vmem:[%s4467_s24 + $0x200] sm:$0xff]   ;;  %v4348_v45 = vld [vmem:[%s4467_s24 + $0xb0] sm:$0xff]   ;;  %v4347_v46 = vld [vmem:[%s4467_s24 + $0x208] sm:$0xff]  }
  0x20   : > { %v4350_v47 = vld [vmem:[%s4467_s24 + $0x210] sm:$0xff]   ;;  %v4349_v48 = vld [vmem:[%s4467_s24 + $0xb8] sm:$0xff]   ;;  %v4352_v49 = vld [vmem:[%s4467_s24 + $0xc0] sm:$0xff]  }
  0x21   : > { %v4351_v50 = vld [vmem:[%s4467_s24 + $0x218] sm:$0xff]   ;;  %v4354_v51 = vld [vmem:[%s4467_s24 + $0x220] sm:$0xff]   ;;  %v4353_v52 = vld [vmem:[%s4467_s24 + $0xc8] sm:$0xff]  }
  0x22   : > { %v4356_v53 = vld [vmem:[%s4467_s24 + $0xd0] sm:$0xff]   ;;  %v4355_v54 = vld [vmem:[%s4467_s24 + $0x228] sm:$0xff]   ;;  %v4357_v56 = vld [vmem:[%s4467_s24 + $0xd8] sm:$0xff]  }
  0x23   : > { %4111 = vmatmul.mubr.msk.bf16.gmra.mrb[8].mxu0 %vm851_vm0, %v4313_v12  ;;  %v4358_v55 = vld [vmem:[%s4467_s24 + $0x230] sm:$0xff]   ;;  %v4360_v57 = vld [vmem:[%s4467_s24 + $0xe0] sm:$0xff]   ;;  %v4359_v58 = vld [vmem:[%s4467_s24 + $0x238] sm:$0xff]  }
  0x24   : > { %4114 = vmatprep.mubr.msk.bf16.mxu0 %vm851_vm0, %v4316_v13  ;;  %4199 = vmatmul.mubr.msk.bf16.gmra.mrb[8].mxu1 %vm851_vm0, %v4315_v14  ;;  %v4362_v59 = vld [vmem:[%s4467_s24 + $0x240] sm:$0xff]   ;;  %v4361_v60 = vld [vmem:[%s4467_s24 + $0xe8] sm:$0xff]   ;;  %v4364_v61 = vld [vmem:[%s4467_s24 + $0xf0] sm:$0xff]  }
  0x25   : > { %4202 = vmatprep.mubr.msk.bf16.mxu1 %vm851_vm0, %v4318_v15  ;;  %v4363_v62 = vld [vmem:[%s4467_s24 + $0x248] sm:$0xff]   ;;  %v4366_v63 = vld [vmem:[%s4467_s24 + $0x250] sm:$0xff]   ;;  %v4365_v0 = vld [vmem:[%s4467_s24 + $0xf8] sm:$0xff]  }
  0x26   : > { %v4368_v1 = vld [vmem:[%s4467_s24 + $0x100] sm:$0xff]   ;;  %v4367_v2 = vld [vmem:[%s4467_s24 + $0x258] sm:$0xff]   ;;  %v4369_v4 = vld [vmem:[%s4467_s24 + $0x108] sm:$0xff]  }
  0x27   : > { %v4370_v3 = vld [vmem:[%s4467_s24 + $0x260] sm:$0xff]   ;;  %v4372_v5 = vld [vmem:[%s4467_s24 + $0x110] sm:$0xff]   ;;  %v4371_v6 = vld [vmem:[%s4467_s24 + $0x268] sm:$0xff]  }
  0x28   : > { %v4374_v7 = vld [vmem:[%s4467_s24 + $0x270] sm:$0xff]   ;;  %v4373_v8 = vld [vmem:[%s4467_s24 + $0x118] sm:$0xff]   ;;  %v4376_v9 = vld [vmem:[%s4467_s24 + $0x120] sm:$0xff]  }
  0x29   : > { %v4375_v10 = vld [vmem:[%s4467_s24 + $0x278] sm:$0xff]   ;;  %v4378_v11 = vld [vmem:[%s4467_s24 + $0x280] sm:$0xff]   ;;  %v4377_v12 = vld [vmem:[%s4467_s24 + $0x128] sm:$0xff]  }
  0x2a   : > { %v4380_v13 = vld [vmem:[%s4467_s24 + $0x130] sm:$0xff]   ;;  %v4379_v14 = vld [vmem:[%s4467_s24 + $0x288] sm:$0xff]  }
  0x2b   : > { %4115 = vmatmul.mubr.msk.bf16.gmra.mrb[12].mxu0 %vm851_vm0, %v4317_v16  ;;  %v4382_v15 = vld [vmem:[%s4467_s24 + $0x290] sm:$0xff]   ;;  %v4381_v16 = vld [vmem:[%s4467_s24 + $0x138] sm:$0xff]  }
  0x2c   : > { %4118 = vmatprep.mubr.msk.bf16.mxu0 %vm851_vm0, %v4320_v17  ;;  %4203 = vmatmul.mubr.msk.bf16.gmra.mrb[12].mxu1 %vm851_vm0, %v4319_v18  ;;  %v4384_v17 = vld [vmem:[%s4467_s24 + $0x140] sm:$0xff]   ;;  %v4383_v18 = vld [vmem:[%s4467_s24 + $0x298] sm:$0xff]  }
  0x2d   : > { %4206 = vmatprep.mubr.msk.bf16.mxu1 %vm851_vm0, %v4322_v19  ;;  %v4386_v19 = vld [vmem:[%s4467_s24 + $0x2a0] sm:$0xff]  }
  0x33   : > { %4119 = vmatmul.mubr.msk.bf16.gmra.mrb[16].mxu0 %vm851_vm0, %v4321_v20  ;;  %v4385_v20 = vld [vmem:[%s4467_s24 + $0x148] sm:$0xff]  }
  0x34   : > { %4122 = vmatprep.mubr.msk.bf16.mxu0 %vm851_vm0, %v4324_v21  ;;  %4207 = vmatmul.mubr.msk.bf16.gmra.mrb[16].mxu1 %vm851_vm0, %v4323_v22  ;;  %v4388_v21 = vld [vmem:[%s4467_s24 + $0x150] sm:$0xff]   ;;  %v4387_v22 = vld [vmem:[%s4467_s24 + $0x2a8] sm:$0xff]  }
  0x35   : > { %4210 = vmatprep.mubr.msk.bf16.mxu1 %vm851_vm0, %v4326_v23  ;;  %v4389_v23 = vld [vmem:[%s4467_s24 + $0x158] sm:$0xff]  }
  0x3b   : > { %4123 = vmatmul.mubr.msk.bf16.gmra.mrb[20].mxu0 %vm851_vm0, %v4325_v24  ;;  %v4644_v24 = vld [vmem:[%s4927_s2] ss:$0 sm:$0xff] }
  0x3c   : > { %4126 = vmatprep.mubr.msk.bf16.mxu0 %vm851_vm0, %v4328_v25  ;;  %4211 = vmatmul.mubr.msk.bf16.gmra.mrb[20].mxu1 %vm851_vm0, %v4327_v26 }
  0x3d   : > { %4214 = vmatprep.mubr.msk.bf16.mxu1 %vm851_vm0, %v4330_v27 }
  0x43   : > { %4127 = vmatmul.mubr.msk.bf16.gmra.mrb[24].mxu0 %vm851_vm0, %v4329_v28 }
  0x44   : > { %4130 = vmatprep.mubr.msk.bf16.mxu0 %vm851_vm0, %v4332_v29  ;;  %4215 = vmatmul.mubr.msk.bf16.gmra.mrb[24].mxu1 %vm851_vm0, %v4331_v30 }
  0x45   : > { %4218 = vmatprep.mubr.msk.bf16.mxu1 %vm851_vm0, %v4334_v31 }
  0x4b   : > { %4131 = vmatmul.mubr.msk.bf16.gmra.mrb[28].mxu0 %vm851_vm0, %v4333_v32 }
  0x4c   : > { %4134 = vmatprep.mubr.msk.bf16.mxu0 %vm851_vm0, %v4336_v33  ;;  %4219 = vmatmul.mubr.msk.bf16.gmra.mrb[28].mxu1 %vm851_vm0, %v4335_v34 }
  0x4d   : > { %4222 = vmatprep.mubr.msk.bf16.mxu1 %vm851_vm0, %v4338_v35 }
  0x53   : > { %4135 = vmatmul.mubr.msk.bf16.gmra.mrb[32].mxu0 %vm851_vm0, %v4337_v36 }
  0x54   : > { %4138 = vmatprep.mubr.msk.bf16.mxu0 %vm851_vm0, %v4340_v37  ;;  %4223 = vmatmul.mubr.msk.bf16.gmra.mrb[32].mxu1 %vm851_vm0, %v4339_v38 }
  0x55   : > { %4226 = vmatprep.mubr.msk.bf16.mxu1 %vm851_vm0, %v4342_v39 }
  0x5b   : > { %4139 = vmatmul.mubr.msk.bf16.gmra.mrb[36].mxu0 %vm851_vm0, %v4341_v40 }
  0x5c   : > { %4142 = vmatprep.mubr.msk.bf16.mxu0 %vm851_vm0, %v4344_v41  ;;  %4227 = vmatmul.mubr.msk.bf16.gmra.mrb[36].mxu1 %vm851_vm0, %v4343_v42 }
  0x5d   : > { %4230 = vmatprep.mubr.msk.bf16.mxu1 %vm851_vm0, %v4346_v43 }
  0x63   : > { %4143 = vmatmul.mubr.msk.bf16.gmra.mrb[40].mxu0 %vm851_vm0, %v4345_v44 }
  0x64   : > { %4146 = vmatprep.mubr.msk.bf16.mxu0 %vm851_vm0, %v4348_v45  ;;  %4231 = vmatmul.mubr.msk.bf16.gmra.mrb[40].mxu1 %vm851_vm0, %v4347_v46 }
  0x65   : > { %4234 = vmatprep.mubr.msk.bf16.mxu1 %vm851_vm0, %v4350_v47 }
  0x6b   : > { %4147 = vmatmul.mubr.msk.bf16.gmra.mrb[44].mxu0 %vm851_vm0, %v4349_v48 }
  0x6c   : > { %4150 = vmatprep.mubr.msk.bf16.mxu0 %vm851_vm0, %v4352_v49  ;;  %4235 = vmatmul.mubr.msk.bf16.gmra.mrb[44].mxu1 %vm851_vm0, %v4351_v50 }
  0x6d   : > { %4238 = vmatprep.mubr.msk.bf16.mxu1 %vm851_vm0, %v4354_v51 }
  0x73   : > { %4151 = vmatmul.mubr.msk.bf16.gmra.mrb[48].mxu0 %vm851_vm0, %v4353_v52 }
  0x74   : > { %4154 = vmatprep.mubr.msk.bf16.mxu0 %vm851_vm0, %v4356_v53  ;;  %4239 = vmatmul.mubr.msk.bf16.gmra.mrb[48].mxu1 %vm851_vm0, %v4355_v54 }
  0x75   : > { %4242 = vmatprep.mubr.msk.bf16.mxu1 %vm851_vm0, %v4358_v55 }
  0x7b   : > { %4155 = vmatmul.mubr.msk.bf16.gmra.mrb[52].mxu0 %vm851_vm0, %v4357_v56 }
  0x7c   : > { %4158 = vmatprep.mubr.msk.bf16.mxu0 %vm851_vm0, %v4360_v57  ;;  %4243 = vmatmul.mubr.msk.bf16.gmra.mrb[52].mxu1 %vm851_vm0, %v4359_v58 }
  0x7d   : > { %4246 = vmatprep.mubr.msk.bf16.mxu1 %vm851_vm0, %v4362_v59 }
  0x83   : > { %4159 = vmatmul.mubr.msk.bf16.gmra.mrb[56].mxu0 %vm851_vm0, %v4361_v60 }
  0x84   : > { %4162 = vmatprep.mubr.msk.bf16.mxu0 %vm851_vm0, %v4364_v61  ;;  %4247 = vmatmul.mubr.msk.bf16.gmra.mrb[56].mxu1 %vm851_vm0, %v4363_v62 }
  0x85   : > { %4250 = vmatprep.mubr.msk.bf16.mxu1 %vm851_vm0, %v4366_v63 }
  0x8b   : > { %4163 = vmatmul.mubr.msk.bf16.gmra.mrb[60].mxu0 %vm851_vm0, %v4365_v0 }
  0x8c   : > { %4166 = vmatprep.mubr.msk.bf16.mxu0 %vm851_vm0, %v4368_v1  ;;  %4251 = vmatmul.mubr.msk.bf16.gmra.mrb[60].mxu1 %vm851_vm0, %v4367_v2 }
  0x8d   : > { %4254 = vmatprep.mubr.msk.bf16.mxu1 %vm851_vm0, %v4370_v3 }
  0x93   : > { %4167 = vmatmul.mubr.msk.bf16.gmra.mrb[64].mxu0 %vm851_vm0, %v4369_v4 }
  0x94   : > { %4170 = vmatprep.mubr.msk.bf16.mxu0 %vm851_vm0, %v4372_v5  ;;  %4255 = vmatmul.mubr.msk.bf16.gmra.mrb[64].mxu1 %vm851_vm0, %v4371_v6 }
  0x95   : > { %4258 = vmatprep.mubr.msk.bf16.mxu1 %vm851_vm0, %v4374_v7 }
  0x9b   : > { %4171 = vmatmul.mubr.msk.bf16.gmra.mrb[68].mxu0 %vm851_vm0, %v4373_v8 }
  0x9c   : > { %4174 = vmatprep.mubr.msk.bf16.mxu0 %vm851_vm0, %v4376_v9  ;;  %4259 = vmatmul.mubr.msk.bf16.gmra.mrb[68].mxu1 %vm851_vm0, %v4375_v10 }
  0x9d   : > { %4262 = vmatprep.mubr.msk.bf16.mxu1 %vm851_vm0, %v4378_v11 }
  0xa3   : > { %4175 = vmatmul.mubr.msk.bf16.gmra.mrb[72].mxu0 %vm851_vm0, %v4377_v12 }
  0xa4   : > { %4178 = vmatprep.mubr.msk.bf16.mxu0 %vm851_vm0, %v4380_v13  ;;  %4263 = vmatmul.mubr.msk.bf16.gmra.mrb[72].mxu1 %vm851_vm0, %v4379_v14 }
  0xa5   : > { %4266 = vmatprep.mubr.msk.bf16.mxu1 %vm851_vm0, %v4382_v15 }
  0xab   : > { %4179 = vmatmul.mubr.msk.bf16.gmra.mrb[76].mxu0 %vm851_vm0, %v4381_v16 }
  0xac   : > { %4182 = vmatprep.mubr.msk.bf16.mxu0 %vm851_vm0, %v4384_v17  ;;  %4267 = vmatmul.mubr.msk.bf16.gmra.mrb[76].mxu1 %vm851_vm0, %v4383_v18 }
  0xad   : > { %4270 = vmatprep.mubr.msk.bf16.mxu1 %vm851_vm0, %v4386_v19 }
  0xb3   : > { %4183 = vmatmul.mubr.msk.bf16.gmra.mrb[80].mxu0 %vm851_vm0, %v4385_v20 }
  0xb4   : > { %4186 = vmatprep.mubr.msk.bf16.mxu0 %vm851_vm0, %v4388_v21  ;;  %4271 = vmatmul.mubr.msk.bf16.gmra.mrb[80].mxu1 %vm851_vm0, %v4387_v22 }
  0xbb   : > { %4187 = vmatmul.mubr.msk.bf16.gmra.mrb[84].mxu0 %vm851_vm0, %v4389_v23 }
  0xe6   : > { %v4104_v25 = vpop.f32.mrb[0].mxu0 }
  0xe7   : > { %v1153_v26 = vadd.f32 %v4104_v25, %v4644_v24  ;;  %v1144_v27 = vpop.f32.mrb[1].mxu0  ;;  %v4192_v30 = vpop.f32.mrb[0].mxu1 }
  0xe8   : > { %v1145_v28 = vadd.f32 %v4644_v24, %v1144_v27  ;;  %v4105_v29 = vpop.f32.mrb[2].mxu0  ;;  %v1505_v33 = vadd.f32 %v4192_v30, %v4644_v24  ;;  %v1496_v34 = vpop.f32.mrb[1].mxu1 }
  0xe9   : > { %v1156_v31 = vadd.f32 %v4105_v29, %v4644_v24  ;;  %v1147_v32 = vpop.f32.mrb[3].mxu0  ;;  %v1497_v36 = vadd.f32 %v4644_v24, %v1496_v34  ;;  %v4193_v37 = vpop.f32.mrb[2].mxu1  ;;  %v1833_v38 = vmax.f32 %v1153_v26, 0.0 }
  0xea   : > { %v1148_v35 = vadd.f32 %v4644_v24, %v1147_v32  ;;  %v1921_v40 = vmax.f32 %v1505_v33, 0.0  ;;  %v1508_v41 = vadd.f32 %v4193_v37, %v4644_v24  ;;  %v1499_v42 = vpop.f32.mrb[3].mxu1  ;;  %v1831_v43 = vmax.f32 %v1145_v28, 0.0 }
  0xeb   : > { %v1834_v39 = vmax.f32 %v1156_v31, 0.0  ;;  %v1919_v45 = vmax.f32 %v1497_v36, 0.0  ;;  %v1500_v46 = vadd.f32 %v4644_v24, %v1499_v42 }
  0xec   : > { %v1832_v44 = vmax.f32 %v1148_v35, 0.0  ;;  %v1922_v48 = vmax.f32 %v1508_v41, 0.0 }
  0xed   : > { %v3503_v47 = vpack.c.bf16 %v1834_v39, %v1833_v38  ;;  %v1920_v51 = vmax.f32 %v1500_v46, 0.0 }
  0xee   : > { %v3498_v49 = vpack.c.bf16 %v1832_v44, %v1831_v43  ;;  %v4108_v50 = vpop.f32.mrb[4].mxu0  ;;  %v3723_v52 = vpack.c.bf16 %v1922_v48, %v1921_v40 }
  0xef   : > { %3925 = vst [vmem:[%s4658_s29 + $0x8] sm:$0xff] %v3503_v47   ;;  %v1169_v53 = vadd.f32 %v4108_v50, %v4644_v24  ;;  %v1160_v54 = vpop.f32.mrb[5].mxu0  ;;  %v3718_v55 = vpack.c.bf16 %v1920_v51, %v1919_v45  ;;  %v4196_v58 = vpop.f32.mrb[4].mxu1 }
  0xf0   : > { %3499 = vst [vmem:[%s4658_s29] sm:$0xff] %v3498_v49   ;;  %v1161_v56 = vadd.f32 %v4644_v24, %v1160_v54  ;;  %v4109_v57 = vpop.f32.mrb[6].mxu0  ;;  %3969 = vst [vmem:[%s4658_s29 + $0x168] sm:$0xff] %v3723_v52   ;;  %v1521_v61 = vadd.f32 %v4196_v58, %v4644_v24  ;;  %v1512_v62 = vpop.f32.mrb[5].mxu1 }
  0xf1   : > { %v1172_v59 = vadd.f32 %v4109_v57, %v4644_v24  ;;  %v1163_v60 = vpop.f32.mrb[7].mxu0  ;;  %3968 = vst [vmem:[%s4658_s29 + $0x160] sm:$0xff] %v3718_v55   ;;  %v1513_v0 = vadd.f32 %v4644_v24, %v1512_v62  ;;  %v4197_v1 = vpop.f32.mrb[6].mxu1  ;;  %v1837_v2 = vmax.f32 %v1169_v53, 0.0 }
  0xf2   : > { %v1164_v63 = vadd.f32 %v4644_v24, %v1163_v60  ;;  %v1925_v4 = vmax.f32 %v1521_v61, 0.0  ;;  %v1524_v5 = vadd.f32 %v4197_v1, %v4644_v24  ;;  %v1515_v6 = vpop.f32.mrb[7].mxu1  ;;  %v1835_v7 = vmax.f32 %v1161_v56, 0.0 }
  0xf3   : > { %v1838_v3 = vmax.f32 %v1172_v59, 0.0  ;;  %v1923_v9 = vmax.f32 %v1513_v0, 0.0  ;;  %v1516_v10 = vadd.f32 %v4644_v24, %v1515_v6 }
  0xf4   : > { %v1836_v8 = vmax.f32 %v1164_v63, 0.0  ;;  %v1926_v12 = vmax.f32 %v1524_v5, 0.0 }
  0xf5   : > { %v3513_v11 = vpack.c.bf16 %v1838_v3, %v1837_v2  ;;  %v1924_v15 = vmax.f32 %v1516_v10, 0.0 }
  0xf6   : > { %v3508_v13 = vpack.c.bf16 %v1836_v8, %v1835_v7  ;;  %v4112_v14 = vpop.f32.mrb[8].mxu0  ;;  %v3733_v16 = vpack.c.bf16 %v1926_v12, %v1925_v4 }
  0xf7   : > { %3927 = vst [vmem:[%s4658_s29 + $0x18] sm:$0xff] %v3513_v11   ;;  %v1185_v17 = vadd.f32 %v4112_v14, %v4644_v24  ;;  %v1176_v18 = vpop.f32.mrb[9].mxu0  ;;  %v3728_v19 = vpack.c.bf16 %v1924_v15, %v1923_v9  ;;  %v4200_v22 = vpop.f32.mrb[8].mxu1 }
  0xf8   : > { %3926 = vst [vmem:[%s4658_s29 + $0x10] sm:$0xff] %v3508_v13   ;;  %v1177_v20 = vadd.f32 %v4644_v24, %v1176_v18  ;;  %v4113_v21 = vpop.f32.mrb[10].mxu0  ;;  %3971 = vst [vmem:[%s4658_s29 + $0x178] sm:$0xff] %v3733_v16   ;;  %v1537_v26 = vadd.f32 %v4200_v22, %v4644_v24  ;;  %v1528_v27 = vpop.f32.mrb[9].mxu1 }
  0xf9   : > { %v1188_v23 = vadd.f32 %v4113_v21, %v4644_v24  ;;  %v1179_v25 = vpop.f32.mrb[11].mxu0  ;;  %3970 = vst [vmem:[%s4658_s29 + $0x170] sm:$0xff] %v3728_v19   ;;  %v1529_v29 = vadd.f32 %v4644_v24, %v1528_v27  ;;  %v4201_v30 = vpop.f32.mrb[10].mxu1  ;;  %v1841_v31 = vmax.f32 %v1185_v17, 0.0 }
  0xfa   : > { %v1180_v28 = vadd.f32 %v4644_v24, %v1179_v25  ;;  %v1929_v33 = vmax.f32 %v1537_v26, 0.0  ;;  %v1540_v34 = vadd.f32 %v4201_v30, %v4644_v24  ;;  %v1531_v35 = vpop.f32.mrb[11].mxu1  ;;  %v1839_v36 = vmax.f32 %v1177_v20, 0.0 }
  0xfb   : > { %v1842_v32 = vmax.f32 %v1188_v23, 0.0  ;;  %v1927_v38 = vmax.f32 %v1529_v29, 0.0  ;;  %v1532_v39 = vadd.f32 %v4644_v24, %v1531_v35 }
  0xfc   : > { %v1840_v37 = vmax.f32 %v1180_v28, 0.0  ;;  %v1930_v41 = vmax.f32 %v1540_v34, 0.0 }
  0xfd   : > { %v3523_v40 = vpack.c.bf16 %v1842_v32, %v1841_v31  ;;  %v1928_v44 = vmax.f32 %v1532_v39, 0.0 }
  0xfe   : > { %v3518_v42 = vpack.c.bf16 %v1840_v37, %v1839_v36  ;;  %v4116_v43 = vpop.f32.mrb[12].mxu0  ;;  %v3743_v45 = vpack.c.bf16 %v1930_v41, %v1929_v33 }
  0xff   : > { %3929 = vst [vmem:[%s4658_s29 + $0x28] sm:$0xff] %v3523_v40   ;;  %v1201_v46 = vadd.f32 %v4116_v43, %v4644_v24  ;;  %v1192_v47 = vpop.f32.mrb[13].mxu0  ;;  %v3738_v48 = vpack.c.bf16 %v1928_v44, %v1927_v38  ;;  %v4204_v51 = vpop.f32.mrb[12].mxu1 }
 0x100   : > { %3928 = vst [vmem:[%s4658_s29 + $0x20] sm:$0xff] %v3518_v42   ;;  %v1193_v49 = vadd.f32 %v4644_v24, %v1192_v47  ;;  %v4117_v50 = vpop.f32.mrb[14].mxu0  ;;  %3973 = vst [vmem:[%s4658_s29 + $0x188] sm:$0xff] %v3743_v45   ;;  %v1553_v54 = vadd.f32 %v4204_v51, %v4644_v24  ;;  %v1544_v55 = vpop.f32.mrb[13].mxu1 }
 0x101   : > { %v1204_v52 = vadd.f32 %v4117_v50, %v4644_v24  ;;  %v1195_v53 = vpop.f32.mrb[15].mxu0  ;;  %3972 = vst [vmem:[%s4658_s29 + $0x180] sm:$0xff] %v3738_v48   ;;  %v1545_v57 = vadd.f32 %v4644_v24, %v1544_v55  ;;  %v4205_v58 = vpop.f32.mrb[14].mxu1  ;;  %v1845_v59 = vmax.f32 %v1201_v46, 0.0 }
 0x102   : > { %v1196_v56 = vadd.f32 %v4644_v24, %v1195_v53  ;;  %v1933_v61 = vmax.f32 %v1553_v54, 0.0  ;;  %v1556_v62 = vadd.f32 %v4205_v58, %v4644_v24  ;;  %v1547_v63 = vpop.f32.mrb[15].mxu1  ;;  %v1843_v0 = vmax.f32 %v1193_v49, 0.0 }
 0x103   : > { %v1846_v60 = vmax.f32 %v1204_v52, 0.0  ;;  %v1931_v2 = vmax.f32 %v1545_v57, 0.0  ;;  %v1548_v3 = vadd.f32 %v4644_v24, %v1547_v63 }
 0x104   : > { %v1844_v1 = vmax.f32 %v1196_v56, 0.0  ;;  %v1934_v5 = vmax.f32 %v1556_v62, 0.0 }
 0x105   : > { %v3533_v4 = vpack.c.bf16 %v1846_v60, %v1845_v59  ;;  %v1932_v8 = vmax.f32 %v1548_v3, 0.0 }
 0x106   : > { %v3528_v6 = vpack.c.bf16 %v1844_v1, %v1843_v0  ;;  %v4120_v7 = vpop.f32.mrb[16].mxu0  ;;  %v3753_v9 = vpack.c.bf16 %v1934_v5, %v1933_v61 }
 0x107   : > { %3931 = vst [vmem:[%s4658_s29 + $0x38] sm:$0xff] %v3533_v4   ;;  %v1217_v10 = vadd.f32 %v4120_v7, %v4644_v24  ;;  %v1208_v11 = vpop.f32.mrb[17].mxu0  ;;  %v3748_v12 = vpack.c.bf16 %v1932_v8, %v1931_v2  ;;  %v4208_v15 = vpop.f32.mrb[16].mxu1 }
 0x108   : > { %3930 = vst [vmem:[%s4658_s29 + $0x30] sm:$0xff] %v3528_v6   ;;  %v1209_v13 = vadd.f32 %v4644_v24, %v1208_v11  ;;  %v4121_v14 = vpop.f32.mrb[18].mxu0  ;;  %3975 = vst [vmem:[%s4658_s29 + $0x198] sm:$0xff] %v3753_v9   ;;  %v1569_v18 = vadd.f32 %v4208_v15, %v4644_v24  ;;  %v1560_v19 = vpop.f32.mrb[17].mxu1 }
 0x109   : > { %v1220_v16 = vadd.f32 %v4121_v14, %v4644_v24  ;;  %v1211_v17 = vpop.f32.mrb[19].mxu0  ;;  %3974 = vst [vmem:[%s4658_s29 + $0x190] sm:$0xff] %v3748_v12   ;;  %v1561_v21 = vadd.f32 %v4644_v24, %v1560_v19  ;;  %v4209_v22 = vpop.f32.mrb[18].mxu1  ;;  %v1849_v23 = vmax.f32 %v1217_v10, 0.0 }
 0x10a   : > { %v1212_v20 = vadd.f32 %v4644_v24, %v1211_v17  ;;  %v1937_v26 = vmax.f32 %v1569_v18, 0.0  ;;  %v1572_v27 = vadd.f32 %v4209_v22, %v4644_v24  ;;  %v1563_v28 = vpop.f32.mrb[19].mxu1  ;;  %v1847_v29 = vmax.f32 %v1209_v13, 0.0 }
 0x10b   : > { %v1850_v25 = vmax.f32 %v1220_v16, 0.0  ;;  %v1935_v31 = vmax.f32 %v1561_v21, 0.0  ;;  %v1564_v32 = vadd.f32 %v4644_v24, %v1563_v28 }
 0x10c   : > { %v1848_v30 = vmax.f32 %v1212_v20, 0.0  ;;  %v1938_v34 = vmax.f32 %v1572_v27, 0.0 }
 0x10d   : > { %v3543_v33 = vpack.c.bf16 %v1850_v25, %v1849_v23  ;;  %v1936_v37 = vmax.f32 %v1564_v32, 0.0 }
 0x10e   : > { %v3538_v35 = vpack.c.bf16 %v1848_v30, %v1847_v29  ;;  %v4124_v36 = vpop.f32.mrb[20].mxu0  ;;  %v3763_v38 = vpack.c.bf16 %v1938_v34, %v1937_v26 }
 0x10f   : > { %3933 = vst [vmem:[%s4658_s29 + $0x48] sm:$0xff] %v3543_v33   ;;  %v1233_v39 = vadd.f32 %v4124_v36, %v4644_v24  ;;  %v1224_v40 = vpop.f32.mrb[21].mxu0  ;;  %v3758_v41 = vpack.c.bf16 %v1936_v37, %v1935_v31  ;;  %v4212_v44 = vpop.f32.mrb[20].mxu1 }
 0x110   : > { %3932 = vst [vmem:[%s4658_s29 + $0x40] sm:$0xff] %v3538_v35   ;;  %v1225_v42 = vadd.f32 %v4644_v24, %v1224_v40  ;;  %v4125_v43 = vpop.f32.mrb[22].mxu0  ;;  %3977 = vst [vmem:[%s4658_s29 + $0x1a8] sm:$0xff] %v3763_v38   ;;  %v1585_v47 = vadd.f32 %v4212_v44, %v4644_v24  ;;  %v1576_v48 = vpop.f32.mrb[21].mxu1 }
 0x111   : > { %v1236_v45 = vadd.f32 %v4125_v43, %v4644_v24  ;;  %v1227_v46 = vpop.f32.mrb[23].mxu0  ;;  %3976 = vst [vmem:[%s4658_s29 + $0x1a0] sm:$0xff] %v3758_v41   ;;  %v1577_v50 = vadd.f32 %v4644_v24, %v1576_v48  ;;  %v4213_v51 = vpop.f32.mrb[22].mxu1  ;;  %v1853_v52 = vmax.f32 %v1233_v39, 0.0 }
 0x112   : > { %v1228_v49 = vadd.f32 %v4644_v24, %v1227_v46  ;;  %v1941_v54 = vmax.f32 %v1585_v47, 0.0  ;;  %v1588_v55 = vadd.f32 %v4213_v51, %v4644_v24  ;;  %v1579_v56 = vpop.f32.mrb[23].mxu1  ;;  %v1851_v57 = vmax.f32 %v1225_v42, 0.0 }
 0x113   : > { %v1854_v53 = vmax.f32 %v1236_v45, 0.0  ;;  %v1939_v59 = vmax.f32 %v1577_v50, 0.0  ;;  %v1580_v60 = vadd.f32 %v4644_v24, %v1579_v56 }
 0x114   : > { %v1852_v58 = vmax.f32 %v1228_v49, 0.0  ;;  %v1942_v62 = vmax.f32 %v1588_v55, 0.0 }
 0x115   : > { %v3553_v61 = vpack.c.bf16 %v1854_v53, %v1853_v52  ;;  %v1940_v1 = vmax.f32 %v1580_v60, 0.0 }
 0x116   : > { %v3548_v63 = vpack.c.bf16 %v1852_v58, %v1851_v57  ;;  %v4128_v0 = vpop.f32.mrb[24].mxu0  ;;  %v3773_v2 = vpack.c.bf16 %v1942_v62, %v1941_v54 }
 0x117   : > { %3935 = vst [vmem:[%s4658_s29 + $0x58] sm:$0xff] %v3553_v61   ;;  %v1249_v3 = vadd.f32 %v4128_v0, %v4644_v24  ;;  %v1240_v4 = vpop.f32.mrb[25].mxu0  ;;  %v3768_v5 = vpack.c.bf16 %v1940_v1, %v1939_v59  ;;  %v4216_v8 = vpop.f32.mrb[24].mxu1 }
 0x118   : > { %3934 = vst [vmem:[%s4658_s29 + $0x50] sm:$0xff] %v3548_v63   ;;  %v1241_v6 = vadd.f32 %v4644_v24, %v1240_v4  ;;  %v4129_v7 = vpop.f32.mrb[26].mxu0  ;;  %3979 = vst [vmem:[%s4658_s29 + $0x1b8] sm:$0xff] %v3773_v2   ;;  %v1601_v11 = vadd.f32 %v4216_v8, %v4644_v24  ;;  %v1592_v12 = vpop.f32.mrb[25].mxu1 }
 0x119   : > { %v1252_v9 = vadd.f32 %v4129_v7, %v4644_v24  ;;  %v1243_v10 = vpop.f32.mrb[27].mxu0  ;;  %3978 = vst [vmem:[%s4658_s29 + $0x1b0] sm:$0xff] %v3768_v5   ;;  %v1593_v14 = vadd.f32 %v4644_v24, %v1592_v12  ;;  %v4217_v15 = vpop.f32.mrb[26].mxu1  ;;  %v1857_v16 = vmax.f32 %v1249_v3, 0.0 }
 0x11a   : > { %v1244_v13 = vadd.f32 %v4644_v24, %v1243_v10  ;;  %v1945_v18 = vmax.f32 %v1601_v11, 0.0  ;;  %v1604_v19 = vadd.f32 %v4217_v15, %v4644_v24  ;;  %v1595_v20 = vpop.f32.mrb[27].mxu1  ;;  %v1855_v21 = vmax.f32 %v1241_v6, 0.0 }
 0x11b   : > { %v1858_v17 = vmax.f32 %v1252_v9, 0.0  ;;  %v1943_v23 = vmax.f32 %v1593_v14, 0.0  ;;  %v1596_v25 = vadd.f32 %v4644_v24, %v1595_v20 }
 0x11c   : > { %v1856_v22 = vmax.f32 %v1244_v13, 0.0  ;;  %v1946_v27 = vmax.f32 %v1604_v19, 0.0 }
 0x11d   : > { %v3563_v26 = vpack.c.bf16 %v1858_v17, %v1857_v16  ;;  %v1944_v30 = vmax.f32 %v1596_v25, 0.0 }
 0x11e   : > { %v3558_v28 = vpack.c.bf16 %v1856_v22, %v1855_v21  ;;  %v4132_v29 = vpop.f32.mrb[28].mxu0  ;;  %v3783_v31 = vpack.c.bf16 %v1946_v27, %v1945_v18 }
 0x11f   : > { %3937 = vst [vmem:[%s4658_s29 + $0x68] sm:$0xff] %v3563_v26   ;;  %v1265_v32 = vadd.f32 %v4132_v29, %v4644_v24  ;;  %v1256_v33 = vpop.f32.mrb[29].mxu0  ;;  %v3778_v34 = vpack.c.bf16 %v1944_v30, %v1943_v23  ;;  %v4220_v37 = vpop.f32.mrb[28].mxu1 }
 0x120   : > { %3936 = vst [vmem:[%s4658_s29 + $0x60] sm:$0xff] %v3558_v28   ;;  %v1257_v35 = vadd.f32 %v4644_v24, %v1256_v33  ;;  %v4133_v36 = vpop.f32.mrb[30].mxu0  ;;  %3981 = vst [vmem:[%s4658_s29 + $0x1c8] sm:$0xff] %v3783_v31   ;;  %v1617_v40 = vadd.f32 %v4220_v37, %v4644_v24  ;;  %v1608_v41 = vpop.f32.mrb[29].mxu1 }
 0x121   : > { %v1268_v38 = vadd.f32 %v4133_v36, %v4644_v24  ;;  %v1259_v39 = vpop.f32.mrb[31].mxu0  ;;  %3980 = vst [vmem:[%s4658_s29 + $0x1c0] sm:$0xff] %v3778_v34   ;;  %v1609_v43 = vadd.f32 %v4644_v24, %v1608_v41  ;;  %v4221_v44 = vpop.f32.mrb[30].mxu1  ;;  %v1861_v45 = vmax.f32 %v1265_v32, 0.0 }
 0x122   : > { %v1260_v42 = vadd.f32 %v4644_v24, %v1259_v39  ;;  %v1949_v47 = vmax.f32 %v1617_v40, 0.0  ;;  %v1620_v48 = vadd.f32 %v4221_v44, %v4644_v24  ;;  %v1611_v49 = vpop.f32.mrb[31].mxu1  ;;  %v1859_v50 = vmax.f32 %v1257_v35, 0.0 }
 0x123   : > { %v1862_v46 = vmax.f32 %v1268_v38, 0.0  ;;  %v1947_v52 = vmax.f32 %v1609_v43, 0.0  ;;  %v1612_v53 = vadd.f32 %v4644_v24, %v1611_v49 }
 0x124   : > { %v1860_v51 = vmax.f32 %v1260_v42, 0.0  ;;  %v1950_v55 = vmax.f32 %v1620_v48, 0.0 }
 0x125   : > { %v3573_v54 = vpack.c.bf16 %v1862_v46, %v1861_v45  ;;  %v1948_v58 = vmax.f32 %v1612_v53, 0.0 }
 0x126   : > { %v3568_v56 = vpack.c.bf16 %v1860_v51, %v1859_v50  ;;  %v4136_v57 = vpop.f32.mrb[32].mxu0  ;;  %v3793_v59 = vpack.c.bf16 %v1950_v55, %v1949_v47 }
 0x127   : > { %3939 = vst [vmem:[%s4658_s29 + $0x78] sm:$0xff] %v3573_v54   ;;  %v1281_v60 = vadd.f32 %v4136_v57, %v4644_v24  ;;  %v1272_v61 = vpop.f32.mrb[33].mxu0  ;;  %v3788_v62 = vpack.c.bf16 %v1948_v58, %v1947_v52  ;;  %v4224_v1 = vpop.f32.mrb[32].mxu1 }
 0x128   : > { %3938 = vst [vmem:[%s4658_s29 + $0x70] sm:$0xff] %v3568_v56   ;;  %v1273_v63 = vadd.f32 %v4644_v24, %v1272_v61  ;;  %v4137_v0 = vpop.f32.mrb[34].mxu0  ;;  %3983 = vst [vmem:[%s4658_s29 + $0x1d8] sm:$0xff] %v3793_v59   ;;  %v1633_v4 = vadd.f32 %v4224_v1, %v4644_v24  ;;  %v1624_v5 = vpop.f32.mrb[33].mxu1 }
 0x129   : > { %v1284_v2 = vadd.f32 %v4137_v0, %v4644_v24  ;;  %v1275_v3 = vpop.f32.mrb[35].mxu0  ;;  %3982 = vst [vmem:[%s4658_s29 + $0x1d0] sm:$0xff] %v3788_v62   ;;  %v1625_v7 = vadd.f32 %v4644_v24, %v1624_v5  ;;  %v4225_v8 = vpop.f32.mrb[34].mxu1  ;;  %v1865_v9 = vmax.f32 %v1281_v60, 0.0 }
 0x12a   : > { %v1276_v6 = vadd.f32 %v4644_v24, %v1275_v3  ;;  %v1953_v11 = vmax.f32 %v1633_v4, 0.0  ;;  %v1636_v12 = vadd.f32 %v4225_v8, %v4644_v24  ;;  %v1627_v13 = vpop.f32.mrb[35].mxu1  ;;  %v1863_v14 = vmax.f32 %v1273_v63, 0.0 }
 0x12b   : > { %v1866_v10 = vmax.f32 %v1284_v2, 0.0  ;;  %v1951_v16 = vmax.f32 %v1625_v7, 0.0  ;;  %v1628_v17 = vadd.f32 %v4644_v24, %v1627_v13 }
 0x12c   : > { %v1864_v15 = vmax.f32 %v1276_v6, 0.0  ;;  %v1954_v19 = vmax.f32 %v1636_v12, 0.0 }
 0x12d   : > { %v3583_v18 = vpack.c.bf16 %v1866_v10, %v1865_v9  ;;  %v1952_v22 = vmax.f32 %v1628_v17, 0.0 }
 0x12e   : > { %v3578_v20 = vpack.c.bf16 %v1864_v15, %v1863_v14  ;;  %v4140_v21 = vpop.f32.mrb[36].mxu0  ;;  %v3803_v23 = vpack.c.bf16 %v1954_v19, %v1953_v11 }
 0x12f   : > { %3941 = vst [vmem:[%s4658_s29 + $0x88] sm:$0xff] %v3583_v18   ;;  %v1297_v25 = vadd.f32 %v4140_v21, %v4644_v24  ;;  %v1288_v26 = vpop.f32.mrb[37].mxu0  ;;  %v3798_v27 = vpack.c.bf16 %v1952_v22, %v1951_v16  ;;  %v4228_v30 = vpop.f32.mrb[36].mxu1 }
 0x130   : > { %3940 = vst [vmem:[%s4658_s29 + $0x80] sm:$0xff] %v3578_v20   ;;  %v1289_v28 = vadd.f32 %v4644_v24, %v1288_v26  ;;  %v4141_v29 = vpop.f32.mrb[38].mxu0  ;;  %3985 = vst [vmem:[%s4658_s29 + $0x1e8] sm:$0xff] %v3803_v23   ;;  %v1649_v33 = vadd.f32 %v4228_v30, %v4644_v24  ;;  %v1640_v34 = vpop.f32.mrb[37].mxu1 }
 0x131   : > { %v1300_v31 = vadd.f32 %v4141_v29, %v4644_v24  ;;  %v1291_v32 = vpop.f32.mrb[39].mxu0  ;;  %3984 = vst [vmem:[%s4658_s29 + $0x1e0] sm:$0xff] %v3798_v27   ;;  %v1641_v36 = vadd.f32 %v4644_v24, %v1640_v34  ;;  %v4229_v37 = vpop.f32.mrb[38].mxu1  ;;  %v1869_v38 = vmax.f32 %v1297_v25, 0.0 }
 0x132   : > { %v1292_v35 = vadd.f32 %v4644_v24, %v1291_v32  ;;  %v1957_v40 = vmax.f32 %v1649_v33, 0.0  ;;  %v1652_v41 = vadd.f32 %v4229_v37, %v4644_v24  ;;  %v1643_v42 = vpop.f32.mrb[39].mxu1  ;;  %v1867_v43 = vmax.f32 %v1289_v28, 0.0 }
 0x133   : > { %v1870_v39 = vmax.f32 %v1300_v31, 0.0  ;;  %v1955_v45 = vmax.f32 %v1641_v36, 0.0  ;;  %v1644_v46 = vadd.f32 %v4644_v24, %v1643_v42 }
 0x134   : > { %v1868_v44 = vmax.f32 %v1292_v35, 0.0  ;;  %v1958_v48 = vmax.f32 %v1652_v41, 0.0 }
 0x135   : > { %v3593_v47 = vpack.c.bf16 %v1870_v39, %v1869_v38  ;;  %v1956_v51 = vmax.f32 %v1644_v46, 0.0 }
 0x136   : > { %v3588_v49 = vpack.c.bf16 %v1868_v44, %v1867_v43  ;;  %v4144_v50 = vpop.f32.mrb[40].mxu0  ;;  %v3813_v52 = vpack.c.bf16 %v1958_v48, %v1957_v40 }
 0x137   : > { %3943 = vst [vmem:[%s4658_s29 + $0x98] sm:$0xff] %v3593_v47   ;;  %v1313_v53 = vadd.f32 %v4144_v50, %v4644_v24  ;;  %v1304_v54 = vpop.f32.mrb[41].mxu0  ;;  %v3808_v55 = vpack.c.bf16 %v1956_v51, %v1955_v45  ;;  %v4232_v58 = vpop.f32.mrb[40].mxu1 }
 0x138   : > { %3942 = vst [vmem:[%s4658_s29 + $0x90] sm:$0xff] %v3588_v49   ;;  %v1305_v56 = vadd.f32 %v4644_v24, %v1304_v54  ;;  %v4145_v57 = vpop.f32.mrb[42].mxu0  ;;  %3987 = vst [vmem:[%s4658_s29 + $0x1f8] sm:$0xff] %v3813_v52   ;;  %v1665_v61 = vadd.f32 %v4232_v58, %v4644_v24  ;;  %v1656_v62 = vpop.f32.mrb[41].mxu1 }
 0x139   : > { %v1316_v59 = vadd.f32 %v4145_v57, %v4644_v24  ;;  %v1307_v60 = vpop.f32.mrb[43].mxu0  ;;  %3986 = vst [vmem:[%s4658_s29 + $0x1f0] sm:$0xff] %v3808_v55   ;;  %v1657_v0 = vadd.f32 %v4644_v24, %v1656_v62  ;;  %v4233_v1 = vpop.f32.mrb[42].mxu1  ;;  %v1873_v2 = vmax.f32 %v1313_v53, 0.0 }
 0x13a   : > { %v1308_v63 = vadd.f32 %v4644_v24, %v1307_v60  ;;  %v1961_v4 = vmax.f32 %v1665_v61, 0.0  ;;  %v1668_v5 = vadd.f32 %v4233_v1, %v4644_v24  ;;  %v1659_v6 = vpop.f32.mrb[43].mxu1  ;;  %v1871_v7 = vmax.f32 %v1305_v56, 0.0 }
 0x13b   : > { %v1874_v3 = vmax.f32 %v1316_v59, 0.0  ;;  %v1959_v9 = vmax.f32 %v1657_v0, 0.0  ;;  %v1660_v10 = vadd.f32 %v4644_v24, %v1659_v6 }
 0x13c   : > { %v1872_v8 = vmax.f32 %v1308_v63, 0.0  ;;  %v1962_v12 = vmax.f32 %v1668_v5, 0.0 }
 0x13d   : > { %v3603_v11 = vpack.c.bf16 %v1874_v3, %v1873_v2  ;;  %v1960_v15 = vmax.f32 %v1660_v10, 0.0 }
 0x13e   : > { %v3598_v13 = vpack.c.bf16 %v1872_v8, %v1871_v7  ;;  %v4148_v14 = vpop.f32.mrb[44].mxu0  ;;  %v3823_v16 = vpack.c.bf16 %v1962_v12, %v1961_v4 }
 0x13f   : > { %3945 = vst [vmem:[%s4658_s29 + $0xa8] sm:$0xff] %v3603_v11   ;;  %v1329_v17 = vadd.f32 %v4148_v14, %v4644_v24  ;;  %v1320_v18 = vpop.f32.mrb[45].mxu0  ;;  %v3818_v19 = vpack.c.bf16 %v1960_v15, %v1959_v9  ;;  %v4236_v22 = vpop.f32.mrb[44].mxu1 }
 0x140   : > { %3944 = vst [vmem:[%s4658_s29 + $0xa0] sm:$0xff] %v3598_v13   ;;  %v1321_v20 = vadd.f32 %v4644_v24, %v1320_v18  ;;  %v4149_v21 = vpop.f32.mrb[46].mxu0  ;;  %3989 = vst [vmem:[%s4658_s29 + $0x208] sm:$0xff] %v3823_v16   ;;  %v1681_v26 = vadd.f32 %v4236_v22, %v4644_v24  ;;  %v1672_v27 = vpop.f32.mrb[45].mxu1 }
 0x141   : > { %v1332_v23 = vadd.f32 %v4149_v21, %v4644_v24  ;;  %v1323_v25 = vpop.f32.mrb[47].mxu0  ;;  %3988 = vst [vmem:[%s4658_s29 + $0x200] sm:$0xff] %v3818_v19   ;;  %v1673_v29 = vadd.f32 %v4644_v24, %v1672_v27  ;;  %v4237_v30 = vpop.f32.mrb[46].mxu1  ;;  %v1877_v31 = vmax.f32 %v1329_v17, 0.0 }
 0x142   : > { %v1324_v28 = vadd.f32 %v4644_v24, %v1323_v25  ;;  %v1965_v33 = vmax.f32 %v1681_v26, 0.0  ;;  %v1684_v34 = vadd.f32 %v4237_v30, %v4644_v24  ;;  %v1675_v35 = vpop.f32.mrb[47].mxu1  ;;  %v1875_v36 = vmax.f32 %v1321_v20, 0.0 }
 0x143   : > { %v1878_v32 = vmax.f32 %v1332_v23, 0.0  ;;  %v1963_v38 = vmax.f32 %v1673_v29, 0.0  ;;  %v1676_v39 = vadd.f32 %v4644_v24, %v1675_v35 }
 0x144   : > { %v1876_v37 = vmax.f32 %v1324_v28, 0.0  ;;  %v1966_v41 = vmax.f32 %v1684_v34, 0.0 }
 0x145   : > { %v3613_v40 = vpack.c.bf16 %v1878_v32, %v1877_v31  ;;  %v1964_v44 = vmax.f32 %v1676_v39, 0.0 }
 0x146   : > { %v3608_v42 = vpack.c.bf16 %v1876_v37, %v1875_v36  ;;  %v4152_v43 = vpop.f32.mrb[48].mxu0  ;;  %v3833_v45 = vpack.c.bf16 %v1966_v41, %v1965_v33 }
 0x147   : > { %3947 = vst [vmem:[%s4658_s29 + $0xb8] sm:$0xff] %v3613_v40   ;;  %v1345_v46 = vadd.f32 %v4152_v43, %v4644_v24  ;;  %v1336_v47 = vpop.f32.mrb[49].mxu0  ;;  %v3828_v48 = vpack.c.bf16 %v1964_v44, %v1963_v38  ;;  %v4240_v51 = vpop.f32.mrb[48].mxu1 }
 0x148   : > { %3946 = vst [vmem:[%s4658_s29 + $0xb0] sm:$0xff] %v3608_v42   ;;  %v1337_v49 = vadd.f32 %v4644_v24, %v1336_v47  ;;  %v4153_v50 = vpop.f32.mrb[50].mxu0  ;;  %3991 = vst [vmem:[%s4658_s29 + $0x218] sm:$0xff] %v3833_v45   ;;  %v1697_v54 = vadd.f32 %v4240_v51, %v4644_v24  ;;  %v1688_v55 = vpop.f32.mrb[49].mxu1 }
 0x149   : > { %v1348_v52 = vadd.f32 %v4153_v50, %v4644_v24  ;;  %v1339_v53 = vpop.f32.mrb[51].mxu0  ;;  %3990 = vst [vmem:[%s4658_s29 + $0x210] sm:$0xff] %v3828_v48   ;;  %v1689_v57 = vadd.f32 %v4644_v24, %v1688_v55  ;;  %v4241_v58 = vpop.f32.mrb[50].mxu1  ;;  %v1881_v59 = vmax.f32 %v1345_v46, 0.0 }
 0x14a   : > { %v1340_v56 = vadd.f32 %v4644_v24, %v1339_v53  ;;  %v1969_v61 = vmax.f32 %v1697_v54, 0.0  ;;  %v1700_v62 = vadd.f32 %v4241_v58, %v4644_v24  ;;  %v1691_v63 = vpop.f32.mrb[51].mxu1  ;;  %v1879_v0 = vmax.f32 %v1337_v49, 0.0 }
 0x14b   : > { %v1882_v60 = vmax.f32 %v1348_v52, 0.0  ;;  %v1967_v2 = vmax.f32 %v1689_v57, 0.0  ;;  %v1692_v3 = vadd.f32 %v4644_v24, %v1691_v63 }
 0x14c   : > { %v1880_v1 = vmax.f32 %v1340_v56, 0.0  ;;  %v1970_v5 = vmax.f32 %v1700_v62, 0.0 }
 0x14d   : > { %v3623_v4 = vpack.c.bf16 %v1882_v60, %v1881_v59  ;;  %v1968_v8 = vmax.f32 %v1692_v3, 0.0 }
 0x14e   : > { %v3618_v6 = vpack.c.bf16 %v1880_v1, %v1879_v0  ;;  %v4156_v7 = vpop.f32.mrb[52].mxu0  ;;  %v3843_v9 = vpack.c.bf16 %v1970_v5, %v1969_v61 }
 0x14f   : > { %3949 = vst [vmem:[%s4658_s29 + $0xc8] sm:$0xff] %v3623_v4   ;;  %v1361_v10 = vadd.f32 %v4156_v7, %v4644_v24  ;;  %v1352_v11 = vpop.f32.mrb[53].mxu0  ;;  %v3838_v12 = vpack.c.bf16 %v1968_v8, %v1967_v2  ;;  %v4244_v15 = vpop.f32.mrb[52].mxu1 }
 0x150   : > { %3948 = vst [vmem:[%s4658_s29 + $0xc0] sm:$0xff] %v3618_v6   ;;  %v1353_v13 = vadd.f32 %v4644_v24, %v1352_v11  ;;  %v4157_v14 = vpop.f32.mrb[54].mxu0  ;;  %3993 = vst [vmem:[%s4658_s29 + $0x228] sm:$0xff] %v3843_v9   ;;  %v1713_v18 = vadd.f32 %v4244_v15, %v4644_v24  ;;  %v1704_v19 = vpop.f32.mrb[53].mxu1 }
 0x151   : > { %v1364_v16 = vadd.f32 %v4157_v14, %v4644_v24  ;;  %v1355_v17 = vpop.f32.mrb[55].mxu0  ;;  %3992 = vst [vmem:[%s4658_s29 + $0x220] sm:$0xff] %v3838_v12   ;;  %v1705_v21 = vadd.f32 %v4644_v24, %v1704_v19  ;;  %v4245_v22 = vpop.f32.mrb[54].mxu1  ;;  %v1885_v23 = vmax.f32 %v1361_v10, 0.0 }
 0x152   : > { %v1356_v20 = vadd.f32 %v4644_v24, %v1355_v17  ;;  %v1973_v26 = vmax.f32 %v1713_v18, 0.0  ;;  %v1716_v27 = vadd.f32 %v4245_v22, %v4644_v24  ;;  %v1707_v28 = vpop.f32.mrb[55].mxu1  ;;  %v1883_v29 = vmax.f32 %v1353_v13, 0.0 }
 0x153   : > { %v1886_v25 = vmax.f32 %v1364_v16, 0.0  ;;  %v1971_v31 = vmax.f32 %v1705_v21, 0.0  ;;  %v1708_v32 = vadd.f32 %v4644_v24, %v1707_v28 }
 0x154   : > { %v1884_v30 = vmax.f32 %v1356_v20, 0.0  ;;  %v1974_v34 = vmax.f32 %v1716_v27, 0.0 }
 0x155   : > { %v3633_v33 = vpack.c.bf16 %v1886_v25, %v1885_v23  ;;  %v1972_v37 = vmax.f32 %v1708_v32, 0.0 }
 0x156   : > { %v3628_v35 = vpack.c.bf16 %v1884_v30, %v1883_v29  ;;  %v4160_v36 = vpop.f32.mrb[56].mxu0  ;;  %v3853_v38 = vpack.c.bf16 %v1974_v34, %v1973_v26 }
 0x157   : > { %3951 = vst [vmem:[%s4658_s29 + $0xd8] sm:$0xff] %v3633_v33   ;;  %v1377_v39 = vadd.f32 %v4160_v36, %v4644_v24  ;;  %v1368_v40 = vpop.f32.mrb[57].mxu0  ;;  %v3848_v41 = vpack.c.bf16 %v1972_v37, %v1971_v31  ;;  %v4248_v44 = vpop.f32.mrb[56].mxu1 }
 0x158   : > { %3950 = vst [vmem:[%s4658_s29 + $0xd0] sm:$0xff] %v3628_v35   ;;  %v1369_v42 = vadd.f32 %v4644_v24, %v1368_v40  ;;  %v4161_v43 = vpop.f32.mrb[58].mxu0  ;;  %3995 = vst [vmem:[%s4658_s29 + $0x238] sm:$0xff] %v3853_v38   ;;  %v1729_v47 = vadd.f32 %v4248_v44, %v4644_v24  ;;  %v1720_v48 = vpop.f32.mrb[57].mxu1  ;;  %v4847_v35 = vld [vmem:[%s4927_s2] ss:$0 sm:$0xff] }
 0x159   : > { %v1380_v45 = vadd.f32 %v4161_v43, %v4644_v24  ;;  %v1371_v46 = vpop.f32.mrb[59].mxu0  ;;  %3994 = vst [vmem:[%s4658_s29 + $0x230] sm:$0xff] %v3848_v41   ;;  %v1721_v50 = vadd.f32 %v4644_v24, %v1720_v48  ;;  %v4249_v51 = vpop.f32.mrb[58].mxu1  ;;  %v1889_v52 = vmax.f32 %v1377_v39, 0.0 }
 0x15a   : > { %v1372_v49 = vadd.f32 %v4644_v24, %v1371_v46  ;;  %v1977_v54 = vmax.f32 %v1729_v47, 0.0  ;;  %v1732_v55 = vadd.f32 %v4249_v51, %v4644_v24  ;;  %v1723_v56 = vpop.f32.mrb[59].mxu1  ;;  %v1887_v57 = vmax.f32 %v1369_v42, 0.0 }
 0x15b   : > { %v1890_v53 = vmax.f32 %v1380_v45, 0.0  ;;  %v1975_v59 = vmax.f32 %v1721_v50, 0.0  ;;  %v1724_v60 = vadd.f32 %v4644_v24, %v1723_v56 }
 0x15c   : > { %v1888_v58 = vmax.f32 %v1372_v49, 0.0  ;;  %v1978_v62 = vmax.f32 %v1732_v55, 0.0 }
 0x15d   : > { %v3643_v61 = vpack.c.bf16 %v1890_v53, %v1889_v52  ;;  %v1976_v1 = vmax.f32 %v1724_v60, 0.0 }
 0x15e   : > { %v3638_v63 = vpack.c.bf16 %v1888_v58, %v1887_v57  ;;  %v4164_v0 = vpop.f32.mrb[60].mxu0  ;;  %v3863_v2 = vpack.c.bf16 %v1978_v62, %v1977_v54 }
 0x15f   : > { %3953 = vst [vmem:[%s4658_s29 + $0xe8] sm:$0xff] %v3643_v61   ;;  %v1393_v3 = vadd.f32 %v4164_v0, %v4644_v24  ;;  %v1384_v4 = vpop.f32.mrb[61].mxu0  ;;  %v3858_v5 = vpack.c.bf16 %v1976_v1, %v1975_v59  ;;  %v4252_v8 = vpop.f32.mrb[60].mxu1 }
 0x160   : > { %3952 = vst [vmem:[%s4658_s29 + $0xe0] sm:$0xff] %v3638_v63   ;;  %v1385_v6 = vadd.f32 %v4644_v24, %v1384_v4  ;;  %v4165_v7 = vpop.f32.mrb[62].mxu0  ;;  %3997 = vst [vmem:[%s4658_s29 + $0x248] sm:$0xff] %v3863_v2   ;;  %v1745_v11 = vadd.f32 %v4252_v8, %v4644_v24  ;;  %v1736_v12 = vpop.f32.mrb[61].mxu1 }
 0x161   : > { %v1396_v9 = vadd.f32 %v4165_v7, %v4644_v24  ;;  %v1387_v10 = vpop.f32.mrb[63].mxu0  ;;  %3996 = vst [vmem:[%s4658_s29 + $0x240] sm:$0xff] %v3858_v5   ;;  %v1737_v14 = vadd.f32 %v4644_v24, %v1736_v12  ;;  %v4253_v15 = vpop.f32.mrb[62].mxu1  ;;  %v1893_v16 = vmax.f32 %v1393_v3, 0.0 }
 0x162   : > { %v1388_v13 = vadd.f32 %v4644_v24, %v1387_v10  ;;  %v1981_v18 = vmax.f32 %v1745_v11, 0.0  ;;  %v1748_v19 = vadd.f32 %v4253_v15, %v4644_v24  ;;  %v1739_v20 = vpop.f32.mrb[63].mxu1  ;;  %v1891_v21 = vmax.f32 %v1385_v6, 0.0 }
 0x163   : > { %v1894_v17 = vmax.f32 %v1396_v9, 0.0  ;;  %v1979_v23 = vmax.f32 %v1737_v14, 0.0  ;;  %v1740_v25 = vadd.f32 %v4644_v24, %v1739_v20 }
 0x164   : > { %v1892_v22 = vmax.f32 %v1388_v13, 0.0  ;;  %v1982_v27 = vmax.f32 %v1748_v19, 0.0 }
 0x165   : > { %v3653_v26 = vpack.c.bf16 %v1894_v17, %v1893_v16  ;;  %v1980_v30 = vmax.f32 %v1740_v25, 0.0 }
 0x166   : > { %v3648_v28 = vpack.c.bf16 %v1892_v22, %v1891_v21  ;;  %v4168_v29 = vpop.f32.mrb[64].mxu0  ;;  %v3873_v31 = vpack.c.bf16 %v1982_v27, %v1981_v18 }
 0x167   : > { %3955 = vst [vmem:[%s4658_s29 + $0xf8] sm:$0xff] %v3653_v26   ;;  %v1409_v32 = vadd.f32 %v4168_v29, %v4644_v24  ;;  %v1400_v33 = vpop.f32.mrb[65].mxu0  ;;  %v3868_v34 = vpack.c.bf16 %v1980_v30, %v1979_v23  ;;  %v4256_v38 = vpop.f32.mrb[64].mxu1 }
 0x168   : > { %3954 = vst [vmem:[%s4658_s29 + $0xf0] sm:$0xff] %v3648_v28   ;;  %v1401_v36 = vadd.f32 %v4847_v35, %v1400_v33  ;;  %v4169_v37 = vpop.f32.mrb[66].mxu0  ;;  %3999 = vst [vmem:[%s4658_s29 + $0x258] sm:$0xff] %v3873_v31   ;;  %v1761_v41 = vadd.f32 %v4847_v35, %v4256_v38  ;;  %v1752_v42 = vpop.f32.mrb[65].mxu1 }
 0x169   : > { %v1412_v39 = vadd.f32 %v4847_v35, %v4169_v37  ;;  %v1403_v40 = vpop.f32.mrb[67].mxu0  ;;  %3998 = vst [vmem:[%s4658_s29 + $0x250] sm:$0xff] %v3868_v34   ;;  %v1753_v43 = vadd.f32 %v4847_v35, %v1752_v42  ;;  %v4257_v44 = vpop.f32.mrb[66].mxu1  ;;  %v1897_v45 = vmax.f32 %v1409_v32, 0.0 }
 0x16a   : > { %v1404_v24 = vadd.f32 %v4847_v35, %v1403_v40  ;;  %v1985_v47 = vmax.f32 %v1761_v41, 0.0  ;;  %v1764_v48 = vadd.f32 %v4847_v35, %v4257_v44  ;;  %v1755_v49 = vpop.f32.mrb[67].mxu1  ;;  %v1895_v50 = vmax.f32 %v1401_v36, 0.0 }
 0x16b   : > { %v1898_v46 = vmax.f32 %v1412_v39, 0.0  ;;  %v1983_v52 = vmax.f32 %v1753_v43, 0.0  ;;  %v1756_v53 = vadd.f32 %v4847_v35, %v1755_v49 }
 0x16c   : > { %v1896_v51 = vmax.f32 %v1404_v24, 0.0  ;;  %v1986_v55 = vmax.f32 %v1764_v48, 0.0 }
 0x16d   : > { %v3663_v54 = vpack.c.bf16 %v1898_v46, %v1897_v45  ;;  %v1984_v58 = vmax.f32 %v1756_v53, 0.0 }
 0x16e   : > { %v3658_v56 = vpack.c.bf16 %v1896_v51, %v1895_v50  ;;  %v4172_v57 = vpop.f32.mrb[68].mxu0  ;;  %v3883_v59 = vpack.c.bf16 %v1986_v55, %v1985_v47 }
 0x16f   : > { %3957 = vst [vmem:[%s4658_s29 + $0x108] sm:$0xff] %v3663_v54   ;;  %v1425_v60 = vadd.f32 %v4847_v35, %v4172_v57  ;;  %v1416_v61 = vpop.f32.mrb[69].mxu0  ;;  %v3878_v62 = vpack.c.bf16 %v1984_v58, %v1983_v52  ;;  %v4260_v1 = vpop.f32.mrb[68].mxu1 }
 0x170   : > { %3956 = vst [vmem:[%s4658_s29 + $0x100] sm:$0xff] %v3658_v56   ;;  %v1417_v63 = vadd.f32 %v4847_v35, %v1416_v61  ;;  %v4173_v0 = vpop.f32.mrb[70].mxu0  ;;  %4001 = vst [vmem:[%s4658_s29 + $0x268] sm:$0xff] %v3883_v59   ;;  %v1777_v4 = vadd.f32 %v4847_v35, %v4260_v1  ;;  %v1768_v5 = vpop.f32.mrb[69].mxu1 }
 0x171   : > { %v1428_v2 = vadd.f32 %v4847_v35, %v4173_v0  ;;  %v1419_v3 = vpop.f32.mrb[71].mxu0  ;;  %4000 = vst [vmem:[%s4658_s29 + $0x260] sm:$0xff] %v3878_v62   ;;  %v1769_v7 = vadd.f32 %v4847_v35, %v1768_v5  ;;  %v4261_v8 = vpop.f32.mrb[70].mxu1  ;;  %v1901_v9 = vmax.f32 %v1425_v60, 0.0 }
 0x172   : > { %v1420_v6 = vadd.f32 %v4847_v35, %v1419_v3  ;;  %v1989_v11 = vmax.f32 %v1777_v4, 0.0  ;;  %v1780_v12 = vadd.f32 %v4847_v35, %v4261_v8  ;;  %v1771_v13 = vpop.f32.mrb[71].mxu1  ;;  %v1899_v14 = vmax.f32 %v1417_v63, 0.0 }
 0x173   : > { %v1902_v10 = vmax.f32 %v1428_v2, 0.0  ;;  %v1987_v16 = vmax.f32 %v1769_v7, 0.0  ;;  %v1772_v17 = vadd.f32 %v4847_v35, %v1771_v13 }
 0x174   : > { %v1900_v15 = vmax.f32 %v1420_v6, 0.0  ;;  %v1990_v19 = vmax.f32 %v1780_v12, 0.0 }
 0x175   : > { %v3673_v18 = vpack.c.bf16 %v1902_v10, %v1901_v9  ;;  %v1988_v22 = vmax.f32 %v1772_v17, 0.0 }
 0x176   : > { %v3668_v20 = vpack.c.bf16 %v1900_v15, %v1899_v14  ;;  %v4176_v21 = vpop.f32.mrb[72].mxu0  ;;  %v3893_v23 = vpack.c.bf16 %v1990_v19, %v1989_v11 }
 0x177   : > { %3959 = vst [vmem:[%s4658_s29 + $0x118] sm:$0xff] %v3673_v18   ;;  %v1441_v25 = vadd.f32 %v4847_v35, %v4176_v21  ;;  %v1432_v26 = vpop.f32.mrb[73].mxu0  ;;  %v3888_v27 = vpack.c.bf16 %v1988_v22, %v1987_v16  ;;  %v4264_v30 = vpop.f32.mrb[72].mxu1 }
 0x178   : > { %3958 = vst [vmem:[%s4658_s29 + $0x110] sm:$0xff] %v3668_v20   ;;  %v1433_v28 = vadd.f32 %v4847_v35, %v1432_v26  ;;  %v4177_v29 = vpop.f32.mrb[74].mxu0  ;;  %4003 = vst [vmem:[%s4658_s29 + $0x278] sm:$0xff] %v3893_v23   ;;  %v1793_v33 = vadd.f32 %v4847_v35, %v4264_v30  ;;  %v1784_v34 = vpop.f32.mrb[73].mxu1 }
 0x179   : > { %v1444_v31 = vadd.f32 %v4847_v35, %v4177_v29  ;;  %v1435_v32 = vpop.f32.mrb[75].mxu0  ;;  %4002 = vst [vmem:[%s4658_s29 + $0x270] sm:$0xff] %v3888_v27   ;;  %v1785_v37 = vadd.f32 %v4847_v35, %v1784_v34  ;;  %v4265_v38 = vpop.f32.mrb[74].mxu1  ;;  %v1905_v39 = vmax.f32 %v1441_v25, 0.0 }
 0x17a   : > { %v1436_v36 = vadd.f32 %v4847_v35, %v1435_v32  ;;  %v1993_v41 = vmax.f32 %v1793_v33, 0.0  ;;  %v1796_v42 = vadd.f32 %v4847_v35, %v4265_v38  ;;  %v1787_v24 = vpop.f32.mrb[75].mxu1  ;;  %v1903_v43 = vmax.f32 %v1433_v28, 0.0 }
 0x17b   : > { %v1906_v40 = vmax.f32 %v1444_v31, 0.0  ;;  %v1991_v45 = vmax.f32 %v1785_v37, 0.0  ;;  %v1788_v46 = vadd.f32 %v4847_v35, %v1787_v24 }
 0x17c   : > { %v1904_v44 = vmax.f32 %v1436_v36, 0.0  ;;  %v1994_v48 = vmax.f32 %v1796_v42, 0.0 }
 0x17d   : > { %v3683_v47 = vpack.c.bf16 %v1906_v40, %v1905_v39  ;;  %v1992_v51 = vmax.f32 %v1788_v46, 0.0 }
 0x17e   : > { %v3678_v49 = vpack.c.bf16 %v1904_v44, %v1903_v43  ;;  %v4180_v50 = vpop.f32.mrb[76].mxu0  ;;  %v3903_v52 = vpack.c.bf16 %v1994_v48, %v1993_v41 }
 0x17f   : > { %3961 = vst [vmem:[%s4658_s29 + $0x128] sm:$0xff] %v3683_v47   ;;  %v1457_v53 = vadd.f32 %v4847_v35, %v4180_v50  ;;  %v1448_v54 = vpop.f32.mrb[77].mxu0  ;;  %v3898_v55 = vpack.c.bf16 %v1992_v51, %v1991_v45  ;;  %v4268_v58 = vpop.f32.mrb[76].mxu1 }
 0x180   : > { %3960 = vst [vmem:[%s4658_s29 + $0x120] sm:$0xff] %v3678_v49   ;;  %v1449_v56 = vadd.f32 %v4847_v35, %v1448_v54  ;;  %v4181_v57 = vpop.f32.mrb[78].mxu0  ;;  %4005 = vst [vmem:[%s4658_s29 + $0x288] sm:$0xff] %v3903_v52   ;;  %v1809_v61 = vadd.f32 %v4847_v35, %v4268_v58  ;;  %v1800_v62 = vpop.f32.mrb[77].mxu1 }
 0x181   : > { %v1460_v59 = vadd.f32 %v4847_v35, %v4181_v57  ;;  %v1451_v60 = vpop.f32.mrb[79].mxu0  ;;  %4004 = vst [vmem:[%s4658_s29 + $0x280] sm:$0xff] %v3898_v55   ;;  %v1801_v0 = vadd.f32 %v4847_v35, %v1800_v62  ;;  %v4269_v1 = vpop.f32.mrb[78].mxu1  ;;  %v1909_v2 = vmax.f32 %v1457_v53, 0.0 }
 0x182   : > { %v1452_v63 = vadd.f32 %v4847_v35, %v1451_v60  ;;  %v1997_v4 = vmax.f32 %v1809_v61, 0.0  ;;  %v1812_v5 = vadd.f32 %v4847_v35, %v4269_v1  ;;  %v1803_v6 = vpop.f32.mrb[79].mxu1  ;;  %v1907_v7 = vmax.f32 %v1449_v56, 0.0 }
 0x183   : > { %v1910_v3 = vmax.f32 %v1460_v59, 0.0  ;;  %v1995_v9 = vmax.f32 %v1801_v0, 0.0  ;;  %v1804_v10 = vadd.f32 %v4847_v35, %v1803_v6 }
 0x184   : > { %v1908_v8 = vmax.f32 %v1452_v63, 0.0  ;;  %v1998_v12 = vmax.f32 %v1812_v5, 0.0 }
 0x185   : > { %v3693_v11 = vpack.c.bf16 %v1910_v3, %v1909_v2  ;;  %v1996_v15 = vmax.f32 %v1804_v10, 0.0 }
 0x186   : > { %v3688_v13 = vpack.c.bf16 %v1908_v8, %v1907_v7  ;;  %v4184_v14 = vpop.f32.mrb[80].mxu0  ;;  %v3913_v16 = vpack.c.bf16 %v1998_v12, %v1997_v4 }
 0x187   : > { %3963 = vst [vmem:[%s4658_s29 + $0x138] sm:$0xff] %v3693_v11   ;;  %v1473_v17 = vadd.f32 %v4847_v35, %v4184_v14  ;;  %v1464_v18 = vpop.f32.mrb[81].mxu0  ;;  %v3908_v19 = vpack.c.bf16 %v1996_v15, %v1995_v9  ;;  %v4272_v22 = vpop.f32.mrb[80].mxu1 }
 0x188   : > { %3962 = vst [vmem:[%s4658_s29 + $0x130] sm:$0xff] %v3688_v13   ;;  %v1465_v20 = vadd.f32 %v4847_v35, %v1464_v18  ;;  %v4185_v21 = vpop.f32.mrb[82].mxu0  ;;  %4007 = vst [vmem:[%s4658_s29 + $0x298] sm:$0xff] %v3913_v16   ;;  %v1825_v26 = vadd.f32 %v4847_v35, %v4272_v22  ;;  %v1816_v27 = vpop.f32.mrb[81].mxu1 }
 0x189   : > { %v1476_v23 = vadd.f32 %v4847_v35, %v4185_v21  ;;  %v1467_v25 = vpop.f32.mrb[83].mxu0  ;;  %4006 = vst [vmem:[%s4658_s29 + $0x290] sm:$0xff] %v3908_v19   ;;  %v1817_v29 = vadd.f32 %v4847_v35, %v1816_v27  ;;  %v4273_v30 = vpop.f32.mrb[82].mxu1  ;;  %v1913_v31 = vmax.f32 %v1473_v17, 0.0 }
 0x18a   : > { %v1468_v28 = vadd.f32 %v4847_v35, %v1467_v25  ;;  %v2001_v33 = vmax.f32 %v1825_v26, 0.0  ;;  %v1828_v34 = vadd.f32 %v4847_v35, %v4273_v30  ;;  %v1819_v36 = vpop.f32.mrb[83].mxu1  ;;  %v1911_v37 = vmax.f32 %v1465_v20, 0.0 }
 0x18b   : > { %v1914_v32 = vmax.f32 %v1476_v23, 0.0  ;;  %v1999_v39 = vmax.f32 %v1817_v29, 0.0  ;;  %v1820_v40 = vadd.f32 %v4847_v35, %v1819_v36 }
 0x18c   : > { %v1912_v38 = vmax.f32 %v1468_v28, 0.0  ;;  %v2002_v42 = vmax.f32 %v1828_v34, 0.0 }
 0x18d   : > { %v3703_v41 = vpack.c.bf16 %v1914_v32, %v1913_v31  ;;  %v2000_v44 = vmax.f32 %v1820_v40, 0.0 }
 0x18e   : > { %v3698_v24 = vpack.c.bf16 %v1912_v38, %v1911_v37  ;;  %v4188_v43 = vpop.f32.mrb[84].mxu0  ;;  %v3923_v45 = vpack.c.bf16 %v2002_v42, %v2001_v33 }
 0x18f   : > { %3965 = vst [vmem:[%s4658_s29 + $0x148] sm:$0xff] %v3703_v41   ;;  %v1489_v46 = vadd.f32 %v4847_v35, %v4188_v43  ;;  %v1480_v47 = vpop.f32.mrb[85].mxu0  ;;  %v3918_v48 = vpack.c.bf16 %v2000_v44, %v1999_v39 }
 0x190   : > { %3964 = vst [vmem:[%s4658_s29 + $0x140] sm:$0xff] %v3698_v24   ;;  %v1481_v49 = vadd.f32 %v4847_v35, %v1480_v47  ;;  %v4189_v50 = vpop.f32.mrb[86].mxu0  ;;  %4009 = vst [vmem:[%s4658_s29 + $0x2a8] sm:$0xff] %v3923_v45  }
 0x191   : > { %v1492_v51 = vadd.f32 %v4847_v35, %v4189_v50  ;;  %v1483_v52 = vpop.f32.mrb[87].mxu0  ;;  %4008 = vst [vmem:[%s4658_s29 + $0x2a0] sm:$0xff] %v3918_v48   ;;  %v1917_v54 = vmax.f32 %v1489_v46, 0.0 }
 0x192   : > { %v1484_v53 = vadd.f32 %v4847_v35, %v1483_v52  ;;  %v1915_v56 = vmax.f32 %v1481_v49, 0.0 }
 0x193   : > { %v1918_v55 = vmax.f32 %v1492_v51, 0.0 }
 0x194   : > { %v1916_v57 = vmax.f32 %v1484_v53, 0.0 }
 0x195   : > { %v3713_v58 = vpack.c.bf16 %v1918_v55, %v1917_v54 }
 0x196   : > { %v3708_v59 = vpack.c.bf16 %v1916_v57, %v1915_v56 }
 0x197   : > { %3967 = vst [vmem:[%s4658_s29 + $0x158] sm:$0xff] %v3713_v58  }
 0x198   : > { %3966 = vst [vmem:[%s4658_s29 + $0x150] sm:$0xff] %v3708_v59  }
 0x199 PF: > { %s13_s14 = sadd.s32 1, %s4413_s14   ;;  %s4929_s12 = smov %s4409_s13 }
 0x19a   : > { %p10_p5 = scmp.ge.s32.totalorder %s13_s14, 4   ;;  %s4930_s13 = smov %s4932_s15 }
 0x19c   :  { %12 = sbr.rel (!%p10_p5) target bundleno = 2 (0x2), region = 68 }

// kernel: inception_transfer_forward.22
= control target key start
LH: loop header
LB: loop body
LE: loop exit
PB: predicated region body
PF: predicated region fallthrough
CT: control target
= control target key end

     0   :  { %s6609_s12 = smov 0   ;;  %s6611_s13 = smov 0   ;;  %s7894_s0 = inlined_call_operand.vmem [shape: bf16[2464,288], index: 0, kind: input, shape index: {}]   ;;  %s7895_s1 = inlined_call_operand.vmem [shape: bf16[288,128], index: 1, kind: input, shape index: {}]   ;;  %s7896_s2 = inlined_call_operand.vmem [shape: f32[1,128], index: 2, kind: input, shape index: {}]   ;;  %s7897_s3 = inlined_call_operand.vmem [shape: bf16[2464,128], index: 3, kind: output, shape index: {}]  }
   0x1   :  { %s6613_s14 = smov 0  }
   0x2 LB: > { %s25_s15 = sadd.s32 1, %s6580_s13  ;;  %p4405_p0 = scmp.ge.s32.totalorder %s6584_s14, 1  ;;  %s6584_s14 = sphi %s6613_s14, %s13_s14   ;;  %s6580_s13 = sphi %s6611_s13, %s7899_s13   ;;  %s6576_s12 = sphi %s6609_s12, %s7898_s12  }
   0x3   : > { %p27_p1 = scmp.ge.s32.totalorder %s25_s15, 2  ;;  %p170_p2 = scmp.lt.s32.totalorder %s6584_s14, 3 }
   0x5   : > { %s7901_s15 = smov (%p27_p1, %s25_s15), 0  ;;  %p171_p3 = pnand %p4405_p0, %p170_p2 }
   0x6   : > { %v6233_v0 = vld [vmem:[%s7895_s1] sm:$0xff] (!%p171_p3)   ;;  %v6586_v1 = vmov (!%p171_p3), 0   ;;  %v6234_v2 = vld [vmem:[%s7895_s1 + $0x8] sm:$0xff] (!%p171_p3)   ;;  %v6587_v3 = vmov (!%p171_p3), 0.0   ;;  %vm6588_vm0 = vmmov (!%p171_p3), 0   ;;  %s205_s20 = smul.u32 (!%p171_p3), 154, %s6576_s12 }
   0x7   : > { %174 = sbr.rel (%p171_p3) target bundleno = 902 (0x386), region = 32  ;;  %2075 = vmatprep.subr.bf16.mxu1 (!%p171_p3), %v6586_v1  ;;  %5585 = vmatprep.subr.bf16.mxu0 (!%p171_p3), %v6587_v3  ;;  %v6235_v4 = vld [vmem:[%s7895_s1 + $0x10] sm:$0xff] (!%p171_p3)   ;;  %v6236_v5 = vld [vmem:[%s7895_s1 + $0x18] sm:$0xff] (!%p171_p3)   ;;  %v6237_v6 = vld [vmem:[%s7895_s1 + $0x20] sm:$0xff] (!%p171_p3)   ;;  %vm1843_vm1 = vcmask (!%p171_p3), 261120  }
   0x8   : > { %2076 = vmatpush1.bf16.msra.mxu1 (!%p171_p3), %v6233_v0  ;;  %5589 = vmatprep.mubr.msk.bf16.mxu0 (!%p171_p3), %vm6588_vm0, %v6587_v3  ;;  %p206_p4 = scmp.lt.s32.totalorder (!%p171_p3), %s205_s20, 307  ;;  %v6247_v7 = vld [vmem:[%s7895_s1 + $0x80] sm:$0xff] (!%p171_p3)   ;;  %v6249_v8 = vld [vmem:[%s7895_s1 + $0x88] sm:$0xff] (!%p171_p3)   ;;  %v6239_v12 = vld [vmem:[%s7895_s1 + $0x30] sm:$0xff] (!%p171_p3)  }
   0x9   : > { %2077 = vmatprep.subr.bf16.mxu1 (!%p171_p3), %v6586_v1  ;;  %5586 = vmatpush3.bf16.msra.mxu0 (!%p171_p3), %v6247_v7  ;;  %v6238_v9 = vld [vmem:[%s7895_s1 + $0x28] sm:$0xff] (!%p171_p3)   ;;  %v6240_v13 = vld [vmem:[%s7895_s1 + $0x38] sm:$0xff] (!%p171_p3)   ;;  %v6241_v15 = vld [vmem:[%s7895_s1 + $0x40] sm:$0xff] (!%p171_p3)  }
   0xa   : > { %5587 = vmatprep.subr.bf16.mxu0 (!%p171_p3), %v6587_v3  ;;  %v6242_v16 = vld [vmem:[%s7895_s1 + $0x48] sm:$0xff] (!%p171_p3)   ;;  %v6243_v18 = vld [vmem:[%s7895_s1 + $0x50] sm:$0xff] (!%p171_p3)   ;;  %v6244_v19 = vld [vmem:[%s7895_s1 + $0x58] sm:$0xff] (!%p171_p3)  }
   0xb   : > { %v6245_v21 = vld [vmem:[%s7895_s1 + $0x60] sm:$0xff] (!%p171_p3)   ;;  %v6246_v22 = vld [vmem:[%s7895_s1 + $0x68] sm:$0xff] (!%p171_p3)   ;;  %v6248_v24 = vld [vmem:[%s7895_s1 + $0x70] sm:$0xff] (!%p171_p3)  }
   0xc   : > { %2078 = vmatpush1.bf16.msra.mxu1 (!%p171_p3), %v6234_v2  ;;  %v6250_v25 = vld [vmem:[%s7895_s1 + $0x78] sm:$0xff] (!%p171_p3)  }
   0xd   : > { %2079 = vmatprep.subr.bf16.mxu1 (!%p171_p3), %v6586_v1  ;;  %5588 = vmatpush3.bf16.msra.mxu0 (!%p171_p3), %v6249_v8 }
   0xe   : > { %s7903_s20 = smov (!%p206_p4, %s205_s20), 307 }
   0xf   : > { %s6205_s25 = smul.u32 12, %s7903_s20  ;;  %s4407_s10 = sshll.u32 %s7903_s20, 2 }
  0x10   : > { %2080 = vmatpush1.bf16.msra.mxu1 %v6235_v4  ;;  %s6938_s16 = scalar_lea.vmem %s7897_s3, %s4407_s10 }
  0x11   : > { %2081 = vmatprep.subr.bf16.mxu1 %v6586_v1  ;;  %s6662_s7 = scalar_lea.vmem %s7894_s0, %s6205_s25 }
  0x12   : > { %v6253_v10 = vld [vmem:[%s6662_s7 + $0x4] ss:$12 sps:$4 sm:$0xff]   ;;  %v6254_v11 = vld [vmem:[%s6662_s7 + $0x8] ss:$12 sps:$4 sm:$0xff]   ;;  %v6257_v14 = vld [vmem:[%s6662_s7 + $0x20] ss:$12 sps:$4 sm:$0xff]  }
  0x13   : > { %2107 = vmatprep.mubr.bf16.mxu1 %v6253_v10  ;;  %5590 = vmatmul.mubr.msk.bf16.vlgmr.msra.gmra.mrb[0].mxu0 %vm1843_vm1, %v6254_v11  ;;  %v6261_v17 = vld [vmem:[%s6662_s7 + $0x38] ss:$12 sps:$4 sm:$0xff]   ;;  %v6265_v20 = vld [vmem:[%s6662_s7 + $0x50] ss:$12 sps:$4 sm:$0xff]   ;;  %v6269_v23 = vld [vmem:[%s6662_s7 + $0x68] ss:$12 sps:$4 sm:$0xff]  }
  0x14   : > { %2082 = vmatpush1.bf16.msra.mxu1 %v6236_v5  ;;  %5593 = vmatprep.mubr.msk.bf16.mxu0 %vm6588_vm0, %v6587_v3  ;;  %v6273_v26 = vld [vmem:[%s6662_s7 + $0x80] ss:$12 sps:$4 sm:$0xff]   ;;  %v6255_v28 = vld [vmem:[%s6662_s7 + $0x1c] ss:$12 sps:$4 sm:$0xff]   ;;  %v6277_v29 = vld [vmem:[%s6662_s7 + $0x98] ss:$12 sps:$4 sm:$0xff]  }
  0x15   : > { %2083 = vmatprep.subr.bf16.mxu1 %v6586_v1  ;;  %v6251_v27 = vld [vmem:[%s6662_s7] ss:$12 sps:$4 sm:$0xff]   ;;  %v6258_v30 = vld [vmem:[%s6662_s7 + $0x18] ss:$12 sps:$4 sm:$0xff]   ;;  %v6281_v32 = vld [vmem:[%s6662_s7 + $0xb0] ss:$12 sps:$4 sm:$0xff]  }
  0x16   : > { %v6259_v31 = vld [vmem:[%s6662_s7 + $0x34] ss:$12 sps:$4 sm:$0xff]   ;;  %v6262_v33 = vld [vmem:[%s6662_s7 + $0x30] ss:$12 sps:$4 sm:$0xff]   ;;  %v6263_v34 = vld [vmem:[%s6662_s7 + $0x4c] ss:$12 sps:$4 sm:$0xff]  }
  0x17   : > { %v6285_v35 = vld [vmem:[%s6662_s7 + $0xc8] ss:$12 sps:$4 sm:$0xff]   ;;  %v6267_v37 = vld [vmem:[%s6662_s7 + $0x64] ss:$12 sps:$4 sm:$0xff]   ;;  %v6289_v38 = vld [vmem:[%s6662_s7 + $0xe0] ss:$12 sps:$4 sm:$0xff]  }
  0x18   : > { %2084 = vmatpush1.bf16.msra.mxu1 %v6237_v6  ;;  %v6266_v36 = vld [vmem:[%s6662_s7 + $0x48] ss:$12 sps:$4 sm:$0xff]   ;;  %v6270_v39 = vld [vmem:[%s6662_s7 + $0x60] ss:$12 sps:$4 sm:$0xff]   ;;  %v6293_v41 = vld [vmem:[%s6662_s7 + $0xf8] ss:$12 sps:$4 sm:$0xff]  }
  0x19   : > { %2085 = vmatprep.subr.bf16.mxu1 %v6586_v1  ;;  %v6271_v40 = vld [vmem:[%s6662_s7 + $0x7c] ss:$12 sps:$4 sm:$0xff]   ;;  %v6274_v42 = vld [vmem:[%s6662_s7 + $0x78] ss:$12 sps:$4 sm:$0xff]   ;;  %v6275_v43 = vld [vmem:[%s6662_s7 + $0x94] ss:$12 sps:$4 sm:$0xff]  }
  0x1a   : > { %v6297_v44 = vld [vmem:[%s6662_s7 + $0x110] ss:$12 sps:$4 sm:$0xff]   ;;  %v6279_v46 = vld [vmem:[%s6662_s7 + $0xac] ss:$12 sps:$4 sm:$0xff]   ;;  %v6301_v47 = vld [vmem:[%s6662_s7 + $0x128] ss:$12 sps:$4 sm:$0xff]  }
  0x1b   : > { %5594 = vmatmul.mubr.msk.bf16.gmra.mrb[4].mxu0 %vm1843_vm1, %v6257_v14  ;;  %v6278_v45 = vld [vmem:[%s6662_s7 + $0x90] ss:$12 sps:$4 sm:$0xff]   ;;  %v6282_v48 = vld [vmem:[%s6662_s7 + $0xa8] ss:$12 sps:$4 sm:$0xff]   ;;  %v6305_v50 = vld [vmem:[%s6662_s7 + $0x140] ss:$12 sps:$4 sm:$0xff]  }
  0x1c   : > { %2086 = vmatpush1.bf16.msra.mxu1 %v6238_v9  ;;  %5597 = vmatprep.mubr.msk.bf16.mxu0 %vm6588_vm0, %v6587_v3  ;;  %v6283_v49 = vld [vmem:[%s6662_s7 + $0xc4] ss:$12 sps:$4 sm:$0xff]   ;;  %v6286_v51 = vld [vmem:[%s6662_s7 + $0xc0] ss:$12 sps:$4 sm:$0xff]   ;;  %v6287_v52 = vld [vmem:[%s6662_s7 + $0xdc] ss:$12 sps:$4 sm:$0xff]  }
  0x1d   : > { %2087 = vmatprep.subr.bf16.mxu1 %v6586_v1  ;;  %v6309_v53 = vld [vmem:[%s6662_s7 + $0x158] ss:$12 sps:$4 sm:$0xff]   ;;  %v6291_v55 = vld [vmem:[%s6662_s7 + $0xf4] ss:$12 sps:$4 sm:$0xff]   ;;  %v6313_v56 = vld [vmem:[%s6662_s7 + $0x170] ss:$12 sps:$4 sm:$0xff]  }
  0x1e   : > { %v6290_v54 = vld [vmem:[%s6662_s7 + $0xd8] ss:$12 sps:$4 sm:$0xff]   ;;  %v6294_v57 = vld [vmem:[%s6662_s7 + $0xf0] ss:$12 sps:$4 sm:$0xff]   ;;  %v6317_v59 = vld [vmem:[%s6662_s7 + $0x188] ss:$12 sps:$4 sm:$0xff]  }
  0x1f   : > { %v6295_v58 = vld [vmem:[%s6662_s7 + $0x10c] ss:$12 sps:$4 sm:$0xff]   ;;  %v6298_v60 = vld [vmem:[%s6662_s7 + $0x108] ss:$12 sps:$4 sm:$0xff]   ;;  %v6299_v61 = vld [vmem:[%s6662_s7 + $0x124] ss:$12 sps:$4 sm:$0xff]  }
  0x20   : > { %2088 = vmatpush1.bf16.msra.mxu1 %v6239_v12  ;;  %v6321_v62 = vld [vmem:[%s6662_s7 + $0x1a0] ss:$12 sps:$4 sm:$0xff]   ;;  %v6303_v0 = vld [vmem:[%s6662_s7 + $0x13c] ss:$12 sps:$4 sm:$0xff]   ;;  %v6306_v2 = vld [vmem:[%s6662_s7 + $0x138] ss:$12 sps:$4 sm:$0xff]  }
  0x21   : > { %2089 = vmatprep.subr.bf16.mxu1 %v6586_v1  ;;  %v6302_v63 = vld [vmem:[%s6662_s7 + $0x120] ss:$12 sps:$4 sm:$0xff]   ;;  %v6329_v5 = vld [vmem:[%s6662_s7 + $0x1d0] ss:$12 sps:$4 sm:$0xff]   ;;  %v6333_v8 = vld [vmem:[%s6662_s7 + $0x1e8] ss:$12 sps:$4 sm:$0xff]  }
  0x22   : > { %v6307_v4 = vld [vmem:[%s6662_s7 + $0x154] ss:$12 sps:$4 sm:$0xff]   ;;  %v6310_v6 = vld [vmem:[%s6662_s7 + $0x150] ss:$12 sps:$4 sm:$0xff]   ;;  %v6311_v7 = vld [vmem:[%s6662_s7 + $0x16c] ss:$12 sps:$4 sm:$0xff]  }
  0x23   : > { %5598 = vmatmul.mubr.msk.bf16.gmra.mrb[8].mxu0 %vm1843_vm1, %v6261_v17  ;;  %v6314_v9 = vld [vmem:[%s6662_s7 + $0x168] ss:$12 sps:$4 sm:$0xff]   ;;  %v6315_v10 = vld [vmem:[%s6662_s7 + $0x184] ss:$12 sps:$4 sm:$0xff]   ;;  %v6337_v11 = vld [vmem:[%s6662_s7 + $0x200] ss:$12 sps:$4 sm:$0xff]  }
  0x24   : > { %2090 = vmatpush1.bf16.msra.mxu1 %v6240_v13  ;;  %5601 = vmatprep.mubr.msk.bf16.mxu0 %vm6588_vm0, %v6587_v3  ;;  %v6318_v12 = vld [vmem:[%s6662_s7 + $0x180] ss:$12 sps:$4 sm:$0xff]   ;;  %v6319_v13 = vld [vmem:[%s6662_s7 + $0x19c] ss:$12 sps:$4 sm:$0xff]   ;;  %v6341_v14 = vld [vmem:[%s6662_s7 + $0x218] ss:$12 sps:$4 sm:$0xff]  }
  0x25   : > { %2091 = vmatprep.subr.bf16.mxu1 %v6586_v1  ;;  %v6345_v17 = vld [vmem:[%s6662_s7 + $0x230] ss:$12 sps:$4 sm:$0xff]  }
  0x28   : > { %2092 = vmatpush1.bf16.msra.mxu1 %v6241_v15  ;;  %v6322_v15 = vld [vmem:[%s6662_s7 + $0x198] ss:$12 sps:$4 sm:$0xff]  }
  0x29   : > { %2093 = vmatprep.subr.bf16.mxu1 %v6586_v1 }
  0x2b   : > { %5602 = vmatmul.mubr.msk.bf16.gmra.mrb[12].mxu0 %vm1843_vm1, %v6265_v20  ;;  %v6349_v20 = vld [vmem:[%s6662_s7 + $0x248] ss:$12 sps:$4 sm:$0xff]  }
  0x2c   : > { %2094 = vmatpush1.bf16.msra.mxu1 %v6242_v16  ;;  %5605 = vmatprep.mubr.msk.bf16.mxu0 %vm6588_vm0, %v6587_v3  ;;  %v6323_v16 = vld [vmem:[%s6662_s7 + $0x1b4] ss:$12 sps:$4 sm:$0xff]  }
  0x2d   : > { %2095 = vmatprep.subr.bf16.mxu1 %v6586_v1 }
  0x30   : > { %2096 = vmatpush1.bf16.msra.mxu1 %v6243_v18  ;;  %v6326_v18 = vld [vmem:[%s6662_s7 + $0x1b0] ss:$12 sps:$4 sm:$0xff]  }
  0x31   : > { %2097 = vmatprep.subr.bf16.mxu1 %v6586_v1 }
  0x33   : > { %5606 = vmatmul.mubr.msk.bf16.gmra.mrb[16].mxu0 %vm1843_vm1, %v6269_v23  ;;  %v6353_v23 = vld [vmem:[%s6662_s7 + $0x260] ss:$12 sps:$4 sm:$0xff]  }
  0x34   : > { %2098 = vmatpush1.bf16.msra.mxu1 %v6244_v19  ;;  %5609 = vmatprep.mubr.msk.bf16.mxu0 %vm6588_vm0, %v6587_v3  ;;  %v6327_v19 = vld [vmem:[%s6662_s7 + $0x1cc] ss:$12 sps:$4 sm:$0xff]  }
  0x35   : > { %2099 = vmatprep.subr.bf16.mxu1 %v6586_v1 }
  0x38   : > { %2100 = vmatpush1.bf16.msra.mxu1 %v6245_v21  ;;  %v6330_v21 = vld [vmem:[%s6662_s7 + $0x1c8] ss:$12 sps:$4 sm:$0xff]  }
  0x39   : > { %2101 = vmatprep.subr.bf16.mxu1 %v6586_v1 }
  0x3b   : > { %5610 = vmatmul.mubr.msk.bf16.gmra.mrb[20].mxu0 %vm1843_vm1, %v6273_v26  ;;  %v6357_v26 = vld [vmem:[%s6662_s7 + $0x278] ss:$12 sps:$4 sm:$0xff]  }
  0x3c   : > { %2102 = vmatpush1.bf16.msra.mxu1 %v6246_v22  ;;  %5613 = vmatprep.mubr.msk.bf16.mxu0 %vm6588_vm0, %v6587_v3  ;;  %v6331_v22 = vld [vmem:[%s6662_s7 + $0x1e4] ss:$12 sps:$4 sm:$0xff]  }
  0x3d   : > { %2103 = vmatprep.subr.bf16.mxu1 %v6586_v1 }
  0x40   : > { %2104 = vmatpush1.bf16.msra.mxu1 %v6248_v24  ;;  %v6334_v24 = vld [vmem:[%s6662_s7 + $0x1e0] ss:$12 sps:$4 sm:$0xff]  }
  0x41   : > { %2105 = vmatprep.subr.bf16.mxu1 %v6586_v1  ;;  %v6325_v1 = vld [vmem:[%s6662_s7 + $0x1b8] ss:$12 sps:$4 sm:$0xff]  }
  0x43   : > { %5614 = vmatmul.mubr.msk.bf16.gmra.mrb[24].mxu0 %vm1843_vm1, %v6277_v29 }
  0x44   : > { %2106 = vmatpush1.bf16.msra.mxu1 %v6250_v25  ;;  %5617 = vmatprep.mubr.msk.bf16.mxu0 %vm6588_vm0, %v6587_v3  ;;  %v6335_v25 = vld [vmem:[%s6662_s7 + $0x1fc] ss:$12 sps:$4 sm:$0xff]  }
  0x47   : > { %2108 = vmatmul.mubr.bf16.vlgmr.msra.gmra.mrb[0].mxu1 %v6251_v27  ;;  %v6338_v27 = vld [vmem:[%s6662_s7 + $0x1f8] ss:$12 sps:$4 sm:$0xff]  }
  0x48   : > { %2115 = vmatprep.mubr.bf16.mxu1 %v6255_v28  ;;  %v6339_v28 = vld [vmem:[%s6662_s7 + $0x214] ss:$12 sps:$4 sm:$0xff]  }
  0x4b   : > { %5618 = vmatmul.mubr.msk.bf16.gmra.mrb[28].mxu0 %vm1843_vm1, %v6281_v32 }
  0x4c   : > { %5621 = vmatprep.mubr.msk.bf16.mxu0 %vm6588_vm0, %v6587_v3 }
  0x4f   : > { %2116 = vmatmul.mubr.bf16.gmra.mrb[4].mxu1 %v6258_v30 }
  0x50   : > { %2123 = vmatprep.mubr.bf16.mxu1 %v6259_v31  ;;  %v6361_v31 = vld [vmem:[%s6662_s7 + $0x290] ss:$12 sps:$4 sm:$0xff]  }
  0x53   : > { %5622 = vmatmul.mubr.msk.bf16.gmra.mrb[32].mxu0 %vm1843_vm1, %v6285_v35  ;;  %v6343_v35 = vld [vmem:[%s6662_s7 + $0x22c] ss:$12 sps:$4 sm:$0xff]  }
  0x54   : > { %5625 = vmatprep.mubr.msk.bf16.mxu0 %vm6588_vm0, %v6587_v3 }
  0x57   : > { %2124 = vmatmul.mubr.bf16.gmra.mrb[8].mxu1 %v6262_v33  ;;  %v6342_v33 = vld [vmem:[%s6662_s7 + $0x210] ss:$12 sps:$4 sm:$0xff]  }
  0x58   : > { %2131 = vmatprep.mubr.bf16.mxu1 %v6263_v34 }
  0x5b   : > { %5626 = vmatmul.mubr.msk.bf16.gmra.mrb[36].mxu0 %vm1843_vm1, %v6289_v38  ;;  %v6365_v38 = vld [vmem:[%s6662_s7 + $0x2a8] ss:$12 sps:$4 sm:$0xff]  }
  0x5c   : > { %5629 = vmatprep.mubr.msk.bf16.mxu0 %vm6588_vm0, %v6587_v3 }
  0x5f   : > { %2132 = vmatmul.mubr.bf16.gmra.mrb[12].mxu1 %v6266_v36 }
  0x60   : > { %2139 = vmatprep.mubr.bf16.mxu1 %v6267_v37 }
  0x63   : > { %5630 = vmatmul.mubr.msk.bf16.gmra.mrb[40].mxu0 %vm1843_vm1, %v6293_v41 }
  0x64   : > { %5633 = vmatprep.mubr.msk.bf16.mxu0 %vm6588_vm0, %v6587_v3 }
  0x67   : > { %2140 = vmatmul.mubr.bf16.gmra.mrb[16].mxu1 %v6270_v39 }
  0x68   : > { %2147 = vmatprep.mubr.bf16.mxu1 %v6271_v40  ;;  %v6346_v40 = vld [vmem:[%s6662_s7 + $0x228] ss:$12 sps:$4 sm:$0xff]  }
  0x6b   : > { %5634 = vmatmul.mubr.msk.bf16.gmra.mrb[44].mxu0 %vm1843_vm1, %v6297_v44 }
  0x6c   : > { %5637 = vmatprep.mubr.msk.bf16.mxu0 %vm6588_vm0, %v6587_v3 }
  0x6f   : > { %2148 = vmatmul.mubr.bf16.gmra.mrb[20].mxu1 %v6274_v42  ;;  %v6347_v42 = vld [vmem:[%s6662_s7 + $0x244] ss:$12 sps:$4 sm:$0xff]  }
  0x70   : > { %2155 = vmatprep.mubr.bf16.mxu1 %v6275_v43 }
  0x73   : > { %5638 = vmatmul.mubr.msk.bf16.gmra.mrb[48].mxu0 %vm1843_vm1, %v6301_v47  ;;  %v6350_v47 = vld [vmem:[%s6662_s7 + $0x240] ss:$12 sps:$4 sm:$0xff]  }
  0x74   : > { %5641 = vmatprep.mubr.msk.bf16.mxu0 %vm6588_vm0, %v6587_v3 }
  0x77   : > { %2156 = vmatmul.mubr.bf16.gmra.mrb[24].mxu1 %v6278_v45  ;;  %v6369_v45 = vld [vmem:[%s6662_s7 + $0x2c0] ss:$12 sps:$4 sm:$0xff]  }
  0x78   : > { %2163 = vmatprep.mubr.bf16.mxu1 %v6279_v46 }
  0x7b   : > { %5642 = vmatmul.mubr.msk.bf16.gmra.mrb[52].mxu0 %vm1843_vm1, %v6305_v50 }
  0x7c   : > { %5645 = vmatprep.mubr.msk.bf16.mxu0 %vm6588_vm0, %v6587_v3 }
  0x7f   : > { %2164 = vmatmul.mubr.bf16.gmra.mrb[28].mxu1 %v6282_v48 }
  0x80   : > { %2171 = vmatprep.mubr.bf16.mxu1 %v6283_v49  ;;  %v6351_v49 = vld [vmem:[%s6662_s7 + $0x25c] ss:$12 sps:$4 sm:$0xff]  }
  0x83   : > { %5646 = vmatmul.mubr.msk.bf16.gmra.mrb[56].mxu0 %vm1843_vm1, %v6309_v53 }
  0x84   : > { %5649 = vmatprep.mubr.msk.bf16.mxu0 %vm6588_vm0, %v6587_v3 }
  0x87   : > { %2172 = vmatmul.mubr.bf16.gmra.mrb[32].mxu1 %v6286_v51 }
  0x88   : > { %2179 = vmatprep.mubr.bf16.mxu1 %v6287_v52  ;;  %v6373_v52 = vld [vmem:[%s6662_s7 + $0x2d8] ss:$12 sps:$4 sm:$0xff]  }
  0x8b   : > { %5650 = vmatmul.mubr.msk.bf16.gmra.mrb[60].mxu0 %vm1843_vm1, %v6313_v56  ;;  %v6355_v56 = vld [vmem:[%s6662_s7 + $0x274] ss:$12 sps:$4 sm:$0xff]  }
  0x8c   : > { %5653 = vmatprep.mubr.msk.bf16.mxu0 %vm6588_vm0, %v6587_v3 }
  0x8f   : > { %2180 = vmatmul.mubr.bf16.gmra.mrb[36].mxu1 %v6290_v54  ;;  %v6354_v54 = vld [vmem:[%s6662_s7 + $0x258] ss:$12 sps:$4 sm:$0xff]  }
  0x90   : > { %2187 = vmatprep.mubr.bf16.mxu1 %v6291_v55 }
  0x93   : > { %5654 = vmatmul.mubr.msk.bf16.gmra.mrb[64].mxu0 %vm1843_vm1, %v6317_v59  ;;  %v6377_v59 = vld [vmem:[%s6662_s7 + $0x2f0] ss:$12 sps:$4 sm:$0xff]  }
  0x94   : > { %5657 = vmatprep.mubr.msk.bf16.mxu0 %vm6588_vm0, %v6587_v3 }
  0x97   : > { %2188 = vmatmul.mubr.bf16.gmra.mrb[40].mxu1 %v6294_v57 }
  0x98   : > { %2195 = vmatprep.mubr.bf16.mxu1 %v6295_v58 }
  0x9b   : > { %5658 = vmatmul.mubr.msk.bf16.gmra.mrb[68].mxu0 %vm1843_vm1, %v6321_v62 }
  0x9c   : > { %5661 = vmatprep.mubr.msk.bf16.mxu0 %vm6588_vm0, %v6587_v3 }
  0x9f   : > { %2196 = vmatmul.mubr.bf16.gmra.mrb[44].mxu1 %v6298_v60 }
  0xa0   : > { %2203 = vmatprep.mubr.bf16.mxu1 %v6299_v61  ;;  %v6358_v61 = vld [vmem:[%s6662_s7 + $0x270] ss:$12 sps:$4 sm:$0xff]  }
  0xa3   : > { %5662 = vmatmul.mubr.msk.bf16.gmra.mrb[72].mxu0 %vm1843_vm1, %v6325_v1 }
  0xa4   : > { %5665 = vmatprep.mubr.msk.bf16.mxu0 %vm6588_vm0, %v6587_v3 }
  0xa7   : > { %2204 = vmatmul.mubr.bf16.gmra.mrb[48].mxu1 %v6302_v63  ;;  %v6359_v63 = vld [vmem:[%s6662_s7 + $0x28c] ss:$12 sps:$4 sm:$0xff]  }
  0xa8   : > { %2211 = vmatprep.mubr.bf16.mxu1 %v6303_v0  ;;  %v6915_v0 = vld [vmem:[%s7896_s2] ss:$0 sm:$0xff] }
  0xab   : > { %5666 = vmatmul.mubr.msk.bf16.gmra.mrb[76].mxu0 %vm1843_vm1, %v6329_v5 }
  0xac   : > { %5669 = vmatprep.mubr.msk.bf16.mxu0 %vm6588_vm0, %v6587_v3 }
  0xaf   : > { %2212 = vmatmul.mubr.bf16.gmra.mrb[52].mxu1 %v6306_v2 }
  0xb0   : > { %2219 = vmatprep.mubr.bf16.mxu1 %v6307_v4  ;;  %v6381_v4 = vld [vmem:[%s6662_s7 + $0x308] ss:$12 sps:$4 sm:$0xff]  }
  0xb3   : > { %5670 = vmatmul.mubr.msk.bf16.gmra.mrb[80].mxu0 %vm1843_vm1, %v6333_v8 }
  0xb4   : > { %5673 = vmatprep.mubr.msk.bf16.mxu0 %vm6588_vm0, %v6587_v3 }
  0xb7   : > { %2220 = vmatmul.mubr.bf16.gmra.mrb[56].mxu1 %v6310_v6 }
  0xb8   : > { %2227 = vmatprep.mubr.bf16.mxu1 %v6311_v7 }
  0xbb   : > { %5674 = vmatmul.mubr.msk.bf16.gmra.mrb[84].mxu0 %vm1843_vm1, %v6337_v11 }
  0xbc   : > { %5677 = vmatprep.mubr.msk.bf16.mxu0 %vm6588_vm0, %v6587_v3 }
  0xbf   : > { %2228 = vmatmul.mubr.bf16.gmra.mrb[60].mxu1 %v6314_v9  ;;  %v6362_v9 = vld [vmem:[%s6662_s7 + $0x288] ss:$12 sps:$4 sm:$0xff]  }
  0xc0   : > { %2235 = vmatprep.mubr.bf16.mxu1 %v6315_v10 }
  0xc3   : > { %5678 = vmatmul.mubr.msk.bf16.gmra.mrb[88].mxu0 %vm1843_vm1, %v6341_v14 }
  0xc4   : > { %5681 = vmatprep.mubr.msk.bf16.mxu0 %vm6588_vm0, %v6587_v3 }
  0xc7   : > { %2236 = vmatmul.mubr.bf16.gmra.mrb[64].mxu1 %v6318_v12  ;;  %v6363_v12 = vld [vmem:[%s6662_s7 + $0x2a4] ss:$12 sps:$4 sm:$0xff]  }
  0xc8   : > { %2243 = vmatprep.mubr.bf16.mxu1 %v6319_v13 }
  0xcb   : > { %5682 = vmatmul.mubr.msk.bf16.gmra.mrb[92].mxu0 %vm1843_vm1, %v6345_v17 }
  0xcc   : > { %5685 = vmatprep.mubr.msk.bf16.mxu0 %vm6588_vm0, %v6587_v3 }
  0xcf   : > { %2244 = vmatmul.mubr.bf16.gmra.mrb[68].mxu1 %v6322_v15 }
  0xd0   : > { %2251 = vmatprep.mubr.bf16.mxu1 %v6323_v16 }
  0xd3   : > { %5686 = vmatmul.mubr.msk.bf16.gmra.mrb[96].mxu0 %vm1843_vm1, %v6349_v20 }
  0xd4   : > { %5689 = vmatprep.mubr.msk.bf16.mxu0 %vm6588_vm0, %v6587_v3 }
  0xd7   : > { %2252 = vmatmul.mubr.bf16.gmra.mrb[72].mxu1 %v6326_v18 }
  0xd8   : > { %2259 = vmatprep.mubr.bf16.mxu1 %v6327_v19 }
  0xdb   : > { %5690 = vmatmul.mubr.msk.bf16.gmra.mrb[100].mxu0 %vm1843_vm1, %v6353_v23 }
  0xdc   : > { %5693 = vmatprep.mubr.msk.bf16.mxu0 %vm6588_vm0, %v6587_v3 }
  0xdf   : > { %2260 = vmatmul.mubr.bf16.gmra.mrb[76].mxu1 %v6330_v21  ;;  %v6385_v21 = vld [vmem:[%s6662_s7 + $0x320] ss:$12 sps:$4 sm:$0xff]  }
  0xe0   : > { %2267 = vmatprep.mubr.bf16.mxu1 %v6331_v22 }
  0xe3   : > { %5694 = vmatmul.mubr.msk.bf16.gmra.mrb[104].mxu0 %vm1843_vm1, %v6357_v26 }
  0xe4   : > { %5697 = vmatprep.mubr.msk.bf16.mxu0 %vm6588_vm0, %v6587_v3 }
  0xe6   : > { %v6862_v29 = vpop.f32.mrb[0].mxu0 }
  0xe7   : > { %2268 = vmatmul.mubr.bf16.gmra.mrb[80].mxu1 %v6334_v24  ;;  %v5591_v30 = vpop.f32.mrb[1].mxu0 }
  0xe8   : > { %2275 = vmatprep.mubr.bf16.mxu1 %v6335_v25  ;;  %v6865_v32 = vpop.f32.mrb[2].mxu0  ;;  %v6367_v30 = vld [vmem:[%s6662_s7 + $0x2bc] ss:$12 sps:$4 sm:$0xff]  }
  0xe9   : > { %v5592_v34 = vpop.f32.mrb[3].mxu0 }
  0xeb   : > { %5698 = vmatmul.mubr.msk.bf16.gmra.mrb[108].mxu0 %vm1843_vm1, %v6361_v31 }
  0xec   : > { %5701 = vmatprep.mubr.msk.bf16.mxu0 %vm6588_vm0, %v6587_v3 }
  0xee   : > { %v6872_v36 = vpop.f32.mrb[4].mxu0 }
  0xef   : > { %2276 = vmatmul.mubr.bf16.gmra.mrb[84].mxu1 %v6338_v27  ;;  %v5595_v37 = vpop.f32.mrb[5].mxu0  ;;  %v6366_v27 = vld [vmem:[%s6662_s7 + $0x2a0] ss:$12 sps:$4 sm:$0xff]  }
  0xf0   : > { %2283 = vmatprep.mubr.bf16.mxu1 %v6339_v28  ;;  %v6875_v39 = vpop.f32.mrb[6].mxu0 }
  0xf1   : > { %v5596_v41 = vpop.f32.mrb[7].mxu0 }
  0xf3   : > { %5702 = vmatmul.mubr.msk.bf16.gmra.mrb[112].mxu0 %vm1843_vm1, %v6365_v38 }
  0xf4   : > { %5705 = vmatprep.mubr.msk.bf16.mxu0 %vm6588_vm0, %v6587_v3 }
  0xf6   : > { %v6882_v43 = vpop.f32.mrb[8].mxu0 }
  0xf7   : > { %2284 = vmatmul.mubr.bf16.gmra.mrb[88].mxu1 %v6342_v33  ;;  %v5599_v44 = vpop.f32.mrb[9].mxu0 }
  0xf8   : > { %2291 = vmatprep.mubr.bf16.mxu1 %v6343_v35  ;;  %v6885_v46 = vpop.f32.mrb[10].mxu0 }
  0xf9   : > { %v5600_v48 = vpop.f32.mrb[11].mxu0 }
  0xfa   : > { %v6370_v48 = vld [vmem:[%s6662_s7 + $0x2b8] ss:$12 sps:$4 sm:$0xff]  }
  0xfb   : > { %5706 = vmatmul.mubr.msk.bf16.gmra.mrb[116].mxu0 %vm1843_vm1, %v6369_v45 }
  0xfc   : > { %5709 = vmatprep.mubr.msk.bf16.mxu0 %vm6588_vm0, %v6587_v3 }
  0xfe   : > { %v6892_v50 = vpop.f32.mrb[12].mxu0 }
  0xff   : > { %2292 = vmatmul.mubr.bf16.gmra.mrb[92].mxu1 %v6346_v40  ;;  %v5603_v51 = vpop.f32.mrb[13].mxu0  ;;  %v6389_v40 = vld [vmem:[%s6662_s7 + $0x338] ss:$12 sps:$4 sm:$0xff]  }
 0x100   : > { %2299 = vmatprep.mubr.bf16.mxu1 %v6347_v42  ;;  %v6895_v53 = vpop.f32.mrb[14].mxu0  ;;  %v6371_v51 = vld [vmem:[%s6662_s7 + $0x2d4] ss:$12 sps:$4 sm:$0xff]  }
 0x101   : > { %v5604_v55 = vpop.f32.mrb[15].mxu0 }
 0x103   : > { %5710 = vmatmul.mubr.msk.bf16.gmra.mrb[120].mxu0 %vm1843_vm1, %v6373_v52 }
 0x104   : > { %5713 = vmatprep.mubr.msk.bf16.mxu0 %vm6588_vm0, %v6587_v3 }
 0x106   : > { %v6902_v57 = vpop.f32.mrb[16].mxu0 }
 0x107   : > { %2300 = vmatmul.mubr.bf16.gmra.mrb[96].mxu1 %v6350_v47  ;;  %v5607_v58 = vpop.f32.mrb[17].mxu0 }
 0x108   : > { %2307 = vmatprep.mubr.bf16.mxu1 %v6351_v49  ;;  %v6905_v60 = vpop.f32.mrb[18].mxu0 }
 0x109   : > { %v5608_v62 = vpop.f32.mrb[19].mxu0 }
 0x10a   : > { %v6393_v62 = vld [vmem:[%s6662_s7 + $0x350] ss:$12 sps:$4 sm:$0xff]  }
 0x10b   : > { %5714 = vmatmul.mubr.msk.bf16.gmra.mrb[124].mxu0 %vm1843_vm1, %v6377_v59 }
 0x10c   : > { %5717 = vmatprep.mubr.msk.bf16.mxu0 %vm6588_vm0, %v6587_v3 }
 0x10e   : > { %v6917_v1 = vpop.f32.mrb[20].mxu0 }
 0x10f   : > { %2308 = vmatmul.mubr.bf16.gmra.mrb[100].mxu1 %v6354_v54  ;;  %v5611_v2 = vpop.f32.mrb[21].mxu0 }
 0x110   : > { %2315 = vmatprep.mubr.bf16.mxu1 %v6355_v56  ;;  %v6920_v6 = vpop.f32.mrb[22].mxu0 }
 0x111   : > { %v5612_v10 = vpop.f32.mrb[23].mxu0 }
 0x112   : > { %v6375_v10 = vld [vmem:[%s6662_s7 + $0x2ec] ss:$12 sps:$4 sm:$0xff]  }
 0x113   : > { %5718 = vmatmul.mubr.msk.bf16.gmra.mrb[128].mxu0 %vm1843_vm1, %v6381_v4 }
 0x114   : > { %5721 = vmatprep.mubr.msk.bf16.mxu0 %vm6588_vm0, %v6587_v3 }
 0x116   : > { %v6932_v17 = vpop.f32.mrb[24].mxu0 }
 0x117   : > { %2316 = vmatmul.mubr.bf16.gmra.mrb[104].mxu1 %v6358_v61  ;;  %v5615_v20 = vpop.f32.mrb[25].mxu0 }
 0x118   : > { %2323 = vmatprep.mubr.bf16.mxu1 %v6359_v63  ;;  %v6940_v23 = vpop.f32.mrb[26].mxu0 }
 0x119   : > { %v5616_v28 = vpop.f32.mrb[27].mxu0 }
 0x11a   : > { %v2109_v5 = vpop.f32.mrb[0].mxu1  ;;  %v6379_v28 = vld [vmem:[%s6662_s7 + $0x304] ss:$12 sps:$4 sm:$0xff]  }
 0x11b   : > { %v2110_v7 = vadd.f32 %v6915_v0, %v2109_v5  ;;  %v2111_v8 = vpop.f32.mrb[1].mxu1  ;;  %5722 = vmatmul.mubr.msk.bf16.gmra.mrb[132].mxu0 %vm1843_vm1, %v6385_v21 }
 0x11c   : > { %v2112_v11 = vpop.f32.mrb[2].mxu1  ;;  %5725 = vmatprep.mubr.msk.bf16.mxu0 %vm6588_vm0, %v6587_v3  ;;  %v6374_v8 = vld [vmem:[%s6662_s7 + $0x2d0] ss:$12 sps:$4 sm:$0xff]  }
 0x11d   : > { %v2759_v13 = vadd.f32 %v6862_v29, %v2110_v7  ;;  %v2113_v14 = vadd.f32 %v6915_v0, %v2112_v11  ;;  %v2114_v15 = vpop.f32.mrb[3].mxu1 }
 0x11e   : > { %v6952_v35 = vpop.f32.mrb[28].mxu0 }
 0x11f   : > { %v2762_v16 = vadd.f32 %v6865_v32, %v2113_v14  ;;  %2324 = vmatmul.mubr.bf16.gmra.mrb[108].mxu1 %v6362_v9  ;;  %v3373_v18 = vmax.f32 %v2759_v13, 0.0 }
 0x120   : > { %2331 = vmatprep.mubr.bf16.mxu1 %v6363_v12 }
 0x121   : > { %v3374_v19 = vmax.f32 %v2762_v16, 0.0 }
 0x122   : > { %v2117_v22 = vpop.f32.mrb[4].mxu1 }
 0x123   : > { %v5048_v24 = vpack.c.bf16 %v3374_v19, %v3373_v18  ;;  %v2118_v25 = vadd.f32 %v6915_v0, %v2117_v22  ;;  %v2119_v26 = vpop.f32.mrb[5].mxu1  ;;  %5726 = vmatmul.mubr.msk.bf16.gmra.mrb[136].mxu0 %vm1843_vm1, %v6389_v40  ;;  %v6397_v19 = vld [vmem:[%s6662_s7 + $0x368] ss:$12 sps:$4 sm:$0xff]  }
 0x124   : > { %v2120_v29 = vpop.f32.mrb[6].mxu1  ;;  %5729 = vmatprep.mubr.msk.bf16.mxu0 %vm6588_vm0, %v6587_v3  ;;  %v6378_v26 = vld [vmem:[%s6662_s7 + $0x2e8] ss:$12 sps:$4 sm:$0xff]  }
 0x125   : > { %5049 = vst [vmem:[%s6938_s16] sm:$0xff] %v5048_v24   ;;  %v2767_v31 = vadd.f32 %v6872_v36, %v2118_v25  ;;  %v2121_v32 = vadd.f32 %v6915_v0, %v2120_v29  ;;  %v2122_v33 = vpop.f32.mrb[7].mxu1  ;;  %v5619_v36 = vpop.f32.mrb[29].mxu0 }
 0x126   : > { %v6955_v42 = vpop.f32.mrb[30].mxu0 }
 0x127   : > { %v2770_v34 = vadd.f32 %v6875_v39, %v2121_v32  ;;  %2332 = vmatmul.mubr.bf16.gmra.mrb[112].mxu1 %v6366_v27  ;;  %v3375_v37 = vmax.f32 %v2767_v31, 0.0  ;;  %v5620_v49 = vpop.f32.mrb[31].mxu0 }
 0x128   : > { %2339 = vmatprep.mubr.bf16.mxu1 %v6367_v30  ;;  %v6967_v58 = vpop.f32.mrb[32].mxu0  ;;  %v6383_v49 = vld [vmem:[%s6662_s7 + $0x31c] ss:$12 sps:$4 sm:$0xff]  }
 0x129   : > { %v3376_v38 = vmax.f32 %v2770_v34, 0.0 }
 0x12a   : > { %v2125_v41 = vpop.f32.mrb[8].mxu1 }
 0x12b   : > { %v5053_v44 = vpack.c.bf16 %v3376_v38, %v3375_v37  ;;  %v2126_v45 = vadd.f32 %v6915_v0, %v2125_v41  ;;  %v2127_v47 = vpop.f32.mrb[9].mxu1  ;;  %5730 = vmatmul.mubr.msk.bf16.gmra.mrb[140].mxu0 %vm1843_vm1, %v6393_v62  ;;  %v6401_v38 = vld [vmem:[%s6662_s7 + $0x380] ss:$12 sps:$4 sm:$0xff]  }
 0x12c   : > { %v2128_v39 = vpop.f32.mrb[10].mxu1  ;;  %5733 = vmatprep.mubr.msk.bf16.mxu0 %vm6588_vm0, %v6587_v3  ;;  %v6382_v47 = vld [vmem:[%s6662_s7 + $0x300] ss:$12 sps:$4 sm:$0xff]  }
 0x12d   : > { %5430 = vst [vmem:[%s6938_s16 + $0x8] sm:$0xff] %v5053_v44   ;;  %v2775_v52 = vadd.f32 %v6882_v43, %v2126_v45  ;;  %v2129_v54 = vadd.f32 %v6915_v0, %v2128_v39  ;;  %v2130_v55 = vpop.f32.mrb[11].mxu1  ;;  %v5623_v43 = vpop.f32.mrb[33].mxu0 }
 0x12e   : > { %v6970_v2 = vpop.f32.mrb[34].mxu0 }
 0x12f   : > { %v2778_v56 = vadd.f32 %v6885_v46, %v2129_v54  ;;  %2340 = vmatmul.mubr.bf16.gmra.mrb[116].mxu1 %v6370_v48  ;;  %v3377_v59 = vmax.f32 %v2775_v52, 0.0  ;;  %v5624_v9 = vpop.f32.mrb[35].mxu0 }
 0x130   : > { %2347 = vmatprep.mubr.bf16.mxu1 %v6371_v51  ;;  %v6982_v15 = vpop.f32.mrb[36].mxu0  ;;  %v6387_v9 = vld [vmem:[%s6662_s7 + $0x334] ss:$12 sps:$4 sm:$0xff]  }
 0x131   : > { %v3378_v61 = vmax.f32 %v2778_v56, 0.0 }
 0x132   : > { %v2133_v63 = vpop.f32.mrb[12].mxu1 }
 0x133   : > { %v5058_v4 = vpack.c.bf16 %v3378_v61, %v3377_v59  ;;  %v2134_v5 = vadd.f32 %v6915_v0, %v2133_v63  ;;  %v2135_v7 = vpop.f32.mrb[13].mxu1  ;;  %5734 = vmatmul.mubr.msk.bf16.gmra.mrb[144].mxu0 %vm1843_vm1, %v6397_v19  ;;  %v6405_v61 = vld [vmem:[%s6662_s7 + $0x398] ss:$12 sps:$4 sm:$0xff]  }
 0x134   : > { %v2136_v46 = vpop.f32.mrb[14].mxu1  ;;  %5737 = vmatprep.mubr.msk.bf16.mxu0 %vm6588_vm0, %v6587_v3  ;;  %v6386_v7 = vld [vmem:[%s6662_s7 + $0x318] ss:$12 sps:$4 sm:$0xff]  }
 0x135   : > { %5431 = vst [vmem:[%s6938_s16 + $0x10] sm:$0xff] %v5058_v4   ;;  %v2783_v11 = vadd.f32 %v6892_v50, %v2134_v5  ;;  %v2137_v12 = vadd.f32 %v6915_v0, %v2136_v46  ;;  %v2138_v13 = vpop.f32.mrb[15].mxu1  ;;  %v5627_v50 = vpop.f32.mrb[37].mxu0 }
 0x136   : > { %v6985_v21 = vpop.f32.mrb[38].mxu0 }
 0x137   : > { %v2786_v14 = vadd.f32 %v6895_v53, %v2137_v12  ;;  %2348 = vmatmul.mubr.bf16.gmra.mrb[120].mxu1 %v6374_v8  ;;  %v3379_v16 = vmax.f32 %v2783_v11, 0.0  ;;  %v5628_v27 = vpop.f32.mrb[39].mxu0 }
 0x138   : > { %2355 = vmatprep.mubr.bf16.mxu1 %v6375_v10  ;;  %v6997_v33 = vpop.f32.mrb[40].mxu0  ;;  %v6391_v27 = vld [vmem:[%s6662_s7 + $0x34c] ss:$12 sps:$4 sm:$0xff]  }
 0x139   : > { %v3380_v18 = vmax.f32 %v2786_v14, 0.0 }
 0x13a   : > { %v2141_v20 = vpop.f32.mrb[16].mxu1 }
 0x13b   : > { %v5063_v22 = vpack.c.bf16 %v3380_v18, %v3379_v16  ;;  %v2142_v24 = vadd.f32 %v6915_v0, %v2141_v20  ;;  %v2143_v25 = vpop.f32.mrb[17].mxu1  ;;  %5738 = vmatmul.mubr.msk.bf16.gmra.mrb[148].mxu0 %vm1843_vm1, %v6401_v38  ;;  %v6409_v18 = vld [vmem:[%s6662_s7 + $0x3b0] ss:$12 sps:$4 sm:$0xff]  }
 0x13c   : > { %v2144_v53 = vpop.f32.mrb[18].mxu1  ;;  %5741 = vmatprep.mubr.msk.bf16.mxu0 %vm6588_vm0, %v6587_v3  ;;  %v6390_v25 = vld [vmem:[%s6662_s7 + $0x330] ss:$12 sps:$4 sm:$0xff]  }
 0x13d   : > { %5432 = vst [vmem:[%s6938_s16 + $0x18] sm:$0xff] %v5063_v22   ;;  %v2791_v29 = vadd.f32 %v6902_v57, %v2142_v24  ;;  %v2145_v30 = vadd.f32 %v6915_v0, %v2144_v53  ;;  %v2146_v31 = vpop.f32.mrb[19].mxu1  ;;  %v5631_v57 = vpop.f32.mrb[41].mxu0 }
 0x13e   : > { %v7000_v40 = vpop.f32.mrb[42].mxu0 }
 0x13f   : > { %v2794_v32 = vadd.f32 %v6905_v60, %v2145_v30  ;;  %2356 = vmatmul.mubr.bf16.gmra.mrb[124].mxu1 %v6378_v26  ;;  %v3381_v34 = vmax.f32 %v2791_v29, 0.0  ;;  %v5632_v48 = vpop.f32.mrb[43].mxu0 }
 0x140   : > { %2363 = vmatprep.mubr.bf16.mxu1 %v6379_v28  ;;  %v7012_v55 = vpop.f32.mrb[44].mxu0  ;;  %v6395_v48 = vld [vmem:[%s6662_s7 + $0x364] ss:$12 sps:$4 sm:$0xff]  }
 0x141   : > { %v3382_v37 = vmax.f32 %v2794_v32, 0.0 }
 0x142   : > { %v2149_v36 = vpop.f32.mrb[20].mxu1 }
 0x143   : > { %v5068_v41 = vpack.c.bf16 %v3382_v37, %v3381_v34  ;;  %v2150_v44 = vadd.f32 %v6915_v0, %v2149_v36  ;;  %v2151_v45 = vpop.f32.mrb[21].mxu1  ;;  %5742 = vmatmul.mubr.msk.bf16.gmra.mrb[152].mxu0 %vm1843_vm1, %v6405_v61  ;;  %v6413_v37 = vld [vmem:[%s6662_s7 + $0x3c8] ss:$12 sps:$4 sm:$0xff]  }
 0x144   : > { %v2152_v60 = vpop.f32.mrb[22].mxu1  ;;  %5745 = vmatprep.mubr.msk.bf16.mxu0 %vm6588_vm0, %v6587_v3  ;;  %v6394_v45 = vld [vmem:[%s6662_s7 + $0x348] ss:$12 sps:$4 sm:$0xff]  }
 0x145   : > { %5433 = vst [vmem:[%s6938_s16 + $0x20] sm:$0xff] %v5068_v41   ;;  %v2799_v39 = vadd.f32 %v6917_v1, %v2150_v44  ;;  %v2153_v51 = vadd.f32 %v6915_v0, %v2152_v60  ;;  %v2154_v52 = vpop.f32.mrb[23].mxu1  ;;  %v5635_v1 = vpop.f32.mrb[45].mxu0 }
 0x146   : > { %v7015_v62 = vpop.f32.mrb[46].mxu0 }
 0x147   : > { %v2802_v54 = vadd.f32 %v6920_v6, %v2153_v51  ;;  %2364 = vmatmul.mubr.bf16.gmra.mrb[128].mxu1 %v6382_v47  ;;  %v3383_v56 = vmax.f32 %v2799_v39, 0.0  ;;  %v5636_v8 = vpop.f32.mrb[47].mxu0 }
 0x148   : > { %2371 = vmatprep.mubr.bf16.mxu1 %v6383_v49  ;;  %v7027_v13 = vpop.f32.mrb[48].mxu0  ;;  %v6399_v8 = vld [vmem:[%s6662_s7 + $0x37c] ss:$12 sps:$4 sm:$0xff]  }
 0x149   : > { %v3384_v59 = vmax.f32 %v2802_v54, 0.0 }
 0x14a   : > { %v2157_v43 = vpop.f32.mrb[24].mxu1 }
 0x14b   : > { %v5073_v63 = vpack.c.bf16 %v3384_v59, %v3383_v56  ;;  %v2158_v4 = vadd.f32 %v6915_v0, %v2157_v43  ;;  %v2159_v5 = vpop.f32.mrb[25].mxu1  ;;  %5746 = vmatmul.mubr.msk.bf16.gmra.mrb[156].mxu0 %vm1843_vm1, %v6409_v18  ;;  %v6417_v59 = vld [vmem:[%s6662_s7 + $0x3e0] ss:$12 sps:$4 sm:$0xff]  }
 0x14c   : > { %v2160_v6 = vpop.f32.mrb[26].mxu1  ;;  %5749 = vmatprep.mubr.msk.bf16.mxu0 %vm6588_vm0, %v6587_v3  ;;  %v6398_v5 = vld [vmem:[%s6662_s7 + $0x360] ss:$12 sps:$4 sm:$0xff]  }
 0x14d   : > { %5434 = vst [vmem:[%s6938_s16 + $0x28] sm:$0xff] %v5073_v63   ;;  %v2807_v46 = vadd.f32 %v6932_v17, %v2158_v4  ;;  %v2161_v10 = vadd.f32 %v6915_v0, %v2160_v6  ;;  %v2162_v11 = vpop.f32.mrb[27].mxu1  ;;  %v5639_v17 = vpop.f32.mrb[49].mxu0 }
 0x14e   : > { %v7030_v19 = vpop.f32.mrb[50].mxu0 }
 0x14f   : > { %v2810_v12 = vadd.f32 %v6940_v23, %v2161_v10  ;;  %2372 = vmatmul.mubr.bf16.gmra.mrb[132].mxu1 %v6386_v7  ;;  %v3385_v14 = vmax.f32 %v2807_v46, 0.0  ;;  %v5640_v26 = vpop.f32.mrb[51].mxu0 }
 0x150   : > { %2379 = vmatprep.mubr.bf16.mxu1 %v6387_v9  ;;  %v7042_v31 = vpop.f32.mrb[52].mxu0  ;;  %v6403_v26 = vld [vmem:[%s6662_s7 + $0x394] ss:$12 sps:$4 sm:$0xff]  }
 0x151   : > { %v3386_v16 = vmax.f32 %v2810_v12, 0.0 }
 0x152   : > { %v2165_v50 = vpop.f32.mrb[28].mxu1 }
 0x153   : > { %v5078_v20 = vpack.c.bf16 %v3386_v16, %v3385_v14  ;;  %v2166_v22 = vadd.f32 %v6915_v0, %v2165_v50  ;;  %v2167_v24 = vpop.f32.mrb[29].mxu1  ;;  %5750 = vmatmul.mubr.msk.bf16.gmra.mrb[160].mxu0 %vm1843_vm1, %v6413_v37  ;;  %v6421_v16 = vld [vmem:[%s6662_s7 + $0x3f8] ss:$12 sps:$4 sm:$0xff]  }
 0x154   : > { %v2168_v23 = vpop.f32.mrb[30].mxu1  ;;  %5753 = vmatprep.mubr.msk.bf16.mxu0 %vm6588_vm0, %v6587_v3  ;;  %v6402_v24 = vld [vmem:[%s6662_s7 + $0x378] ss:$12 sps:$4 sm:$0xff]  }
 0x155   : > { %5435 = vst [vmem:[%s6938_s16 + $0x30] sm:$0xff] %v5078_v20   ;;  %v2815_v53 = vadd.f32 %v6952_v35, %v2166_v22  ;;  %v2169_v28 = vadd.f32 %v6915_v0, %v2168_v23  ;;  %v2170_v29 = vpop.f32.mrb[31].mxu1  ;;  %v5643_v35 = vpop.f32.mrb[53].mxu0 }
 0x156   : > { %v7045_v38 = vpop.f32.mrb[54].mxu0 }
 0x157   : > { %v2818_v30 = vadd.f32 %v6955_v42, %v2169_v28  ;;  %2380 = vmatmul.mubr.bf16.gmra.mrb[136].mxu1 %v6390_v25  ;;  %v3387_v32 = vmax.f32 %v2815_v53, 0.0  ;;  %v5644_v47 = vpop.f32.mrb[55].mxu0 }
 0x158   : > { %2387 = vmatprep.mubr.bf16.mxu1 %v6391_v27  ;;  %v7057_v52 = vpop.f32.mrb[56].mxu0  ;;  %v6407_v47 = vld [vmem:[%s6662_s7 + $0x3ac] ss:$12 sps:$4 sm:$0xff]  }
 0x159   : > { %v3388_v34 = vmax.f32 %v2818_v30, 0.0 }
 0x15a   : > { %v2173_v57 = vpop.f32.mrb[32].mxu1 }
 0x15b   : > { %v5083_v36 = vpack.c.bf16 %v3388_v34, %v3387_v32  ;;  %v2174_v41 = vadd.f32 %v6915_v0, %v2173_v57  ;;  %v2175_v44 = vpop.f32.mrb[33].mxu1  ;;  %5754 = vmatmul.mubr.msk.bf16.gmra.mrb[164].mxu0 %vm1843_vm1, %v6417_v59  ;;  %v6425_v34 = vld [vmem:[%s6662_s7 + $0x410] ss:$12 sps:$4 sm:$0xff]  }
 0x15c   : > { %v2176_v42 = vpop.f32.mrb[34].mxu1  ;;  %5757 = vmatprep.mubr.msk.bf16.mxu0 %vm6588_vm0, %v6587_v3  ;;  %v6406_v44 = vld [vmem:[%s6662_s7 + $0x390] ss:$12 sps:$4 sm:$0xff]  }
 0x15d   : > { %5436 = vst [vmem:[%s6938_s16 + $0x38] sm:$0xff] %v5083_v36   ;;  %v2823_v60 = vadd.f32 %v6967_v58, %v2174_v41  ;;  %v2177_v49 = vadd.f32 %v6915_v0, %v2176_v42  ;;  %v2178_v39 = vpop.f32.mrb[35].mxu1  ;;  %v5647_v58 = vpop.f32.mrb[57].mxu0 }
 0x15e   : > { %v7060_v61 = vpop.f32.mrb[58].mxu0 }
 0x15f   : > { %v2826_v51 = vadd.f32 %v6970_v2, %v2177_v49  ;;  %2388 = vmatmul.mubr.bf16.gmra.mrb[140].mxu1 %v6394_v45  ;;  %v3389_v54 = vmax.f32 %v2823_v60, 0.0  ;;  %v5648_v7 = vpop.f32.mrb[59].mxu0 }
 0x160   : > { %2395 = vmatprep.mubr.bf16.mxu1 %v6395_v48  ;;  %v7072_v11 = vpop.f32.mrb[60].mxu0  ;;  %v6411_v7 = vld [vmem:[%s6662_s7 + $0x3c4] ss:$12 sps:$4 sm:$0xff]  }
 0x161   : > { %v3390_v56 = vmax.f32 %v2826_v51, 0.0 }
 0x162   : > { %v2181_v1 = vpop.f32.mrb[36].mxu1 }
 0x163   : > { %v5088_v43 = vpack.c.bf16 %v3390_v56, %v3389_v54  ;;  %v2182_v63 = vadd.f32 %v6915_v0, %v2181_v1  ;;  %v2183_v4 = vpop.f32.mrb[37].mxu1  ;;  %5758 = vmatmul.mubr.msk.bf16.gmra.mrb[168].mxu0 %vm1843_vm1, %v6421_v16  ;;  %v6429_v56 = vld [vmem:[%s6662_s7 + $0x428] ss:$12 sps:$4 sm:$0xff]  }
 0x164   : > { %v2184_v2 = vpop.f32.mrb[38].mxu1  ;;  %5761 = vmatprep.mubr.msk.bf16.mxu0 %vm6588_vm0, %v6587_v3  ;;  %v6410_v4 = vld [vmem:[%s6662_s7 + $0x3a8] ss:$12 sps:$4 sm:$0xff]  }
 0x165   : > { %5437 = vst [vmem:[%s6938_s16 + $0x40] sm:$0xff] %v5088_v43   ;;  %v2831_v6 = vadd.f32 %v6982_v15, %v2182_v63  ;;  %v2185_v9 = vadd.f32 %v6915_v0, %v2184_v2  ;;  %v2186_v46 = vpop.f32.mrb[39].mxu1  ;;  %v5651_v15 = vpop.f32.mrb[61].mxu0 }
 0x166   : > { %v7075_v18 = vpop.f32.mrb[62].mxu0 }
 0x167   : > { %v2834_v10 = vadd.f32 %v6985_v21, %v2185_v9  ;;  %2396 = vmatmul.mubr.bf16.gmra.mrb[144].mxu1 %v6398_v5  ;;  %v3391_v12 = vmax.f32 %v2831_v6, 0.0  ;;  %v5652_v25 = vpop.f32.mrb[63].mxu0 }
 0x168   : > { %2403 = vmatprep.mubr.bf16.mxu1 %v6399_v8  ;;  %v7087_v29 = vpop.f32.mrb[64].mxu0  ;;  %v6415_v25 = vld [vmem:[%s6662_s7 + $0x3dc] ss:$12 sps:$4 sm:$0xff]  }
 0x169   : > { %v3392_v14 = vmax.f32 %v2834_v10, 0.0 }
 0x16a   : > { %v2189_v17 = vpop.f32.mrb[40].mxu1 }
 0x16b   : > { %v5093_v50 = vpack.c.bf16 %v3392_v14, %v3391_v12  ;;  %v2190_v20 = vadd.f32 %v6915_v0, %v2189_v17  ;;  %v2191_v22 = vpop.f32.mrb[41].mxu1  ;;  %5762 = vmatmul.mubr.msk.bf16.gmra.mrb[172].mxu0 %vm1843_vm1, %v6425_v34  ;;  %v6433_v14 = vld [vmem:[%s6662_s7 + $0x440] ss:$12 sps:$4 sm:$0xff]  }
 0x16c   : > { %v2192_v21 = vpop.f32.mrb[42].mxu1  ;;  %5765 = vmatprep.mubr.msk.bf16.mxu0 %vm6588_vm0, %v6587_v3  ;;  %v6414_v22 = vld [vmem:[%s6662_s7 + $0x3c0] ss:$12 sps:$4 sm:$0xff]  }
 0x16d   : > { %5438 = vst [vmem:[%s6938_s16 + $0x48] sm:$0xff] %v5093_v50   ;;  %v2839_v23 = vadd.f32 %v6997_v33, %v2190_v20  ;;  %v2193_v27 = vadd.f32 %v6915_v0, %v2192_v21  ;;  %v2194_v53 = vpop.f32.mrb[43].mxu1  ;;  %v5655_v33 = vpop.f32.mrb[65].mxu0 }
 0x16e   : > { %v7090_v37 = vpop.f32.mrb[66].mxu0 }
 0x16f   : > { %v2842_v28 = vadd.f32 %v7000_v40, %v2193_v27  ;;  %2404 = vmatmul.mubr.bf16.gmra.mrb[148].mxu1 %v6402_v24  ;;  %v3393_v30 = vmax.f32 %v2839_v23, 0.0  ;;  %v5656_v45 = vpop.f32.mrb[67].mxu0 }
 0x170   : > { %2411 = vmatprep.mubr.bf16.mxu1 %v6403_v26  ;;  %v7102_v39 = vpop.f32.mrb[68].mxu0  ;;  %v6419_v45 = vld [vmem:[%s6662_s7 + $0x3f4] ss:$12 sps:$4 sm:$0xff]  }
 0x171   : > { %v3394_v32 = vmax.f32 %v2842_v28, 0.0 }
 0x172   : > { %v2197_v35 = vpop.f32.mrb[44].mxu1 }
 0x173   : > { %v5098_v57 = vpack.c.bf16 %v3394_v32, %v3393_v30  ;;  %v2198_v36 = vadd.f32 %v6915_v0, %v2197_v35  ;;  %v2199_v41 = vpop.f32.mrb[45].mxu1  ;;  %5766 = vmatmul.mubr.msk.bf16.gmra.mrb[176].mxu0 %vm1843_vm1, %v6429_v56  ;;  %v6437_v32 = vld [vmem:[%s6662_s7 + $0x458] ss:$12 sps:$4 sm:$0xff]  }
 0x174   : > { %v2200_v40 = vpop.f32.mrb[46].mxu1  ;;  %5769 = vmatprep.mubr.msk.bf16.mxu0 %vm6588_vm0, %v6587_v3  ;;  %v6418_v41 = vld [vmem:[%s6662_s7 + $0x3d8] ss:$12 sps:$4 sm:$0xff]  }
 0x175   : > { %5439 = vst [vmem:[%s6938_s16 + $0x50] sm:$0xff] %v5098_v57   ;;  %v2847_v42 = vadd.f32 %v7012_v55, %v2198_v36  ;;  %v2201_v48 = vadd.f32 %v6915_v0, %v2200_v40  ;;  %v2202_v60 = vpop.f32.mrb[47].mxu1  ;;  %v5659_v55 = vpop.f32.mrb[69].mxu0 }
 0x176   : > { %v7105_v59 = vpop.f32.mrb[70].mxu0 }
 0x177   : > { %v2850_v49 = vadd.f32 %v7015_v62, %v2201_v48  ;;  %2412 = vmatmul.mubr.bf16.gmra.mrb[152].mxu1 %v6406_v44  ;;  %v3395_v51 = vmax.f32 %v2847_v42, 0.0  ;;  %v5660_v5 = vpop.f32.mrb[71].mxu0 }
 0x178   : > { %2419 = vmatprep.mubr.bf16.mxu1 %v6407_v47  ;;  %v7117_v46 = vpop.f32.mrb[72].mxu0  ;;  %v6423_v5 = vld [vmem:[%s6662_s7 + $0x40c] ss:$12 sps:$4 sm:$0xff]  }
 0x179   : > { %v3396_v54 = vmax.f32 %v2850_v49, 0.0 }
 0x17a   : > { %v2205_v58 = vpop.f32.mrb[48].mxu1 }
 0x17b   : > { %v5103_v1 = vpack.c.bf16 %v3396_v54, %v3395_v51  ;;  %v2206_v43 = vadd.f32 %v6915_v0, %v2205_v58  ;;  %v2207_v63 = vpop.f32.mrb[49].mxu1  ;;  %5770 = vmatmul.mubr.msk.bf16.gmra.mrb[180].mxu0 %vm1843_vm1, %v6433_v14  ;;  %v6441_v54 = vld [vmem:[%s6662_s7 + $0x470] ss:$12 sps:$4 sm:$0xff]  }
 0x17c   : > { %v2208_v62 = vpop.f32.mrb[50].mxu1  ;;  %5773 = vmatprep.mubr.msk.bf16.mxu0 %vm6588_vm0, %v6587_v3  ;;  %v6422_v63 = vld [vmem:[%s6662_s7 + $0x3f0] ss:$12 sps:$4 sm:$0xff]  }
 0x17d   : > { %5440 = vst [vmem:[%s6938_s16 + $0x58] sm:$0xff] %v5103_v1   ;;  %v2855_v2 = vadd.f32 %v7027_v13, %v2206_v43  ;;  %v2209_v8 = vadd.f32 %v6915_v0, %v2208_v62  ;;  %v2210_v6 = vpop.f32.mrb[51].mxu1  ;;  %v5663_v13 = vpop.f32.mrb[73].mxu0 }
 0x17e   : > { %v7120_v16 = vpop.f32.mrb[74].mxu0 }
 0x17f   : > { %v2858_v9 = vadd.f32 %v7030_v19, %v2209_v8  ;;  %2420 = vmatmul.mubr.bf16.gmra.mrb[156].mxu1 %v6410_v4  ;;  %v3397_v10 = vmax.f32 %v2855_v2, 0.0  ;;  %v5664_v24 = vpop.f32.mrb[75].mxu0 }
 0x180   : > { %2427 = vmatprep.mubr.bf16.mxu1 %v6411_v7  ;;  %v7132_v53 = vpop.f32.mrb[76].mxu0  ;;  %v6427_v24 = vld [vmem:[%s6662_s7 + $0x424] ss:$12 sps:$4 sm:$0xff]  }
 0x181   : > { %v3398_v12 = vmax.f32 %v2858_v9, 0.0 }
 0x182   : > { %v2213_v15 = vpop.f32.mrb[52].mxu1 }
 0x183   : > { %v5108_v17 = vpack.c.bf16 %v3398_v12, %v3397_v10  ;;  %v2214_v50 = vadd.f32 %v6915_v0, %v2213_v15  ;;  %v2215_v20 = vpop.f32.mrb[53].mxu1  ;;  %5774 = vmatmul.mubr.msk.bf16.gmra.mrb[184].mxu0 %vm1843_vm1, %v6437_v32  ;;  %v6445_v12 = vld [vmem:[%s6662_s7 + $0x488] ss:$12 sps:$4 sm:$0xff]  }
 0x184   : > { %v2216_v19 = vpop.f32.mrb[54].mxu1  ;;  %5777 = vmatprep.mubr.msk.bf16.mxu0 %vm6588_vm0, %v6587_v3  ;;  %v6426_v20 = vld [vmem:[%s6662_s7 + $0x408] ss:$12 sps:$4 sm:$0xff]  }
 0x185   : > { %5441 = vst [vmem:[%s6938_s16 + $0x60] sm:$0xff] %v5108_v17   ;;  %v2863_v21 = vadd.f32 %v7042_v31, %v2214_v50  ;;  %v2217_v26 = vadd.f32 %v6915_v0, %v2216_v19  ;;  %v2218_v23 = vpop.f32.mrb[55].mxu1  ;;  %v5667_v31 = vpop.f32.mrb[77].mxu0 }
 0x186   : > { %v7135_v34 = vpop.f32.mrb[78].mxu0 }
 0x187   : > { %v2866_v27 = vadd.f32 %v7045_v38, %v2217_v26  ;;  %2428 = vmatmul.mubr.bf16.gmra.mrb[160].mxu1 %v6414_v22  ;;  %v3399_v28 = vmax.f32 %v2863_v21, 0.0  ;;  %v5668_v44 = vpop.f32.mrb[79].mxu0 }
 0x188   : > { %2435 = vmatprep.mubr.bf16.mxu1 %v6415_v25  ;;  %v7147_v60 = vpop.f32.mrb[80].mxu0  ;;  %v6431_v44 = vld [vmem:[%s6662_s7 + $0x43c] ss:$12 sps:$4 sm:$0xff]  }
 0x189   : > { %v3400_v30 = vmax.f32 %v2866_v27, 0.0 }
 0x18a   : > { %v2221_v33 = vpop.f32.mrb[56].mxu1 }
 0x18b   : > { %v5113_v35 = vpack.c.bf16 %v3400_v30, %v3399_v28  ;;  %v2222_v57 = vadd.f32 %v6915_v0, %v2221_v33  ;;  %v2223_v36 = vpop.f32.mrb[57].mxu1  ;;  %5778 = vmatmul.mubr.msk.bf16.gmra.mrb[188].mxu0 %vm1843_vm1, %v6441_v54  ;;  %v6449_v30 = vld [vmem:[%s6662_s7 + $0x4a0] ss:$12 sps:$4 sm:$0xff]  }
 0x18c   : > { %v2224_v38 = vpop.f32.mrb[58].mxu1  ;;  %5781 = vmatprep.mubr.msk.bf16.mxu0 %vm6588_vm0, %v6587_v3  ;;  %v6430_v36 = vld [vmem:[%s6662_s7 + $0x420] ss:$12 sps:$4 sm:$0xff]  }
 0x18d   : > { %5442 = vst [vmem:[%s6938_s16 + $0x68] sm:$0xff] %v5113_v35   ;;  %v2871_v40 = vadd.f32 %v7057_v52, %v2222_v57  ;;  %v2225_v47 = vadd.f32 %v6915_v0, %v2224_v38  ;;  %v2226_v42 = vpop.f32.mrb[59].mxu1  ;;  %v5671_v52 = vpop.f32.mrb[81].mxu0 }
 0x18e   : > { %v7150_v56 = vpop.f32.mrb[82].mxu0 }
 0x18f   : > { %v2874_v48 = vadd.f32 %v7060_v61, %v2225_v47  ;;  %2436 = vmatmul.mubr.bf16.gmra.mrb[164].mxu1 %v6418_v41  ;;  %v3401_v49 = vmax.f32 %v2871_v40, 0.0  ;;  %v5672_v4 = vpop.f32.mrb[83].mxu0 }
 0x190   : > { %2443 = vmatprep.mubr.bf16.mxu1 %v6419_v45  ;;  %v7162_v6 = vpop.f32.mrb[84].mxu0  ;;  %v6435_v4 = vld [vmem:[%s6662_s7 + $0x454] ss:$12 sps:$4 sm:$0xff]  }
 0x191   : > { %v3402_v51 = vmax.f32 %v2874_v48, 0.0 }
 0x192   : > { %v2229_v55 = vpop.f32.mrb[60].mxu1 }
 0x193   : > { %v5118_v58 = vpack.c.bf16 %v3402_v51, %v3401_v49  ;;  %v2230_v1 = vadd.f32 %v6915_v0, %v2229_v55  ;;  %v2231_v43 = vpop.f32.mrb[61].mxu1  ;;  %5782 = vmatmul.mubr.msk.bf16.gmra.mrb[192].mxu0 %vm1843_vm1, %v6445_v12  ;;  %v6453_v51 = vld [vmem:[%s6662_s7 + $0x4b8] ss:$12 sps:$4 sm:$0xff]  }
 0x194   : > { %v2232_v61 = vpop.f32.mrb[62].mxu1  ;;  %5785 = vmatprep.mubr.msk.bf16.mxu0 %vm6588_vm0, %v6587_v3  ;;  %v6434_v43 = vld [vmem:[%s6662_s7 + $0x438] ss:$12 sps:$4 sm:$0xff]  }
 0x195   : > { %5443 = vst [vmem:[%s6938_s16 + $0x70] sm:$0xff] %v5118_v58   ;;  %v2879_v62 = vadd.f32 %v7072_v11, %v2230_v1  ;;  %v2233_v7 = vadd.f32 %v6915_v0, %v2232_v61  ;;  %v2234_v2 = vpop.f32.mrb[63].mxu1  ;;  %v5675_v11 = vpop.f32.mrb[85].mxu0 }
 0x196   : > { %v7165_v14 = vpop.f32.mrb[86].mxu0 }
 0x197   : > { %v2882_v8 = vadd.f32 %v7075_v18, %v2233_v7  ;;  %2444 = vmatmul.mubr.bf16.gmra.mrb[168].mxu1 %v6422_v63  ;;  %v3403_v9 = vmax.f32 %v2879_v62, 0.0  ;;  %v5676_v22 = vpop.f32.mrb[87].mxu0 }
 0x198   : > { %2451 = vmatprep.mubr.bf16.mxu1 %v6423_v5  ;;  %v7177_v23 = vpop.f32.mrb[88].mxu0  ;;  %v6439_v22 = vld [vmem:[%s6662_s7 + $0x46c] ss:$12 sps:$4 sm:$0xff]  }
 0x199   : > { %v3404_v10 = vmax.f32 %v2882_v8, 0.0 }
 0x19a   : > { %v2237_v13 = vpop.f32.mrb[64].mxu1 }
 0x19b   : > { %v5123_v15 = vpack.c.bf16 %v3404_v10, %v3403_v9  ;;  %v2238_v17 = vadd.f32 %v6915_v0, %v2237_v13  ;;  %v2239_v50 = vpop.f32.mrb[65].mxu1  ;;  %5786 = vmatmul.mubr.msk.bf16.gmra.mrb[196].mxu0 %vm1843_vm1, %v6449_v30  ;;  %v6457_v10 = vld [vmem:[%s6662_s7 + $0x4d0] ss:$12 sps:$4 sm:$0xff]  }
 0x19c   : > { %v2240_v18 = vpop.f32.mrb[66].mxu1  ;;  %5789 = vmatprep.mubr.msk.bf16.mxu0 %vm6588_vm0, %v6587_v3  ;;  %v6438_v50 = vld [vmem:[%s6662_s7 + $0x450] ss:$12 sps:$4 sm:$0xff]  }
 0x19d   : > { %5444 = vst [vmem:[%s6938_s16 + $0x78] sm:$0xff] %v5123_v15   ;;  %v2887_v19 = vadd.f32 %v7087_v29, %v2238_v17  ;;  %v2241_v25 = vadd.f32 %v6915_v0, %v2240_v18  ;;  %v2242_v21 = vpop.f32.mrb[67].mxu1  ;;  %v5679_v29 = vpop.f32.mrb[89].mxu0 }
 0x19e   : > { %v7180_v32 = vpop.f32.mrb[90].mxu0 }
 0x19f   : > { %v2890_v26 = vadd.f32 %v7090_v37, %v2241_v25  ;;  %2452 = vmatmul.mubr.bf16.gmra.mrb[172].mxu1 %v6426_v20  ;;  %v3405_v27 = vmax.f32 %v2887_v19, 0.0  ;;  %v5680_v41 = vpop.f32.mrb[91].mxu0 }
 0x1a0   : > { %2459 = vmatprep.mubr.bf16.mxu1 %v6427_v24  ;;  %v7192_v42 = vpop.f32.mrb[92].mxu0  ;;  %v6443_v41 = vld [vmem:[%s6662_s7 + $0x484] ss:$12 sps:$4 sm:$0xff]  }
 0x1a1   : > { %v3406_v28 = vmax.f32 %v2890_v26, 0.0 }
 0x1a2   : > { %v2245_v31 = vpop.f32.mrb[68].mxu1 }
 0x1a3   : > { %v5128_v33 = vpack.c.bf16 %v3406_v28, %v3405_v27  ;;  %v2246_v35 = vadd.f32 %v6915_v0, %v2245_v31  ;;  %v2247_v57 = vpop.f32.mrb[69].mxu1  ;;  %5790 = vmatmul.mubr.msk.bf16.gmra.mrb[200].mxu0 %vm1843_vm1, %v6453_v51  ;;  %v6461_v28 = vld [vmem:[%s6662_s7 + $0x4e8] ss:$12 sps:$4 sm:$0xff]  }
 0x1a4   : > { %v2248_v37 = vpop.f32.mrb[70].mxu1  ;;  %5793 = vmatprep.mubr.msk.bf16.mxu0 %vm6588_vm0, %v6587_v3  ;;  %v6442_v57 = vld [vmem:[%s6662_s7 + $0x468] ss:$12 sps:$4 sm:$0xff]  }
 0x1a5   : > { %5445 = vst [vmem:[%s6938_s16 + $0x80] sm:$0xff] %v5128_v33   ;;  %v2895_v38 = vadd.f32 %v7102_v39, %v2246_v35  ;;  %v2249_v45 = vadd.f32 %v6915_v0, %v2248_v37  ;;  %v2250_v40 = vpop.f32.mrb[71].mxu1  ;;  %v5683_v39 = vpop.f32.mrb[93].mxu0 }
 0x1a6   : > { %v7195_v54 = vpop.f32.mrb[94].mxu0 }
 0x1a7   : > { %v2898_v47 = vadd.f32 %v7105_v59, %v2249_v45  ;;  %2460 = vmatmul.mubr.bf16.gmra.mrb[176].mxu1 %v6430_v36  ;;  %v3407_v48 = vmax.f32 %v2895_v38, 0.0  ;;  %v5684_v63 = vpop.f32.mrb[95].mxu0 }
 0x1a8   : > { %2467 = vmatprep.mubr.bf16.mxu1 %v6431_v44  ;;  %v7207_v2 = vpop.f32.mrb[96].mxu0  ;;  %v6447_v63 = vld [vmem:[%s6662_s7 + $0x49c] ss:$12 sps:$4 sm:$0xff]  }
 0x1a9   : > { %v3408_v49 = vmax.f32 %v2898_v47, 0.0 }
 0x1aa   : > { %v2253_v52 = vpop.f32.mrb[72].mxu1 }
 0x1ab   : > { %v5133_v55 = vpack.c.bf16 %v3408_v49, %v3407_v48  ;;  %v2254_v58 = vadd.f32 %v6915_v0, %v2253_v52  ;;  %v2255_v1 = vpop.f32.mrb[73].mxu1  ;;  %5794 = vmatmul.mubr.msk.bf16.gmra.mrb[204].mxu0 %vm1843_vm1, %v6457_v10  ;;  %v6465_v49 = vld [vmem:[%s6662_s7 + $0x500] ss:$12 sps:$4 sm:$0xff]  }
 0x1ac   : > { %v2256_v59 = vpop.f32.mrb[74].mxu1  ;;  %5797 = vmatprep.mubr.msk.bf16.mxu0 %vm6588_vm0, %v6587_v3  ;;  %v6446_v1 = vld [vmem:[%s6662_s7 + $0x480] ss:$12 sps:$4 sm:$0xff]  }
 0x1ad   : > { %5446 = vst [vmem:[%s6938_s16 + $0x88] sm:$0xff] %v5133_v55   ;;  %v2903_v61 = vadd.f32 %v7117_v46, %v2254_v58  ;;  %v2257_v5 = vadd.f32 %v6915_v0, %v2256_v59  ;;  %v2258_v62 = vpop.f32.mrb[75].mxu1  ;;  %v5687_v46 = vpop.f32.mrb[97].mxu0 }
 0x1ae   : > { %v7210_v12 = vpop.f32.mrb[98].mxu0 }
 0x1af   : > { %v2906_v7 = vadd.f32 %v7120_v16, %v2257_v5  ;;  %2468 = vmatmul.mubr.bf16.gmra.mrb[180].mxu1 %v6434_v43  ;;  %v3409_v8 = vmax.f32 %v2903_v61, 0.0  ;;  %v5688_v20 = vpop.f32.mrb[99].mxu0 }
 0x1b0   : > { %2475 = vmatprep.mubr.bf16.mxu1 %v6435_v4  ;;  %v7222_v21 = vpop.f32.mrb[100].mxu0  ;;  %v6451_v20 = vld [vmem:[%s6662_s7 + $0x4b4] ss:$12 sps:$4 sm:$0xff]  }
 0x1b1   : > { %v3410_v9 = vmax.f32 %v2906_v7, 0.0 }
 0x1b2   : > { %v2261_v11 = vpop.f32.mrb[76].mxu1 }
 0x1b3   : > { %v5138_v13 = vpack.c.bf16 %v3410_v9, %v3409_v8  ;;  %v2262_v15 = vadd.f32 %v6915_v0, %v2261_v11  ;;  %v2263_v17 = vpop.f32.mrb[77].mxu1  ;;  %5798 = vmatmul.mubr.msk.bf16.gmra.mrb[208].mxu0 %vm1843_vm1, %v6461_v28  ;;  %v6469_v9 = vld [vmem:[%s6662_s7 + $0x518] ss:$12 sps:$4 sm:$0xff]   ;;  %v7260_v11 = vld [vmem:[%s7896_s2] ss:$0 sm:$0xff] }
 0x1b4   : > { %v2264_v16 = vpop.f32.mrb[78].mxu1  ;;  %5801 = vmatprep.mubr.msk.bf16.mxu0 %vm6588_vm0, %v6587_v3 }
 0x1b5   : > { %5447 = vst [vmem:[%s6938_s16 + $0x90] sm:$0xff] %v5138_v13   ;;  %v2911_v18 = vadd.f32 %v7132_v53, %v2262_v15  ;;  %v2265_v24 = vadd.f32 %v6915_v0, %v2264_v16  ;;  %v2266_v19 = vpop.f32.mrb[79].mxu1  ;;  %v5691_v53 = vpop.f32.mrb[101].mxu0  ;;  %v6450_v15 = vld [vmem:[%s6662_s7 + $0x498] ss:$12 sps:$4 sm:$0xff]  }
 0x1b6   : > { %v7225_v30 = vpop.f32.mrb[102].mxu0 }
 0x1b7   : > { %v2914_v25 = vadd.f32 %v7135_v34, %v2265_v24  ;;  %2476 = vmatmul.mubr.bf16.gmra.mrb[184].mxu1 %v6438_v50  ;;  %v3411_v26 = vmax.f32 %v2911_v18, 0.0  ;;  %v5692_v36 = vpop.f32.mrb[103].mxu0 }
 0x1b8   : > { %2483 = vmatprep.mubr.bf16.mxu1 %v6439_v22  ;;  %v7237_v40 = vpop.f32.mrb[104].mxu0  ;;  %v6455_v36 = vld [vmem:[%s6662_s7 + $0x4cc] ss:$12 sps:$4 sm:$0xff]  }
 0x1b9   : > { %v3412_v27 = vmax.f32 %v2914_v25, 0.0 }
 0x1ba   : > { %v2269_v29 = vpop.f32.mrb[80].mxu1 }
 0x1bb   : > { %v5143_v31 = vpack.c.bf16 %v3412_v27, %v3411_v26  ;;  %v2270_v33 = vadd.f32 %v6915_v0, %v2269_v29  ;;  %v2271_v35 = vpop.f32.mrb[81].mxu1  ;;  %5802 = vmatmul.mubr.msk.bf16.gmra.mrb[212].mxu0 %vm1843_vm1, %v6465_v49  ;;  %v6473_v27 = vld [vmem:[%s6662_s7 + $0x530] ss:$12 sps:$4 sm:$0xff]  }
 0x1bc   : > { %v2272_v34 = vpop.f32.mrb[82].mxu1  ;;  %5805 = vmatprep.mubr.msk.bf16.mxu0 %vm6588_vm0, %v6587_v3  ;;  %v6454_v35 = vld [vmem:[%s6662_s7 + $0x4b0] ss:$12 sps:$4 sm:$0xff]  }
 0x1bd   : > { %5448 = vst [vmem:[%s6938_s16 + $0x98] sm:$0xff] %v5143_v31   ;;  %v2919_v37 = vadd.f32 %v7147_v60, %v2270_v33  ;;  %v2273_v44 = vadd.f32 %v6915_v0, %v2272_v34  ;;  %v2274_v38 = vpop.f32.mrb[83].mxu1  ;;  %v5695_v60 = vpop.f32.mrb[105].mxu0 }
 0x1be   : > { %v7240_v51 = vpop.f32.mrb[106].mxu0 }
 0x1bf   : > { %v2922_v45 = vadd.f32 %v7150_v56, %v2273_v44  ;;  %2484 = vmatmul.mubr.bf16.gmra.mrb[188].mxu1 %v6442_v57  ;;  %v3413_v47 = vmax.f32 %v2919_v37, 0.0  ;;  %v5696_v43 = vpop.f32.mrb[107].mxu0 }
 0x1c0   : > { %2491 = vmatprep.mubr.bf16.mxu1 %v6443_v41  ;;  %v7252_v62 = vpop.f32.mrb[108].mxu0  ;;  %v6459_v43 = vld [vmem:[%s6662_s7 + $0x4e4] ss:$12 sps:$4 sm:$0xff]  }
 0x1c1   : > { %v3414_v48 = vmax.f32 %v2922_v45, 0.0 }
 0x1c2   : > { %v2277_v39 = vpop.f32.mrb[84].mxu1 }
 0x1c3   : > { %v5148_v52 = vpack.c.bf16 %v3414_v48, %v3413_v47  ;;  %v2278_v55 = vadd.f32 %v6915_v0, %v2277_v39  ;;  %v2279_v58 = vpop.f32.mrb[85].mxu1  ;;  %5806 = vmatmul.mubr.msk.bf16.gmra.mrb[216].mxu0 %vm1843_vm1, %v6469_v9  ;;  %v6477_v48 = vld [vmem:[%s6662_s7 + $0x548] ss:$12 sps:$4 sm:$0xff]  }
 0x1c4   : > { %v2280_v56 = vpop.f32.mrb[86].mxu1  ;;  %5809 = vmatprep.mubr.msk.bf16.mxu0 %vm6588_vm0, %v6587_v3  ;;  %v6458_v58 = vld [vmem:[%s6662_s7 + $0x4c8] ss:$12 sps:$4 sm:$0xff]  }
 0x1c5   : > { %5449 = vst [vmem:[%s6938_s16 + $0xa0] sm:$0xff] %v5148_v52   ;;  %v2927_v59 = vadd.f32 %v7162_v6, %v2278_v55  ;;  %v2281_v4 = vadd.f32 %v6915_v0, %v2280_v56  ;;  %v2282_v61 = vpop.f32.mrb[87].mxu1  ;;  %v5699_v6 = vpop.f32.mrb[109].mxu0 }
 0x1c6   : > { %v7255_v46 = vpop.f32.mrb[110].mxu0 }
 0x1c7   : > { %v2930_v5 = vadd.f32 %v7165_v14, %v2281_v4  ;;  %2492 = vmatmul.mubr.bf16.gmra.mrb[192].mxu1 %v6446_v1  ;;  %v3415_v7 = vmax.f32 %v2927_v59, 0.0  ;;  %v5700_v17 = vpop.f32.mrb[111].mxu0 }
 0x1c8   : > { %2499 = vmatprep.mubr.bf16.mxu1 %v6447_v63  ;;  %v7272_v19 = vpop.f32.mrb[112].mxu0  ;;  %v6463_v17 = vld [vmem:[%s6662_s7 + $0x4fc] ss:$12 sps:$4 sm:$0xff]  }
 0x1c9   : > { %v3416_v8 = vmax.f32 %v2930_v5, 0.0 }
 0x1ca   : > { %v2285_v0 = vpop.f32.mrb[88].mxu1 }
 0x1cb   : > { %v5153_v10 = vpack.c.bf16 %v3416_v8, %v3415_v7  ;;  %v2286_v14 = vadd.f32 %v7260_v11, %v2285_v0  ;;  %v2287_v13 = vpop.f32.mrb[89].mxu1  ;;  %5810 = vmatmul.mubr.msk.bf16.gmra.mrb[220].mxu0 %vm1843_vm1, %v6473_v27  ;;  %v6481_v8 = vld [vmem:[%s6662_s7 + $0x560] ss:$12 sps:$4 sm:$0xff]  }
 0x1cc   : > { %v2288_v50 = vpop.f32.mrb[90].mxu1  ;;  %5813 = vmatprep.mubr.msk.bf16.mxu0 %vm6588_vm0, %v6587_v3  ;;  %v6462_v13 = vld [vmem:[%s6662_s7 + $0x4e0] ss:$12 sps:$4 sm:$0xff]  }
 0x1cd   : > { %5450 = vst [vmem:[%s6938_s16 + $0xa8] sm:$0xff] %v5153_v10   ;;  %v2935_v16 = vadd.f32 %v7177_v23, %v2286_v14  ;;  %v2289_v22 = vadd.f32 %v7260_v11, %v2288_v50  ;;  %v2290_v18 = vpop.f32.mrb[91].mxu1  ;;  %v5703_v23 = vpop.f32.mrb[113].mxu0 }
 0x1ce   : > { %v7275_v28 = vpop.f32.mrb[114].mxu0 }
 0x1cf   : > { %v2938_v24 = vadd.f32 %v7180_v32, %v2289_v22  ;;  %2500 = vmatmul.mubr.bf16.gmra.mrb[196].mxu1 %v6450_v15  ;;  %v3417_v25 = vmax.f32 %v2935_v16, 0.0  ;;  %v5704_v57 = vpop.f32.mrb[115].mxu0 }
 0x1d0   : > { %2507 = vmatprep.mubr.bf16.mxu1 %v6451_v20  ;;  %v7287_v38 = vpop.f32.mrb[116].mxu0  ;;  %v6467_v57 = vld [vmem:[%s6662_s7 + $0x514] ss:$12 sps:$4 sm:$0xff]  }
 0x1d1   : > { %v3418_v26 = vmax.f32 %v2938_v24, 0.0 }
 0x1d2   : > { %v2293_v53 = vpop.f32.mrb[92].mxu1 }
 0x1d3   : > { %v5158_v29 = vpack.c.bf16 %v3418_v26, %v3417_v25  ;;  %v2294_v31 = vadd.f32 %v7260_v11, %v2293_v53  ;;  %v2295_v33 = vpop.f32.mrb[93].mxu1  ;;  %5814 = vmatmul.mubr.msk.bf16.gmra.mrb[224].mxu0 %vm1843_vm1, %v6477_v48  ;;  %v6485_v26 = vld [vmem:[%s6662_s7 + $0x578] ss:$12 sps:$4 sm:$0xff]  }
 0x1d4   : > { %v2296_v32 = vpop.f32.mrb[94].mxu1  ;;  %5817 = vmatprep.mubr.msk.bf16.mxu0 %vm6588_vm0, %v6587_v3  ;;  %v6466_v33 = vld [vmem:[%s6662_s7 + $0x4f8] ss:$12 sps:$4 sm:$0xff]  }
 0x1d5   : > { %5451 = vst [vmem:[%s6938_s16 + $0xb0] sm:$0xff] %v5158_v29   ;;  %v2943_v34 = vadd.f32 %v7192_v42, %v2294_v31  ;;  %v2297_v41 = vadd.f32 %v7260_v11, %v2296_v32  ;;  %v2298_v37 = vpop.f32.mrb[95].mxu1  ;;  %v5707_v42 = vpop.f32.mrb[117].mxu0 }
 0x1d6   : > { %v7290_v49 = vpop.f32.mrb[118].mxu0 }
 0x1d7   : > { %v2946_v44 = vadd.f32 %v7195_v54, %v2297_v41  ;;  %2508 = vmatmul.mubr.bf16.gmra.mrb[200].mxu1 %v6454_v35  ;;  %v3419_v45 = vmax.f32 %v2943_v34, 0.0  ;;  %v5708_v1 = vpop.f32.mrb[119].mxu0 }
 0x1d8   : > { %2515 = vmatprep.mubr.bf16.mxu1 %v6455_v36  ;;  %v7302_v61 = vpop.f32.mrb[120].mxu0  ;;  %v6471_v1 = vld [vmem:[%s6662_s7 + $0x52c] ss:$12 sps:$4 sm:$0xff]  }
 0x1d9   : > { %v3420_v47 = vmax.f32 %v2946_v44, 0.0 }
 0x1da   : > { %v2301_v60 = vpop.f32.mrb[96].mxu1 }
 0x1db   : > { %v5163_v39 = vpack.c.bf16 %v3420_v47, %v3419_v45  ;;  %v2302_v52 = vadd.f32 %v7260_v11, %v2301_v60  ;;  %v2303_v55 = vpop.f32.mrb[97].mxu1  ;;  %5818 = vmatmul.mubr.msk.bf16.gmra.mrb[228].mxu0 %vm1843_vm1, %v6481_v8  ;;  %v6489_v47 = vld [vmem:[%s6662_s7 + $0x590] ss:$12 sps:$4 sm:$0xff]  }
 0x1dc   : > { %v2304_v54 = vpop.f32.mrb[98].mxu1  ;;  %5821 = vmatprep.mubr.msk.bf16.mxu0 %vm6588_vm0, %v6587_v3  ;;  %v6470_v55 = vld [vmem:[%s6662_s7 + $0x510] ss:$12 sps:$4 sm:$0xff]  }
 0x1dd   : > { %5452 = vst [vmem:[%s6938_s16 + $0xb8] sm:$0xff] %v5163_v39   ;;  %v2951_v56 = vadd.f32 %v7207_v2, %v2302_v52  ;;  %v2305_v63 = vadd.f32 %v7260_v11, %v2304_v54  ;;  %v2306_v59 = vpop.f32.mrb[99].mxu1  ;;  %v5711_v2 = vpop.f32.mrb[121].mxu0 }
 0x1de   : > { %v7305_v9 = vpop.f32.mrb[122].mxu0 }
 0x1df   : > { %v2954_v4 = vadd.f32 %v7210_v12, %v2305_v63  ;;  %2516 = vmatmul.mubr.bf16.gmra.mrb[204].mxu1 %v6458_v58  ;;  %v3421_v5 = vmax.f32 %v2951_v56, 0.0  ;;  %v5712_v15 = vpop.f32.mrb[123].mxu0 }
 0x1e0   : > { %2523 = vmatprep.mubr.bf16.mxu1 %v6459_v43  ;;  %v7317_v18 = vpop.f32.mrb[124].mxu0  ;;  %v6475_v15 = vld [vmem:[%s6662_s7 + $0x544] ss:$12 sps:$4 sm:$0xff]  }
 0x1e1   : > { %v3422_v7 = vmax.f32 %v2954_v4, 0.0 }
 0x1e2   : > { %v2309_v6 = vpop.f32.mrb[100].mxu1 }
 0x1e3   : > { %v5168_v0 = vpack.c.bf16 %v3422_v7, %v3421_v5  ;;  %v2310_v10 = vadd.f32 %v7260_v11, %v2309_v6  ;;  %v2311_v14 = vpop.f32.mrb[101].mxu1  ;;  %5822 = vmatmul.mubr.msk.bf16.gmra.mrb[232].mxu0 %vm1843_vm1, %v6485_v26  ;;  %v6493_v7 = vld [vmem:[%s6662_s7 + $0x5a8] ss:$12 sps:$4 sm:$0xff]  }
 0x1e4   : > { %v2312_v12 = vpop.f32.mrb[102].mxu1  ;;  %5825 = vmatprep.mubr.msk.bf16.mxu0 %vm6588_vm0, %v6587_v3  ;;  %v6474_v14 = vld [vmem:[%s6662_s7 + $0x528] ss:$12 sps:$4 sm:$0xff]  }
 0x1e5   : > { %5453 = vst [vmem:[%s6938_s16 + $0xc0] sm:$0xff] %v5168_v0   ;;  %v2959_v50 = vadd.f32 %v7222_v21, %v2310_v10  ;;  %v2313_v20 = vadd.f32 %v7260_v11, %v2312_v12  ;;  %v2314_v16 = vpop.f32.mrb[103].mxu1  ;;  %v5715_v21 = vpop.f32.mrb[125].mxu0 }
 0x1e6   : > { %v7320_v27 = vpop.f32.mrb[126].mxu0 }
 0x1e7   : > { %v2962_v22 = vadd.f32 %v7225_v30, %v2313_v20  ;;  %2524 = vmatmul.mubr.bf16.gmra.mrb[208].mxu1 %v6462_v13  ;;  %v3423_v24 = vmax.f32 %v2959_v50, 0.0  ;;  %v5716_v35 = vpop.f32.mrb[127].mxu0 }
 0x1e8   : > { %2531 = vmatprep.mubr.bf16.mxu1 %v6463_v17  ;;  %v7332_v37 = vpop.f32.mrb[128].mxu0  ;;  %v6479_v35 = vld [vmem:[%s6662_s7 + $0x55c] ss:$12 sps:$4 sm:$0xff]  }
 0x1e9   : > { %v3424_v25 = vmax.f32 %v2962_v22, 0.0 }
 0x1ea   : > { %v2317_v23 = vpop.f32.mrb[104].mxu1 }
 0x1eb   : > { %v5173_v53 = vpack.c.bf16 %v3424_v25, %v3423_v24  ;;  %v2318_v29 = vadd.f32 %v7260_v11, %v2317_v23  ;;  %v2319_v31 = vpop.f32.mrb[105].mxu1  ;;  %5826 = vmatmul.mubr.msk.bf16.gmra.mrb[236].mxu0 %vm1843_vm1, %v6489_v47  ;;  %v6497_v25 = vld [vmem:[%s6662_s7 + $0x5c0] ss:$12 sps:$4 sm:$0xff]  }
 0x1ec   : > { %v2320_v30 = vpop.f32.mrb[106].mxu1  ;;  %5829 = vmatprep.mubr.msk.bf16.mxu0 %vm6588_vm0, %v6587_v3  ;;  %v6478_v31 = vld [vmem:[%s6662_s7 + $0x540] ss:$12 sps:$4 sm:$0xff]  }
 0x1ed   : > { %5454 = vst [vmem:[%s6938_s16 + $0xc8] sm:$0xff] %v5173_v53   ;;  %v2967_v32 = vadd.f32 %v7237_v40, %v2318_v29  ;;  %v2321_v36 = vadd.f32 %v7260_v11, %v2320_v30  ;;  %v2322_v34 = vpop.f32.mrb[107].mxu1  ;;  %v5719_v40 = vpop.f32.mrb[129].mxu0 }
 0x1ee   : > { %v7335_v48 = vpop.f32.mrb[130].mxu0 }
 0x1ef   : > { %v2970_v41 = vadd.f32 %v7240_v51, %v2321_v36  ;;  %2532 = vmatmul.mubr.bf16.gmra.mrb[212].mxu1 %v6466_v33  ;;  %v3425_v44 = vmax.f32 %v2967_v32, 0.0  ;;  %v5720_v58 = vpop.f32.mrb[131].mxu0 }
 0x1f0   : > { %2539 = vmatprep.mubr.bf16.mxu1 %v6467_v57  ;;  %v7347_v59 = vpop.f32.mrb[132].mxu0  ;;  %v6483_v58 = vld [vmem:[%s6662_s7 + $0x574] ss:$12 sps:$4 sm:$0xff]  }
 0x1f1   : > { %v3426_v45 = vmax.f32 %v2970_v41, 0.0 }
 0x1f2   : > { %v2325_v42 = vpop.f32.mrb[108].mxu1 }
 0x1f3   : > { %v5178_v60 = vpack.c.bf16 %v3426_v45, %v3425_v44  ;;  %v2326_v39 = vadd.f32 %v7260_v11, %v2325_v42  ;;  %v2327_v52 = vpop.f32.mrb[109].mxu1  ;;  %5830 = vmatmul.mubr.msk.bf16.gmra.mrb[240].mxu0 %vm1843_vm1, %v6493_v7  ;;  %v6501_v45 = vld [vmem:[%s6662_s7 + $0x5d8] ss:$12 sps:$4 sm:$0xff]  }
 0x1f4   : > { %v2328_v51 = vpop.f32.mrb[110].mxu1  ;;  %5833 = vmatprep.mubr.msk.bf16.mxu0 %vm6588_vm0, %v6587_v3  ;;  %v6482_v52 = vld [vmem:[%s6662_s7 + $0x558] ss:$12 sps:$4 sm:$0xff]  }
 0x1f5   : > { %5455 = vst [vmem:[%s6938_s16 + $0xd0] sm:$0xff] %v5178_v60   ;;  %v2975_v54 = vadd.f32 %v7252_v62, %v2326_v39  ;;  %v2329_v43 = vadd.f32 %v7260_v11, %v2328_v51  ;;  %v2330_v56 = vpop.f32.mrb[111].mxu1  ;;  %v5723_v62 = vpop.f32.mrb[133].mxu0 }
 0x1f6   : > { %v7350_v8 = vpop.f32.mrb[134].mxu0 }
 0x1f7   : > { %v2978_v63 = vadd.f32 %v7255_v46, %v2329_v43  ;;  %2540 = vmatmul.mubr.bf16.gmra.mrb[216].mxu1 %v6470_v55  ;;  %v3427_v4 = vmax.f32 %v2975_v54, 0.0  ;;  %v5724_v13 = vpop.f32.mrb[135].mxu0 }
 0x1f8   : > { %2547 = vmatprep.mubr.bf16.mxu1 %v6471_v1  ;;  %v7362_v16 = vpop.f32.mrb[136].mxu0  ;;  %v6487_v13 = vld [vmem:[%s6662_s7 + $0x58c] ss:$12 sps:$4 sm:$0xff]  }
 0x1f9   : > { %v3428_v5 = vmax.f32 %v2978_v63, 0.0 }
 0x1fa   : > { %v2333_v2 = vpop.f32.mrb[112].mxu1 }
 0x1fb   : > { %v5183_v6 = vpack.c.bf16 %v3428_v5, %v3427_v4  ;;  %v2334_v0 = vadd.f32 %v7260_v11, %v2333_v2  ;;  %v2335_v10 = vpop.f32.mrb[113].mxu1  ;;  %5834 = vmatmul.mubr.msk.bf16.gmra.mrb[244].mxu0 %vm1843_vm1, %v6497_v25  ;;  %v6505_v5 = vld [vmem:[%s6662_s7 + $0x5f0] ss:$12 sps:$4 sm:$0xff]  }
 0x1fc   : > { %v2336_v46 = vpop.f32.mrb[114].mxu1  ;;  %5837 = vmatprep.mubr.msk.bf16.mxu0 %vm6588_vm0, %v6587_v3  ;;  %v6486_v10 = vld [vmem:[%s6662_s7 + $0x570] ss:$12 sps:$4 sm:$0xff]  }
 0x1fd   : > { %5456 = vst [vmem:[%s6938_s16 + $0xd8] sm:$0xff] %v5183_v6   ;;  %v2983_v12 = vadd.f32 %v7272_v19, %v2334_v0  ;;  %v2337_v17 = vadd.f32 %v7260_v11, %v2336_v46  ;;  %v2338_v50 = vpop.f32.mrb[115].mxu1  ;;  %v5727_v19 = vpop.f32.mrb[137].mxu0 }
 0x1fe   : > { %v7365_v26 = vpop.f32.mrb[138].mxu0 }
 0x1ff   : > { %v2986_v20 = vadd.f32 %v7275_v28, %v2337_v17  ;;  %2548 = vmatmul.mubr.bf16.gmra.mrb[220].mxu1 %v6474_v14  ;;  %v3429_v22 = vmax.f32 %v2983_v12, 0.0  ;;  %v5728_v33 = vpop.f32.mrb[139].mxu0 }
 0x200   : > { %2555 = vmatprep.mubr.bf16.mxu1 %v6475_v15  ;;  %v7377_v34 = vpop.f32.mrb[140].mxu0  ;;  %v6491_v33 = vld [vmem:[%s6662_s7 + $0x5a4] ss:$12 sps:$4 sm:$0xff]  }
 0x201   : > { %v3430_v24 = vmax.f32 %v2986_v20, 0.0 }
 0x202   : > { %v2341_v21 = vpop.f32.mrb[116].mxu1 }
 0x203   : > { %v5188_v23 = vpack.c.bf16 %v3430_v24, %v3429_v22  ;;  %v2342_v53 = vadd.f32 %v7260_v11, %v2341_v21  ;;  %v2343_v29 = vpop.f32.mrb[117].mxu1  ;;  %5838 = vmatmul.mubr.msk.bf16.gmra.mrb[248].mxu0 %vm1843_vm1, %v6501_v45  ;;  %v6510_v24 = vld [vmem:[%s6662_s7 + $0x608] ss:$12 sps:$4 sm:$0xff]  }
 0x204   : > { %v2344_v28 = vpop.f32.mrb[118].mxu1  ;;  %5841 = vmatprep.mubr.msk.bf16.mxu0 %vm6588_vm0, %v6587_v3  ;;  %v6490_v29 = vld [vmem:[%s6662_s7 + $0x588] ss:$12 sps:$4 sm:$0xff]  }
 0x205   : > { %5457 = vst [vmem:[%s6938_s16 + $0xe0] sm:$0xff] %v5188_v23   ;;  %v2991_v30 = vadd.f32 %v7287_v38, %v2342_v53  ;;  %v2345_v57 = vadd.f32 %v7260_v11, %v2344_v28  ;;  %v2346_v32 = vpop.f32.mrb[119].mxu1  ;;  %v5731_v38 = vpop.f32.mrb[141].mxu0 }
 0x206   : > { %v7380_v47 = vpop.f32.mrb[142].mxu0 }
 0x207   : > { %v2994_v36 = vadd.f32 %v7290_v49, %v2345_v57  ;;  %2556 = vmatmul.mubr.bf16.gmra.mrb[224].mxu1 %v6478_v31  ;;  %v3431_v41 = vmax.f32 %v2991_v30, 0.0  ;;  %v5732_v55 = vpop.f32.mrb[143].mxu0 }
 0x208   : > { %2563 = vmatprep.mubr.bf16.mxu1 %v6479_v35  ;;  %v7392_v56 = vpop.f32.mrb[144].mxu0  ;;  %v6495_v55 = vld [vmem:[%s6662_s7 + $0x5bc] ss:$12 sps:$4 sm:$0xff]  }
 0x209   : > { %v3432_v44 = vmax.f32 %v2994_v36, 0.0 }
 0x20a   : > { %v2349_v40 = vpop.f32.mrb[120].mxu1 }
 0x20b   : > { %v5193_v42 = vpack.c.bf16 %v3432_v44, %v3431_v41  ;;  %v2350_v60 = vadd.f32 %v7260_v11, %v2349_v40  ;;  %v2351_v39 = vpop.f32.mrb[121].mxu1  ;;  %5842 = vmatmul.mubr.msk.bf16.gmra.mrb[252].mxu0 %vm1843_vm1, %v6505_v5  ;;  %v6514_v44 = vld [vmem:[%s6662_s7 + $0x620] ss:$12 sps:$4 sm:$0xff]  }
 0x20c   : > { %v2352_v49 = vpop.f32.mrb[122].mxu1  ;;  %5845 = vmatprep.mubr.msk.bf16.mxu0 %vm6588_vm0, %v6587_v3  ;;  %v6494_v39 = vld [vmem:[%s6662_s7 + $0x5a0] ss:$12 sps:$4 sm:$0xff]  }
 0x20d   : > { %5458 = vst [vmem:[%s6938_s16 + $0xe8] sm:$0xff] %v5193_v42   ;;  %v2999_v51 = vadd.f32 %v7302_v61, %v2350_v60  ;;  %v2353_v1 = vadd.f32 %v7260_v11, %v2352_v49  ;;  %v2354_v54 = vpop.f32.mrb[123].mxu1  ;;  %v5735_v61 = vpop.f32.mrb[145].mxu0 }
 0x20e   : > { %v7395_v7 = vpop.f32.mrb[146].mxu0 }
 0x20f   : > { %v3002_v43 = vadd.f32 %v7305_v9, %v2353_v1  ;;  %2564 = vmatmul.mubr.bf16.gmra.mrb[228].mxu1 %v6482_v52  ;;  %v3433_v63 = vmax.f32 %v2999_v51, 0.0  ;;  %v5736_v14 = vpop.f32.mrb[147].mxu0 }
 0x210   : > { %2571 = vmatprep.mubr.bf16.mxu1 %v6483_v58  ;;  %v7407_v50 = vpop.f32.mrb[148].mxu0  ;;  %v6499_v14 = vld [vmem:[%s6662_s7 + $0x5d4] ss:$12 sps:$4 sm:$0xff]  }
 0x211   : > { %v3434_v4 = vmax.f32 %v3002_v43, 0.0 }
 0x212   : > { %v2357_v62 = vpop.f32.mrb[124].mxu1 }
 0x213   : > { %v5198_v2 = vpack.c.bf16 %v3434_v4, %v3433_v63  ;;  %v2358_v6 = vadd.f32 %v7260_v11, %v2357_v62  ;;  %v2359_v0 = vpop.f32.mrb[125].mxu1  ;;  %5846 = vmatmul.mubr.msk.bf16.gmra.mrb[0].mxu0 %vm1843_vm1, %v6510_v24  ;;  %v6518_v4 = vld [vmem:[%s6662_s7 + $0x638] ss:$12 sps:$4 sm:$0xff]  }
 0x214   : > { %v2360_v9 = vpop.f32.mrb[126].mxu1  ;;  %5849 = vmatprep.mubr.msk.bf16.mxu0 %vm6588_vm0, %v6587_v3  ;;  %v6498_v0 = vld [vmem:[%s6662_s7 + $0x5b8] ss:$12 sps:$4 sm:$0xff]  }
 0x215   : > { %5459 = vst [vmem:[%s6938_s16 + $0xf0] sm:$0xff] %v5198_v2   ;;  %v3007_v46 = vadd.f32 %v7317_v18, %v2358_v6  ;;  %v2361_v15 = vadd.f32 %v7260_v11, %v2360_v9  ;;  %v2362_v12 = vpop.f32.mrb[127].mxu1  ;;  %v5739_v18 = vpop.f32.mrb[149].mxu0 }
 0x216   : > { %v7410_v25 = vpop.f32.mrb[150].mxu0 }
 0x217   : > { %v3010_v17 = vadd.f32 %v7320_v27, %v2361_v15  ;;  %2572 = vmatmul.mubr.bf16.gmra.mrb[232].mxu1 %v6486_v10  ;;  %v3435_v20 = vmax.f32 %v3007_v46, 0.0  ;;  %v5740_v31 = vpop.f32.mrb[151].mxu0 }
 0x218   : > { %2579 = vmatprep.mubr.bf16.mxu1 %v6487_v13  ;;  %v7422_v32 = vpop.f32.mrb[152].mxu0  ;;  %v6503_v31 = vld [vmem:[%s6662_s7 + $0x5ec] ss:$12 sps:$4 sm:$0xff]  }
 0x219   : > { %v3436_v22 = vmax.f32 %v3010_v17, 0.0 }
 0x21a   : > { %v2365_v19 = vpop.f32.mrb[128].mxu1 }
 0x21b   : > { %v5203_v21 = vpack.c.bf16 %v3436_v22, %v3435_v20  ;;  %v2366_v23 = vadd.f32 %v7260_v11, %v2365_v19  ;;  %v2367_v53 = vpop.f32.mrb[129].mxu1  ;;  %5850 = vmatmul.mubr.msk.bf16.gmra.mrb[4].mxu0 %vm1843_vm1, %v6514_v44  ;;  %v6522_v22 = vld [vmem:[%s6662_s7 + $0x650] ss:$12 sps:$4 sm:$0xff]  }
 0x21c   : > { %v2368_v27 = vpop.f32.mrb[130].mxu1  ;;  %5853 = vmatprep.mubr.msk.bf16.mxu0 %vm6588_vm0, %v6587_v3  ;;  %v6502_v53 = vld [vmem:[%s6662_s7 + $0x5d0] ss:$12 sps:$4 sm:$0xff]  }
 0x21d   : > { %5460 = vst [vmem:[%s6938_s16 + $0xf8] sm:$0xff] %v5203_v21   ;;  %v3015_v28 = vadd.f32 %v7332_v37, %v2366_v23  ;;  %v2369_v35 = vadd.f32 %v7260_v11, %v2368_v27  ;;  %v2370_v30 = vpop.f32.mrb[131].mxu1  ;;  %v5743_v37 = vpop.f32.mrb[153].mxu0 }
 0x21e   : > { %v7425_v45 = vpop.f32.mrb[154].mxu0 }
 0x21f   : > { %v3018_v57 = vadd.f32 %v7335_v48, %v2369_v35  ;;  %2580 = vmatmul.mubr.bf16.gmra.mrb[236].mxu1 %v6490_v29  ;;  %v3437_v36 = vmax.f32 %v3015_v28, 0.0  ;;  %v5744_v52 = vpop.f32.mrb[155].mxu0 }
 0x220   : > { %2587 = vmatprep.mubr.bf16.mxu1 %v6491_v33  ;;  %v7437_v54 = vpop.f32.mrb[156].mxu0  ;;  %v6509_v52 = vld [vmem:[%s6662_s7 + $0x604] ss:$12 sps:$4 sm:$0xff]  }
 0x221   : > { %v3438_v41 = vmax.f32 %v3018_v57, 0.0 }
 0x222   : > { %v2373_v38 = vpop.f32.mrb[132].mxu1 }
 0x223   : > { %v5208_v40 = vpack.c.bf16 %v3438_v41, %v3437_v36  ;;  %v2374_v42 = vadd.f32 %v7260_v11, %v2373_v38  ;;  %v2375_v60 = vpop.f32.mrb[133].mxu1  ;;  %5854 = vmatmul.mubr.msk.bf16.gmra.mrb[8].mxu0 %vm1843_vm1, %v6518_v4  ;;  %v6526_v41 = vld [vmem:[%s6662_s7 + $0x668] ss:$12 sps:$4 sm:$0xff]  }
 0x224   : > { %v2376_v48 = vpop.f32.mrb[134].mxu1  ;;  %5857 = vmatprep.mubr.msk.bf16.mxu0 %vm6588_vm0, %v6587_v3  ;;  %v6506_v60 = vld [vmem:[%s6662_s7 + $0x5e8] ss:$12 sps:$4 sm:$0xff]  }
 0x225   : > { %5461 = vst [vmem:[%s6938_s16 + $0x100] sm:$0xff] %v5208_v40   ;;  %v3023_v49 = vadd.f32 %v7347_v59, %v2374_v42  ;;  %v2377_v58 = vadd.f32 %v7260_v11, %v2376_v48  ;;  %v2378_v51 = vpop.f32.mrb[135].mxu1  ;;  %v5747_v59 = vpop.f32.mrb[157].mxu0 }
 0x226   : > { %v7440_v5 = vpop.f32.mrb[158].mxu0 }
 0x227   : > { %v3026_v1 = vadd.f32 %v7350_v8, %v2377_v58  ;;  %2588 = vmatmul.mubr.bf16.gmra.mrb[240].mxu1 %v6494_v39  ;;  %v3439_v43 = vmax.f32 %v3023_v49, 0.0  ;;  %v5748_v10 = vpop.f32.mrb[159].mxu0 }
 0x228   : > { %2595 = vmatprep.mubr.bf16.mxu1 %v6495_v55  ;;  %v7452_v12 = vpop.f32.mrb[160].mxu0  ;;  %v6513_v10 = vld [vmem:[%s6662_s7 + $0x61c] ss:$12 sps:$4 sm:$0xff]  }
 0x229   : > { %v3440_v63 = vmax.f32 %v3026_v1, 0.0 }
 0x22a   : > { %v2381_v61 = vpop.f32.mrb[136].mxu1 }
 0x22b   : > { %v5213_v62 = vpack.c.bf16 %v3440_v63, %v3439_v43  ;;  %v2382_v2 = vadd.f32 %v7260_v11, %v2381_v61  ;;  %v2383_v6 = vpop.f32.mrb[137].mxu1  ;;  %5858 = vmatmul.mubr.msk.bf16.gmra.mrb[12].mxu0 %vm1843_vm1, %v6522_v22  ;;  %v6530_v63 = vld [vmem:[%s6662_s7 + $0x680] ss:$12 sps:$4 sm:$0xff]  }
 0x22c   : > { %v2384_v8 = vpop.f32.mrb[138].mxu1  ;;  %5861 = vmatprep.mubr.msk.bf16.mxu0 %vm6588_vm0, %v6587_v3  ;;  %v6507_v6 = vld [vmem:[%s6662_s7 + $0x600] ss:$12 sps:$4 sm:$0xff]  }
 0x22d   : > { %5462 = vst [vmem:[%s6938_s16 + $0x108] sm:$0xff] %v5213_v62   ;;  %v3031_v9 = vadd.f32 %v7362_v16, %v2382_v2  ;;  %v2385_v13 = vadd.f32 %v7260_v11, %v2384_v8  ;;  %v2386_v46 = vpop.f32.mrb[139].mxu1  ;;  %v5751_v16 = vpop.f32.mrb[161].mxu0 }
 0x22e   : > { %v7455_v24 = vpop.f32.mrb[162].mxu0 }
 0x22f   : > { %v3034_v15 = vadd.f32 %v7365_v26, %v2385_v13  ;;  %2596 = vmatmul.mubr.bf16.gmra.mrb[244].mxu1 %v6498_v0  ;;  %v3441_v17 = vmax.f32 %v3031_v9, 0.0  ;;  %v5752_v29 = vpop.f32.mrb[163].mxu0 }
 0x230   : > { %2603 = vmatprep.mubr.bf16.mxu1 %v6499_v14  ;;  %v7467_v30 = vpop.f32.mrb[164].mxu0  ;;  %v6517_v29 = vld [vmem:[%s6662_s7 + $0x634] ss:$12 sps:$4 sm:$0xff]  }
 0x231   : > { %v3442_v20 = vmax.f32 %v3034_v15, 0.0 }
 0x232   : > { %v2389_v18 = vpop.f32.mrb[140].mxu1 }
 0x233   : > { %v5218_v19 = vpack.c.bf16 %v3442_v20, %v3441_v17  ;;  %v2390_v21 = vadd.f32 %v7260_v11, %v2389_v18  ;;  %v2391_v23 = vpop.f32.mrb[141].mxu1  ;;  %5862 = vmatmul.mubr.msk.bf16.gmra.mrb[16].mxu0 %vm1843_vm1, %v6526_v41  ;;  %v6534_v20 = vld [vmem:[%s6662_s7 + $0x698] ss:$12 sps:$4 sm:$0xff]  }
 0x234   : > { %v2392_v26 = vpop.f32.mrb[142].mxu1  ;;  %5865 = vmatprep.mubr.msk.bf16.mxu0 %vm6588_vm0, %v6587_v3  ;;  %v6511_v23 = vld [vmem:[%s6662_s7 + $0x618] ss:$12 sps:$4 sm:$0xff]  }
 0x235   : > { %5463 = vst [vmem:[%s6938_s16 + $0x110] sm:$0xff] %v5218_v19   ;;  %v3039_v27 = vadd.f32 %v7377_v34, %v2390_v21  ;;  %v2393_v33 = vadd.f32 %v7260_v11, %v2392_v26  ;;  %v2394_v28 = vpop.f32.mrb[143].mxu1  ;;  %v5755_v34 = vpop.f32.mrb[165].mxu0 }
 0x236   : > { %v7470_v44 = vpop.f32.mrb[166].mxu0 }
 0x237   : > { %v3042_v35 = vadd.f32 %v7380_v47, %v2393_v33  ;;  %2604 = vmatmul.mubr.bf16.gmra.mrb[248].mxu1 %v6502_v53  ;;  %v3443_v57 = vmax.f32 %v3039_v27, 0.0  ;;  %v5756_v39 = vpop.f32.mrb[167].mxu0 }
 0x238   : > { %2611 = vmatprep.mubr.bf16.mxu1 %v6503_v31  ;;  %v7482_v51 = vpop.f32.mrb[168].mxu0  ;;  %v6521_v39 = vld [vmem:[%s6662_s7 + $0x64c] ss:$12 sps:$4 sm:$0xff]  }
 0x239   : > { %v3444_v36 = vmax.f32 %v3042_v35, 0.0 }
 0x23a   : > { %v2397_v37 = vpop.f32.mrb[144].mxu1 }
 0x23b   : > { %v5223_v38 = vpack.c.bf16 %v3444_v36, %v3443_v57  ;;  %v2398_v40 = vadd.f32 %v7260_v11, %v2397_v37  ;;  %v2399_v42 = vpop.f32.mrb[145].mxu1  ;;  %5866 = vmatmul.mubr.msk.bf16.gmra.mrb[20].mxu0 %vm1843_vm1, %v6530_v63  ;;  %v6538_v36 = vld [vmem:[%s6662_s7 + $0x6b0] ss:$12 sps:$4 sm:$0xff]  }
 0x23c   : > { %v2400_v47 = vpop.f32.mrb[146].mxu1  ;;  %5869 = vmatprep.mubr.msk.bf16.mxu0 %vm6588_vm0, %v6587_v3  ;;  %v6515_v42 = vld [vmem:[%s6662_s7 + $0x630] ss:$12 sps:$4 sm:$0xff]  }
 0x23d   : > { %5464 = vst [vmem:[%s6938_s16 + $0x118] sm:$0xff] %v5223_v38   ;;  %v3047_v48 = vadd.f32 %v7392_v56, %v2398_v40  ;;  %v2401_v55 = vadd.f32 %v7260_v11, %v2400_v47  ;;  %v2402_v49 = vpop.f32.mrb[147].mxu1  ;;  %v5759_v56 = vpop.f32.mrb[169].mxu0 }
 0x23e   : > { %v7485_v4 = vpop.f32.mrb[170].mxu0 }
 0x23f   : > { %v3050_v58 = vadd.f32 %v7395_v7, %v2401_v55  ;;  %2612 = vmatmul.mubr.bf16.gmra.mrb[252].mxu1 %v6506_v60  ;;  %v3445_v1 = vmax.f32 %v3047_v48, 0.0  ;;  %v5760_v0 = vpop.f32.mrb[171].mxu0 }
 0x240   : > { %2619 = vmatprep.mubr.bf16.mxu1 %v6509_v52  ;;  %v7497_v46 = vpop.f32.mrb[172].mxu0  ;;  %v6525_v0 = vld [vmem:[%s6662_s7 + $0x664] ss:$12 sps:$4 sm:$0xff]  }
 0x241   : > { %v3446_v43 = vmax.f32 %v3050_v58, 0.0 }
 0x242   : > { %v2405_v59 = vpop.f32.mrb[148].mxu1 }
 0x243   : > { %v5228_v61 = vpack.c.bf16 %v3446_v43, %v3445_v1  ;;  %v2406_v62 = vadd.f32 %v7260_v11, %v2405_v59  ;;  %v2407_v2 = vpop.f32.mrb[149].mxu1  ;;  %5870 = vmatmul.mubr.msk.bf16.gmra.mrb[24].mxu0 %vm1843_vm1, %v6534_v20  ;;  %v6542_v43 = vld [vmem:[%s6662_s7 + $0x6c8] ss:$12 sps:$4 sm:$0xff]  }
 0x244   : > { %v2408_v7 = vpop.f32.mrb[150].mxu1  ;;  %5873 = vmatprep.mubr.msk.bf16.mxu0 %vm6588_vm0, %v6587_v3  ;;  %v6519_v2 = vld [vmem:[%s6662_s7 + $0x648] ss:$12 sps:$4 sm:$0xff]  }
 0x245   : > { %5465 = vst [vmem:[%s6938_s16 + $0x120] sm:$0xff] %v5228_v61   ;;  %v3055_v8 = vadd.f32 %v7407_v50, %v2406_v62  ;;  %v2409_v14 = vadd.f32 %v7260_v11, %v2408_v7  ;;  %v2410_v9 = vpop.f32.mrb[151].mxu1  ;;  %v5763_v50 = vpop.f32.mrb[173].mxu0 }
 0x246   : > { %v7500_v22 = vpop.f32.mrb[174].mxu0 }
 0x247   : > { %v3058_v13 = vadd.f32 %v7410_v25, %v2409_v14  ;;  %2620 = vmatmul.mubr.bf16.gmra.mrb[148].mxu1 %v6507_v6  ;;  %v3447_v15 = vmax.f32 %v3055_v8, 0.0  ;;  %v5764_v53 = vpop.f32.mrb[175].mxu0 }
 0x248   : > { %2627 = vmatprep.mubr.bf16.mxu1 %v6513_v10  ;;  %v7512_v28 = vpop.f32.mrb[176].mxu0  ;;  %v6529_v53 = vld [vmem:[%s6662_s7 + $0x67c] ss:$12 sps:$4 sm:$0xff]  }
 0x249   : > { %v3448_v17 = vmax.f32 %v3058_v13, 0.0 }
 0x24a   : > { %v2413_v16 = vpop.f32.mrb[152].mxu1 }
 0x24b   : > { %v5233_v18 = vpack.c.bf16 %v3448_v17, %v3447_v15  ;;  %v2414_v19 = vadd.f32 %v7260_v11, %v2413_v16  ;;  %v2415_v21 = vpop.f32.mrb[153].mxu1  ;;  %5874 = vmatmul.mubr.msk.bf16.gmra.mrb[28].mxu0 %vm1843_vm1, %v6538_v36  ;;  %v6546_v17 = vld [vmem:[%s6662_s7 + $0x6e0] ss:$12 sps:$4 sm:$0xff]  }
 0x24c   : > { %v2416_v25 = vpop.f32.mrb[154].mxu1  ;;  %5877 = vmatprep.mubr.msk.bf16.mxu0 %vm6588_vm0, %v6587_v3  ;;  %v6523_v21 = vld [vmem:[%s6662_s7 + $0x660] ss:$12 sps:$4 sm:$0xff]  }
 0x24d   : > { %5466 = vst [vmem:[%s6938_s16 + $0x128] sm:$0xff] %v5233_v18   ;;  %v3063_v26 = vadd.f32 %v7422_v32, %v2414_v19  ;;  %v2417_v31 = vadd.f32 %v7260_v11, %v2416_v25  ;;  %v2418_v27 = vpop.f32.mrb[155].mxu1  ;;  %v5767_v32 = vpop.f32.mrb[177].mxu0 }
 0x24e   : > { %v7515_v41 = vpop.f32.mrb[178].mxu0 }
 0x24f   : > { %v3066_v33 = vadd.f32 %v7425_v45, %v2417_v31  ;;  %2628 = vmatmul.mubr.bf16.gmra.mrb[152].mxu1 %v6511_v23  ;;  %v3449_v35 = vmax.f32 %v3063_v26, 0.0  ;;  %v5768_v60 = vpop.f32.mrb[179].mxu0 }
 0x250   : > { %2635 = vmatprep.mubr.bf16.mxu1 %v6517_v29  ;;  %v7527_v49 = vpop.f32.mrb[180].mxu0  ;;  %v6533_v60 = vld [vmem:[%s6662_s7 + $0x694] ss:$12 sps:$4 sm:$0xff]  }
 0x251   : > { %v3450_v57 = vmax.f32 %v3066_v33, 0.0 }
 0x252   : > { %v2421_v34 = vpop.f32.mrb[156].mxu1 }
 0x253   : > { %v5238_v37 = vpack.c.bf16 %v3450_v57, %v3449_v35  ;;  %v2422_v38 = vadd.f32 %v7260_v11, %v2421_v34  ;;  %v2423_v40 = vpop.f32.mrb[157].mxu1  ;;  %5878 = vmatmul.mubr.msk.bf16.gmra.mrb[32].mxu0 %vm1843_vm1, %v6542_v43  ;;  %v6550_v57 = vld [vmem:[%s6662_s7 + $0x6f8] ss:$12 sps:$4 sm:$0xff]  }
 0x254   : > { %v2424_v45 = vpop.f32.mrb[158].mxu1  ;;  %5881 = vmatprep.mubr.msk.bf16.mxu0 %vm6588_vm0, %v6587_v3  ;;  %v6527_v40 = vld [vmem:[%s6662_s7 + $0x678] ss:$12 sps:$4 sm:$0xff]  }
 0x255   : > { %5467 = vst [vmem:[%s6938_s16 + $0x130] sm:$0xff] %v5238_v37   ;;  %v3071_v47 = vadd.f32 %v7437_v54, %v2422_v38  ;;  %v2425_v52 = vadd.f32 %v7260_v11, %v2424_v45  ;;  %v2426_v48 = vpop.f32.mrb[159].mxu1  ;;  %v5771_v54 = vpop.f32.mrb[181].mxu0 }
 0x256   : > { %v7530_v63 = vpop.f32.mrb[182].mxu0 }
 0x257   : > { %v3074_v55 = vadd.f32 %v7440_v5, %v2425_v52  ;;  %2636 = vmatmul.mubr.bf16.gmra.mrb[156].mxu1 %v6515_v42  ;;  %v3451_v58 = vmax.f32 %v3071_v47, 0.0  ;;  %v5772_v6 = vpop.f32.mrb[183].mxu0 }
 0x258   : > { %2643 = vmatprep.mubr.bf16.mxu1 %v6521_v39  ;;  %v7542_v9 = vpop.f32.mrb[184].mxu0  ;;  %v6537_v6 = vld [vmem:[%s6662_s7 + $0x6ac] ss:$12 sps:$4 sm:$0xff]  }
 0x259   : > { %v3452_v1 = vmax.f32 %v3074_v55, 0.0 }
 0x25a   : > { %v2429_v56 = vpop.f32.mrb[160].mxu1 }
 0x25b   : > { %v5243_v59 = vpack.c.bf16 %v3452_v1, %v3451_v58  ;;  %v2430_v61 = vadd.f32 %v7260_v11, %v2429_v56  ;;  %v2431_v62 = vpop.f32.mrb[161].mxu1  ;;  %5882 = vmatmul.mubr.msk.bf16.gmra.mrb[36].mxu0 %vm1843_vm1, %v6546_v17  ;;  %v6554_v1 = vld [vmem:[%s6662_s7 + $0x710] ss:$12 sps:$4 sm:$0xff]  }
 0x25c   : > { %v2432_v5 = vpop.f32.mrb[162].mxu1  ;;  %5885 = vmatprep.mubr.msk.bf16.mxu0 %vm6588_vm0, %v6587_v3  ;;  %v6531_v62 = vld [vmem:[%s6662_s7 + $0x690] ss:$12 sps:$4 sm:$0xff]  }
 0x25d   : > { %5468 = vst [vmem:[%s6938_s16 + $0x138] sm:$0xff] %v5243_v59   ;;  %v3079_v7 = vadd.f32 %v7452_v12, %v2430_v61  ;;  %v2433_v10 = vadd.f32 %v7260_v11, %v2432_v5  ;;  %v2434_v8 = vpop.f32.mrb[163].mxu1  ;;  %v5775_v12 = vpop.f32.mrb[185].mxu0 }
 0x25e   : > { %v7545_v20 = vpop.f32.mrb[186].mxu0 }
 0x25f   : > { %v3082_v14 = vadd.f32 %v7455_v24, %v2433_v10  ;;  %2644 = vmatmul.mubr.bf16.gmra.mrb[160].mxu1 %v6519_v2  ;;  %v3453_v13 = vmax.f32 %v3079_v7, 0.0  ;;  %v5776_v23 = vpop.f32.mrb[187].mxu0 }
 0x260   : > { %2651 = vmatprep.mubr.bf16.mxu1 %v6525_v0  ;;  %v7557_v27 = vpop.f32.mrb[188].mxu0 }
 0x261   : > { %v3454_v15 = vmax.f32 %v3082_v14, 0.0 }
 0x262   : > { %v2437_v50 = vpop.f32.mrb[164].mxu1 }
 0x263   : > { %v5248_v16 = vpack.c.bf16 %v3454_v15, %v3453_v13  ;;  %v2438_v18 = vadd.f32 %v7260_v11, %v2437_v50  ;;  %v2439_v19 = vpop.f32.mrb[165].mxu1  ;;  %5886 = vmatmul.mubr.msk.bf16.gmra.mrb[40].mxu0 %vm1843_vm1, %v6550_v57  ;;  %v6558_v15 = vld [vmem:[%s6662_s7 + $0x728] ss:$12 sps:$4 sm:$0xff]  }
 0x264   : > { %v2440_v24 = vpop.f32.mrb[166].mxu1  ;;  %5889 = vmatprep.mubr.msk.bf16.mxu0 %vm6588_vm0, %v6587_v3 }
 0x265   : > { %5469 = vst [vmem:[%s6938_s16 + $0x140] sm:$0xff] %v5248_v16   ;;  %v3087_v25 = vadd.f32 %v7467_v30, %v2438_v18  ;;  %v2441_v29 = vadd.f32 %v7260_v11, %v2440_v24  ;;  %v2442_v26 = vpop.f32.mrb[167].mxu1  ;;  %v5779_v30 = vpop.f32.mrb[189].mxu0  ;;  %v7600_v24 = vld [vmem:[%s7896_s2] ss:$0 sm:$0xff] }
 0x266   : > { %v7560_v36 = vpop.f32.mrb[190].mxu0 }
 0x267   : > { %v3090_v31 = vadd.f32 %v7470_v44, %v2441_v29  ;;  %2652 = vmatmul.mubr.bf16.gmra.mrb[164].mxu1 %v6523_v21  ;;  %v3455_v33 = vmax.f32 %v3087_v25, 0.0  ;;  %v5780_v42 = vpop.f32.mrb[191].mxu0  ;;  %v6541_v21 = vld [vmem:[%s6662_s7 + $0x6c4] ss:$12 sps:$4 sm:$0xff]  }
 0x268   : > { %2659 = vmatprep.mubr.bf16.mxu1 %v6529_v53  ;;  %v7572_v48 = vpop.f32.mrb[192].mxu0 }
 0x269   : > { %v3456_v35 = vmax.f32 %v3090_v31, 0.0 }
 0x26a   : > { %v2445_v32 = vpop.f32.mrb[168].mxu1 }
 0x26b   : > { %v5253_v34 = vpack.c.bf16 %v3456_v35, %v3455_v33  ;;  %v2446_v37 = vadd.f32 %v7260_v11, %v2445_v32  ;;  %v2447_v38 = vpop.f32.mrb[169].mxu1  ;;  %5890 = vmatmul.mubr.msk.bf16.gmra.mrb[44].mxu0 %vm1843_vm1, %v6554_v1 }
 0x26c   : > { %v2448_v44 = vpop.f32.mrb[170].mxu1  ;;  %5893 = vmatprep.mubr.msk.bf16.mxu0 %vm6588_vm0, %v6587_v3  ;;  %v6535_v3 = vld [vmem:[%s6662_s7 + $0x6a8] ss:$12 sps:$4 sm:$0xff]  }
 0x26d   : > { %5470 = vst [vmem:[%s6938_s16 + $0x148] sm:$0xff] %v5253_v34   ;;  %v3095_v45 = vadd.f32 %v7482_v51, %v2446_v37  ;;  %v2449_v39 = vadd.f32 %v7260_v11, %v2448_v44  ;;  %v2450_v47 = vpop.f32.mrb[171].mxu1  ;;  %v5783_v51 = vpop.f32.mrb[193].mxu0  ;;  %v6539_v34 = vld [vmem:[%s6662_s7 + $0x6c0] ss:$12 sps:$4 sm:$0xff]  }
 0x26e   : > { %v7575_v43 = vpop.f32.mrb[194].mxu0 }
 0x26f   : > { %v3098_v52 = vadd.f32 %v7485_v4, %v2449_v39  ;;  %2660 = vmatmul.mubr.bf16.gmra.mrb[168].mxu1 %v6527_v40  ;;  %v3457_v55 = vmax.f32 %v3095_v45, 0.0  ;;  %v5784_v2 = vpop.f32.mrb[195].mxu0  ;;  %v6545_v40 = vld [vmem:[%s6662_s7 + $0x6dc] ss:$12 sps:$4 sm:$0xff]  }
 0x270   : > { %2667 = vmatprep.mubr.bf16.mxu1 %v6533_v60  ;;  %v7587_v8 = vpop.f32.mrb[196].mxu0 }
 0x271   : > { %v3458_v58 = vmax.f32 %v3098_v52, 0.0 }
 0x272   : > { %v2453_v54 = vpop.f32.mrb[172].mxu1 }
 0x273   : > { %v5258_v56 = vpack.c.bf16 %v3458_v58, %v3457_v55  ;;  %v2454_v59 = vadd.f32 %v7260_v11, %v2453_v54  ;;  %v2455_v61 = vpop.f32.mrb[173].mxu1  ;;  %5894 = vmatmul.mubr.msk.bf16.gmra.mrb[48].mxu0 %vm1843_vm1, %v6558_v15  ;;  %v6543_v54 = vld [vmem:[%s6662_s7 + $0x6d8] ss:$12 sps:$4 sm:$0xff]   ;;  %v6547_v15 = vld [vmem:[%s6662_s7 + $0x6f0] ss:$12 sps:$4 sm:$0xff]  }
 0x274   : > { %v2456_v4 = vpop.f32.mrb[174].mxu1  ;;  %v6549_v61 = vld [vmem:[%s6662_s7 + $0x6f4] ss:$12 sps:$4 sm:$0xff]  }
 0x275   : > { %5471 = vst [vmem:[%s6938_s16 + $0x150] sm:$0xff] %v5258_v56   ;;  %v3103_v5 = vadd.f32 %v7497_v46, %v2454_v59  ;;  %v2457_v0 = vadd.f32 %v7260_v11, %v2456_v4  ;;  %v2458_v7 = vpop.f32.mrb[175].mxu1  ;;  %v5787_v46 = vpop.f32.mrb[197].mxu0 }
 0x276   : > { %v7590_v17 = vpop.f32.mrb[198].mxu0 }
 0x277   : > { %v3106_v10 = vadd.f32 %v7500_v22, %v2457_v0  ;;  %2668 = vmatmul.mubr.bf16.gmra.mrb[172].mxu1 %v6531_v62  ;;  %v3459_v14 = vmax.f32 %v3103_v5, 0.0  ;;  %v5788_v19 = vpop.f32.mrb[199].mxu0 }
 0x278   : > { %2675 = vmatprep.mubr.bf16.mxu1 %v6537_v6  ;;  %v7605_v29 = vpop.f32.mrb[200].mxu0 }
 0x279   : > { %v3460_v13 = vmax.f32 %v3106_v10, 0.0  ;;  %v5791_v31 = vpop.f32.mrb[201].mxu0 }
 0x27a   : > { %v2461_v12 = vpop.f32.mrb[176].mxu1  ;;  %v7607_v35 = vpop.f32.mrb[202].mxu0  ;;  %v6551_v31 = vld [vmem:[%s6662_s7 + $0x708] ss:$12 sps:$4 sm:$0xff]  }
 0x27b   : > { %v5263_v50 = vpack.c.bf16 %v3460_v13, %v3459_v14  ;;  %v2462_v16 = vadd.f32 %v7260_v11, %v2461_v12  ;;  %v2463_v18 = vpop.f32.mrb[177].mxu1  ;;  %v5792_v37 = vpop.f32.mrb[203].mxu0 }
 0x27c   : > { %v2464_v22 = vpop.f32.mrb[178].mxu1 }
 0x27d   : > { %5472 = vst [vmem:[%s6938_s16 + $0x158] sm:$0xff] %v5263_v50   ;;  %v3111_v23 = vadd.f32 %v7512_v28, %v2462_v16  ;;  %v2465_v53 = vadd.f32 %v7600_v24, %v2464_v22  ;;  %v2466_v25 = vpop.f32.mrb[179].mxu1  ;;  %v6553_v16 = vld [vmem:[%s6662_s7 + $0x70c] ss:$12 sps:$4 sm:$0xff]  }
 0x27e   : > { %v7616_v45 = vpop.f32.mrb[204].mxu0 }
 0x27f   : > { %v3114_v11 = vadd.f32 %v7515_v41, %v2465_v53  ;;  %2676 = vmatmul.mubr.bf16.gmra.mrb[176].mxu1 %v6535_v3  ;;  %v3461_v28 = vmax.f32 %v3111_v23, 0.0  ;;  %v5795_v52 = vpop.f32.mrb[205].mxu0 }
 0x280   : > { %2683 = vmatprep.mubr.bf16.mxu1 %v6541_v21  ;;  %v7618_v58 = vpop.f32.mrb[206].mxu0  ;;  %v6555_v52 = vld [vmem:[%s6662_s7 + $0x720] ss:$12 sps:$4 sm:$0xff]  }
 0x281   : > { %v3462_v26 = vmax.f32 %v3114_v11, 0.0  ;;  %v5796_v56 = vpop.f32.mrb[207].mxu0 }
 0x282   : > { %v2469_v33 = vpop.f32.mrb[180].mxu1 }
 0x283   : > { %v5268_v30 = vpack.c.bf16 %v3462_v26, %v3461_v28  ;;  %v2470_v57 = vadd.f32 %v7600_v24, %v2469_v33  ;;  %v2471_v32 = vpop.f32.mrb[181].mxu1 }
 0x284   : > { %v2472_v38 = vpop.f32.mrb[182].mxu1 }
 0x285   : > { %5473 = vst [vmem:[%s6938_s16 + $0x160] sm:$0xff] %v5268_v30   ;;  %v3119_v41 = vadd.f32 %v7527_v49, %v2470_v57  ;;  %v2473_v42 = vadd.f32 %v7600_v24, %v2472_v38  ;;  %v2474_v44 = vpop.f32.mrb[183].mxu1  ;;  %v6557_v57 = vld [vmem:[%s6662_s7 + $0x724] ss:$12 sps:$4 sm:$0xff]  }
 0x286   : > { %v7627_v6 = vpop.f32.mrb[208].mxu0 }
 0x287   : > { %v3122_v60 = vadd.f32 %v7530_v63, %v2473_v42  ;;  %2684 = vmatmul.mubr.bf16.gmra.mrb[180].mxu1 %v6539_v34  ;;  %v3463_v39 = vmax.f32 %v3119_v41, 0.0  ;;  %v5799_v7 = vpop.f32.mrb[209].mxu0 }
 0x288   : > { %2691 = vmatprep.mubr.bf16.mxu1 %v6545_v40  ;;  %v7629_v14 = vpop.f32.mrb[210].mxu0 }
 0x289   : > { %v3464_v47 = vmax.f32 %v3122_v60, 0.0  ;;  %v5800_v12 = vpop.f32.mrb[211].mxu0 }
 0x28a   : > { %v2477_v55 = vpop.f32.mrb[184].mxu1 }
 0x28b   : > { %v5273_v51 = vpack.c.bf16 %v3464_v47, %v3463_v39  ;;  %v2478_v49 = vadd.f32 %v7600_v24, %v2477_v55  ;;  %v2479_v1 = vpop.f32.mrb[185].mxu1 }
 0x28c   : > { %v2480_v59 = vpop.f32.mrb[186].mxu1 }
 0x28d   : > { %5474 = vst [vmem:[%s6938_s16 + $0x168] sm:$0xff] %v5273_v51   ;;  %v3127_v63 = vadd.f32 %v7542_v9, %v2478_v49  ;;  %v2481_v62 = vadd.f32 %v7600_v24, %v2480_v59  ;;  %v2482_v2 = vpop.f32.mrb[187].mxu1 }
 0x28e   : > { %v7638_v22 = vpop.f32.mrb[212].mxu0 }
 0x28f   : > { %v3130_v4 = vadd.f32 %v7545_v20, %v2481_v62  ;;  %2692 = vmatmul.mubr.bf16.gmra.mrb[184].mxu1 %v6543_v54  ;;  %v3465_v5 = vmax.f32 %v3127_v63, 0.0  ;;  %v5803_v53 = vpop.f32.mrb[213].mxu0 }
 0x290   : > { %2699 = vmatprep.mubr.bf16.mxu1 %v6549_v61  ;;  %v7640_v11 = vpop.f32.mrb[214].mxu0 }
 0x291   : > { %v3466_v0 = vmax.f32 %v3130_v4, 0.0  ;;  %v5804_v33 = vpop.f32.mrb[215].mxu0 }
 0x292   : > { %v2485_v10 = vpop.f32.mrb[188].mxu1 }
 0x293   : > { %v5278_v13 = vpack.c.bf16 %v3466_v0, %v3465_v5  ;;  %v2486_v9 = vadd.f32 %v7600_v24, %v2485_v10  ;;  %v2487_v46 = vpop.f32.mrb[189].mxu1 }
 0x294   : > { %v2488_v50 = vpop.f32.mrb[190].mxu1 }
 0x295   : > { %5475 = vst [vmem:[%s6938_s16 + $0x170] sm:$0xff] %v5278_v13   ;;  %v3135_v20 = vadd.f32 %v7557_v27, %v2486_v9  ;;  %v2489_v18 = vadd.f32 %v7600_v24, %v2488_v50  ;;  %v2490_v3 = vpop.f32.mrb[191].mxu1 }
 0x296   : > { %v7649_v38 = vpop.f32.mrb[216].mxu0 }
 0x297   : > { %v3138_v19 = vadd.f32 %v7560_v36, %v2489_v18  ;;  %2700 = vmatmul.mubr.bf16.gmra.mrb[188].mxu1 %v6547_v15  ;;  %v3467_v21 = vmax.f32 %v3135_v20, 0.0  ;;  %v5807_v42 = vpop.f32.mrb[217].mxu0 }
 0x298   : > { %2707 = vmatprep.mubr.bf16.mxu1 %v6553_v16  ;;  %v7651_v60 = vpop.f32.mrb[218].mxu0 }
 0x299   : > { %v3468_v23 = vmax.f32 %v3138_v19, 0.0  ;;  %v5808_v55 = vpop.f32.mrb[219].mxu0 }
 0x29a   : > { %v2493_v25 = vpop.f32.mrb[192].mxu1 }
 0x29b   : > { %v5283_v28 = vpack.c.bf16 %v3468_v23, %v3467_v21  ;;  %v2494_v27 = vadd.f32 %v7600_v24, %v2493_v25  ;;  %v2495_v26 = vpop.f32.mrb[193].mxu1 }
 0x29c   : > { %v2496_v30 = vpop.f32.mrb[194].mxu1 }
 0x29d   : > { %5476 = vst [vmem:[%s6938_s16 + $0x178] sm:$0xff] %v5283_v28   ;;  %v3143_v36 = vadd.f32 %v7572_v48, %v2494_v27  ;;  %v2497_v32 = vadd.f32 %v7600_v24, %v2496_v30  ;;  %v2498_v34 = vpop.f32.mrb[195].mxu1 }
 0x29e   : > { %v7659_v56 = vpop.f32.mrb[220].mxu0 }
 0x29f   : > { %v3146_v37 = vadd.f32 %v7575_v43, %v2497_v32  ;;  %2708 = vmatmul.mubr.bf16.gmra.mrb[192].mxu1 %v6551_v31  ;;  %v3469_v40 = vmax.f32 %v3143_v36, 0.0  ;;  %v5811_v63 = vpop.f32.mrb[221].mxu0 }
 0x2a0   : > { %2715 = vmatprep.mubr.bf16.mxu1 %v6557_v57  ;;  %v7661_v2 = vpop.f32.mrb[222].mxu0 }
 0x2a1   : > { %v3470_v41 = vmax.f32 %v3146_v37, 0.0 }
 0x2a2   : > { %v2501_v44 = vpop.f32.mrb[196].mxu1 }
 0x2a3   : > { %v5288_v39 = vpack.c.bf16 %v3470_v41, %v3469_v40  ;;  %v2502_v47 = vadd.f32 %v7600_v24, %v2501_v44  ;;  %v2503_v48 = vpop.f32.mrb[197].mxu1 }
 0x2a4   : > { %v2504_v51 = vpop.f32.mrb[198].mxu1 }
 0x2a5   : > { %5477 = vst [vmem:[%s6938_s16 + $0x180] sm:$0xff] %v5288_v39   ;;  %v3151_v43 = vadd.f32 %v7587_v8, %v2502_v47  ;;  %v2505_v49 = vadd.f32 %v7600_v24, %v2504_v51  ;;  %v2506_v1 = vpop.f32.mrb[199].mxu1  ;;  %v5812_v8 = vpop.f32.mrb[223].mxu0 }
 0x2a6   : > { %v7668_v46 = vpop.f32.mrb[224].mxu0 }
 0x2a7   : > { %v3154_v54 = vadd.f32 %v7590_v17, %v2505_v49  ;;  %2716 = vmatmul.mubr.bf16.gmra.mrb[196].mxu1 %v6555_v52  ;;  %v3471_v59 = vmax.f32 %v3151_v43, 0.0  ;;  %v5815_v50 = vpop.f32.mrb[225].mxu0 }
 0x2a8   : > { %v7670_v20 = vpop.f32.mrb[226].mxu0 }
 0x2a9   : > { %v3472_v61 = vmax.f32 %v3154_v54, 0.0  ;;  %v5816_v21 = vpop.f32.mrb[227].mxu0 }
 0x2aa   : > { %v2509_v62 = vpop.f32.mrb[200].mxu1 }
 0x2ab   : > { %v5293_v4 = vpack.c.bf16 %v3472_v61, %v3471_v59  ;;  %v2510_v5 = vadd.f32 %v7600_v24, %v2509_v62  ;;  %v2511_v0 = vpop.f32.mrb[201].mxu1 }
 0x2ac   : > { %v2512_v7 = vpop.f32.mrb[202].mxu1 }
 0x2ad   : > { %5478 = vst [vmem:[%s6938_s16 + $0x188] sm:$0xff] %v5293_v4   ;;  %v3159_v10 = vadd.f32 %v7605_v29, %v2510_v5  ;;  %v2513_v17 = vadd.f32 %v7600_v24, %v2512_v7  ;;  %v2514_v13 = vpop.f32.mrb[203].mxu1 }
 0x2ae   : > { %v7677_v28 = vpop.f32.mrb[228].mxu0 }
 0x2af   : > { %v3162_v9 = vadd.f32 %v7607_v35, %v2513_v17  ;;  %v3473_v15 = vmax.f32 %v3159_v10, 0.0  ;;  %v5819_v31 = vpop.f32.mrb[229].mxu0 }
 0x2b0   : > { %v7679_v30 = vpop.f32.mrb[230].mxu0 }
 0x2b1   : > { %v3474_v12 = vmax.f32 %v3162_v9, 0.0  ;;  %v5820_v34 = vpop.f32.mrb[231].mxu0 }
 0x2b2   : > { %v2517_v16 = vpop.f32.mrb[204].mxu1 }
 0x2b3   : > { %v5298_v18 = vpack.c.bf16 %v3474_v12, %v3473_v15  ;;  %v2518_v3 = vadd.f32 %v7600_v24, %v2517_v16  ;;  %v2519_v19 = vpop.f32.mrb[205].mxu1 }
 0x2b4   : > { %v2520_v23 = vpop.f32.mrb[206].mxu1 }
 0x2b5   : > { %5479 = vst [vmem:[%s6938_s16 + $0x190] sm:$0xff] %v5298_v18   ;;  %v3167_v29 = vadd.f32 %v7616_v45, %v2518_v3  ;;  %v2521_v35 = vadd.f32 %v7600_v24, %v2520_v23  ;;  %v2522_v53 = vpop.f32.mrb[207].mxu1 }
 0x2b6   : > { %v7686_v42 = vpop.f32.mrb[232].mxu0 }
 0x2b7   : > { %v3170_v25 = vadd.f32 %v7618_v58, %v2521_v35  ;;  %v3475_v27 = vmax.f32 %v3167_v29, 0.0  ;;  %v5823_v47 = vpop.f32.mrb[233].mxu0 }
 0x2b8   : > { %v7688_v52 = vpop.f32.mrb[234].mxu0 }
 0x2b9   : > { %v3476_v26 = vmax.f32 %v3170_v25, 0.0  ;;  %v5824_v49 = vpop.f32.mrb[235].mxu0 }
 0x2ba   : > { %v2525_v33 = vpop.f32.mrb[208].mxu1 }
 0x2bb   : > { %v5303_v57 = vpack.c.bf16 %v3476_v26, %v3475_v27  ;;  %v2526_v36 = vadd.f32 %v7600_v24, %v2525_v33  ;;  %v2527_v32 = vpop.f32.mrb[209].mxu1 }
 0x2bc   : > { %v2528_v37 = vpop.f32.mrb[210].mxu1 }
 0x2bd   : > { %5480 = vst [vmem:[%s6938_s16 + $0x198] sm:$0xff] %v5303_v57   ;;  %v3175_v45 = vadd.f32 %v7627_v6, %v2526_v36  ;;  %v2529_v58 = vadd.f32 %v7600_v24, %v2528_v37  ;;  %v2530_v40 = vpop.f32.mrb[211].mxu1 }
 0x2be   : > { %v7695_v61 = vpop.f32.mrb[236].mxu0 }
 0x2bf   : > { %v3178_v41 = vadd.f32 %v7629_v14, %v2529_v58  ;;  %v3477_v44 = vmax.f32 %v3175_v45, 0.0  ;;  %v5827_v4 = vpop.f32.mrb[237].mxu0 }
 0x2c0   : > { %v7697_v0 = vpop.f32.mrb[238].mxu0 }
 0x2c1   : > { %v3478_v39 = vmax.f32 %v3178_v41, 0.0  ;;  %v5828_v17 = vpop.f32.mrb[239].mxu0 }
 0x2c2   : > { %v2533_v48 = vpop.f32.mrb[212].mxu1 }
 0x2c3   : > { %v5308_v55 = vpack.c.bf16 %v3478_v39, %v3477_v44  ;;  %v2534_v51 = vadd.f32 %v7600_v24, %v2533_v48  ;;  %v2535_v43 = vpop.f32.mrb[213].mxu1 }
 0x2c4   : > { %v2536_v1 = vpop.f32.mrb[214].mxu1 }
 0x2c5   : > { %5481 = vst [vmem:[%s6938_s16 + $0x1a0] sm:$0xff] %v5308_v55   ;;  %v3183_v6 = vadd.f32 %v7638_v22, %v2534_v51  ;;  %v2537_v14 = vadd.f32 %v7600_v24, %v2536_v1  ;;  %v2538_v54 = vpop.f32.mrb[215].mxu1 }
 0x2c6   : > { %v7704_v12 = vpop.f32.mrb[240].mxu0 }
 0x2c7   : > { %v3186_v59 = vadd.f32 %v7640_v11, %v2537_v14  ;;  %v3479_v63 = vmax.f32 %v3183_v6, 0.0  ;;  %v5831_v18 = vpop.f32.mrb[241].mxu0 }
 0x2c8   : > { %v7706_v19 = vpop.f32.mrb[242].mxu0 }
 0x2c9   : > { %v3480_v62 = vmax.f32 %v3186_v59, 0.0  ;;  %v5832_v35 = vpop.f32.mrb[243].mxu0 }
 0x2ca   : > { %v2541_v5 = vpop.f32.mrb[216].mxu1 }
 0x2cb   : > { %v5313_v8 = vpack.c.bf16 %v3480_v62, %v3479_v63  ;;  %v2542_v7 = vadd.f32 %v7600_v24, %v2541_v5  ;;  %v2543_v10 = vpop.f32.mrb[217].mxu1 }
 0x2cc   : > { %v2544_v13 = vpop.f32.mrb[218].mxu1 }
 0x2cd   : > { %5482 = vst [vmem:[%s6938_s16 + $0x1a8] sm:$0xff] %v5313_v8   ;;  %v3191_v22 = vadd.f32 %v7649_v38, %v2542_v7  ;;  %v2545_v11 = vadd.f32 %v7600_v24, %v2544_v13  ;;  %v2546_v9 = vpop.f32.mrb[219].mxu1 }
 0x2ce   : > { %v7713_v26 = vpop.f32.mrb[244].mxu0 }
 0x2cf   : > { %v3194_v15 = vadd.f32 %v7651_v60, %v2545_v11  ;;  %v3481_v50 = vmax.f32 %v3191_v22, 0.0  ;;  %v5835_v57 = vpop.f32.mrb[245].mxu0 }
 0x2d0   : > { %v7715_v32 = vpop.f32.mrb[246].mxu0 }
 0x2d1   : > { %v3482_v16 = vmax.f32 %v3194_v15, 0.0  ;;  %v5836_v58 = vpop.f32.mrb[247].mxu0 }
 0x2d2   : > { %v2549_v3 = vpop.f32.mrb[220].mxu1 }
 0x2d3   : > { %v5318_v21 = vpack.c.bf16 %v3482_v16, %v3481_v50  ;;  %v2550_v23 = vadd.f32 %v7600_v24, %v2549_v3  ;;  %v2551_v29 = vpop.f32.mrb[221].mxu1 }
 0x2d4   : > { %v2552_v53 = vpop.f32.mrb[222].mxu1 }
 0x2d5   : > { %5483 = vst [vmem:[%s6938_s16 + $0x1b0] sm:$0xff] %v5318_v21   ;;  %v3199_v38 = vadd.f32 %v7659_v56, %v2550_v23  ;;  %v2553_v60 = vadd.f32 %v7600_v24, %v2552_v53  ;;  %v2554_v25 = vpop.f32.mrb[223].mxu1 }
 0x2d6   : > { %v7722_v39 = vpop.f32.mrb[248].mxu0 }
 0x2d7   : > { %v3202_v27 = vadd.f32 %v7661_v2, %v2553_v60  ;;  %v3483_v31 = vmax.f32 %v3199_v38, 0.0  ;;  %v5839_v55 = vpop.f32.mrb[249].mxu0 }
 0x2d8   : > { %v7724_v43 = vpop.f32.mrb[250].mxu0 }
 0x2d9   : > { %v3484_v33 = vmax.f32 %v3202_v27, 0.0  ;;  %v5840_v14 = vpop.f32.mrb[251].mxu0 }
 0x2da   : > { %v2557_v36 = vpop.f32.mrb[224].mxu1 }
 0x2db   : > { %v5323_v34 = vpack.c.bf16 %v3484_v33, %v3483_v31  ;;  %v2558_v37 = vadd.f32 %v7600_v24, %v2557_v36  ;;  %v2559_v45 = vpop.f32.mrb[225].mxu1 }
 0x2dc   : > { %v2560_v40 = vpop.f32.mrb[226].mxu1 }
 0x2dd   : > { %5484 = vst [vmem:[%s6938_s16 + $0x1b8] sm:$0xff] %v5323_v34   ;;  %v3207_v56 = vadd.f32 %v7668_v46, %v2558_v37  ;;  %v2561_v2 = vadd.f32 %v7600_v24, %v2560_v40  ;;  %v2562_v41 = vpop.f32.mrb[227].mxu1 }
 0x2de   : > { %v7731_v62 = vpop.f32.mrb[252].mxu0 }
 0x2df   : > { %v3210_v44 = vadd.f32 %v7670_v20, %v2561_v2  ;;  %v3485_v47 = vmax.f32 %v3207_v56, 0.0  ;;  %v5843_v8 = vpop.f32.mrb[253].mxu0 }
 0x2e0   : > { %v7733_v10 = vpop.f32.mrb[254].mxu0 }
 0x2e1   : > { %v3486_v48 = vmax.f32 %v3210_v44, 0.0  ;;  %v5844_v11 = vpop.f32.mrb[255].mxu0 }
 0x2e2   : > { %v2565_v51 = vpop.f32.mrb[228].mxu1 }
 0x2e3   : > { %v5328_v49 = vpack.c.bf16 %v3486_v48, %v3485_v47  ;;  %v2566_v1 = vadd.f32 %v7600_v24, %v2565_v51  ;;  %v2567_v6 = vpop.f32.mrb[229].mxu1 }
 0x2e4   : > { %v2568_v54 = vpop.f32.mrb[230].mxu1 }
 0x2e5   : > { %5485 = vst [vmem:[%s6938_s16 + $0x1c0] sm:$0xff] %v5328_v49   ;;  %v3215_v46 = vadd.f32 %v7677_v28, %v2566_v1  ;;  %v2569_v20 = vadd.f32 %v7600_v24, %v2568_v54  ;;  %v2570_v59 = vpop.f32.mrb[231].mxu1 }
 0x2e6   : > { %v7740_v16 = vpop.f32.mrb[0].mxu0 }
 0x2e7   : > { %v3218_v63 = vadd.f32 %v7679_v30, %v2569_v20  ;;  %v3487_v4 = vmax.f32 %v3215_v46, 0.0  ;;  %v5847_v21 = vpop.f32.mrb[1].mxu0 }
 0x2e8   : > { %v7742_v29 = vpop.f32.mrb[2].mxu0 }
 0x2e9   : > { %v3488_v5 = vmax.f32 %v3218_v63, 0.0  ;;  %v5848_v60 = vpop.f32.mrb[3].mxu0 }
 0x2ea   : > { %v2573_v7 = vpop.f32.mrb[232].mxu1 }
 0x2eb   : > { %v5333_v17 = vpack.c.bf16 %v3488_v5, %v3487_v4  ;;  %v2574_v13 = vadd.f32 %v7600_v24, %v2573_v7  ;;  %v2575_v22 = vpop.f32.mrb[233].mxu1 }
 0x2ec   : > { %v2576_v9 = vpop.f32.mrb[234].mxu1 }
 0x2ed   : > { %5486 = vst [vmem:[%s6938_s16 + $0x1c8] sm:$0xff] %v5333_v17   ;;  %v3223_v28 = vadd.f32 %v7686_v42, %v2574_v13  ;;  %v2577_v30 = vadd.f32 %v7600_v24, %v2576_v9  ;;  %v2578_v15 = vpop.f32.mrb[235].mxu1 }
 0x2ee   : > { %v7749_v33 = vpop.f32.mrb[4].mxu0 }
 0x2ef   : > { %v3226_v50 = vadd.f32 %v7688_v52, %v2577_v30  ;;  %v3489_v18 = vmax.f32 %v3223_v28, 0.0  ;;  %v5851_v34 = vpop.f32.mrb[5].mxu0 }
 0x2f0   : > { %v7751_v45 = vpop.f32.mrb[6].mxu0 }
 0x2f1   : > { %v3490_v3 = vmax.f32 %v3226_v50, 0.0  ;;  %v5852_v2 = vpop.f32.mrb[7].mxu0 }
 0x2f2   : > { %v2581_v23 = vpop.f32.mrb[236].mxu1 }
 0x2f3   : > { %v5338_v35 = vpack.c.bf16 %v3490_v3, %v3489_v18  ;;  %v2582_v53 = vadd.f32 %v7600_v24, %v2581_v23  ;;  %v2583_v38 = vpop.f32.mrb[237].mxu1 }
 0x2f4   : > { %v2584_v25 = vpop.f32.mrb[238].mxu1 }
 0x2f5   : > { %5487 = vst [vmem:[%s6938_s16 + $0x1d0] sm:$0xff] %v5338_v35   ;;  %v3231_v42 = vadd.f32 %v7695_v61, %v2582_v53  ;;  %v2585_v52 = vadd.f32 %v7600_v24, %v2584_v25  ;;  %v2586_v27 = vpop.f32.mrb[239].mxu1 }
 0x2f6   : > { %v7758_v48 = vpop.f32.mrb[8].mxu0 }
 0x2f7   : > { %v3234_v31 = vadd.f32 %v7697_v0, %v2585_v52  ;;  %v3491_v57 = vmax.f32 %v3231_v42, 0.0  ;;  %v5855_v49 = vpop.f32.mrb[9].mxu0 }
 0x2f8   : > { %v7760_v6 = vpop.f32.mrb[10].mxu0 }
 0x2f9   : > { %v3492_v36 = vmax.f32 %v3234_v31, 0.0  ;;  %v5856_v20 = vpop.f32.mrb[11].mxu0 }
 0x2fa   : > { %v2589_v37 = vpop.f32.mrb[240].mxu1 }
 0x2fb   : > { %v5343_v58 = vpack.c.bf16 %v3492_v36, %v3491_v57  ;;  %v2590_v40 = vadd.f32 %v7600_v24, %v2589_v37  ;;  %v2591_v56 = vpop.f32.mrb[241].mxu1 }
 0x2fc   : > { %v2592_v41 = vpop.f32.mrb[242].mxu1 }
 0x2fd   : > { %5488 = vst [vmem:[%s6938_s16 + $0x1d8] sm:$0xff] %v5343_v58   ;;  %v3239_v61 = vadd.f32 %v7704_v12, %v2590_v40  ;;  %v2593_v0 = vadd.f32 %v7600_v24, %v2592_v41  ;;  %v2594_v44 = vpop.f32.mrb[243].mxu1 }
 0x2fe   : > { %v7767_v5 = vpop.f32.mrb[12].mxu0 }
 0x2ff   : > { %v3242_v47 = vadd.f32 %v7706_v19, %v2593_v0  ;;  %v3493_v55 = vmax.f32 %v3239_v61, 0.0  ;;  %v5859_v17 = vpop.f32.mrb[13].mxu0 }
 0x300   : > { %v7769_v22 = vpop.f32.mrb[14].mxu0 }
 0x301   : > { %v3494_v51 = vmax.f32 %v3242_v47, 0.0  ;;  %v5860_v30 = vpop.f32.mrb[15].mxu0 }
 0x302   : > { %v2597_v1 = vpop.f32.mrb[244].mxu1 }
 0x303   : > { %v5348_v14 = vpack.c.bf16 %v3494_v51, %v3493_v55  ;;  %v2598_v54 = vadd.f32 %v7600_v24, %v2597_v1  ;;  %v2599_v46 = vpop.f32.mrb[245].mxu1 }
 0x304   : > { %v2600_v59 = vpop.f32.mrb[246].mxu1 }
 0x305   : > { %5489 = vst [vmem:[%s6938_s16 + $0x1e0] sm:$0xff] %v5348_v14   ;;  %v3247_v12 = vadd.f32 %v7713_v26, %v2598_v54  ;;  %v2601_v19 = vadd.f32 %v7600_v24, %v2600_v59  ;;  %v2602_v63 = vpop.f32.mrb[247].mxu1 }
 0x306   : > { %v7776_v3 = vpop.f32.mrb[16].mxu0 }
 0x307   : > { %v3250_v4 = vadd.f32 %v7715_v32, %v2601_v19  ;;  %v3495_v8 = vmax.f32 %v3247_v12, 0.0  ;;  %v5863_v35 = vpop.f32.mrb[17].mxu0 }
 0x308   : > { %v7778_v38 = vpop.f32.mrb[18].mxu0 }
 0x309   : > { %v3496_v7 = vmax.f32 %v3250_v4, 0.0  ;;  %v5864_v52 = vpop.f32.mrb[19].mxu0 }
 0x30a   : > { %v2605_v13 = vpop.f32.mrb[248].mxu1 }
 0x30b   : > { %v5353_v11 = vpack.c.bf16 %v3496_v7, %v3495_v8  ;;  %v2606_v9 = vadd.f32 %v7600_v24, %v2605_v13  ;;  %v2607_v28 = vpop.f32.mrb[249].mxu1 }
 0x30c   : > { %v2608_v15 = vpop.f32.mrb[250].mxu1 }
 0x30d   : > { %5490 = vst [vmem:[%s6938_s16 + $0x1e8] sm:$0xff] %v5353_v11   ;;  %v3255_v26 = vadd.f32 %v7722_v39, %v2606_v9  ;;  %v2609_v32 = vadd.f32 %v7600_v24, %v2608_v15  ;;  %v2610_v50 = vpop.f32.mrb[251].mxu1 }
 0x30e   : > { %v7785_v36 = vpop.f32.mrb[20].mxu0 }
 0x30f   : > { %v3258_v18 = vadd.f32 %v7724_v43, %v2609_v32  ;;  %v3497_v21 = vmax.f32 %v3255_v26, 0.0  ;;  %v5867_v58 = vpop.f32.mrb[21].mxu0 }
 0x310   : > { %v7787_v56 = vpop.f32.mrb[22].mxu0 }
 0x311   : > { %v3498_v23 = vmax.f32 %v3258_v18, 0.0  ;;  %v5868_v0 = vpop.f32.mrb[23].mxu0 }
 0x312   : > { %v2613_v53 = vpop.f32.mrb[252].mxu1 }
 0x313   : > { %v5358_v60 = vpack.c.bf16 %v3498_v23, %v3497_v21  ;;  %v2614_v25 = vadd.f32 %v7600_v24, %v2613_v53  ;;  %v2615_v42 = vpop.f32.mrb[253].mxu1 }
 0x314   : > { %v2616_v27 = vpop.f32.mrb[254].mxu1 }
 0x315   : > { %5491 = vst [vmem:[%s6938_s16 + $0x1f0] sm:$0xff] %v5358_v60   ;;  %v3263_v39 = vadd.f32 %v7731_v62, %v2614_v25  ;;  %v2617_v43 = vadd.f32 %v7600_v24, %v2616_v27  ;;  %v2618_v31 = vpop.f32.mrb[255].mxu1 }
 0x316   : > { %v7794_v51 = vpop.f32.mrb[24].mxu0 }
 0x317   : > { %v3266_v57 = vadd.f32 %v7733_v10, %v2617_v43  ;;  %v3499_v34 = vmax.f32 %v3263_v39, 0.0  ;;  %v5871_v14 = vpop.f32.mrb[25].mxu0 }
 0x318   : > { %v7796_v46 = vpop.f32.mrb[26].mxu0 }
 0x319   : > { %v3500_v37 = vmax.f32 %v3266_v57, 0.0  ;;  %v5872_v19 = vpop.f32.mrb[27].mxu0 }
 0x31a   : > { %v2621_v40 = vpop.f32.mrb[148].mxu1 }
 0x31b   : > { %v5363_v2 = vpack.c.bf16 %v3500_v37, %v3499_v34  ;;  %v2622_v41 = vadd.f32 %v7600_v24, %v2621_v40  ;;  %v2623_v61 = vpop.f32.mrb[149].mxu1 }
 0x31c   : > { %v2624_v44 = vpop.f32.mrb[150].mxu1 }
 0x31d   : > { %5492 = vst [vmem:[%s6938_s16 + $0x1f8] sm:$0xff] %v5363_v2   ;;  %v3271_v62 = vadd.f32 %v7740_v16, %v2622_v41  ;;  %v2625_v10 = vadd.f32 %v7600_v24, %v2624_v44  ;;  %v2626_v47 = vpop.f32.mrb[151].mxu1 }
 0x31e   : > { %v7803_v7 = vpop.f32.mrb[28].mxu0 }
 0x31f   : > { %v3274_v55 = vadd.f32 %v7742_v29, %v2625_v10  ;;  %v3501_v49 = vmax.f32 %v3271_v62, 0.0  ;;  %v5875_v11 = vpop.f32.mrb[29].mxu0 }
 0x320   : > { %v7805_v28 = vpop.f32.mrb[30].mxu0 }
 0x321   : > { %v3502_v1 = vmax.f32 %v3274_v55, 0.0  ;;  %v5876_v32 = vpop.f32.mrb[31].mxu0 }
 0x322   : > { %v2629_v54 = vpop.f32.mrb[152].mxu1 }
 0x323   : > { %v5368_v20 = vpack.c.bf16 %v3502_v1, %v3501_v49  ;;  %v2630_v59 = vadd.f32 %v7600_v24, %v2629_v54  ;;  %v2631_v12 = vpop.f32.mrb[153].mxu1 }
 0x324   : > { %v2632_v63 = vpop.f32.mrb[154].mxu1 }
 0x325   : > { %5493 = vst [vmem:[%s6938_s16 + $0x200] sm:$0xff] %v5368_v20   ;;  %v3279_v16 = vadd.f32 %v7749_v33, %v2630_v59  ;;  %v2633_v29 = vadd.f32 %v7600_v24, %v2632_v63  ;;  %v2634_v4 = vpop.f32.mrb[155].mxu1 }
 0x326   : > { %v7812_v23 = vpop.f32.mrb[32].mxu0 }
 0x327   : > { %v3282_v8 = vadd.f32 %v7751_v45, %v2633_v29  ;;  %v3503_v17 = vmax.f32 %v3279_v16, 0.0  ;;  %v5879_v60 = vpop.f32.mrb[33].mxu0 }
 0x328   : > { %v7814_v42 = vpop.f32.mrb[34].mxu0 }
 0x329   : > { %v3504_v13 = vmax.f32 %v3282_v8, 0.0  ;;  %v5880_v43 = vpop.f32.mrb[35].mxu0 }
 0x32a   : > { %v2637_v9 = vpop.f32.mrb[156].mxu1 }
 0x32b   : > { %v5373_v30 = vpack.c.bf16 %v3504_v13, %v3503_v17  ;;  %v2638_v15 = vadd.f32 %v7600_v24, %v2637_v9  ;;  %v2639_v26 = vpop.f32.mrb[157].mxu1 }
 0x32c   : > { %v2640_v50 = vpop.f32.mrb[158].mxu1 }
 0x32d   : > { %5494 = vst [vmem:[%s6938_s16 + $0x208] sm:$0xff] %v5373_v30   ;;  %v3287_v33 = vadd.f32 %v7758_v48, %v2638_v15  ;;  %v2641_v45 = vadd.f32 %v7600_v24, %v2640_v50  ;;  %v2642_v18 = vpop.f32.mrb[159].mxu1 }
 0x32e   : > { %v7821_v37 = vpop.f32.mrb[36].mxu0 }
 0x32f   : > { %v3290_v21 = vadd.f32 %v7760_v6, %v2641_v45  ;;  %v3505_v35 = vmax.f32 %v3287_v33, 0.0  ;;  %v5883_v2 = vpop.f32.mrb[37].mxu0 }
 0x330   : > { %v7823_v61 = vpop.f32.mrb[38].mxu0 }
 0x331   : > { %v3506_v53 = vmax.f32 %v3290_v21, 0.0  ;;  %v5884_v10 = vpop.f32.mrb[39].mxu0 }
 0x332   : > { %v2645_v25 = vpop.f32.mrb[160].mxu1 }
 0x333   : > { %v5378_v52 = vpack.c.bf16 %v3506_v53, %v3505_v35  ;;  %v2646_v27 = vadd.f32 %v7600_v24, %v2645_v25  ;;  %v2647_v39 = vpop.f32.mrb[161].mxu1 }
 0x334   : > { %v2648_v31 = vpop.f32.mrb[162].mxu1 }
 0x335   : > { %5495 = vst [vmem:[%s6938_s16 + $0x210] sm:$0xff] %v5378_v52   ;;  %v3295_v48 = vadd.f32 %v7767_v5, %v2646_v27  ;;  %v2649_v6 = vadd.f32 %v7600_v24, %v2648_v31  ;;  %v2650_v57 = vpop.f32.mrb[163].mxu1 }
 0x336   : > { %v7830_v1 = vpop.f32.mrb[40].mxu0 }
 0x337   : > { %v3298_v34 = vadd.f32 %v7769_v22, %v2649_v6  ;;  %v3507_v58 = vmax.f32 %v3295_v48, 0.0  ;;  %v5887_v20 = vpop.f32.mrb[41].mxu0 }
 0x338   : > { %v7832_v12 = vpop.f32.mrb[42].mxu0 }
 0x339   : > { %v3508_v40 = vmax.f32 %v3298_v34, 0.0  ;;  %v5888_v29 = vpop.f32.mrb[43].mxu0 }
 0x33a   : > { %v2653_v41 = vpop.f32.mrb[164].mxu1 }
 0x33b   : > { %v5383_v0 = vpack.c.bf16 %v3508_v40, %v3507_v58  ;;  %v2654_v44 = vadd.f32 %v7600_v24, %v2653_v41  ;;  %v2655_v62 = vpop.f32.mrb[165].mxu1 }
 0x33c   : > { %v2656_v47 = vpop.f32.mrb[166].mxu1 }
 0x33d   : > { %5496 = vst [vmem:[%s6938_s16 + $0x218] sm:$0xff] %v5383_v0   ;;  %v3303_v5 = vadd.f32 %v7776_v3, %v2654_v44  ;;  %v2657_v22 = vadd.f32 %v7600_v24, %v2656_v47  ;;  %v2658_v55 = vpop.f32.mrb[167].mxu1 }
 0x33e   : > { %v7839_v13 = vpop.f32.mrb[44].mxu0 }
 0x33f   : > { %v3306_v49 = vadd.f32 %v7778_v38, %v2657_v22  ;;  %v3509_v14 = vmax.f32 %v3303_v5, 0.0  ;;  %v5891_v30 = vpop.f32.mrb[45].mxu0 }
 0x340   : > { %v7841_v26 = vpop.f32.mrb[46].mxu0 }
 0x341   : > { %v3510_v54 = vmax.f32 %v3306_v49, 0.0  ;;  %v5892_v45 = vpop.f32.mrb[47].mxu0 }
 0x342   : > { %v2661_v59 = vpop.f32.mrb[168].mxu1 }
 0x343   : > { %v5388_v19 = vpack.c.bf16 %v3510_v54, %v3509_v14  ;;  %v2662_v63 = vadd.f32 %v7600_v24, %v2661_v59  ;;  %v2663_v16 = vpop.f32.mrb[169].mxu1 }
 0x344   : > { %v2664_v4 = vpop.f32.mrb[170].mxu1 }
 0x345   : > { %5497 = vst [vmem:[%s6938_s16 + $0x220] sm:$0xff] %v5388_v19   ;;  %v3311_v3 = vadd.f32 %v7785_v36, %v2662_v63  ;;  %v2665_v38 = vadd.f32 %v7600_v24, %v2664_v4  ;;  %v2666_v8 = vpop.f32.mrb[171].mxu1 }
 0x346   : > { %v7848_v53 = vpop.f32.mrb[48].mxu0 }
 0x347   : > { %v3314_v17 = vadd.f32 %v7787_v56, %v2665_v38  ;;  %v3511_v11 = vmax.f32 %v3311_v3, 0.0  ;;  %v5895_v52 = vpop.f32.mrb[49].mxu0 }
 0x348   : > { %v7850_v39 = vpop.f32.mrb[50].mxu0 }
 0x349   : > { %v3512_v9 = vmax.f32 %v3314_v17, 0.0  ;;  %v5896_v6 = vpop.f32.mrb[51].mxu0 }
 0x34a   : > { %v2669_v15 = vpop.f32.mrb[172].mxu1 }
 0x34b   : > { %v5393_v32 = vpack.c.bf16 %v3512_v9, %v3511_v11  ;;  %v2670_v50 = vadd.f32 %v7600_v24, %v2669_v15  ;;  %v2671_v33 = vpop.f32.mrb[173].mxu1 }
 0x34c   : > { %v2672_v18 = vpop.f32.mrb[174].mxu1 }
 0x34d   : > { %5498 = vst [vmem:[%s6938_s16 + $0x228] sm:$0xff] %v5393_v32   ;;  %v3319_v36 = vadd.f32 %v7794_v51, %v2670_v50  ;;  %v2673_v56 = vadd.f32 %v7600_v24, %v2672_v18  ;;  %v2674_v21 = vpop.f32.mrb[175].mxu1 }
 0x34f   : > { %v3322_v35 = vadd.f32 %v7796_v46, %v2673_v56  ;;  %v3513_v60 = vmax.f32 %v3319_v36, 0.0 }
 0x351   : > { %v3514_v25 = vmax.f32 %v3322_v35, 0.0 }
 0x352   : > { %v2677_v27 = vpop.f32.mrb[176].mxu1 }
 0x353   : > { %v5398_v43 = vpack.c.bf16 %v3514_v25, %v3513_v60  ;;  %v2678_v31 = vadd.f32 %v7600_v24, %v2677_v27  ;;  %v2679_v48 = vpop.f32.mrb[177].mxu1 }
 0x354   : > { %v2680_v51 = vpop.f32.mrb[178].mxu1 }
 0x355   : > { %5499 = vst [vmem:[%s6938_s16 + $0x230] sm:$0xff] %v5398_v43   ;;  %v3327_v57 = vadd.f32 %v7803_v7, %v2678_v31  ;;  %v2681_v46 = vadd.f32 %v7600_v24, %v2680_v51  ;;  %v2682_v34 = vpop.f32.mrb[179].mxu1 }
 0x357   : > { %v3330_v58 = vadd.f32 %v7805_v28, %v2681_v46  ;;  %v3515_v40 = vmax.f32 %v3327_v57, 0.0 }
 0x359   : > { %v3516_v2 = vmax.f32 %v3330_v58, 0.0 }
 0x35a   : > { %v2685_v41 = vpop.f32.mrb[180].mxu1 }
 0x35b   : > { %v5403_v0 = vpack.c.bf16 %v3516_v2, %v3515_v40  ;;  %v2686_v44 = vadd.f32 %v7600_v24, %v2685_v41  ;;  %v2687_v62 = vpop.f32.mrb[181].mxu1 }
 0x35c   : > { %v2688_v10 = vpop.f32.mrb[182].mxu1 }
 0x35d   : > { %5500 = vst [vmem:[%s6938_s16 + $0x238] sm:$0xff] %v5403_v0   ;;  %v3335_v47 = vadd.f32 %v7812_v23, %v2686_v44  ;;  %v2689_v5 = vadd.f32 %v7600_v24, %v2688_v10  ;;  %v2690_v7 = vpop.f32.mrb[183].mxu1 }
 0x35f   : > { %v3338_v22 = vadd.f32 %v7814_v42, %v2689_v5  ;;  %v3517_v55 = vmax.f32 %v3335_v47, 0.0 }
 0x361   : > { %v3518_v49 = vmax.f32 %v3338_v22, 0.0 }
 0x362   : > { %v2693_v28 = vpop.f32.mrb[184].mxu1 }
 0x363   : > { %v5408_v14 = vpack.c.bf16 %v3518_v49, %v3517_v55  ;;  %v2694_v54 = vadd.f32 %v7600_v24, %v2693_v28  ;;  %v2695_v20 = vpop.f32.mrb[185].mxu1 }
 0x364   : > { %v2696_v59 = vpop.f32.mrb[186].mxu1 }
 0x365   : > { %5501 = vst [vmem:[%s6938_s16 + $0x240] sm:$0xff] %v5408_v14   ;;  %v3343_v19 = vadd.f32 %v7821_v37, %v2694_v54  ;;  %v2697_v63 = vadd.f32 %v7600_v24, %v2696_v59  ;;  %v2698_v23 = vpop.f32.mrb[187].mxu1 }
 0x367   : > { %v3346_v16 = vadd.f32 %v7823_v61, %v2697_v63  ;;  %v3519_v29 = vmax.f32 %v3343_v19, 0.0 }
 0x369   : > { %v3520_v4 = vmax.f32 %v3346_v16, 0.0 }
 0x36a   : > { %v2701_v42 = vpop.f32.mrb[188].mxu1 }
 0x36b   : > { %v5413_v3 = vpack.c.bf16 %v3520_v4, %v3519_v29  ;;  %v2702_v38 = vadd.f32 %v7600_v24, %v2701_v42  ;;  %v2703_v8 = vpop.f32.mrb[189].mxu1 }
 0x36c   : > { %v2704_v17 = vpop.f32.mrb[190].mxu1 }
 0x36d   : > { %5502 = vst [vmem:[%s6938_s16 + $0x248] sm:$0xff] %v5413_v3   ;;  %v3351_v11 = vadd.f32 %v7830_v1, %v2702_v38  ;;  %v2705_v9 = vadd.f32 %v7600_v24, %v2704_v17  ;;  %v2706_v37 = vpop.f32.mrb[191].mxu1 }
 0x36f   : > { %v3354_v30 = vadd.f32 %v7832_v12, %v2705_v9  ;;  %v3521_v15 = vmax.f32 %v3351_v11, 0.0 }
 0x371   : > { %v3522_v32 = vmax.f32 %v3354_v30, 0.0 }
 0x372   : > { %v2709_v61 = vpop.f32.mrb[192].mxu1 }
 0x373   : > { %v5418_v50 = vpack.c.bf16 %v3522_v32, %v3521_v15  ;;  %v2710_v33 = vadd.f32 %v7600_v24, %v2709_v61  ;;  %v2711_v45 = vpop.f32.mrb[193].mxu1 }
 0x374   : > { %v2712_v18 = vpop.f32.mrb[194].mxu1 }
 0x375   : > { %5503 = vst [vmem:[%s6938_s16 + $0x250] sm:$0xff] %v5418_v50   ;;  %v3359_v36 = vadd.f32 %v7839_v13, %v2710_v33  ;;  %v2713_v56 = vadd.f32 %v7600_v24, %v2712_v18  ;;  %v2714_v1 = vpop.f32.mrb[195].mxu1  ;;  %v6561_v13 = vld [vmem:[%s7896_s2] ss:$0 sm:$0xff] }
 0x377   : > { %v3362_v21 = vadd.f32 %v7841_v26, %v2713_v56  ;;  %v3523_v35 = vmax.f32 %v3359_v36, 0.0 }
 0x379   : > { %v3524_v12 = vmax.f32 %v3362_v21, 0.0 }
 0x37a   : > { %v2717_v60 = vpop.f32.mrb[196].mxu1 }
 0x37b   : > { %v5423_v25 = vpack.c.bf16 %v3524_v12, %v3523_v35  ;;  %v2718_v52 = vadd.f32 %v7600_v24, %v2717_v60  ;;  %v2719_v27 = vpop.f32.mrb[197].mxu1 }
 0x37c   : > { %v2720_v43 = vpop.f32.mrb[198].mxu1 }
 0x37d   : > { %5504 = vst [vmem:[%s6938_s16 + $0x258] sm:$0xff] %v5423_v25   ;;  %v3367_v31 = vadd.f32 %v7848_v53, %v2718_v52  ;;  %v2721_v48 = vadd.f32 %v6561_v13, %v2720_v43  ;;  %v2722_v6 = vpop.f32.mrb[199].mxu1 }
 0x37f   : > { %v3370_v26 = vadd.f32 %v7850_v39, %v2721_v48  ;;  %v3525_v51 = vmax.f32 %v3367_v31, 0.0 }
 0x381   : > { %v3526_v57 = vmax.f32 %v3370_v26, 0.0 }
 0x383   : > { %v5428_v46 = vpack.c.bf16 %v3526_v57, %v3525_v51 }
 0x385   : > { %5505 = vst [vmem:[%s6938_s16 + $0x260] sm:$0xff] %v5428_v46  }
 0x386 PF: > { %s13_s14 = sadd.s32 1, %s6584_s14   ;;  %s7898_s12 = smov %s6580_s13 }
 0x387   : > { %p10_p5 = scmp.ge.s32.totalorder %s13_s14, 4   ;;  %s7899_s13 = smov %s7901_s15 }
 0x389   :  { %12 = sbr.rel (!%p10_p5) target bundleno = 2 (0x2), region = 68 }

// kernel: inception_transfer_forward.24
= control target key start
LH: loop header
LB: loop body
LE: loop exit
PB: predicated region body
PF: predicated region fallthrough
CT: control target
= control target key end

     0   :  { %s1424_s12 = smov 0   ;;  %s1426_s13 = smov 0   ;;  %s1626_s0 = inlined_call_operand.vmem [shape: bf16[608,64], index: 0, kind: input, shape index: {}]   ;;  %s1627_s1 = inlined_call_operand.vmem [shape: bf16[64,128], index: 1, kind: input, shape index: {}]   ;;  %s1628_s2 = inlined_call_operand.vmem [shape: f32[1,128], index: 2, kind: input, shape index: {}]   ;;  %s1629_s3 = inlined_call_operand.vmem [shape: bf16[608,128], index: 3, kind: output, shape index: {}]  }
   0x1   :  { %s1428_s14 = smov 0  }
   0x2 LB: > { %s25_s15 = sadd.s32 1, %s1396_s13  ;;  %p977_p0 = scmp.ge.s32.totalorder %s1400_s14, 1  ;;  %s1400_s14 = sphi %s1428_s14, %s13_s14   ;;  %s1396_s13 = sphi %s1426_s13, %s1631_s13   ;;  %s1392_s12 = sphi %s1424_s12, %s1630_s12  }
   0x3   : > { %p27_p1 = scmp.ge.s32.totalorder %s25_s15, 2  ;;  %p169_p2 = scmp.lt.s32.totalorder %s1400_s14, 3 }
   0x5   : > { %s1633_s15 = smov (%p27_p1, %s25_s15), 0  ;;  %p170_p3 = pnand %p977_p0, %p169_p2 }
   0x6   : > { %v1355_v0 = vld [vmem:[%s1627_s1] sm:$0xff] (!%p170_p3)   ;;  %v1402_v1 = vmov (!%p170_p3), 0.0   ;;  %v1356_v2 = vld [vmem:[%s1627_s1 + $0x8] sm:$0xff] (!%p170_p3)   ;;  %s203_s20 = smul.u32 (!%p170_p3), 38, %s1392_s12  ;;  %vm1403_vm0 = vmmov (!%p170_p3), 0   ;;  %v1357_v3 = vld [vmem:[%s1627_s1 + $0x10] sm:$0xff] (!%p170_p3)  }
   0x7   : > { %173 = sbr.rel (%p170_p3) target bundleno = 316 (0x13c), region = 32  ;;  %1237 = vmatprep.subr.bf16.mxu0 (!%p170_p3), %v1402_v1  ;;  %1321 = vmatprep.subr.bf16.mxu1 (!%p170_p3), %v1402_v1  ;;  %v1358_v4 = vld [vmem:[%s1627_s1 + $0x18] sm:$0xff] (!%p170_p3)   ;;  %vm398_vm1 = vcmask (!%p170_p3), 523264   ;;  %v1551_v24 = vld [vmem:[%s1628_s2] ss:$0 sm:$0xff] (!%p170_p3) }
   0x8   : > { %1238 = vmatpush3.bf16.msra.mxu0 (!%p170_p3), %v1355_v0  ;;  %1325 = vmatpush3.bf16.msra.mxu1 (!%p170_p3), %v1355_v0  ;;  %p204_p4 = scmp.lt.s32.totalorder (!%p170_p3), %s203_s20, 75 }
   0x9   : > { %1239 = vmatprep.subr.bf16.mxu0 (!%p170_p3), %v1402_v1  ;;  %1322 = vmatprep.subr.bf16.mxu1 (!%p170_p3), %v1402_v1 }
   0xa   : > { %1245 = vmatprep.mubr.msk.bf16.mxu0 (!%p170_p3), %vm1403_vm0, %v1402_v1  ;;  %1285 = vmatprep.mubr.msk.bf16.mxu1 (!%p170_p3), %vm1403_vm0, %v1402_v1 }
   0xc   : > { %1240 = vmatpush3.bf16.msra.mxu0 (!%p170_p3), %v1356_v2  ;;  %1326 = vmatpush3.bf16.msra.mxu1 (!%p170_p3), %v1356_v2 }
   0xd   : > { %1241 = vmatprep.subr.bf16.mxu0 (!%p170_p3), %v1402_v1  ;;  %1323 = vmatprep.subr.bf16.mxu1 (!%p170_p3), %v1402_v1 }
   0xe   : > { %s1635_s20 = smov (!%p204_p4, %s203_s20), 75 }
   0xf   : > { %s978_s23 = sshll.u32 %s1635_s20, 2 }
  0x10   : > { %s1469_s26 = scalar_lea.vmem %s1626_s0, %s978_s23  ;;  %1242 = vmatpush3.bf16.msra.mxu0 %v1357_v3  ;;  %1327 = vmatpush3.bf16.msra.mxu1 %v1357_v3  ;;  %s1562_s6 = scalar_lea.vmem %s1629_s3, %s978_s23 }
  0x11   : > { %1243 = vmatprep.subr.bf16.mxu0 %v1402_v1  ;;  %1324 = vmatprep.subr.bf16.mxu1 %v1402_v1  ;;  %v1359_v5 = vld [vmem:[%s1469_s26] sm:$0xff]   ;;  %v1360_v6 = vld [vmem:[%s1469_s26 + $0x50] sm:$0xff]   ;;  %v1361_v7 = vld [vmem:[%s1469_s26 + $0x8] sm:$0xff]  }
  0x12   : > { %v1362_v8 = vld [vmem:[%s1469_s26 + $0x58] sm:$0xff]   ;;  %v1363_v9 = vld [vmem:[%s1469_s26 + $0x10] sm:$0xff]   ;;  %v1364_v10 = vld [vmem:[%s1469_s26 + $0x60] sm:$0xff]  }
  0x13   : > { %v1365_v11 = vld [vmem:[%s1469_s26 + $0x18] sm:$0xff]   ;;  %v1366_v12 = vld [vmem:[%s1469_s26 + $0x68] sm:$0xff]   ;;  %v1367_v13 = vld [vmem:[%s1469_s26 + $0x20] sm:$0xff]  }
  0x14   : > { %1244 = vmatpush3.bf16.msra.mxu0 %v1358_v4  ;;  %1328 = vmatpush3.bf16.msra.mxu1 %v1358_v4  ;;  %v1368_v14 = vld [vmem:[%s1469_s26 + $0x70] sm:$0xff]   ;;  %v1369_v15 = vld [vmem:[%s1469_s26 + $0x28] sm:$0xff]   ;;  %v1370_v16 = vld [vmem:[%s1469_s26 + $0x78] sm:$0xff]  }
  0x15   : > { %v1371_v17 = vld [vmem:[%s1469_s26 + $0x30] sm:$0xff]   ;;  %v1372_v18 = vld [vmem:[%s1469_s26 + $0x80] sm:$0xff]   ;;  %v1373_v19 = vld [vmem:[%s1469_s26 + $0x38] sm:$0xff]  }
  0x16   : > { %v1374_v20 = vld [vmem:[%s1469_s26 + $0x88] sm:$0xff]   ;;  %v1375_v21 = vld [vmem:[%s1469_s26 + $0x40] sm:$0xff]   ;;  %v1376_v22 = vld [vmem:[%s1469_s26 + $0x90] sm:$0xff]  }
  0x17   : > { %1246 = vmatmul.mubr.msk.bf16.vlgmr.msra.gmra.mrb[0].mxu0 %vm398_vm1, %v1359_v5  ;;  %1286 = vmatmul.mubr.msk.bf16.vlgmr.msra.gmra.mrb[0].mxu1 %vm398_vm1, %v1360_v6  ;;  %v1377_v23 = vld [vmem:[%s1469_s26 + $0x48] sm:$0xff]  }
  0x18   : > { %1249 = vmatprep.mubr.msk.bf16.mxu0 %vm1403_vm0, %v1402_v1  ;;  %1289 = vmatprep.mubr.msk.bf16.mxu1 %vm1403_vm0, %v1402_v1 }
  0x1f   : > { %1250 = vmatmul.mubr.msk.bf16.gmra.mrb[4].mxu0 %vm398_vm1, %v1361_v7  ;;  %1290 = vmatmul.mubr.msk.bf16.gmra.mrb[4].mxu1 %vm398_vm1, %v1362_v8 }
  0x20   : > { %1253 = vmatprep.mubr.msk.bf16.mxu0 %vm1403_vm0, %v1402_v1  ;;  %1293 = vmatprep.mubr.msk.bf16.mxu1 %vm1403_vm0, %v1402_v1 }
  0x27   : > { %1254 = vmatmul.mubr.msk.bf16.gmra.mrb[8].mxu0 %vm398_vm1, %v1363_v9  ;;  %1294 = vmatmul.mubr.msk.bf16.gmra.mrb[8].mxu1 %vm398_vm1, %v1364_v10 }
  0x28   : > { %1257 = vmatprep.mubr.msk.bf16.mxu0 %vm1403_vm0, %v1402_v1  ;;  %1297 = vmatprep.mubr.msk.bf16.mxu1 %vm1403_vm0, %v1402_v1 }
  0x2f   : > { %1258 = vmatmul.mubr.msk.bf16.gmra.mrb[12].mxu0 %vm398_vm1, %v1365_v11  ;;  %1298 = vmatmul.mubr.msk.bf16.gmra.mrb[12].mxu1 %vm398_vm1, %v1366_v12 }
  0x30   : > { %1261 = vmatprep.mubr.msk.bf16.mxu0 %vm1403_vm0, %v1402_v1  ;;  %1301 = vmatprep.mubr.msk.bf16.mxu1 %vm1403_vm0, %v1402_v1 }
  0x37   : > { %1262 = vmatmul.mubr.msk.bf16.gmra.mrb[16].mxu0 %vm398_vm1, %v1367_v13  ;;  %1302 = vmatmul.mubr.msk.bf16.gmra.mrb[16].mxu1 %vm398_vm1, %v1368_v14 }
  0x38   : > { %1265 = vmatprep.mubr.msk.bf16.mxu0 %vm1403_vm0, %v1402_v1  ;;  %1305 = vmatprep.mubr.msk.bf16.mxu1 %vm1403_vm0, %v1402_v1 }
  0x3f   : > { %1266 = vmatmul.mubr.msk.bf16.gmra.mrb[20].mxu0 %vm398_vm1, %v1369_v15  ;;  %1306 = vmatmul.mubr.msk.bf16.gmra.mrb[20].mxu1 %vm398_vm1, %v1370_v16 }
  0x40   : > { %1269 = vmatprep.mubr.msk.bf16.mxu0 %vm1403_vm0, %v1402_v1  ;;  %1309 = vmatprep.mubr.msk.bf16.mxu1 %vm1403_vm0, %v1402_v1 }
  0x47   : > { %1270 = vmatmul.mubr.msk.bf16.gmra.mrb[24].mxu0 %vm398_vm1, %v1371_v17  ;;  %1310 = vmatmul.mubr.msk.bf16.gmra.mrb[24].mxu1 %vm398_vm1, %v1372_v18 }
  0x48   : > { %1273 = vmatprep.mubr.msk.bf16.mxu0 %vm1403_vm0, %v1402_v1  ;;  %1313 = vmatprep.mubr.msk.bf16.mxu1 %vm1403_vm0, %v1402_v1 }
  0x4f   : > { %1274 = vmatmul.mubr.msk.bf16.gmra.mrb[28].mxu0 %vm398_vm1, %v1373_v19  ;;  %1314 = vmatmul.mubr.msk.bf16.gmra.mrb[28].mxu1 %vm398_vm1, %v1374_v20 }
  0x50   : > { %1277 = vmatprep.mubr.msk.bf16.mxu0 %vm1403_vm0, %v1402_v1  ;;  %1317 = vmatprep.mubr.msk.bf16.mxu1 %vm1403_vm0, %v1402_v1 }
  0x57   : > { %1278 = vmatmul.mubr.msk.bf16.gmra.mrb[32].mxu0 %vm398_vm1, %v1375_v21  ;;  %1318 = vmatmul.mubr.msk.bf16.gmra.mrb[32].mxu1 %vm398_vm1, %v1376_v22 }
  0x58   : > { %1281 = vmatprep.mubr.msk.bf16.mxu0 %vm1403_vm0, %v1402_v1 }
  0x5f   : > { %1282 = vmatmul.mubr.msk.bf16.gmra.mrb[36].mxu0 %vm398_vm1, %v1377_v23 }
  0xea   : > { %v490_v25 = vpop.f32.mrb[0].mxu0  ;;  %v570_v26 = vpop.f32.mrb[0].mxu1 }
  0xeb   : > { %v491_v27 = vadd.f32 %v1551_v24, %v490_v25  ;;  %v1247_v28 = vpop.f32.mrb[1].mxu0  ;;  %v571_v29 = vadd.f32 %v1551_v24, %v570_v26  ;;  %v1287_v30 = vpop.f32.mrb[1].mxu1 }
  0xec   : > { %v493_v31 = vpop.f32.mrb[2].mxu0  ;;  %v573_v32 = vpop.f32.mrb[2].mxu1 }
  0xed   : > { %v494_v33 = vadd.f32 %v1551_v24, %v493_v31  ;;  %v1248_v34 = vpop.f32.mrb[3].mxu0  ;;  %v661_v35 = vmax.f32 %v571_v29, 0.0  ;;  %v574_v36 = vadd.f32 %v1551_v24, %v573_v32  ;;  %v1288_v37 = vpop.f32.mrb[3].mxu1  ;;  %v641_v38 = vmax.f32 %v491_v27, 0.0 }
  0xef   : > { %v642_v39 = vmax.f32 %v494_v33, 0.0  ;;  %v662_v40 = vmax.f32 %v574_v36, 0.0 }
  0xf1   : > { %v1104_v41 = vpack.c.bf16 %v642_v39, %v641_v38  ;;  %v1154_v42 = vpack.c.bf16 %v662_v40, %v661_v35 }
  0xf2   : > { %v498_v43 = vpop.f32.mrb[4].mxu0  ;;  %v578_v44 = vpop.f32.mrb[4].mxu1 }
  0xf3   : > { %1105 = vst [vmem:[%s1562_s6] sm:$0xff] %v1104_v41   ;;  %1205 = vst [vmem:[%s1562_s6 + $0x50] sm:$0xff] %v1154_v42   ;;  %v499_v45 = vadd.f32 %v1551_v24, %v498_v43  ;;  %v1251_v46 = vpop.f32.mrb[5].mxu0  ;;  %v579_v47 = vadd.f32 %v1551_v24, %v578_v44  ;;  %v1291_v48 = vpop.f32.mrb[5].mxu1 }
  0xf4   : > { %v501_v49 = vpop.f32.mrb[6].mxu0  ;;  %v581_v50 = vpop.f32.mrb[6].mxu1 }
  0xf5   : > { %v502_v51 = vadd.f32 %v1551_v24, %v501_v49  ;;  %v1252_v52 = vpop.f32.mrb[7].mxu0  ;;  %v663_v53 = vmax.f32 %v579_v47, 0.0  ;;  %v582_v54 = vadd.f32 %v1551_v24, %v581_v50  ;;  %v1292_v55 = vpop.f32.mrb[7].mxu1  ;;  %v643_v56 = vmax.f32 %v499_v45, 0.0 }
  0xf7   : > { %v644_v57 = vmax.f32 %v502_v51, 0.0  ;;  %v664_v58 = vmax.f32 %v582_v54, 0.0 }
  0xf9   : > { %v1109_v59 = vpack.c.bf16 %v644_v57, %v643_v56  ;;  %v1159_v60 = vpack.c.bf16 %v664_v58, %v663_v53 }
  0xfa   : > { %v506_v61 = vpop.f32.mrb[8].mxu0  ;;  %v586_v62 = vpop.f32.mrb[8].mxu1 }
  0xfb   : > { %1196 = vst [vmem:[%s1562_s6 + $0x8] sm:$0xff] %v1109_v59   ;;  %1206 = vst [vmem:[%s1562_s6 + $0x58] sm:$0xff] %v1159_v60   ;;  %v507_v63 = vadd.f32 %v1551_v24, %v506_v61  ;;  %v1255_v0 = vpop.f32.mrb[9].mxu0  ;;  %v587_v1 = vadd.f32 %v1551_v24, %v586_v62  ;;  %v1295_v2 = vpop.f32.mrb[9].mxu1 }
  0xfc   : > { %v509_v3 = vpop.f32.mrb[10].mxu0  ;;  %v589_v4 = vpop.f32.mrb[10].mxu1 }
  0xfd   : > { %v510_v5 = vadd.f32 %v1551_v24, %v509_v3  ;;  %v1256_v6 = vpop.f32.mrb[11].mxu0  ;;  %v665_v7 = vmax.f32 %v587_v1, 0.0  ;;  %v590_v8 = vadd.f32 %v1551_v24, %v589_v4  ;;  %v1296_v9 = vpop.f32.mrb[11].mxu1  ;;  %v645_v10 = vmax.f32 %v507_v63, 0.0 }
  0xff   : > { %v646_v11 = vmax.f32 %v510_v5, 0.0  ;;  %v666_v12 = vmax.f32 %v590_v8, 0.0 }
 0x101   : > { %v1114_v13 = vpack.c.bf16 %v646_v11, %v645_v10  ;;  %v1164_v14 = vpack.c.bf16 %v666_v12, %v665_v7 }
 0x102   : > { %v514_v15 = vpop.f32.mrb[12].mxu0  ;;  %v594_v16 = vpop.f32.mrb[12].mxu1 }
 0x103   : > { %1197 = vst [vmem:[%s1562_s6 + $0x10] sm:$0xff] %v1114_v13   ;;  %1207 = vst [vmem:[%s1562_s6 + $0x60] sm:$0xff] %v1164_v14   ;;  %v515_v17 = vadd.f32 %v1551_v24, %v514_v15  ;;  %v1259_v18 = vpop.f32.mrb[13].mxu0  ;;  %v595_v19 = vadd.f32 %v1551_v24, %v594_v16  ;;  %v1299_v20 = vpop.f32.mrb[13].mxu1 }
 0x104   : > { %v517_v21 = vpop.f32.mrb[14].mxu0  ;;  %v597_v22 = vpop.f32.mrb[14].mxu1 }
 0x105   : > { %v518_v23 = vadd.f32 %v1551_v24, %v517_v21  ;;  %v1260_v25 = vpop.f32.mrb[15].mxu0  ;;  %v667_v26 = vmax.f32 %v595_v19, 0.0  ;;  %v598_v27 = vadd.f32 %v1551_v24, %v597_v22  ;;  %v1300_v28 = vpop.f32.mrb[15].mxu1  ;;  %v647_v29 = vmax.f32 %v515_v17, 0.0 }
 0x107   : > { %v648_v30 = vmax.f32 %v518_v23, 0.0  ;;  %v668_v31 = vmax.f32 %v598_v27, 0.0 }
 0x109   : > { %v1119_v32 = vpack.c.bf16 %v648_v30, %v647_v29  ;;  %v1169_v33 = vpack.c.bf16 %v668_v31, %v667_v26 }
 0x10a   : > { %v522_v34 = vpop.f32.mrb[16].mxu0  ;;  %v602_v35 = vpop.f32.mrb[16].mxu1 }
 0x10b   : > { %1198 = vst [vmem:[%s1562_s6 + $0x18] sm:$0xff] %v1119_v32   ;;  %1208 = vst [vmem:[%s1562_s6 + $0x68] sm:$0xff] %v1169_v33   ;;  %v523_v36 = vadd.f32 %v1551_v24, %v522_v34  ;;  %v1263_v37 = vpop.f32.mrb[17].mxu0  ;;  %v603_v38 = vadd.f32 %v1551_v24, %v602_v35  ;;  %v1303_v39 = vpop.f32.mrb[17].mxu1 }
 0x10c   : > { %v525_v40 = vpop.f32.mrb[18].mxu0  ;;  %v605_v41 = vpop.f32.mrb[18].mxu1 }
 0x10d   : > { %v526_v42 = vadd.f32 %v1551_v24, %v525_v40  ;;  %v1264_v43 = vpop.f32.mrb[19].mxu0  ;;  %v669_v44 = vmax.f32 %v603_v38, 0.0  ;;  %v606_v45 = vadd.f32 %v1551_v24, %v605_v41  ;;  %v1304_v46 = vpop.f32.mrb[19].mxu1  ;;  %v649_v47 = vmax.f32 %v523_v36, 0.0 }
 0x10f   : > { %v650_v48 = vmax.f32 %v526_v42, 0.0  ;;  %v670_v49 = vmax.f32 %v606_v45, 0.0 }
 0x111   : > { %v1124_v50 = vpack.c.bf16 %v650_v48, %v649_v47  ;;  %v1174_v51 = vpack.c.bf16 %v670_v49, %v669_v44 }
 0x112   : > { %v530_v52 = vpop.f32.mrb[20].mxu0  ;;  %v610_v53 = vpop.f32.mrb[20].mxu1 }
 0x113   : > { %1199 = vst [vmem:[%s1562_s6 + $0x20] sm:$0xff] %v1124_v50   ;;  %1209 = vst [vmem:[%s1562_s6 + $0x70] sm:$0xff] %v1174_v51   ;;  %v531_v54 = vadd.f32 %v1551_v24, %v530_v52  ;;  %v1267_v55 = vpop.f32.mrb[21].mxu0  ;;  %v611_v56 = vadd.f32 %v1551_v24, %v610_v53  ;;  %v1307_v57 = vpop.f32.mrb[21].mxu1 }
 0x114   : > { %v533_v58 = vpop.f32.mrb[22].mxu0  ;;  %v613_v59 = vpop.f32.mrb[22].mxu1 }
 0x115   : > { %v534_v60 = vadd.f32 %v1551_v24, %v533_v58  ;;  %v1268_v61 = vpop.f32.mrb[23].mxu0  ;;  %v671_v62 = vmax.f32 %v611_v56, 0.0  ;;  %v614_v63 = vadd.f32 %v1551_v24, %v613_v59  ;;  %v1308_v0 = vpop.f32.mrb[23].mxu1  ;;  %v651_v1 = vmax.f32 %v531_v54, 0.0 }
 0x117   : > { %v652_v2 = vmax.f32 %v534_v60, 0.0  ;;  %v672_v3 = vmax.f32 %v614_v63, 0.0 }
 0x119   : > { %v1129_v4 = vpack.c.bf16 %v652_v2, %v651_v1  ;;  %v1179_v5 = vpack.c.bf16 %v672_v3, %v671_v62 }
 0x11a   : > { %v538_v6 = vpop.f32.mrb[24].mxu0  ;;  %v618_v7 = vpop.f32.mrb[24].mxu1 }
 0x11b   : > { %1200 = vst [vmem:[%s1562_s6 + $0x28] sm:$0xff] %v1129_v4   ;;  %1210 = vst [vmem:[%s1562_s6 + $0x78] sm:$0xff] %v1179_v5   ;;  %v539_v8 = vadd.f32 %v1551_v24, %v538_v6  ;;  %v1271_v9 = vpop.f32.mrb[25].mxu0  ;;  %v619_v10 = vadd.f32 %v1551_v24, %v618_v7  ;;  %v1311_v11 = vpop.f32.mrb[25].mxu1 }
 0x11c   : > { %v541_v12 = vpop.f32.mrb[26].mxu0  ;;  %v621_v13 = vpop.f32.mrb[26].mxu1 }
 0x11d   : > { %v542_v14 = vadd.f32 %v1551_v24, %v541_v12  ;;  %v1272_v15 = vpop.f32.mrb[27].mxu0  ;;  %v673_v16 = vmax.f32 %v619_v10, 0.0  ;;  %v622_v17 = vadd.f32 %v1551_v24, %v621_v13  ;;  %v1312_v18 = vpop.f32.mrb[27].mxu1  ;;  %v653_v19 = vmax.f32 %v539_v8, 0.0 }
 0x11f   : > { %v654_v20 = vmax.f32 %v542_v14, 0.0  ;;  %v674_v21 = vmax.f32 %v622_v17, 0.0 }
 0x121   : > { %v1134_v22 = vpack.c.bf16 %v654_v20, %v653_v19  ;;  %v1184_v23 = vpack.c.bf16 %v674_v21, %v673_v16 }
 0x122   : > { %v546_v25 = vpop.f32.mrb[28].mxu0  ;;  %v626_v26 = vpop.f32.mrb[28].mxu1 }
 0x123   : > { %1201 = vst [vmem:[%s1562_s6 + $0x30] sm:$0xff] %v1134_v22   ;;  %1211 = vst [vmem:[%s1562_s6 + $0x80] sm:$0xff] %v1184_v23   ;;  %v547_v27 = vadd.f32 %v1551_v24, %v546_v25  ;;  %v1275_v28 = vpop.f32.mrb[29].mxu0  ;;  %v627_v29 = vadd.f32 %v1551_v24, %v626_v26  ;;  %v1315_v30 = vpop.f32.mrb[29].mxu1 }
 0x124   : > { %v549_v31 = vpop.f32.mrb[30].mxu0  ;;  %v629_v32 = vpop.f32.mrb[30].mxu1 }
 0x125   : > { %v550_v33 = vadd.f32 %v1551_v24, %v549_v31  ;;  %v1276_v34 = vpop.f32.mrb[31].mxu0  ;;  %v675_v35 = vmax.f32 %v627_v29, 0.0  ;;  %v630_v36 = vadd.f32 %v1551_v24, %v629_v32  ;;  %v1316_v37 = vpop.f32.mrb[31].mxu1  ;;  %v655_v38 = vmax.f32 %v547_v27, 0.0 }
 0x127   : > { %v656_v39 = vmax.f32 %v550_v33, 0.0  ;;  %v676_v40 = vmax.f32 %v630_v36, 0.0 }
 0x129   : > { %v1139_v41 = vpack.c.bf16 %v656_v39, %v655_v38  ;;  %v1189_v42 = vpack.c.bf16 %v676_v40, %v675_v35 }
 0x12a   : > { %v554_v43 = vpop.f32.mrb[32].mxu0  ;;  %v634_v44 = vpop.f32.mrb[32].mxu1 }
 0x12b   : > { %1202 = vst [vmem:[%s1562_s6 + $0x38] sm:$0xff] %v1139_v41   ;;  %1212 = vst [vmem:[%s1562_s6 + $0x88] sm:$0xff] %v1189_v42   ;;  %v555_v45 = vadd.f32 %v1551_v24, %v554_v43  ;;  %v1279_v46 = vpop.f32.mrb[33].mxu0  ;;  %v635_v47 = vadd.f32 %v1551_v24, %v634_v44  ;;  %v1319_v48 = vpop.f32.mrb[33].mxu1 }
 0x12c   : > { %v557_v49 = vpop.f32.mrb[34].mxu0  ;;  %v637_v50 = vpop.f32.mrb[34].mxu1 }
 0x12d   : > { %v558_v51 = vadd.f32 %v1551_v24, %v557_v49  ;;  %v1280_v52 = vpop.f32.mrb[35].mxu0  ;;  %v677_v53 = vmax.f32 %v635_v47, 0.0  ;;  %v638_v54 = vadd.f32 %v1551_v24, %v637_v50  ;;  %v1320_v55 = vpop.f32.mrb[35].mxu1  ;;  %v657_v56 = vmax.f32 %v555_v45, 0.0 }
 0x12f   : > { %v658_v57 = vmax.f32 %v558_v51, 0.0  ;;  %v678_v58 = vmax.f32 %v638_v54, 0.0 }
 0x131   : > { %v1144_v59 = vpack.c.bf16 %v658_v57, %v657_v56  ;;  %v1194_v60 = vpack.c.bf16 %v678_v58, %v677_v53 }
 0x132   : > { %v562_v61 = vpop.f32.mrb[36].mxu0 }
 0x133   : > { %1203 = vst [vmem:[%s1562_s6 + $0x40] sm:$0xff] %v1144_v59   ;;  %1213 = vst [vmem:[%s1562_s6 + $0x90] sm:$0xff] %v1194_v60   ;;  %v563_v62 = vadd.f32 %v1551_v24, %v562_v61  ;;  %v1283_v63 = vpop.f32.mrb[37].mxu0 }
 0x134   : > { %v565_v0 = vpop.f32.mrb[38].mxu0 }
 0x135   : > { %v566_v1 = vadd.f32 %v1551_v24, %v565_v0  ;;  %v1284_v2 = vpop.f32.mrb[39].mxu0  ;;  %v659_v3 = vmax.f32 %v563_v62, 0.0 }
 0x137   : > { %v660_v4 = vmax.f32 %v566_v1, 0.0 }
 0x139   : > { %v1149_v5 = vpack.c.bf16 %v660_v4, %v659_v3 }
 0x13b   : > { %1204 = vst [vmem:[%s1562_s6 + $0x48] sm:$0xff] %v1149_v5  }
 0x13c PF: > { %s13_s14 = sadd.s32 1, %s1400_s14   ;;  %s1630_s12 = smov %s1396_s13 }
 0x13d   : > { %p10_p5 = scmp.ge.s32.totalorder %s13_s14, 4   ;;  %s1631_s13 = smov %s1633_s15 }
 0x13f   :  { %12 = sbr.rel (!%p10_p5) target bundleno = 2 (0x2), region = 68 }

// kernel: inception_transfer_forward.25
= control target key start
LH: loop header
LB: loop body
LE: loop exit
PB: predicated region body
PF: predicated region fallthrough
CT: control target
= control target key end

     0   :  { %s3116_s12 = smov 0   ;;  %s3118_s13 = smov 0   ;;  %s3820_s0 = inlined_call_operand.vmem [shape: bf16[480,720], index: 0, kind: input, shape index: {}]   ;;  %s3821_s1 = inlined_call_operand.vmem [shape: bf16[720,256], index: 1, kind: input, shape index: {}]   ;;  %s3822_s2 = inlined_call_operand.vmem [shape: f32[1,256], index: 2, kind: input, shape index: {}]   ;;  %s3823_s3 = inlined_call_operand.vmem [shape: bf16[480,256], index: 3, kind: output, shape index: {}]  }
   0x1   :  { %s3120_s14 = smov 0  }
   0x2 LB: > { %s25_s15 = sadd.s32 1, %s3090_s13  ;;  %p2303_p0 = scmp.ge.s32.totalorder %s3094_s14, 1  ;;  %s3094_s14 = sphi %s3120_s14, %s13_s14   ;;  %s3090_s13 = sphi %s3118_s13, %s3825_s13   ;;  %s3086_s12 = sphi %s3116_s12, %s3824_s12  }
   0x3   : > { %p27_p1 = scmp.ge.s32.totalorder %s25_s15, 2  ;;  %p174_p2 = scmp.lt.s32.totalorder %s3094_s14, 3 }
   0x5   : > { %s3827_s15 = smov (%p27_p1, %s25_s15), 0  ;;  %p175_p3 = pnand %p2303_p0, %p174_p2 }
   0x6   : > { %v2802_v0 = vld [vmem:[%s3821_s1 + $0x4] ss:$8 sps:$4 sm:$0xff] (!%p175_p3)   ;;  %v2806_v2 = vld [vmem:[%s3821_s1] ss:$8 sps:$4 sm:$0xff] (!%p175_p3)   ;;  %v2808_v4 = vld [vmem:[%s3821_s1 + $0x14] ss:$8 sps:$4 sm:$0xff] (!%p175_p3)  }
   0x7   : > { %178 = sbr.rel (%p175_p3) target bundleno = 471 (0x1d7), region = 32  ;;  %v3142_v1 = vld [vmem:[%s3821_s1 + $0x104] ss:$8 sps:$4 sm:$0xff] (!%p175_p3)   ;;  %1367 = vmatprep.subr.bf16.mxu1 (!%p175_p3), %v2802_v0  ;;  %v3150_v3 = vld [vmem:[%s3821_s1 + $0x100] ss:$8 sps:$4 sm:$0xff] (!%p175_p3)   ;;  %vm1321_vm0 = vcmask (!%p175_p3), 654336  }
   0x8   : > { %1550 = vmatprep.subr.bf16.mxu0 (!%p175_p3), %v3142_v1  ;;  %1368 = vmatpush1.bf16.msra.mxu1 (!%p175_p3), %v2806_v2  ;;  %v3160_v5 = vld [vmem:[%s3821_s1 + $0x114] ss:$8 sps:$4 sm:$0xff] (!%p175_p3)   ;;  %v2812_v6 = vld [vmem:[%s3821_s1 + $0x10] ss:$8 sps:$4 sm:$0xff] (!%p175_p3)   ;;  %v2814_v8 = vld [vmem:[%s3821_s1 + $0x24] ss:$8 sps:$4 sm:$0xff] (!%p175_p3)  }
   0x9   : > { %1551 = vmatpush1.bf16.msra.mxu0 (!%p175_p3), %v3150_v3  ;;  %1369 = vmatprep.subr.bf16.mxu1 (!%p175_p3), %v2808_v4  ;;  %v3168_v7 = vld [vmem:[%s3821_s1 + $0x110] ss:$8 sps:$4 sm:$0xff] (!%p175_p3)   ;;  %v3177_v9 = vld [vmem:[%s3821_s1 + $0x124] ss:$8 sps:$4 sm:$0xff] (!%p175_p3)   ;;  %v2818_v10 = vld [vmem:[%s3821_s1 + $0x20] ss:$8 sps:$4 sm:$0xff] (!%p175_p3)  }
   0xa   : > { %1552 = vmatprep.subr.bf16.mxu0 (!%p175_p3), %v3160_v5  ;;  %v3185_v11 = vld [vmem:[%s3821_s1 + $0x120] ss:$8 sps:$4 sm:$0xff] (!%p175_p3)   ;;  %v2820_v12 = vld [vmem:[%s3821_s1 + $0x34] ss:$8 sps:$4 sm:$0xff] (!%p175_p3)   ;;  %v2824_v14 = vld [vmem:[%s3821_s1 + $0x30] ss:$8 sps:$4 sm:$0xff] (!%p175_p3)  }
   0xb   : > { %v3195_v13 = vld [vmem:[%s3821_s1 + $0x134] ss:$8 sps:$4 sm:$0xff] (!%p175_p3)   ;;  %v3204_v15 = vld [vmem:[%s3821_s1 + $0x130] ss:$8 sps:$4 sm:$0xff] (!%p175_p3)   ;;  %v2826_v16 = vld [vmem:[%s3821_s1 + $0x44] ss:$8 sps:$4 sm:$0xff] (!%p175_p3)  }
   0xc   : > { %1370 = vmatpush1.bf16.msra.mxu1 (!%p175_p3), %v2812_v6  ;;  %v3213_v17 = vld [vmem:[%s3821_s1 + $0x144] ss:$8 sps:$4 sm:$0xff] (!%p175_p3)   ;;  %v2830_v18 = vld [vmem:[%s3821_s1 + $0x40] ss:$8 sps:$4 sm:$0xff] (!%p175_p3)   ;;  %v2832_v20 = vld [vmem:[%s3821_s1 + $0x54] ss:$8 sps:$4 sm:$0xff] (!%p175_p3)  }
   0xd   : > { %1553 = vmatpush1.bf16.msra.mxu0 (!%p175_p3), %v3168_v7  ;;  %1371 = vmatprep.subr.bf16.mxu1 (!%p175_p3), %v2814_v8  ;;  %v3221_v19 = vld [vmem:[%s3821_s1 + $0x140] ss:$8 sps:$4 sm:$0xff] (!%p175_p3)   ;;  %v3231_v21 = vld [vmem:[%s3821_s1 + $0x154] ss:$8 sps:$4 sm:$0xff] (!%p175_p3)   ;;  %v2836_v22 = vld [vmem:[%s3821_s1 + $0x50] ss:$8 sps:$4 sm:$0xff] (!%p175_p3)  }
   0xe   : > { %1554 = vmatprep.subr.bf16.mxu0 %v3177_v9  ;;  %v3240_v23 = vld [vmem:[%s3821_s1 + $0x150] ss:$8 sps:$4 sm:$0xff]   ;;  %v2838_v24 = vld [vmem:[%s3821_s1 + $0x64] ss:$8 sps:$4 sm:$0xff]   ;;  %v2842_v26 = vld [vmem:[%s3821_s1 + $0x60] ss:$8 sps:$4 sm:$0xff]  }
   0xf   : > { %v3249_v25 = vld [vmem:[%s3821_s1 + $0x164] ss:$8 sps:$4 sm:$0xff]   ;;  %v3257_v27 = vld [vmem:[%s3821_s1 + $0x160] ss:$8 sps:$4 sm:$0xff]   ;;  %v2844_v28 = vld [vmem:[%s3821_s1 + $0x74] ss:$8 sps:$4 sm:$0xff]  }
  0x10   : > { %1372 = vmatpush1.bf16.msra.mxu1 %v2818_v10  ;;  %s213_s28 = smul.u32 30, %s3086_s12  ;;  %v3268_v29 = vld [vmem:[%s3821_s1 + $0x174] ss:$8 sps:$4 sm:$0xff]   ;;  %v2848_v30 = vld [vmem:[%s3821_s1 + $0x70] ss:$8 sps:$4 sm:$0xff]  }
  0x11   : > { %1555 = vmatpush1.bf16.msra.mxu0 %v3185_v11  ;;  %1373 = vmatprep.subr.bf16.mxu1 %v2820_v12  ;;  %v3277_v31 = vld [vmem:[%s3821_s1 + $0x170] ss:$8 sps:$4 sm:$0xff]   ;;  %v2850_v32 = vld [vmem:[%s3821_s1 + $0x84] ss:$8 sps:$4 sm:$0xff]   ;;  %v2854_v34 = vld [vmem:[%s3821_s1 + $0x80] ss:$8 sps:$4 sm:$0xff]  }
  0x12   : > { %1556 = vmatprep.subr.bf16.mxu0 %v3195_v13  ;;  %p214_p4 = scmp.lt.s32.totalorder %s213_s28, 59  ;;  %v3286_v33 = vld [vmem:[%s3821_s1 + $0x184] ss:$8 sps:$4 sm:$0xff]   ;;  %v3294_v35 = vld [vmem:[%s3821_s1 + $0x180] ss:$8 sps:$4 sm:$0xff]  }
  0x13   : > { %v2856_v36 = vld [vmem:[%s3821_s1 + $0x94] ss:$8 sps:$4 sm:$0xff]   ;;  %v2860_v38 = vld [vmem:[%s3821_s1 + $0x90] ss:$8 sps:$4 sm:$0xff]   ;;  %v2862_v40 = vld [vmem:[%s3821_s1 + $0xa4] ss:$8 sps:$4 sm:$0xff]  }
  0x14   : > { %1374 = vmatpush1.bf16.msra.mxu1 %v2824_v14  ;;  %s3829_s28 = smov (!%p214_p4, %s213_s28), 59  ;;  %v3306_v37 = vld [vmem:[%s3821_s1 + $0x194] ss:$8 sps:$4 sm:$0xff]   ;;  %v3315_v39 = vld [vmem:[%s3821_s1 + $0x190] ss:$8 sps:$4 sm:$0xff]  }
  0x15   : > { %1557 = vmatpush1.bf16.msra.mxu0 %v3204_v15  ;;  %1375 = vmatprep.subr.bf16.mxu1 %v2826_v16  ;;  %s2777_s30 = smul.u32 24, %s3829_s28  ;;  %v3325_v41 = vld [vmem:[%s3821_s1 + $0x1a4] ss:$8 sps:$4 sm:$0xff]   ;;  %v2866_v42 = vld [vmem:[%s3821_s1 + $0xa0] ss:$8 sps:$4 sm:$0xff]   ;;  %s2534_s21 = sshll.u32 %s3829_s28, 3 }
  0x16   : > { %1558 = vmatprep.subr.bf16.mxu0 %v3213_v17  ;;  %v3333_v43 = vld [vmem:[%s3821_s1 + $0x1a0] ss:$8 sps:$4 sm:$0xff]   ;;  %v2868_v44 = vld [vmem:[%s3821_s1 + $0xb4] ss:$8 sps:$4 sm:$0xff]   ;;  %v2872_v46 = vld [vmem:[%s3821_s1 + $0xb0] ss:$8 sps:$4 sm:$0xff]   ;;  %s3703_s24 = scalar_lea.vmem %s3823_s3, %s2534_s21 }
  0x17   : > { %s3342_s17 = scalar_lea.vmem %s3820_s0, %s2777_s30  ;;  %v3348_v45 = vld [vmem:[%s3821_s1 + $0x1b4] ss:$8 sps:$4 sm:$0xff]   ;;  %v3356_v47 = vld [vmem:[%s3821_s1 + $0x1b0] ss:$8 sps:$4 sm:$0xff]   ;;  %v2874_v48 = vld [vmem:[%s3821_s1 + $0xc4] ss:$8 sps:$4 sm:$0xff]  }
  0x18   : > { %1376 = vmatpush1.bf16.msra.mxu1 %v2830_v18  ;;  %v2900_v49 = vld [vmem:[%s3342_s17 + $0x4] ss:$24 sps:$4 sm:$0xff]   ;;  %v2878_v52 = vld [vmem:[%s3821_s1 + $0xc0] ss:$8 sps:$4 sm:$0xff]   ;;  %v2884_v56 = vld [vmem:[%s3821_s1 + $0xd0] ss:$8 sps:$4 sm:$0xff]  }
  0x19   : > { %1559 = vmatpush1.bf16.msra.mxu0 %v3221_v19  ;;  %1377 = vmatprep.subr.bf16.mxu1 %v2832_v20  ;;  %v3366_v50 = vld [vmem:[%s3821_s1 + $0x1c4] ss:$8 sps:$4 sm:$0xff]   ;;  %v3377_v53 = vld [vmem:[%s3821_s1 + $0x1c0] ss:$8 sps:$4 sm:$0xff]   ;;  %v2880_v54 = vld [vmem:[%s3821_s1 + $0xd4] ss:$8 sps:$4 sm:$0xff]  }
  0x1a   : > { %1560 = vmatprep.subr.bf16.mxu0 %v3231_v21  ;;  %v2903_v51 = vld [vmem:[%s3342_s17 + $0xc] ss:$24 sps:$4 sm:$0xff]   ;;  %1399 = vmatprep.mubr.bf16.mxu1 %v2900_v49  ;;  %v3386_v55 = vld [vmem:[%s3821_s1 + $0x1d4] ss:$8 sps:$4 sm:$0xff]   ;;  %v3394_v57 = vld [vmem:[%s3821_s1 + $0x1d0] ss:$8 sps:$4 sm:$0xff]  }
  0x1b   : > { %1582 = vmatprep.mubr.bf16.mxu0 %v2903_v51  ;;  %v2886_v58 = vld [vmem:[%s3821_s1 + $0xe4] ss:$8 sps:$4 sm:$0xff]   ;;  %v2890_v60 = vld [vmem:[%s3821_s1 + $0xe0] ss:$8 sps:$4 sm:$0xff]   ;;  %v2892_v62 = vld [vmem:[%s3821_s1 + $0xf4] ss:$8 sps:$4 sm:$0xff]  }
  0x1c   : > { %1378 = vmatpush1.bf16.msra.mxu1 %v2836_v22  ;;  %v3404_v59 = vld [vmem:[%s3821_s1 + $0x1e4] ss:$8 sps:$4 sm:$0xff]   ;;  %v3412_v61 = vld [vmem:[%s3821_s1 + $0x1e0] ss:$8 sps:$4 sm:$0xff]   ;;  %v3422_v63 = vld [vmem:[%s3821_s1 + $0x1f4] ss:$8 sps:$4 sm:$0xff]  }
  0x1d   : > { %1561 = vmatpush1.bf16.msra.mxu0 %v3240_v23  ;;  %1379 = vmatprep.subr.bf16.mxu1 %v2838_v24  ;;  %v2896_v0 = vld [vmem:[%s3821_s1 + $0xf0] ss:$8 sps:$4 sm:$0xff]   ;;  %v2906_v4 = vld [vmem:[%s3821_s1 + $0x204] ss:$8 sps:$4 sm:$0xff]   ;;  %v2901_v8 = vld [vmem:[%s3342_s17 + $0x8] ss:$24 sps:$4 sm:$0xff]  }
  0x1e   : > { %1562 = vmatprep.subr.bf16.mxu0 %v3249_v25  ;;  %v3431_v2 = vld [vmem:[%s3821_s1 + $0x1f0] ss:$8 sps:$4 sm:$0xff]   ;;  %v2904_v10 = vld [vmem:[%s3821_s1 + $0x200] ss:$8 sps:$4 sm:$0xff]   ;;  %v2907_v12 = vld [vmem:[%s3342_s17 + $0x34] ss:$24 sps:$4 sm:$0xff]  }
  0x1f   : > { %v2898_v6 = vld [vmem:[%s3342_s17] ss:$24 sps:$4 sm:$0xff]   ;;  %v2909_v14 = vld [vmem:[%s3342_s17 + $0x3c] ss:$24 sps:$4 sm:$0xff]   ;;  %v2911_v20 = vld [vmem:[%s3342_s17 + $0x30] ss:$24 sps:$4 sm:$0xff]  }
  0x20   : > { %1380 = vmatpush1.bf16.msra.mxu1 %v2842_v26  ;;  %v2915_v16 = vld [vmem:[%s3821_s1 + $0x214] ss:$8 sps:$4 sm:$0xff]   ;;  %v2913_v18 = vld [vmem:[%s3821_s1 + $0x210] ss:$8 sps:$4 sm:$0xff]   ;;  %v2921_v26 = vld [vmem:[%s3342_s17 + $0x6c] ss:$24 sps:$4 sm:$0xff]  }
  0x21   : > { %1563 = vmatpush1.bf16.msra.mxu0 %v3257_v27  ;;  %1381 = vmatprep.subr.bf16.mxu1 %v2844_v28  ;;  %v2912_v22 = vld [vmem:[%s3342_s17 + $0x38] ss:$24 sps:$4 sm:$0xff]   ;;  %v2919_v24 = vld [vmem:[%s3342_s17 + $0x64] ss:$24 sps:$4 sm:$0xff]   ;;  %v2948_v49 = vld [vmem:[%s3342_s17 + $0xc8] ss:$24 sps:$4 sm:$0xff]  }
  0x22   : > { %1564 = vmatprep.subr.bf16.mxu0 %v3268_v29  ;;  %v2923_v28 = vld [vmem:[%s3342_s17 + $0x60] ss:$24 sps:$4 sm:$0xff]   ;;  %v2955_v51 = vld [vmem:[%s3342_s17 + $0xf4] ss:$24 sps:$4 sm:$0xff]  }
  0x24   : > { %1382 = vmatpush1.bf16.msra.mxu1 %v2848_v30  ;;  %v2924_v30 = vld [vmem:[%s3342_s17 + $0x68] ss:$24 sps:$4 sm:$0xff]  }
  0x25   : > { %1565 = vmatpush1.bf16.msra.mxu0 %v3277_v31  ;;  %1383 = vmatprep.subr.bf16.mxu1 %v2850_v32  ;;  %v2928_v32 = vld [vmem:[%s3821_s1 + $0x240] ss:$8 sps:$4 sm:$0xff]  }
  0x26   : > { %1566 = vmatprep.subr.bf16.mxu0 %v3286_v33 }
  0x28   : > { %1384 = vmatpush1.bf16.msra.mxu1 %v2854_v34  ;;  %v2931_v34 = vld [vmem:[%s3342_s17 + $0x94] ss:$24 sps:$4 sm:$0xff]  }
  0x29   : > { %1567 = vmatpush1.bf16.msra.mxu0 %v3294_v35  ;;  %1385 = vmatprep.subr.bf16.mxu1 %v2856_v36  ;;  %v2933_v36 = vld [vmem:[%s3342_s17 + $0x9c] ss:$24 sps:$4 sm:$0xff]  }
  0x2a   : > { %1568 = vmatprep.subr.bf16.mxu0 %v3306_v37 }
  0x2c   : > { %1386 = vmatpush1.bf16.msra.mxu1 %v2860_v38  ;;  %v2935_v38 = vld [vmem:[%s3342_s17 + $0x90] ss:$24 sps:$4 sm:$0xff]  }
  0x2d   : > { %1569 = vmatpush1.bf16.msra.mxu0 %v3315_v39  ;;  %1387 = vmatprep.subr.bf16.mxu1 %v2862_v40  ;;  %v2936_v40 = vld [vmem:[%s3342_s17 + $0x98] ss:$24 sps:$4 sm:$0xff]  }
  0x2e   : > { %1570 = vmatprep.subr.bf16.mxu0 %v3325_v41 }
  0x30   : > { %1388 = vmatpush1.bf16.msra.mxu1 %v2866_v42  ;;  %v2943_v42 = vld [vmem:[%s3342_s17 + $0xc4] ss:$24 sps:$4 sm:$0xff]  }
  0x31   : > { %1571 = vmatpush1.bf16.msra.mxu0 %v3333_v43  ;;  %1389 = vmatprep.subr.bf16.mxu1 %v2868_v44  ;;  %v2945_v44 = vld [vmem:[%s3342_s17 + $0xcc] ss:$24 sps:$4 sm:$0xff]  }
  0x32   : > { %1572 = vmatprep.subr.bf16.mxu0 %v3348_v45 }
  0x34   : > { %1390 = vmatpush1.bf16.msra.mxu1 %v2872_v46  ;;  %v2951_v46 = vld [vmem:[%s3821_s1 + $0x274] ss:$8 sps:$4 sm:$0xff]  }
  0x35   : > { %1573 = vmatpush1.bf16.msra.mxu0 %v3356_v47  ;;  %1391 = vmatprep.subr.bf16.mxu1 %v2874_v48  ;;  %v2947_v48 = vld [vmem:[%s3342_s17 + $0xc0] ss:$24 sps:$4 sm:$0xff]  }
  0x36   : > { %1574 = vmatprep.subr.bf16.mxu0 %v3366_v50 }
  0x38   : > { %1392 = vmatpush1.bf16.msra.mxu1 %v2878_v52  ;;  %v2957_v52 = vld [vmem:[%s3342_s17 + $0xfc] ss:$24 sps:$4 sm:$0xff]  }
  0x39   : > { %1575 = vmatpush1.bf16.msra.mxu0 %v3377_v53  ;;  %1393 = vmatprep.subr.bf16.mxu1 %v2880_v54  ;;  %v2963_v54 = vld [vmem:[%s3821_s1 + $0x294] ss:$8 sps:$4 sm:$0xff]  }
  0x3a   : > { %1576 = vmatprep.subr.bf16.mxu0 %v3386_v55 }
  0x3c   : > { %1394 = vmatpush1.bf16.msra.mxu1 %v2884_v56  ;;  %v2960_v56 = vld [vmem:[%s3342_s17 + $0xf8] ss:$24 sps:$4 sm:$0xff]  }
  0x3d   : > { %1577 = vmatpush1.bf16.msra.mxu0 %v3394_v57  ;;  %1395 = vmatprep.subr.bf16.mxu1 %v2886_v58  ;;  %v2964_v58 = vld [vmem:[%s3821_s1 + $0x2a0] ss:$8 sps:$4 sm:$0xff]  }
  0x3e   : > { %1578 = vmatprep.subr.bf16.mxu0 %v3404_v59 }
  0x40   : > { %1396 = vmatpush1.bf16.msra.mxu1 %v2890_v60  ;;  %v2967_v60 = vld [vmem:[%s3342_s17 + $0x124] ss:$24 sps:$4 sm:$0xff]  }
  0x41   : > { %1579 = vmatpush1.bf16.msra.mxu0 %v3412_v61  ;;  %1397 = vmatprep.subr.bf16.mxu1 %v2892_v62  ;;  %v2969_v62 = vld [vmem:[%s3342_s17 + $0x12c] ss:$24 sps:$4 sm:$0xff]  }
  0x42   : > { %1580 = vmatprep.subr.bf16.mxu0 %v3422_v63 }
  0x44   : > { %1398 = vmatpush1.bf16.msra.mxu1 %v2896_v0  ;;  %v2975_v0 = vld [vmem:[%s3821_s1 + $0x2b4] ss:$8 sps:$4 sm:$0xff]  }
  0x45   : > { %1581 = vmatpush1.bf16.msra.mxu0 %v3431_v2  ;;  %2565 = vmatprep.subr.bf16.mxu1 %v3142_v1  ;;  %v2918_v1 = vld [vmem:[%s3821_s1 + $0x224] ss:$8 sps:$4 sm:$0xff]  }
  0x46   : > { %1733 = vmatprep.subr.bf16.mxu0 %v2906_v4  ;;  %v2971_v4 = vld [vmem:[%s3342_s17 + $0x120] ss:$24 sps:$4 sm:$0xff]  }
  0x47   : > { %1400 = vmatmul.mubr.bf16.vlgmr.msra.gmra.mrb[0].mxu1 %v2898_v6  ;;  %v2972_v6 = vld [vmem:[%s3342_s17 + $0x128] ss:$24 sps:$4 sm:$0xff]  }
  0x48   : > { %1583 = vmatmul.mubr.bf16.vlgmr.msra.gmra.mrb[0].mxu0 %v2901_v8  ;;  %2581 = vmatpush1.bf16.msra.mxu1 %v3150_v3  ;;  %v2916_v3 = vld [vmem:[%s3821_s1 + $0x220] ss:$8 sps:$4 sm:$0xff]   ;;  %v2979_v8 = vld [vmem:[%s3342_s17 + $0x154] ss:$24 sps:$4 sm:$0xff]  }
  0x49   : > { %1734 = vmatpush1.bf16.msra.mxu0 %v2904_v10  ;;  %1409 = vmatprep.mubr.bf16.mxu1 %v2907_v12  ;;  %v2983_v10 = vld [vmem:[%s3342_s17 + $0x14] ss:$24 sps:$4 sm:$0xff]   ;;  %v2987_v12 = vld [vmem:[%s3342_s17 + $0x44] ss:$24 sps:$4 sm:$0xff]  }
  0x4a   : > { %1592 = vmatprep.mubr.bf16.mxu0 %v2909_v14  ;;  %2566 = vmatprep.subr.bf16.mxu1 %v3160_v5  ;;  %v2927_v5 = vld [vmem:[%s3821_s1 + $0x234] ss:$8 sps:$4 sm:$0xff]  }
  0x4b   : > { %1735 = vmatprep.subr.bf16.mxu0 %v2915_v16  ;;  %v2991_v14 = vld [vmem:[%s3342_s17 + $0x1b4] ss:$24 sps:$4 sm:$0xff]  }
  0x4c   : > { %2582 = vmatpush1.bf16.msra.mxu1 %v3168_v7  ;;  %v2925_v7 = vld [vmem:[%s3821_s1 + $0x230] ss:$8 sps:$4 sm:$0xff]   ;;  %v2993_v16 = vld [vmem:[%s3342_s17 + $0x74] ss:$24 sps:$4 sm:$0xff]  }
  0x4d   : > { %1736 = vmatpush1.bf16.msra.mxu0 %v2913_v18  ;;  %2567 = vmatprep.subr.bf16.mxu1 %v3177_v9  ;;  %v2930_v9 = vld [vmem:[%s3821_s1 + $0x244] ss:$8 sps:$4 sm:$0xff]   ;;  %v3008_v18 = vld [vmem:[%s3342_s17 + $0xd0] ss:$24 sps:$4 sm:$0xff]  }
  0x4e   : > { %1737 = vmatprep.subr.bf16.mxu0 %v2918_v1  ;;  %v3009_v1 = vld [vmem:[%s3342_s17 + $0x244] ss:$24 sps:$4 sm:$0xff]  }
  0x4f   : > { %1410 = vmatmul.mubr.bf16.gmra.mrb[4].mxu1 %v2911_v20  ;;  %v3011_v20 = vld [vmem:[%s3342_s17 + $0x104] ss:$24 sps:$4 sm:$0xff]  }
  0x50   : > { %1593 = vmatmul.mubr.bf16.gmra.mrb[4].mxu0 %v2912_v22  ;;  %1419 = vmatprep.mubr.bf16.mxu1 %v2919_v24  ;;  %v3013_v22 = vld [vmem:[%s3342_s17 + $0x240] ss:$24 sps:$4 sm:$0xff]   ;;  %v3015_v24 = vld [vmem:[%s3342_s17 + $0x274] ss:$24 sps:$4 sm:$0xff]  }
  0x51   : > { %1738 = vmatpush1.bf16.msra.mxu0 %v2916_v3  ;;  %1602 = vmatprep.mubr.bf16.mxu0 %v2921_v26  ;;  %v3014_v3 = vld [vmem:[%s3342_s17 + $0x100] ss:$24 sps:$4 sm:$0xff]   ;;  %v3017_v26 = vld [vmem:[%s3342_s17 + $0x134] ss:$24 sps:$4 sm:$0xff]  }
  0x52   : > { %2583 = vmatpush1.bf16.msra.mxu1 %v3185_v11  ;;  %1739 = vmatprep.subr.bf16.mxu0 %v2927_v5  ;;  %v2939_v11 = vld [vmem:[%s3821_s1 + $0x254] ss:$8 sps:$4 sm:$0xff]   ;;  %v3019_v5 = vld [vmem:[%s3342_s17 + $0x270] ss:$24 sps:$4 sm:$0xff]  }
  0x53   : > { %2568 = vmatprep.subr.bf16.mxu1 %v3195_v13  ;;  %v2937_v13 = vld [vmem:[%s3821_s1 + $0x250] ss:$8 sps:$4 sm:$0xff]  }
  0x55   : > { %1740 = vmatpush1.bf16.msra.mxu0 %v2925_v7  ;;  %v3020_v7 = vld [vmem:[%s3342_s17 + $0x130] ss:$24 sps:$4 sm:$0xff]  }
  0x56   : > { %1741 = vmatprep.subr.bf16.mxu0 %v2930_v9  ;;  %2584 = vmatpush1.bf16.msra.mxu1 %v3204_v15  ;;  %v2942_v15 = vld [vmem:[%s3821_s1 + $0x264] ss:$8 sps:$4 sm:$0xff]  }
  0x57   : > { %2569 = vmatprep.subr.bf16.mxu1 %v3213_v17  ;;  %1420 = vmatmul.mubr.bf16.gmra.mrb[8].mxu1 %v2923_v28  ;;  %v2940_v17 = vld [vmem:[%s3821_s1 + $0x260] ss:$8 sps:$4 sm:$0xff]   ;;  %v3021_v9 = vld [vmem:[%s3342_s17 + $0x2a4] ss:$24 sps:$4 sm:$0xff]  }
  0x58   : > { %1603 = vmatmul.mubr.bf16.gmra.mrb[8].mxu0 %v2924_v30  ;;  %1429 = vmatprep.mubr.bf16.mxu1 %v2931_v34  ;;  %v3027_v28 = vld [vmem:[%s3342_s17 + $0x164] ss:$24 sps:$4 sm:$0xff]   ;;  %v3023_v30 = vld [vmem:[%s3342_s17 + $0x2a0] ss:$24 sps:$4 sm:$0xff]  }
  0x59   : > { %1742 = vmatpush1.bf16.msra.mxu0 %v2928_v32  ;;  %1612 = vmatprep.mubr.bf16.mxu0 %v2933_v36  ;;  %v3029_v32 = vld [vmem:[%s3342_s17 + $0x160] ss:$24 sps:$4 sm:$0xff]   ;;  %v3026_v34 = vld [vmem:[%s3342_s17 + $0x15c] ss:$24 sps:$4 sm:$0xff]  }
  0x5a   : > { %1743 = vmatprep.subr.bf16.mxu0 %v2939_v11  ;;  %2585 = vmatpush1.bf16.msra.mxu1 %v3221_v19  ;;  %v2949_v19 = vld [vmem:[%s3821_s1 + $0x270] ss:$8 sps:$4 sm:$0xff]   ;;  %v3032_v36 = vld [vmem:[%s3342_s17 + $0x194] ss:$24 sps:$4 sm:$0xff]  }
  0x5b   : > { %2570 = vmatprep.subr.bf16.mxu1 %v3231_v21  ;;  %v2954_v21 = vld [vmem:[%s3821_s1 + $0x284] ss:$8 sps:$4 sm:$0xff]   ;;  %v3024_v11 = vld [vmem:[%s3342_s17 + $0x158] ss:$24 sps:$4 sm:$0xff]  }
  0x5d   : > { %1744 = vmatpush1.bf16.msra.mxu0 %v2937_v13  ;;  %v3035_v13 = vld [vmem:[%s3342_s17 + $0x190] ss:$24 sps:$4 sm:$0xff]  }
  0x5e   : > { %1745 = vmatprep.subr.bf16.mxu0 %v2942_v15  ;;  %2586 = vmatpush1.bf16.msra.mxu1 %v3240_v23  ;;  %v2952_v23 = vld [vmem:[%s3821_s1 + $0x280] ss:$8 sps:$4 sm:$0xff]   ;;  %v3030_v15 = vld [vmem:[%s3342_s17 + $0x18c] ss:$24 sps:$4 sm:$0xff]  }
  0x5f   : > { %1430 = vmatmul.mubr.bf16.gmra.mrb[12].mxu1 %v2935_v38  ;;  %2571 = vmatprep.subr.bf16.mxu1 %v3249_v25  ;;  %v2961_v25 = vld [vmem:[%s3821_s1 + $0x290] ss:$8 sps:$4 sm:$0xff]   ;;  %v3038_v38 = vld [vmem:[%s3342_s17 + $0x1c4] ss:$24 sps:$4 sm:$0xff]  }
  0x60   : > { %1613 = vmatmul.mubr.bf16.gmra.mrb[12].mxu0 %v2936_v40  ;;  %1439 = vmatprep.mubr.bf16.mxu1 %v2943_v42  ;;  %v3034_v40 = vld [vmem:[%s3342_s17 + $0x188] ss:$24 sps:$4 sm:$0xff]   ;;  %v3036_v42 = vld [vmem:[%s3342_s17 + $0x1bc] ss:$24 sps:$4 sm:$0xff]  }
  0x61   : > { %1746 = vmatpush1.bf16.msra.mxu0 %v2940_v17  ;;  %1622 = vmatprep.mubr.bf16.mxu0 %v2945_v44  ;;  %v3041_v17 = vld [vmem:[%s3342_s17 + $0x1c0] ss:$24 sps:$4 sm:$0xff]   ;;  %v3044_v44 = vld [vmem:[%s3342_s17 + $0x1f4] ss:$24 sps:$4 sm:$0xff]  }
  0x62   : > { %1747 = vmatprep.subr.bf16.mxu0 %v2951_v46  ;;  %2587 = vmatpush1.bf16.msra.mxu1 %v3257_v27  ;;  %v2966_v27 = vld [vmem:[%s3821_s1 + $0x2a4] ss:$8 sps:$4 sm:$0xff]   ;;  %v3040_v46 = vld [vmem:[%s3342_s17 + $0x1b8] ss:$24 sps:$4 sm:$0xff]  }
  0x63   : > { %2572 = vmatprep.subr.bf16.mxu1 %v3268_v29  ;;  %v2959_v29 = vld [vmem:[%s3342_s17 + $0xf0] ss:$24 sps:$4 sm:$0xff]  }
  0x65   : > { %1748 = vmatpush1.bf16.msra.mxu0 %v2949_v19  ;;  %v3047_v19 = vld [vmem:[%s3342_s17 + $0x1f0] ss:$24 sps:$4 sm:$0xff]  }
  0x66   : > { %1749 = vmatprep.subr.bf16.mxu0 %v2954_v21  ;;  %2588 = vmatpush1.bf16.msra.mxu1 %v3277_v31  ;;  %v2973_v31 = vld [vmem:[%s3821_s1 + $0x2b0] ss:$8 sps:$4 sm:$0xff]   ;;  %v3042_v21 = vld [vmem:[%s3342_s17 + $0x1ec] ss:$24 sps:$4 sm:$0xff]  }
  0x67   : > { %1440 = vmatmul.mubr.bf16.gmra.mrb[16].mxu1 %v2947_v48  ;;  %2573 = vmatprep.subr.bf16.mxu1 %v3286_v33  ;;  %v2978_v33 = vld [vmem:[%s3821_s1 + $0x2c4] ss:$8 sps:$4 sm:$0xff]  }
  0x68   : > { %1623 = vmatmul.mubr.bf16.gmra.mrb[16].mxu0 %v2948_v49  ;;  %1449 = vmatprep.mubr.bf16.mxu1 %v2955_v51  ;;  %v3050_v48 = vld [vmem:[%s3342_s17 + $0x224] ss:$24 sps:$4 sm:$0xff]   ;;  %v3046_v49 = vld [vmem:[%s3342_s17 + $0x1e8] ss:$24 sps:$4 sm:$0xff]  }
  0x69   : > { %1750 = vmatpush1.bf16.msra.mxu0 %v2952_v23  ;;  %1632 = vmatprep.mubr.bf16.mxu0 %v2957_v52  ;;  %v3053_v23 = vld [vmem:[%s3342_s17 + $0x220] ss:$24 sps:$4 sm:$0xff]   ;;  %v3048_v51 = vld [vmem:[%s3342_s17 + $0x21c] ss:$24 sps:$4 sm:$0xff]  }
  0x6a   : > { %1751 = vmatprep.subr.bf16.mxu0 %v2963_v54  ;;  %2589 = vmatpush1.bf16.msra.mxu1 %v3294_v35  ;;  %v2976_v35 = vld [vmem:[%s3821_s1 + $0x2c0] ss:$8 sps:$4 sm:$0xff]   ;;  %v3056_v52 = vld [vmem:[%s3342_s17 + $0x254] ss:$24 sps:$4 sm:$0xff]   ;;  %v3052_v54 = vld [vmem:[%s3342_s17 + $0x218] ss:$24 sps:$4 sm:$0xff]  }
  0x6b   : > { %2574 = vmatprep.subr.bf16.mxu1 %v3306_v37  ;;  %v2981_v37 = vld [vmem:[%s3342_s17 + $0x10] ss:$24 sps:$4 sm:$0xff]  }
  0x6d   : > { %1752 = vmatpush1.bf16.msra.mxu0 %v2961_v25  ;;  %v3059_v25 = vld [vmem:[%s3342_s17 + $0x250] ss:$24 sps:$4 sm:$0xff]  }
  0x6e   : > { %1753 = vmatprep.subr.bf16.mxu0 %v2966_v27  ;;  %2590 = vmatpush1.bf16.msra.mxu1 %v3315_v39  ;;  %v2984_v39 = vld [vmem:[%s3342_s17 + $0x150] ss:$24 sps:$4 sm:$0xff]   ;;  %v3054_v27 = vld [vmem:[%s3342_s17 + $0x24c] ss:$24 sps:$4 sm:$0xff]  }
  0x6f   : > { %1450 = vmatmul.mubr.bf16.gmra.mrb[20].mxu1 %v2959_v29  ;;  %2575 = vmatprep.subr.bf16.mxu1 %v3325_v41  ;;  %v2985_v41 = vld [vmem:[%s3342_s17 + $0x184] ss:$24 sps:$4 sm:$0xff]  }
  0x70   : > { %1633 = vmatmul.mubr.bf16.gmra.mrb[20].mxu0 %v2960_v56  ;;  %1459 = vmatprep.mubr.bf16.mxu1 %v2967_v60  ;;  %v3062_v29 = vld [vmem:[%s3342_s17 + $0x284] ss:$24 sps:$4 sm:$0xff]   ;;  %v3058_v56 = vld [vmem:[%s3342_s17 + $0x248] ss:$24 sps:$4 sm:$0xff]  }
  0x71   : > { %1754 = vmatpush1.bf16.msra.mxu0 %v2964_v58  ;;  %1642 = vmatprep.mubr.bf16.mxu0 %v2969_v62  ;;  %v3065_v58 = vld [vmem:[%s3342_s17 + $0x280] ss:$24 sps:$4 sm:$0xff]   ;;  %v3060_v60 = vld [vmem:[%s3342_s17 + $0x27c] ss:$24 sps:$4 sm:$0xff]  }
  0x72   : > { %1755 = vmatprep.subr.bf16.mxu0 %v2975_v0  ;;  %2591 = vmatpush1.bf16.msra.mxu1 %v3333_v43  ;;  %v2989_v43 = vld [vmem:[%s3342_s17 + $0x180] ss:$24 sps:$4 sm:$0xff]   ;;  %v3068_v62 = vld [vmem:[%s3342_s17 + $0x2b4] ss:$24 sps:$4 sm:$0xff]  }
  0x73   : > { %2576 = vmatprep.subr.bf16.mxu1 %v3348_v45  ;;  %v2990_v45 = vld [vmem:[%s3342_s17 + $0x40] ss:$24 sps:$4 sm:$0xff]  }
  0x74   : > { %v3064_v0 = vld [vmem:[%s3342_s17 + $0x278] ss:$24 sps:$4 sm:$0xff]  }
  0x75   : > { %1756 = vmatpush1.bf16.msra.mxu0 %v2973_v31  ;;  %v3071_v31 = vld [vmem:[%s3342_s17 + $0x2b0] ss:$24 sps:$4 sm:$0xff]  }
  0x76   : > { %1757 = vmatprep.subr.bf16.mxu0 %v2978_v33  ;;  %2592 = vmatpush1.bf16.msra.mxu1 %v3356_v47  ;;  %v2995_v47 = vld [vmem:[%s3342_s17 + $0x1b0] ss:$24 sps:$4 sm:$0xff]   ;;  %v3066_v33 = vld [vmem:[%s3342_s17 + $0x2ac] ss:$24 sps:$4 sm:$0xff]  }
  0x77   : > { %1460 = vmatmul.mubr.bf16.gmra.mrb[24].mxu1 %v2971_v4  ;;  %2577 = vmatprep.subr.bf16.mxu1 %v3366_v50  ;;  %v2996_v50 = vld [vmem:[%s3342_s17 + $0x70] ss:$24 sps:$4 sm:$0xff]  }
  0x78   : > { %1643 = vmatmul.mubr.bf16.gmra.mrb[24].mxu0 %v2972_v6  ;;  %1469 = vmatprep.mubr.bf16.mxu1 %v2979_v8  ;;  %v3070_v4 = vld [vmem:[%s3342_s17 + $0x2a8] ss:$24 sps:$4 sm:$0xff]  }
  0x79   : > { %1758 = vmatpush1.bf16.msra.mxu0 %v2976_v35  ;;  %2487 = vmatprep.mubr.msk.bf16.mxu0 %vm1321_vm0, %v2983_v10 }
  0x7a   : > { %2593 = vmatpush1.bf16.msra.mxu1 %v3377_v53  ;;  %v2997_v53 = vld [vmem:[%s3342_s17 + $0x1e4] ss:$24 sps:$4 sm:$0xff]  }
  0x7b   : > { %2578 = vmatprep.subr.bf16.mxu1 %v3386_v55  ;;  %v2999_v55 = vld [vmem:[%s3342_s17 + $0xa4] ss:$24 sps:$4 sm:$0xff]  }
  0x7e   : > { %2594 = vmatpush1.bf16.msra.mxu1 %v3394_v57  ;;  %v3001_v57 = vld [vmem:[%s3342_s17 + $0x1e0] ss:$24 sps:$4 sm:$0xff]  }
  0x7f   : > { %1470 = vmatmul.mubr.bf16.gmra.mrb[28].mxu1 %v2984_v39  ;;  %2579 = vmatprep.subr.bf16.mxu1 %v3404_v59  ;;  %v3002_v59 = vld [vmem:[%s3342_s17 + $0xa0] ss:$24 sps:$4 sm:$0xff]  }
  0x80   : > { %1766 = vmatmul.mubr.bf16.vlgmr.msra.gmra.mrb[0].mxu0 %v2981_v37  ;;  %1479 = vmatprep.mubr.bf16.mxu1 %v2985_v41 }
  0x81   : > { %2488 = vmatprep.mubr.msk.bf16.mxu0 %vm1321_vm0, %v2987_v12 }
  0x82   : > { %2595 = vmatpush1.bf16.msra.mxu1 %v3412_v61  ;;  %v3003_v61 = vld [vmem:[%s3342_s17 + $0x214] ss:$24 sps:$4 sm:$0xff]  }
  0x83   : > { %2580 = vmatprep.subr.bf16.mxu1 %v3422_v63  ;;  %v3005_v63 = vld [vmem:[%s3342_s17 + $0xd4] ss:$24 sps:$4 sm:$0xff]  }
  0x86   : > { %2596 = vmatpush1.bf16.msra.mxu1 %v3431_v2  ;;  %v3007_v2 = vld [vmem:[%s3342_s17 + $0x210] ss:$24 sps:$4 sm:$0xff]  }
  0x87   : > { %1480 = vmatmul.mubr.bf16.gmra.mrb[32].mxu1 %v2989_v43 }
  0x88   : > { %1776 = vmatmul.mubr.bf16.gmra.mrb[4].mxu0 %v2990_v45  ;;  %1489 = vmatprep.mubr.bf16.mxu1 %v2991_v14 }
  0x89   : > { %2489 = vmatprep.mubr.msk.bf16.mxu0 %vm1321_vm0, %v2993_v16 }
  0x8f   : > { %1490 = vmatmul.mubr.bf16.gmra.mrb[36].mxu1 %v2995_v47 }
  0x90   : > { %1786 = vmatmul.mubr.bf16.gmra.mrb[8].mxu0 %v2996_v50  ;;  %1499 = vmatprep.mubr.bf16.mxu1 %v2997_v53 }
  0x91   : > { %2490 = vmatprep.mubr.msk.bf16.mxu0 %vm1321_vm0, %v2999_v55 }
  0x97   : > { %1500 = vmatmul.mubr.bf16.gmra.mrb[40].mxu1 %v3001_v57 }
  0x98   : > { %1796 = vmatmul.mubr.bf16.gmra.mrb[12].mxu0 %v3002_v59  ;;  %1509 = vmatprep.mubr.bf16.mxu1 %v3003_v61 }
  0x99   : > { %2491 = vmatprep.mubr.msk.bf16.mxu0 %vm1321_vm0, %v3005_v63 }
  0x9f   : > { %1510 = vmatmul.mubr.bf16.gmra.mrb[44].mxu1 %v3007_v2  ;;  %v426_v2 = vlaneseq }
  0xa0   : > { %1806 = vmatmul.mubr.bf16.gmra.mrb[16].mxu0 %v3008_v18  ;;  %1519 = vmatprep.mubr.bf16.mxu1 %v3009_v1 }
  0xa1   : > { %2492 = vmatprep.mubr.msk.bf16.mxu0 %vm1321_vm0, %v3011_v20 }
  0xa7   : > { %1520 = vmatmul.mubr.bf16.gmra.mrb[48].mxu1 %v3013_v22  ;;  %v427_v22 = vshrl.u32 %v426_v2, 7 }
  0xa8   : > { %1816 = vmatmul.mubr.bf16.gmra.mrb[20].mxu0 %v3014_v3  ;;  %1529 = vmatprep.mubr.bf16.mxu1 %v3015_v24 }
  0xa9   : > { %2493 = vmatprep.mubr.msk.bf16.mxu0 %vm1321_vm0, %v3017_v26  ;;  %v428_v24 = vsub.s32 0, %v427_v22  ;;  %v424_v26 = vld [vmem:[%s3822_s2] sm:$0x3] }
  0xaf   : > { %1530 = vmatmul.mubr.bf16.gmra.mrb[52].mxu1 %v3019_v5  ;;  %v432_v5 = vsub.s32 1, %v427_v22 }
  0xb0   : > { %1826 = vmatmul.mubr.bf16.gmra.mrb[24].mxu0 %v3020_v7  ;;  %1539 = vmatprep.mubr.bf16.mxu1 %v3021_v9 }
  0xb1   : > { %2494 = vmatprep.mubr.msk.bf16.mxu0 %vm1321_vm0, %v3027_v28 }
  0xb7   : > { %1540 = vmatmul.mubr.bf16.gmra.mrb[56].mxu1 %v3023_v30  ;;  %v3689_v30 = vrot.slane %v424_v26, %v428_v24 }
  0xb8   : > { %1836 = vmatmul.mubr.bf16.gmra.mrb[28].mxu0 %v3029_v32  ;;  %1652 = vmatprep.mubr.bf16.mxu1 %v3026_v34  ;;  %v3693_v34 = vrot.slane %v424_v26, %v432_v5 }
  0xb9   : > { %2495 = vmatprep.mubr.msk.bf16.mxu0 %vm1321_vm0, %v3032_v36 }
  0xbf   : > { %1653 = vmatmul.mubr.bf16.vlgmr.msra.gmra.mrb[28].mxu1 %v3024_v11 }
  0xc0   : > { %1846 = vmatmul.mubr.bf16.gmra.mrb[32].mxu0 %v3035_v13  ;;  %1662 = vmatprep.mubr.bf16.mxu1 %v3030_v15 }
  0xc1   : > { %2496 = vmatprep.mubr.msk.bf16.mxu0 %vm1321_vm0, %v3038_v38 }
  0xc7   : > { %1663 = vmatmul.mubr.bf16.gmra.mrb[32].mxu1 %v3034_v40 }
  0xc8   : > { %1856 = vmatmul.mubr.bf16.gmra.mrb[36].mxu0 %v3041_v17  ;;  %1672 = vmatprep.mubr.bf16.mxu1 %v3036_v42 }
  0xc9   : > { %2497 = vmatprep.mubr.msk.bf16.mxu0 %vm1321_vm0, %v3044_v44 }
  0xcf   : > { %1673 = vmatmul.mubr.bf16.gmra.mrb[36].mxu1 %v3040_v46 }
  0xd0   : > { %1866 = vmatmul.mubr.bf16.gmra.mrb[40].mxu0 %v3047_v19  ;;  %1682 = vmatprep.mubr.bf16.mxu1 %v3042_v21 }
  0xd1   : > { %2498 = vmatprep.mubr.msk.bf16.mxu0 %vm1321_vm0, %v3050_v48 }
  0xd7   : > { %1683 = vmatmul.mubr.bf16.gmra.mrb[40].mxu1 %v3046_v49 }
  0xd8   : > { %1876 = vmatmul.mubr.bf16.gmra.mrb[44].mxu0 %v3053_v23  ;;  %1692 = vmatprep.mubr.bf16.mxu1 %v3048_v51 }
  0xd9   : > { %2499 = vmatprep.mubr.msk.bf16.mxu0 %vm1321_vm0, %v3056_v52 }
  0xdf   : > { %1693 = vmatmul.mubr.bf16.gmra.mrb[44].mxu1 %v3052_v54 }
  0xe0   : > { %1886 = vmatmul.mubr.bf16.gmra.mrb[48].mxu0 %v3059_v25  ;;  %1702 = vmatprep.mubr.bf16.mxu1 %v3054_v27 }
  0xe1   : > { %2500 = vmatprep.mubr.msk.bf16.mxu0 %vm1321_vm0, %v3062_v29 }
  0xe7   : > { %1703 = vmatmul.mubr.bf16.gmra.mrb[48].mxu1 %v3058_v56 }
  0xe8   : > { %1896 = vmatmul.mubr.bf16.gmra.mrb[52].mxu0 %v3065_v58  ;;  %1712 = vmatprep.mubr.bf16.mxu1 %v3060_v60 }
  0xe9   : > { %2501 = vmatprep.mubr.msk.bf16.mxu0 %vm1321_vm0, %v3068_v62 }
  0xef   : > { %1713 = vmatmul.mubr.bf16.gmra.mrb[52].mxu1 %v3064_v0 }
  0xf0   : > { %1906 = vmatmul.mubr.bf16.gmra.mrb[56].mxu0 %v3071_v31  ;;  %1722 = vmatprep.mubr.bf16.mxu1 %v3066_v33 }
  0xf7   : > { %1723 = vmatmul.mubr.bf16.gmra.mrb[56].mxu1 %v3070_v4 }
 0x11a   : > { %v1401_v6 = vpop.f32.mrb[0].mxu1 }
 0x11b   : > { %v1403_v35 = vpop.f32.mrb[1].mxu1  ;;  %v1402_v36 = vadd.f32 %v1401_v6, %v3689_v30 }
 0x11c   : > { %v1405_v8 = vpop.f32.mrb[2].mxu1  ;;  %v1404_v11 = vadd.f32 %v1403_v35, %v3693_v34 }
 0x11d   : > { %v1407_v10 = vpop.f32.mrb[3].mxu1  ;;  %v1406_v15 = vadd.f32 %v1405_v8, %v3689_v30 }
 0x11e   : > { %v1408_v17 = vadd.f32 %v1407_v10, %v3693_v34 }
 0x122   : > { %v1411_v37 = vpop.f32.mrb[4].mxu1 }
 0x123   : > { %v1413_v39 = vpop.f32.mrb[5].mxu1  ;;  %v1412_v54 = vadd.f32 %v1411_v37, %v3689_v30 }
 0x124   : > { %v1415_v41 = vpop.f32.mrb[6].mxu1  ;;  %v1414_v25 = vadd.f32 %v1413_v39, %v3693_v34 }
 0x125   : > { %v1417_v12 = vpop.f32.mrb[7].mxu1  ;;  %v1416_v56 = vadd.f32 %v1415_v41, %v3689_v30 }
 0x126   : > { %v1418_v62 = vadd.f32 %v1417_v12, %v3693_v34 }
 0x12a   : > { %v3648_v43 = vpop.f32.mrb[8].mxu1 }
 0x12b   : > { %v3650_v45 = vpop.f32.mrb[9].mxu1  ;;  %v1422_v41 = vadd.f32 %v3648_v43, %v3689_v30 }
 0x12c   : > { %v3652_v14 = vpop.f32.mrb[10].mxu1  ;;  %v1424_v2 = vadd.f32 %v3650_v45, %v3693_v34 }
 0x12d   : > { %v3654_v16 = vpop.f32.mrb[11].mxu1  ;;  %v1426_v24 = vadd.f32 %v3652_v14, %v3689_v30 }
 0x132   : > { %v3656_v47 = vpop.f32.mrb[12].mxu1 }
 0x133   : > { %v3658_v50 = vpop.f32.mrb[13].mxu1  ;;  %v1432_v14 = vadd.f32 %v3656_v47, %v3689_v30 }
 0x134   : > { %v3660_v53 = vpop.f32.mrb[14].mxu1 }
 0x135   : > { %v3662_v55 = vpop.f32.mrb[15].mxu1 }
 0x13a   : > { %v3664_v57 = vpop.f32.mrb[16].mxu1 }
 0x13b   : > { %v3666_v59 = vpop.f32.mrb[17].mxu1 }
 0x13c   : > { %v3668_v61 = vpop.f32.mrb[18].mxu1 }
 0x13d   : > { %v3670_v63 = vpop.f32.mrb[19].mxu1 }
 0x142   : > { %v3672_v18 = vpop.f32.mrb[20].mxu1 }
 0x143   : > { %v3674_v1 = vpop.f32.mrb[21].mxu1 }
 0x144   : > { %v3676_v20 = vpop.f32.mrb[22].mxu1 }
 0x145   : > { %v3678_v3 = vpop.f32.mrb[23].mxu1 }
 0x14a   : > { %v3683_v7 = vpop.f32.mrb[24].mxu1 }
 0x14b   : > { %v3685_v9 = vpop.f32.mrb[25].mxu1 }
 0x14c   : > { %v3687_v28 = vpop.f32.mrb[26].mxu1 }
 0x14d   : > { %v3691_v32 = vpop.f32.mrb[27].mxu1 }
 0x153   : > { %v1767_v13 = vpop.f32.mrb[0].mxu0 }
 0x154   : > { %v2598_v38 = vadd.f32 %v1767_v13, %v1402_v36  ;;  %v1769_v40 = vpop.f32.mrb[1].mxu0  ;;  %v1428_v36 = vadd.f32 %v3654_v16, %v3693_v34 }
 0x155   : > { %v2600_v42 = vadd.f32 %v1769_v40, %v1404_v11  ;;  %v1771_v44 = vpop.f32.mrb[2].mxu0 }
 0x156   : > { %v1916_v46 = vmax.f32 %v2598_v38, 0.0  ;;  %v2602_v19 = vadd.f32 %v1771_v44, %v1406_v15  ;;  %v1773_v21 = vpop.f32.mrb[3].mxu0 }
 0x157   : > { %v1917_v48 = vmax.f32 %v2600_v42, 0.0  ;;  %v2604_v49 = vadd.f32 %v1773_v21, %v1408_v17  ;;  %v1436_v21 = vadd.f32 %v3660_v53, %v3689_v30  ;;  %v1442_v53 = vadd.f32 %v3664_v57, %v3689_v30 }
 0x158   : > { %v1918_v23 = vmax.f32 %v2602_v19, 0.0 }
 0x159   : > { %v2535_v51 = vpack.c.bf16 %v1917_v48, %v1916_v46  ;;  %v1919_v52 = vmax.f32 %v2604_v49, 0.0  ;;  %v1434_v46 = vadd.f32 %v3658_v50, %v3693_v34 }
 0x15b   : > { %2156 = vst [vmem:[%s3703_s24] sm:$0xff] %v2535_v51  ;;  %v2536_v27 = vpack.c.bf16 %v1919_v52, %v1918_v23  ;;  %v1777_v29 = vpop.f32.mrb[4].mxu0  ;;  %v1438_v23 = vadd.f32 %v3662_v55, %v3693_v34 }
 0x15c   : > { %v2606_v58 = vadd.f32 %v1777_v29, %v1412_v54  ;;  %v1779_v60 = vpop.f32.mrb[5].mxu0 }
 0x15d   : > { %2157 = vst [vmem:[%s3703_s24 + $0x8] sm:$0xff] %v2536_v27  ;;  %v2608_v0 = vadd.f32 %v1779_v60, %v1414_v25  ;;  %v1781_v31 = vpop.f32.mrb[6].mxu0  ;;  %v1444_v60 = vadd.f32 %v3666_v59, %v3693_v34 }
 0x15e   : > { %v1920_v33 = vmax.f32 %v2606_v58, 0.0  ;;  %v2610_v4 = vadd.f32 %v1781_v31, %v1416_v56  ;;  %v1783_v6 = vpop.f32.mrb[7].mxu0 }
 0x15f   : > { %v1921_v35 = vmax.f32 %v2608_v0, 0.0  ;;  %v2612_v8 = vadd.f32 %v1783_v6, %v1418_v62  ;;  %v1446_v0 = vadd.f32 %v3668_v61, %v3689_v30  ;;  %v1452_v61 = vadd.f32 %v3672_v18, %v3689_v30 }
 0x160   : > { %v1922_v10 = vmax.f32 %v2610_v4, 0.0  ;;  %v1448_v4 = vadd.f32 %v3670_v63, %v3693_v34 }
 0x161   : > { %v2537_v37 = vpack.c.bf16 %v1921_v35, %v1920_v33  ;;  %v1923_v39 = vmax.f32 %v2612_v8, 0.0 }
 0x163   : > { %2158 = vst [vmem:[%s3703_s24 + $0x10] sm:$0xff] %v2537_v37  ;;  %v2538_v12 = vpack.c.bf16 %v1923_v39, %v1922_v10  ;;  %v1787_v22 = vpop.f32.mrb[8].mxu0 }
 0x164   : > { %v2614_v26 = vadd.f32 %v1787_v22, %v1422_v41  ;;  %v1789_v5 = vpop.f32.mrb[9].mxu0 }
 0x165   : > { %2159 = vst [vmem:[%s3703_s24 + $0x18] sm:$0xff] %v2538_v12  ;;  %v2616_v11 = vadd.f32 %v1789_v5, %v1424_v2  ;;  %v1791_v13 = vpop.f32.mrb[10].mxu0  ;;  %v1454_v12 = vadd.f32 %v3674_v1, %v3693_v34 }
 0x166   : > { %v1924_v15 = vmax.f32 %v2614_v26, 0.0  ;;  %v2618_v43 = vadd.f32 %v1791_v13, %v1426_v24  ;;  %v1793_v38 = vpop.f32.mrb[11].mxu0  ;;  %v1456_v24 = vadd.f32 %v3676_v20, %v3689_v30  ;;  %v1462_v20 = vadd.f32 %v3683_v7, %v3689_v30 }
 0x167   : > { %v1925_v45 = vmax.f32 %v2616_v11, 0.0  ;;  %v2620_v40 = vadd.f32 %v1793_v38, %v1428_v36  ;;  %v1458_v36 = vadd.f32 %v3678_v3, %v3693_v34 }
 0x168   : > { %v1926_v17 = vmax.f32 %v2618_v43, 0.0 }
 0x169   : > { %v2539_v42 = vpack.c.bf16 %v1925_v45, %v1924_v15  ;;  %v1927_v44 = vmax.f32 %v2620_v40, 0.0 }
 0x16b   : > { %2160 = vst [vmem:[%s3703_s24 + $0x20] sm:$0xff] %v2539_v42  ;;  %v2540_v16 = vpack.c.bf16 %v1927_v44, %v1926_v17  ;;  %v1797_v19 = vpop.f32.mrb[12].mxu0  ;;  %v1464_v42 = vadd.f32 %v3685_v9, %v3693_v34 }
 0x16c   : > { %v2622_v48 = vadd.f32 %v1797_v19, %v1432_v14  ;;  %v1799_v49 = vpop.f32.mrb[13].mxu0  ;;  %v1466_v14 = vadd.f32 %v3687_v28, %v3689_v30  ;;  %v1468_v19 = vadd.f32 %v3691_v32, %v3693_v34 }
 0x16d   : > { %2161 = vst [vmem:[%s3703_s24 + $0x28] sm:$0xff] %v2540_v16  ;;  %v2624_v51 = vadd.f32 %v1799_v49, %v1434_v46  ;;  %v1801_v52 = vpop.f32.mrb[14].mxu0 }
 0x16e   : > { %v1928_v54 = vmax.f32 %v2622_v48, 0.0  ;;  %v2626_v47 = vadd.f32 %v1801_v52, %v1436_v21  ;;  %v1803_v25 = vpop.f32.mrb[15].mxu0 }
 0x16f   : > { %v1929_v50 = vmax.f32 %v2624_v51, 0.0  ;;  %v2628_v27 = vadd.f32 %v1803_v25, %v1438_v23 }
 0x170   : > { %v1930_v29 = vmax.f32 %v2626_v47, 0.0 }
 0x171   : > { %v2541_v56 = vpack.c.bf16 %v1929_v50, %v1928_v54  ;;  %v1931_v58 = vmax.f32 %v2628_v27, 0.0 }
 0x173   : > { %2162 = vst [vmem:[%s3703_s24 + $0x30] sm:$0xff] %v2541_v56  ;;  %v2542_v55 = vpack.c.bf16 %v1931_v58, %v1930_v29  ;;  %v1807_v62 = vpop.f32.mrb[16].mxu0 }
 0x174   : > { %v2630_v31 = vadd.f32 %v1807_v62, %v1442_v53  ;;  %v1809_v33 = vpop.f32.mrb[17].mxu0 }
 0x175   : > { %2163 = vst [vmem:[%s3703_s24 + $0x38] sm:$0xff] %v2542_v55  ;;  %v2632_v6 = vadd.f32 %v1809_v33, %v1444_v60  ;;  %v1811_v35 = vpop.f32.mrb[18].mxu0 }
 0x176   : > { %v1932_v8 = vmax.f32 %v2630_v31, 0.0  ;;  %v2634_v57 = vadd.f32 %v1811_v35, %v1446_v0  ;;  %v1813_v10 = vpop.f32.mrb[19].mxu0 }
 0x177   : > { %v1933_v59 = vmax.f32 %v2632_v6, 0.0  ;;  %v2636_v37 = vadd.f32 %v1813_v10, %v1448_v4 }
 0x178   : > { %v1934_v39 = vmax.f32 %v2634_v57, 0.0 }
 0x179   : > { %v2543_v41 = vpack.c.bf16 %v1933_v59, %v1932_v8  ;;  %v1935_v2 = vmax.f32 %v2636_v37, 0.0 }
 0x17b   : > { %2164 = vst [vmem:[%s3703_s24 + $0x40] sm:$0xff] %v2543_v41  ;;  %v2544_v63 = vpack.c.bf16 %v1935_v2, %v1934_v39  ;;  %v1817_v22 = vpop.f32.mrb[20].mxu0 }
 0x17c   : > { %v2638_v26 = vadd.f32 %v1817_v22, %v1452_v61  ;;  %v1819_v5 = vpop.f32.mrb[21].mxu0 }
 0x17d   : > { %2165 = vst [vmem:[%s3703_s24 + $0x48] sm:$0xff] %v2544_v63  ;;  %v2640_v11 = vadd.f32 %v1819_v5, %v1454_v12  ;;  %v1821_v13 = vpop.f32.mrb[22].mxu0 }
 0x17e   : > { %v1936_v15 = vmax.f32 %v2638_v26, 0.0  ;;  %v2642_v18 = vadd.f32 %v1821_v13, %v1456_v24  ;;  %v1823_v43 = vpop.f32.mrb[23].mxu0 }
 0x17f   : > { %v1937_v1 = vmax.f32 %v2640_v11, 0.0  ;;  %v2644_v38 = vadd.f32 %v1823_v43, %v1458_v36 }
 0x180   : > { %v1938_v45 = vmax.f32 %v2642_v18, 0.0 }
 0x181   : > { %v2545_v40 = vpack.c.bf16 %v1937_v1, %v1936_v15  ;;  %v1939_v17 = vmax.f32 %v2644_v38, 0.0 }
 0x183   : > { %2166 = vst [vmem:[%s3703_s24 + $0x50] sm:$0xff] %v2545_v40  ;;  %v2546_v3 = vpack.c.bf16 %v1939_v17, %v1938_v45  ;;  %v1827_v44 = vpop.f32.mrb[24].mxu0 }
 0x184   : > { %v2646_v46 = vadd.f32 %v1827_v44, %v1462_v20  ;;  %v1829_v16 = vpop.f32.mrb[25].mxu0 }
 0x185   : > { %2167 = vst [vmem:[%s3703_s24 + $0x58] sm:$0xff] %v2546_v3  ;;  %v2648_v21 = vadd.f32 %v1829_v16, %v1464_v42  ;;  %v1831_v48 = vpop.f32.mrb[26].mxu0 }
 0x186   : > { %v1940_v7 = vmax.f32 %v2646_v46, 0.0  ;;  %v2650_v49 = vadd.f32 %v1831_v48, %v1466_v14  ;;  %v1833_v23 = vpop.f32.mrb[27].mxu0 }
 0x187   : > { %v1941_v9 = vmax.f32 %v2648_v21, 0.0  ;;  %v2652_v51 = vadd.f32 %v1833_v23, %v1468_v19 }
 0x188   : > { %v1942_v52 = vmax.f32 %v2650_v49, 0.0 }
 0x189   : > { %v2547_v54 = vpack.c.bf16 %v1941_v9, %v1940_v7  ;;  %v1943_v47 = vmax.f32 %v2652_v51, 0.0 }
 0x18b   : > { %2168 = vst [vmem:[%s3703_s24 + $0x60] sm:$0xff] %v2547_v54  ;;  %v2548_v25 = vpack.c.bf16 %v1943_v47, %v1942_v52  ;;  %v1837_v28 = vpop.f32.mrb[28].mxu0 }
 0x18c   : > { %v1839_v50 = vpop.f32.mrb[29].mxu0 }
 0x18d   : > { %2169 = vst [vmem:[%s3703_s24 + $0x68] sm:$0xff] %v2548_v25  ;;  %v1841_v27 = vpop.f32.mrb[30].mxu0 }
 0x18e   : > { %v1843_v29 = vpop.f32.mrb[31].mxu0 }
 0x192   : > { %v1654_v32 = vpop.f32.mrb[28].mxu1 }
 0x193   : > { %v1847_v56 = vpop.f32.mrb[32].mxu0  ;;  %v2653_v58 = vadd.f32 %v1654_v32, %v3689_v30  ;;  %v1656_v53 = vpop.f32.mrb[29].mxu1 }
 0x194   : > { %v1849_v60 = vpop.f32.mrb[33].mxu0  ;;  %v2655_v55 = vadd.f32 %v1656_v53, %v3693_v34  ;;  %v1658_v62 = vpop.f32.mrb[30].mxu1 }
 0x195   : > { %v1851_v0 = vpop.f32.mrb[34].mxu0  ;;  %v2654_v31 = vadd.f32 %v2653_v58, %v1837_v28  ;;  %v2657_v33 = vadd.f32 %v1658_v62, %v3689_v30  ;;  %v1660_v4 = vpop.f32.mrb[31].mxu1 }
 0x196   : > { %v1853_v6 = vpop.f32.mrb[35].mxu0  ;;  %v2656_v35 = vadd.f32 %v2655_v55, %v1839_v50  ;;  %v2659_v8 = vadd.f32 %v1660_v4, %v3693_v34 }
 0x197   : > { %v1944_v57 = vmax.f32 %v2654_v31, 0.0  ;;  %v2658_v10 = vadd.f32 %v2657_v33, %v1841_v27 }
 0x198   : > { %v1945_v59 = vmax.f32 %v2656_v35, 0.0  ;;  %v2660_v37 = vadd.f32 %v2659_v8, %v1843_v29 }
 0x199   : > { %v1946_v39 = vmax.f32 %v2658_v10, 0.0 }
 0x19a   : > { %v2549_v41 = vpack.c.bf16 %v1945_v59, %v1944_v57  ;;  %v1947_v2 = vmax.f32 %v2660_v37, 0.0  ;;  %v1664_v61 = vpop.f32.mrb[32].mxu1 }
 0x19b   : > { %v1857_v12 = vpop.f32.mrb[36].mxu0  ;;  %v2661_v63 = vadd.f32 %v1664_v61, %v3689_v30  ;;  %v1666_v22 = vpop.f32.mrb[33].mxu1 }
 0x19c   : > { %v1859_v24 = vpop.f32.mrb[37].mxu0  ;;  %2170 = vst [vmem:[%s3703_s24 + $0x70] sm:$0xff] %v2549_v41  ;;  %v2550_v26 = vpack.c.bf16 %v1947_v2, %v1946_v39  ;;  %v2663_v5 = vadd.f32 %v1666_v22, %v3693_v34  ;;  %v1668_v36 = vpop.f32.mrb[34].mxu1 }
 0x19d   : > { %v1861_v11 = vpop.f32.mrb[38].mxu0  ;;  %v2662_v13 = vadd.f32 %v2661_v63, %v1847_v56  ;;  %v2665_v15 = vadd.f32 %v1668_v36, %v3689_v30  ;;  %v1670_v18 = vpop.f32.mrb[35].mxu1 }
 0x19e   : > { %v1863_v43 = vpop.f32.mrb[39].mxu0  ;;  %2171 = vst [vmem:[%s3703_s24 + $0x78] sm:$0xff] %v2550_v26  ;;  %v2664_v1 = vadd.f32 %v2663_v5, %v1849_v60  ;;  %v2667_v38 = vadd.f32 %v1670_v18, %v3693_v34 }
 0x19f   : > { %v1948_v45 = vmax.f32 %v2662_v13, 0.0  ;;  %v2666_v40 = vadd.f32 %v2665_v15, %v1851_v0 }
 0x1a0   : > { %v1949_v17 = vmax.f32 %v2664_v1, 0.0  ;;  %v2668_v20 = vadd.f32 %v2667_v38, %v1853_v6 }
 0x1a1   : > { %v1950_v42 = vmax.f32 %v2666_v40, 0.0 }
 0x1a2   : > { %v2551_v3 = vpack.c.bf16 %v1949_v17, %v1948_v45  ;;  %v1951_v44 = vmax.f32 %v2668_v20, 0.0  ;;  %v1674_v14 = vpop.f32.mrb[36].mxu1 }
 0x1a3   : > { %v1867_v46 = vpop.f32.mrb[40].mxu0  ;;  %v2669_v16 = vadd.f32 %v1674_v14, %v3689_v30  ;;  %v1676_v19 = vpop.f32.mrb[37].mxu1 }
 0x1a4   : > { %v1869_v21 = vpop.f32.mrb[41].mxu0  ;;  %2172 = vst [vmem:[%s3703_s24 + $0x80] sm:$0xff] %v2551_v3  ;;  %v2552_v48 = vpack.c.bf16 %v1951_v44, %v1950_v42  ;;  %v2671_v7 = vadd.f32 %v1676_v19, %v3693_v34  ;;  %v1678_v49 = vpop.f32.mrb[38].mxu1 }
 0x1a5   : > { %v1871_v23 = vpop.f32.mrb[42].mxu0  ;;  %v2670_v9 = vadd.f32 %v2669_v16, %v1857_v12  ;;  %v2673_v51 = vadd.f32 %v1678_v49, %v3689_v30  ;;  %v1680_v52 = vpop.f32.mrb[39].mxu1 }
 0x1a6   : > { %v1873_v54 = vpop.f32.mrb[43].mxu0  ;;  %2173 = vst [vmem:[%s3703_s24 + $0x88] sm:$0xff] %v2552_v48  ;;  %v2672_v47 = vadd.f32 %v2671_v7, %v1859_v24  ;;  %v2675_v25 = vadd.f32 %v1680_v52, %v3693_v34 }
 0x1a7   : > { %v1952_v28 = vmax.f32 %v2670_v9, 0.0  ;;  %v2674_v50 = vadd.f32 %v2673_v51, %v1861_v11 }
 0x1a8   : > { %v1953_v27 = vmax.f32 %v2672_v47, 0.0  ;;  %v2676_v29 = vadd.f32 %v2675_v25, %v1863_v43 }
 0x1a9   : > { %v1954_v32 = vmax.f32 %v2674_v50, 0.0 }
 0x1aa   : > { %v2553_v56 = vpack.c.bf16 %v1953_v27, %v1952_v28  ;;  %v1955_v58 = vmax.f32 %v2676_v29, 0.0  ;;  %v1684_v53 = vpop.f32.mrb[40].mxu1 }
 0x1ab   : > { %v1877_v60 = vpop.f32.mrb[44].mxu0  ;;  %v2677_v55 = vadd.f32 %v1684_v53, %v3689_v30  ;;  %v1686_v62 = vpop.f32.mrb[41].mxu1 }
 0x1ac   : > { %v1879_v0 = vpop.f32.mrb[45].mxu0  ;;  %2174 = vst [vmem:[%s3703_s24 + $0x90] sm:$0xff] %v2553_v56  ;;  %v2554_v31 = vpack.c.bf16 %v1955_v58, %v1954_v32  ;;  %v2679_v33 = vadd.f32 %v1686_v62, %v3693_v34  ;;  %v1688_v4 = vpop.f32.mrb[42].mxu1 }
 0x1ad   : > { %v1881_v6 = vpop.f32.mrb[46].mxu0  ;;  %v2678_v35 = vadd.f32 %v2677_v55, %v1867_v46  ;;  %v2681_v8 = vadd.f32 %v1688_v4, %v3689_v30  ;;  %v1690_v57 = vpop.f32.mrb[43].mxu1 }
 0x1ae   : > { %v1883_v10 = vpop.f32.mrb[47].mxu0  ;;  %2175 = vst [vmem:[%s3703_s24 + $0x98] sm:$0xff] %v2554_v31  ;;  %v2680_v59 = vadd.f32 %v2679_v33, %v1869_v21  ;;  %v2683_v37 = vadd.f32 %v1690_v57, %v3693_v34 }
 0x1af   : > { %v1956_v39 = vmax.f32 %v2678_v35, 0.0  ;;  %v2682_v41 = vadd.f32 %v2681_v8, %v1871_v23 }
 0x1b0   : > { %v1957_v2 = vmax.f32 %v2680_v59, 0.0  ;;  %v2684_v61 = vadd.f32 %v2683_v37, %v1873_v54 }
 0x1b1   : > { %v1958_v12 = vmax.f32 %v2682_v41, 0.0 }
 0x1b2   : > { %v2555_v63 = vpack.c.bf16 %v1957_v2, %v1956_v39  ;;  %v1959_v22 = vmax.f32 %v2684_v61, 0.0  ;;  %v1694_v24 = vpop.f32.mrb[44].mxu1 }
 0x1b3   : > { %v1887_v26 = vpop.f32.mrb[48].mxu0  ;;  %v2685_v5 = vadd.f32 %v1694_v24, %v3689_v30  ;;  %v1696_v36 = vpop.f32.mrb[45].mxu1 }
 0x1b4   : > { %v1889_v11 = vpop.f32.mrb[49].mxu0  ;;  %2176 = vst [vmem:[%s3703_s24 + $0xa0] sm:$0xff] %v2555_v63  ;;  %v2556_v13 = vpack.c.bf16 %v1959_v22, %v1958_v12  ;;  %v2687_v15 = vadd.f32 %v1696_v36, %v3693_v34  ;;  %v1698_v18 = vpop.f32.mrb[46].mxu1 }
 0x1b5   : > { %v1891_v43 = vpop.f32.mrb[50].mxu0  ;;  %v2686_v1 = vadd.f32 %v2685_v5, %v1877_v60  ;;  %v2689_v38 = vadd.f32 %v1698_v18, %v3689_v30  ;;  %v1700_v45 = vpop.f32.mrb[47].mxu1 }
 0x1b6   : > { %v1893_v40 = vpop.f32.mrb[51].mxu0  ;;  %2177 = vst [vmem:[%s3703_s24 + $0xa8] sm:$0xff] %v2556_v13  ;;  %v2688_v17 = vadd.f32 %v2687_v15, %v1879_v0  ;;  %v2691_v20 = vadd.f32 %v1700_v45, %v3693_v34 }
 0x1b7   : > { %v1960_v42 = vmax.f32 %v2686_v1, 0.0  ;;  %v2690_v3 = vadd.f32 %v2689_v38, %v1881_v6 }
 0x1b8   : > { %v1961_v44 = vmax.f32 %v2688_v17, 0.0  ;;  %v2692_v14 = vadd.f32 %v2691_v20, %v1883_v10 }
 0x1b9   : > { %v1962_v46 = vmax.f32 %v2690_v3, 0.0 }
 0x1ba   : > { %v2557_v16 = vpack.c.bf16 %v1961_v44, %v1960_v42  ;;  %v1963_v19 = vmax.f32 %v2692_v14, 0.0  ;;  %v1704_v21 = vpop.f32.mrb[48].mxu1 }
 0x1bb   : > { %v1897_v48 = vpop.f32.mrb[52].mxu0  ;;  %v2693_v7 = vadd.f32 %v1704_v21, %v3689_v30  ;;  %v1706_v49 = vpop.f32.mrb[49].mxu1 }
 0x1bc   : > { %v1899_v23 = vpop.f32.mrb[53].mxu0  ;;  %2178 = vst [vmem:[%s3703_s24 + $0xb0] sm:$0xff] %v2557_v16  ;;  %v2558_v9 = vpack.c.bf16 %v1963_v19, %v1962_v46  ;;  %v2695_v51 = vadd.f32 %v1706_v49, %v3693_v34  ;;  %v1708_v52 = vpop.f32.mrb[50].mxu1 }
 0x1bd   : > { %v1901_v54 = vpop.f32.mrb[54].mxu0  ;;  %v2694_v47 = vadd.f32 %v2693_v7, %v1887_v26  ;;  %v2697_v25 = vadd.f32 %v1708_v52, %v3689_v30  ;;  %v1710_v28 = vpop.f32.mrb[51].mxu1 }
 0x1be   : > { %v1903_v50 = vpop.f32.mrb[55].mxu0  ;;  %2179 = vst [vmem:[%s3703_s24 + $0xb8] sm:$0xff] %v2558_v9  ;;  %v2696_v27 = vadd.f32 %v2695_v51, %v1889_v11  ;;  %v2699_v29 = vadd.f32 %v1710_v28, %v3693_v34 }
 0x1bf   : > { %v1964_v32 = vmax.f32 %v2694_v47, 0.0  ;;  %v2698_v56 = vadd.f32 %v2697_v25, %v1891_v43 }
 0x1c0   : > { %v1965_v58 = vmax.f32 %v2696_v27, 0.0  ;;  %v2700_v53 = vadd.f32 %v2699_v29, %v1893_v40 }
 0x1c1   : > { %v1966_v60 = vmax.f32 %v2698_v56, 0.0 }
 0x1c2   : > { %v2559_v55 = vpack.c.bf16 %v1965_v58, %v1964_v32  ;;  %v1967_v62 = vmax.f32 %v2700_v53, 0.0  ;;  %v1714_v0 = vpop.f32.mrb[52].mxu1 }
 0x1c3   : > { %v1907_v31 = vpop.f32.mrb[56].mxu0  ;;  %v2701_v33 = vadd.f32 %v1714_v0, %v3689_v30  ;;  %v1716_v4 = vpop.f32.mrb[53].mxu1 }
 0x1c4   : > { %v1909_v6 = vpop.f32.mrb[57].mxu0  ;;  %2180 = vst [vmem:[%s3703_s24 + $0xc0] sm:$0xff] %v2559_v55  ;;  %v2560_v35 = vpack.c.bf16 %v1967_v62, %v1966_v60  ;;  %v2703_v8 = vadd.f32 %v1716_v4, %v3693_v34  ;;  %v1718_v57 = vpop.f32.mrb[54].mxu1 }
 0x1c5   : > { %v1911_v10 = vpop.f32.mrb[58].mxu0  ;;  %v2702_v59 = vadd.f32 %v2701_v33, %v1897_v48  ;;  %v2705_v37 = vadd.f32 %v1718_v57, %v3689_v30  ;;  %v1720_v39 = vpop.f32.mrb[55].mxu1 }
 0x1c6   : > { %v1913_v41 = vpop.f32.mrb[59].mxu0  ;;  %2181 = vst [vmem:[%s3703_s24 + $0xc8] sm:$0xff] %v2560_v35  ;;  %v2704_v2 = vadd.f32 %v2703_v8, %v1899_v23  ;;  %v2707_v61 = vadd.f32 %v1720_v39, %v3693_v34 }
 0x1c7   : > { %v1968_v12 = vmax.f32 %v2702_v59, 0.0  ;;  %v2706_v63 = vadd.f32 %v2705_v37, %v1901_v54 }
 0x1c8   : > { %v1969_v22 = vmax.f32 %v2704_v2, 0.0  ;;  %v2708_v24 = vadd.f32 %v2707_v61, %v1903_v50 }
 0x1c9   : > { %v1970_v26 = vmax.f32 %v2706_v63, 0.0 }
 0x1ca   : > { %v2561_v5 = vpack.c.bf16 %v1969_v22, %v1968_v12  ;;  %v1971_v36 = vmax.f32 %v2708_v24, 0.0  ;;  %v1724_v11 = vpop.f32.mrb[56].mxu1 }
 0x1cb   : > { %v2709_v13 = vadd.f32 %v1724_v11, %v3689_v30  ;;  %v1726_v15 = vpop.f32.mrb[57].mxu1 }
 0x1cc   : > { %2182 = vst [vmem:[%s3703_s24 + $0xd0] sm:$0xff] %v2561_v5  ;;  %v2562_v18 = vpack.c.bf16 %v1971_v36, %v1970_v26  ;;  %v2711_v43 = vadd.f32 %v1726_v15, %v3693_v34  ;;  %v1728_v1 = vpop.f32.mrb[58].mxu1 }
 0x1cd   : > { %v2710_v38 = vadd.f32 %v2709_v13, %v1907_v31  ;;  %v2713_v45 = vadd.f32 %v1728_v1, %v3689_v30  ;;  %v1730_v40 = vpop.f32.mrb[59].mxu1 }
 0x1ce   : > { %2183 = vst [vmem:[%s3703_s24 + $0xd8] sm:$0xff] %v2562_v18  ;;  %v2712_v17 = vadd.f32 %v2711_v43, %v1909_v6  ;;  %v2715_v20 = vadd.f32 %v1730_v40, %v3693_v34 }
 0x1cf   : > { %v1972_v42 = vmax.f32 %v2710_v38, 0.0  ;;  %v2714_v3 = vadd.f32 %v2713_v45, %v1911_v10 }
 0x1d0   : > { %v1973_v44 = vmax.f32 %v2712_v17, 0.0  ;;  %v2716_v14 = vadd.f32 %v2715_v20, %v1913_v41 }
 0x1d1   : > { %v1974_v46 = vmax.f32 %v2714_v3, 0.0 }
 0x1d2   : > { %v2563_v16 = vpack.c.bf16 %v1973_v44, %v1972_v42  ;;  %v1975_v19 = vmax.f32 %v2716_v14, 0.0 }
 0x1d4   : > { %2184 = vst [vmem:[%s3703_s24 + $0xe0] sm:$0xff] %v2563_v16  ;;  %v2564_v21 = vpack.c.bf16 %v1975_v19, %v1974_v46 }
 0x1d6   : > { %2185 = vst [vmem:[%s3703_s24 + $0xe8] sm:$0xff] %v2564_v21 }
 0x1d7 PF: > { %s13_s14 = sadd.s32 1, %s3094_s14   ;;  %s3824_s12 = smov %s3090_s13 }
 0x1d8   : > { %p10_p5 = scmp.ge.s32.totalorder %s13_s14, 4   ;;  %s3825_s13 = smov %s3827_s15 }
 0x1da   :  { %12 = sbr.rel (!%p10_p5) target bundleno = 2 (0x2), region = 68 }

// kernel: inception_transfer_forward.26
= control target key start
LH: loop header
LB: loop body
LE: loop exit
PB: predicated region body
PF: predicated region fallthrough
CT: control target
= control target key end

     0   :  { %vm248_vm0 = vcmask 523264   ;;  %v55_v38 = vlaneseq  ;;  %s875_s1 = inlined_call_operand.vmem [shape: bf16[192,256], index: 1, kind: input, shape index: {}]   ;;  %s876_s0 = inlined_call_operand.vmem [shape: bf16[112,192], index: 0, kind: input, shape index: {}]   ;;  %s877_s2 = inlined_call_operand.vmem [shape: f32[1,256], index: 2, kind: input, shape index: {}]   ;;  %s878_s3 = inlined_call_operand.vmem [shape: bf16[112,256], index: 3, kind: output, shape index: {}]  }
   0x1   :  { %v600_v0 = vld [vmem:[%s875_s1 + $0x4] ss:$8 sps:$4 sm:$0xff]   ;;  %v602_v1 = vld [vmem:[%s875_s1] ss:$8 sps:$4 sm:$0xff]   ;;  %v603_v2 = vld [vmem:[%s875_s1 + $0x14] ss:$8 sps:$4 sm:$0xff]  }
   0x2   :  { %270 = vmatprep.subr.bf16.mxu0 %v600_v0  ;;  %576 = vmatprep.subr.bf16.mxu1 %v600_v0  ;;  %v605_v3 = vld [vmem:[%s875_s1 + $0x10] ss:$8 sps:$4 sm:$0xff]   ;;  %v606_v4 = vld [vmem:[%s875_s1 + $0x24] ss:$8 sps:$4 sm:$0xff]   ;;  %v608_v5 = vld [vmem:[%s875_s1 + $0x20] ss:$8 sps:$4 sm:$0xff]  }
   0x3   :  { %271 = vmatpush1.bf16.msra.mxu0 %v602_v1  ;;  %588 = vmatpush1.bf16.msra.mxu1 %v602_v1  ;;  %v609_v6 = vld [vmem:[%s875_s1 + $0x34] ss:$8 sps:$4 sm:$0xff]   ;;  %v611_v7 = vld [vmem:[%s875_s1 + $0x30] ss:$8 sps:$4 sm:$0xff]   ;;  %v612_v8 = vld [vmem:[%s875_s1 + $0x44] ss:$8 sps:$4 sm:$0xff]  }
   0x4   :  { %272 = vmatprep.subr.bf16.mxu0 %v603_v2  ;;  %577 = vmatprep.subr.bf16.mxu1 %v603_v2  ;;  %v614_v9 = vld [vmem:[%s875_s1 + $0x40] ss:$8 sps:$4 sm:$0xff]   ;;  %v615_v10 = vld [vmem:[%s875_s1 + $0x54] ss:$8 sps:$4 sm:$0xff]   ;;  %v638_v11 = vld [vmem:[%s876_s0 + $0x4] ss:$8 sps:$4 sm:$0xff]  }
   0x5   :  { %v641_v12 = vld [vmem:[%s876_s0 + $0x44] ss:$8 sps:$4 sm:$0xff]   ;;  %v617_v13 = vld [vmem:[%s875_s1 + $0x50] ss:$8 sps:$4 sm:$0xff]   ;;  %541 = vmatprep.mubr.msk.bf16.mxu0 %vm248_vm0, %v638_v11  ;;  %v620_v15 = vld [vmem:[%s875_s1 + $0x60] ss:$8 sps:$4 sm:$0xff]  }
   0x6   :  { %v618_v14 = vld [vmem:[%s875_s1 + $0x64] ss:$8 sps:$4 sm:$0xff]   ;;  %545 = vmatprep.mubr.msk.bf16.mxu1 %vm248_vm0, %v641_v12  ;;  %v621_v16 = vld [vmem:[%s875_s1 + $0x74] ss:$8 sps:$4 sm:$0xff]   ;;  %v623_v17 = vld [vmem:[%s875_s1 + $0x70] ss:$8 sps:$4 sm:$0xff]  }
   0x7   :  { %273 = vmatpush1.bf16.msra.mxu0 %v605_v3  ;;  %589 = vmatpush1.bf16.msra.mxu1 %v605_v3  ;;  %v624_v18 = vld [vmem:[%s875_s1 + $0x84] ss:$8 sps:$4 sm:$0xff]   ;;  %v626_v19 = vld [vmem:[%s875_s1 + $0x80] ss:$8 sps:$4 sm:$0xff]   ;;  %v627_v20 = vld [vmem:[%s875_s1 + $0x94] ss:$8 sps:$4 sm:$0xff]  }
   0x8   :  { %274 = vmatprep.subr.bf16.mxu0 %v606_v4  ;;  %578 = vmatprep.subr.bf16.mxu1 %v606_v4  ;;  %v629_v21 = vld [vmem:[%s875_s1 + $0x90] ss:$8 sps:$4 sm:$0xff]   ;;  %v630_v22 = vld [vmem:[%s875_s1 + $0xa4] ss:$8 sps:$4 sm:$0xff]   ;;  %v632_v23 = vld [vmem:[%s875_s1 + $0xa0] ss:$8 sps:$4 sm:$0xff]  }
   0x9   :  { %v633_v24 = vld [vmem:[%s875_s1 + $0xb4] ss:$8 sps:$4 sm:$0xff]   ;;  %v635_v25 = vld [vmem:[%s875_s1 + $0xb0] ss:$8 sps:$4 sm:$0xff]   ;;  %v636_v26 = vld [vmem:[%s876_s0] ss:$8 sps:$4 sm:$0xff]  }
   0xa   :  { %v639_v27 = vld [vmem:[%s876_s0 + $0x40] ss:$8 sps:$4 sm:$0xff]   ;;  %v642_v28 = vld [vmem:[%s876_s0 + $0x14] ss:$8 sps:$4 sm:$0xff]   ;;  %v644_v30 = vld [vmem:[%s876_s0 + $0x10] ss:$8 sps:$4 sm:$0xff]  }
   0xb   :  { %275 = vmatpush1.bf16.msra.mxu0 %v608_v5  ;;  %590 = vmatpush1.bf16.msra.mxu1 %v608_v5  ;;  %v645_v29 = vld [vmem:[%s876_s0 + $0x54] ss:$8 sps:$4 sm:$0xff]   ;;  %v647_v31 = vld [vmem:[%s876_s0 + $0x50] ss:$8 sps:$4 sm:$0xff]   ;;  %v648_v32 = vld [vmem:[%s876_s0 + $0x24] ss:$8 sps:$4 sm:$0xff]  }
   0xc   :  { %276 = vmatprep.subr.bf16.mxu0 %v609_v6  ;;  %579 = vmatprep.subr.bf16.mxu1 %v609_v6  ;;  %v651_v33 = vld [vmem:[%s876_s0 + $0x64] ss:$8 sps:$4 sm:$0xff]   ;;  %v650_v34 = vld [vmem:[%s876_s0 + $0x20] ss:$8 sps:$4 sm:$0xff]   ;;  %v654_v36 = vld [vmem:[%s876_s0 + $0x34] ss:$8 sps:$4 sm:$0xff]  }
   0xd   :  { %v653_v35 = vld [vmem:[%s876_s0 + $0x60] ss:$8 sps:$4 sm:$0xff]   ;;  %v656_v37 = vld [vmem:[%s876_s0 + $0x30] ss:$8 sps:$4 sm:$0xff]   ;;  %v56_v39 = vshrl.u32 %v55_v38, 7 }
   0xe   :  { %v53_v41 = vld [vmem:[%s877_s2] sm:$0x3] }
   0xf   :  { %277 = vmatpush1.bf16.msra.mxu0 %v611_v7  ;;  %591 = vmatpush1.bf16.msra.mxu1 %v611_v7  ;;  %v57_v40 = vsub.s32 0, %v56_v39  ;;  %v61_v42 = vsub.s32 1, %v56_v39 }
  0x10   :  { %278 = vmatprep.subr.bf16.mxu0 %v612_v8  ;;  %580 = vmatprep.subr.bf16.mxu1 %v612_v8 }
  0x11   :  { %v801_v43 = vrot.slane %v53_v41, %v57_v40  ;;  %v803_v44 = vrot.slane %v53_v41, %v61_v42 }
  0x13   :  { %279 = vmatpush1.bf16.msra.mxu0 %v614_v9  ;;  %592 = vmatpush1.bf16.msra.mxu1 %v614_v9 }
  0x14   :  { %280 = vmatprep.subr.bf16.mxu0 %v615_v10  ;;  %581 = vmatprep.subr.bf16.mxu1 %v615_v10 }
  0x17   :  { %281 = vmatpush1.bf16.msra.mxu0 %v617_v13  ;;  %593 = vmatpush1.bf16.msra.mxu1 %v617_v13 }
  0x18   :  { %282 = vmatprep.subr.bf16.mxu0 %v618_v14  ;;  %582 = vmatprep.subr.bf16.mxu1 %v618_v14 }
  0x1b   :  { %283 = vmatpush1.bf16.msra.mxu0 %v620_v15  ;;  %594 = vmatpush1.bf16.msra.mxu1 %v620_v15 }
  0x1c   :  { %284 = vmatprep.subr.bf16.mxu0 %v621_v16  ;;  %583 = vmatprep.subr.bf16.mxu1 %v621_v16 }
  0x1f   :  { %285 = vmatpush1.bf16.msra.mxu0 %v623_v17  ;;  %595 = vmatpush1.bf16.msra.mxu1 %v623_v17 }
  0x20   :  { %286 = vmatprep.subr.bf16.mxu0 %v624_v18  ;;  %584 = vmatprep.subr.bf16.mxu1 %v624_v18 }
  0x23   :  { %287 = vmatpush1.bf16.msra.mxu0 %v626_v19  ;;  %596 = vmatpush1.bf16.msra.mxu1 %v626_v19 }
  0x24   :  { %288 = vmatprep.subr.bf16.mxu0 %v627_v20  ;;  %585 = vmatprep.subr.bf16.mxu1 %v627_v20 }
  0x27   :  { %289 = vmatpush1.bf16.msra.mxu0 %v629_v21  ;;  %597 = vmatpush1.bf16.msra.mxu1 %v629_v21 }
  0x28   :  { %290 = vmatprep.subr.bf16.mxu0 %v630_v22  ;;  %586 = vmatprep.subr.bf16.mxu1 %v630_v22 }
  0x2b   :  { %291 = vmatpush1.bf16.msra.mxu0 %v632_v23  ;;  %598 = vmatpush1.bf16.msra.mxu1 %v632_v23 }
  0x2c   :  { %292 = vmatprep.subr.bf16.mxu0 %v633_v24  ;;  %587 = vmatprep.subr.bf16.mxu1 %v633_v24 }
  0x2f   :  { %293 = vmatpush1.bf16.msra.mxu0 %v635_v25  ;;  %599 = vmatpush1.bf16.msra.mxu1 %v635_v25 }
  0x32   :  { %303 = vmatmul.mubr.bf16.vlgmr.msra.gmra.mrb[0].mxu0 %v636_v26  ;;  %343 = vmatmul.mubr.bf16.vlgmr.msra.gmra.mrb[0].mxu1 %v639_v27 }
  0x33   :  { %542 = vmatprep.mubr.msk.bf16.mxu0 %vm248_vm0, %v642_v28  ;;  %546 = vmatprep.mubr.msk.bf16.mxu1 %vm248_vm0, %v645_v29 }
  0x3a   :  { %313 = vmatmul.mubr.bf16.gmra.mrb[4].mxu0 %v644_v30  ;;  %353 = vmatmul.mubr.bf16.gmra.mrb[4].mxu1 %v647_v31 }
  0x3b   :  { %543 = vmatprep.mubr.msk.bf16.mxu0 %vm248_vm0, %v648_v32  ;;  %547 = vmatprep.mubr.msk.bf16.mxu1 %vm248_vm0, %v651_v33 }
  0x42   :  { %323 = vmatmul.mubr.bf16.gmra.mrb[8].mxu0 %v650_v34  ;;  %363 = vmatmul.mubr.bf16.gmra.mrb[8].mxu1 %v653_v35 }
  0x43   :  { %544 = vmatprep.mubr.msk.bf16.mxu0 %vm248_vm0, %v654_v36 }
  0x4a   :  { %333 = vmatmul.mubr.bf16.gmra.mrb[12].mxu0 %v656_v37 }
 0x105   :  { %v304_v45 = vpop.f32.mrb[0].mxu0  ;;  %v344_v46 = vpop.f32.mrb[0].mxu1 }
 0x106   :  { %v305_v47 = vadd.f32 %v304_v45, %v801_v43  ;;  %v306_v48 = vpop.f32.mrb[1].mxu0  ;;  %v345_v49 = vadd.f32 %v344_v46, %v801_v43  ;;  %v346_v50 = vpop.f32.mrb[1].mxu1 }
 0x107   :  { %v307_v51 = vadd.f32 %v306_v48, %v803_v44  ;;  %v308_v52 = vpop.f32.mrb[2].mxu0  ;;  %v347_v53 = vadd.f32 %v346_v50, %v803_v44  ;;  %v348_v54 = vpop.f32.mrb[2].mxu1 }
 0x108   :  { %v373_v55 = vmax.f32 %v305_v47, 0.0  ;;  %v309_v56 = vadd.f32 %v308_v52, %v801_v43  ;;  %v310_v57 = vpop.f32.mrb[3].mxu0  ;;  %v389_v58 = vmax.f32 %v345_v49, 0.0  ;;  %v349_v59 = vadd.f32 %v348_v54, %v801_v43  ;;  %v350_v60 = vpop.f32.mrb[3].mxu1 }
 0x109   :  { %v374_v61 = vmax.f32 %v307_v51, 0.0  ;;  %v311_v62 = vadd.f32 %v310_v57, %v803_v44  ;;  %v390_v63 = vmax.f32 %v347_v53, 0.0  ;;  %v351_v0 = vadd.f32 %v350_v60, %v803_v44 }
 0x10a   :  { %v375_v1 = vmax.f32 %v309_v56, 0.0  ;;  %v391_v2 = vmax.f32 %v349_v59, 0.0 }
 0x10b   :  { %v562_v3 = vpack.c.bf16 %v374_v61, %v373_v55  ;;  %v376_v4 = vmax.f32 %v311_v62, 0.0  ;;  %v570_v5 = vpack.c.bf16 %v390_v63, %v389_v58  ;;  %v392_v6 = vmax.f32 %v351_v0, 0.0 }
 0x10d   :  { %485 = vst [vmem:[%s878_s3] sm:$0xff] %v562_v3  ;;  %v563_v7 = vpack.c.bf16 %v376_v4, %v375_v1  ;;  %493 = vst [vmem:[%s878_s3 + $0x40] sm:$0xff] %v570_v5  ;;  %v314_v8 = vpop.f32.mrb[4].mxu0  ;;  %v571_v9 = vpack.c.bf16 %v392_v6, %v391_v2  ;;  %v354_v10 = vpop.f32.mrb[4].mxu1 }
 0x10e   :  { %v315_v11 = vadd.f32 %v314_v8, %v801_v43  ;;  %v316_v12 = vpop.f32.mrb[5].mxu0  ;;  %v355_v13 = vadd.f32 %v354_v10, %v801_v43  ;;  %v356_v14 = vpop.f32.mrb[5].mxu1 }
 0x10f   :  { %486 = vst [vmem:[%s878_s3 + $0x8] sm:$0xff] %v563_v7  ;;  %494 = vst [vmem:[%s878_s3 + $0x48] sm:$0xff] %v571_v9  ;;  %v317_v15 = vadd.f32 %v316_v12, %v803_v44  ;;  %v318_v16 = vpop.f32.mrb[6].mxu0  ;;  %v357_v17 = vadd.f32 %v356_v14, %v803_v44  ;;  %v358_v18 = vpop.f32.mrb[6].mxu1 }
 0x110   :  { %v377_v19 = vmax.f32 %v315_v11, 0.0  ;;  %v319_v20 = vadd.f32 %v318_v16, %v801_v43  ;;  %v320_v21 = vpop.f32.mrb[7].mxu0  ;;  %v393_v22 = vmax.f32 %v355_v13, 0.0  ;;  %v359_v23 = vadd.f32 %v358_v18, %v801_v43  ;;  %v360_v24 = vpop.f32.mrb[7].mxu1 }
 0x111   :  { %v378_v25 = vmax.f32 %v317_v15, 0.0  ;;  %v321_v26 = vadd.f32 %v320_v21, %v803_v44  ;;  %v394_v27 = vmax.f32 %v357_v17, 0.0  ;;  %v361_v28 = vadd.f32 %v360_v24, %v803_v44 }
 0x112   :  { %v379_v29 = vmax.f32 %v319_v20, 0.0  ;;  %v395_v30 = vmax.f32 %v359_v23, 0.0 }
 0x113   :  { %v564_v31 = vpack.c.bf16 %v378_v25, %v377_v19  ;;  %v380_v32 = vmax.f32 %v321_v26, 0.0  ;;  %v572_v33 = vpack.c.bf16 %v394_v27, %v393_v22  ;;  %v396_v34 = vmax.f32 %v361_v28, 0.0 }
 0x115   :  { %487 = vst [vmem:[%s878_s3 + $0x10] sm:$0xff] %v564_v31  ;;  %v565_v35 = vpack.c.bf16 %v380_v32, %v379_v29  ;;  %495 = vst [vmem:[%s878_s3 + $0x50] sm:$0xff] %v572_v33  ;;  %v324_v36 = vpop.f32.mrb[8].mxu0  ;;  %v573_v37 = vpack.c.bf16 %v396_v34, %v395_v30  ;;  %v364_v38 = vpop.f32.mrb[8].mxu1 }
 0x116   :  { %v325_v39 = vadd.f32 %v324_v36, %v801_v43  ;;  %v326_v40 = vpop.f32.mrb[9].mxu0  ;;  %v365_v41 = vadd.f32 %v364_v38, %v801_v43  ;;  %v366_v42 = vpop.f32.mrb[9].mxu1 }
 0x117   :  { %488 = vst [vmem:[%s878_s3 + $0x18] sm:$0xff] %v565_v35  ;;  %496 = vst [vmem:[%s878_s3 + $0x58] sm:$0xff] %v573_v37  ;;  %v327_v45 = vadd.f32 %v326_v40, %v803_v44  ;;  %v328_v46 = vpop.f32.mrb[10].mxu0  ;;  %v367_v47 = vadd.f32 %v366_v42, %v803_v44  ;;  %v368_v48 = vpop.f32.mrb[10].mxu1 }
 0x118   :  { %v381_v49 = vmax.f32 %v325_v39, 0.0  ;;  %v329_v50 = vadd.f32 %v328_v46, %v801_v43  ;;  %v330_v51 = vpop.f32.mrb[11].mxu0  ;;  %v397_v52 = vmax.f32 %v365_v41, 0.0  ;;  %v369_v53 = vadd.f32 %v368_v48, %v801_v43  ;;  %v370_v54 = vpop.f32.mrb[11].mxu1 }
 0x119   :  { %v382_v55 = vmax.f32 %v327_v45, 0.0  ;;  %v331_v56 = vadd.f32 %v330_v51, %v803_v44  ;;  %v398_v57 = vmax.f32 %v367_v47, 0.0  ;;  %v371_v58 = vadd.f32 %v370_v54, %v803_v44 }
 0x11a   :  { %v383_v59 = vmax.f32 %v329_v50, 0.0  ;;  %v399_v60 = vmax.f32 %v369_v53, 0.0 }
 0x11b   :  { %v566_v61 = vpack.c.bf16 %v382_v55, %v381_v49  ;;  %v384_v62 = vmax.f32 %v331_v56, 0.0  ;;  %v574_v63 = vpack.c.bf16 %v398_v57, %v397_v52  ;;  %v400_v0 = vmax.f32 %v371_v58, 0.0 }
 0x11d   :  { %489 = vst [vmem:[%s878_s3 + $0x20] sm:$0xff] %v566_v61  ;;  %v567_v1 = vpack.c.bf16 %v384_v62, %v383_v59  ;;  %497 = vst [vmem:[%s878_s3 + $0x60] sm:$0xff] %v574_v63  ;;  %v334_v2 = vpop.f32.mrb[12].mxu0  ;;  %v575_v3 = vpack.c.bf16 %v400_v0, %v399_v60 }
 0x11e   :  { %v335_v4 = vadd.f32 %v334_v2, %v801_v43  ;;  %v336_v5 = vpop.f32.mrb[13].mxu0 }
 0x11f   :  { %490 = vst [vmem:[%s878_s3 + $0x28] sm:$0xff] %v567_v1  ;;  %498 = vst [vmem:[%s878_s3 + $0x68] sm:$0xff] %v575_v3  ;;  %v337_v6 = vadd.f32 %v336_v5, %v803_v44  ;;  %v338_v7 = vpop.f32.mrb[14].mxu0 }
 0x120   :  { %v385_v8 = vmax.f32 %v335_v4, 0.0  ;;  %v339_v9 = vadd.f32 %v338_v7, %v801_v43  ;;  %v340_v10 = vpop.f32.mrb[15].mxu0 }
 0x121   :  { %v386_v11 = vmax.f32 %v337_v6, 0.0  ;;  %v341_v12 = vadd.f32 %v340_v10, %v803_v44 }
 0x122   :  { %v387_v13 = vmax.f32 %v339_v9, 0.0 }
 0x123   :  { %v568_v14 = vpack.c.bf16 %v386_v11, %v385_v8  ;;  %v388_v15 = vmax.f32 %v341_v12, 0.0 }
 0x125   :  { %491 = vst [vmem:[%s878_s3 + $0x30] sm:$0xff] %v568_v14  ;;  %v569_v16 = vpack.c.bf16 %v388_v15, %v387_v13 }
 0x127   :  { %492 = vst [vmem:[%s878_s3 + $0x38] sm:$0xff] %v569_v16 }

// kernel: inception_transfer_forward.27
= control target key start
LH: loop header
LB: loop body
LE: loop exit
PB: predicated region body
PF: predicated region fallthrough
CT: control target
= control target key end

     0   :  { %vm1035_vm0 = vcmask 392192   ;;  %s2821_s1 = inlined_call_operand.vmem [shape: bf16[1200,128], index: 1, kind: input, shape index: {}]   ;;  %s2822_s0 = inlined_call_operand.vmem [shape: bf16[112,1200], index: 0, kind: input, shape index: {}]   ;;  %s2823_s2 = inlined_call_operand.vmem [shape: f32[1,128], index: 2, kind: input, shape index: {}]   ;;  %s2824_s3 = inlined_call_operand.vmem [shape: bf16[112,128], index: 3, kind: output, shape index: {}]  }
   0x1   :  { %v2061_v0 = vld [vmem:[%s2821_s1 + $0x40] sm:$0xff]   ;;  %v2063_v2 = vld [vmem:[%s2821_s1 + $0x48] sm:$0xff]   ;;  %v2065_v4 = vld [vmem:[%s2821_s1 + $0x50] sm:$0xff]  }
   0x2   :  { %v2062_v1 = vld [vmem:[%s2821_s1] sm:$0xff]   ;;  %2044 = vmatprep.subr.bf16.mxu1 %v2061_v0  ;;  %1812 = vmatprep.subr.bf16.mxu0 %v2061_v0  ;;  %v2064_v3 = vld [vmem:[%s2821_s1 + $0x8] sm:$0xff]   ;;  %v2066_v5 = vld [vmem:[%s2821_s1 + $0x10] sm:$0xff]  }
   0x3   :  { %2052 = vmatpush3.bf16.msra.mxu1 %v2062_v1  ;;  %1813 = vmatpush3.bf16.msra.mxu0 %v2062_v1  ;;  %v2067_v6 = vld [vmem:[%s2821_s1 + $0x58] sm:$0xff]   ;;  %v2069_v8 = vld [vmem:[%s2821_s1 + $0x60] sm:$0xff]   ;;  %v2071_v10 = vld [vmem:[%s2821_s1 + $0x68] sm:$0xff]  }
   0x4   :  { %2045 = vmatprep.subr.bf16.mxu1 %v2063_v2  ;;  %1814 = vmatprep.subr.bf16.mxu0 %v2063_v2  ;;  %v2068_v7 = vld [vmem:[%s2821_s1 + $0x18] sm:$0xff]   ;;  %v2070_v9 = vld [vmem:[%s2821_s1 + $0x20] sm:$0xff]   ;;  %v2072_v12 = vld [vmem:[%s2821_s1 + $0x28] sm:$0xff]  }
   0x5   :  { %v2079_v11 = vld [vmem:[%s2822_s0 + $0x144] ss:$40 sps:$4 sm:$0xff]   ;;  %v2073_v14 = vld [vmem:[%s2821_s1 + $0x70] sm:$0xff]   ;;  %v2075_v16 = vld [vmem:[%s2821_s1 + $0x78] sm:$0xff]  }
   0x6   :  { %v2083_v13 = vld [vmem:[%s2822_s0 + $0x4] ss:$40 sps:$4 sm:$0xff]   ;;  %1121 = vmatprep.mubr.bf16.mxu1 %v2079_v11  ;;  %v2074_v15 = vld [vmem:[%s2821_s1 + $0x30] sm:$0xff]   ;;  %v2076_v17 = vld [vmem:[%s2821_s1 + $0x38] sm:$0xff]  }
   0x7   :  { %2053 = vmatpush3.bf16.msra.mxu1 %v2064_v3  ;;  %1815 = vmatpush3.bf16.msra.mxu0 %v2064_v3  ;;  %v2080_v18 = vld [vmem:[%s2821_s1 + $0xc0] sm:$0xff]   ;;  %v2087_v24 = vld [vmem:[%s2821_s1 + $0xc8] sm:$0xff]   ;;  %v2092_v26 = vld [vmem:[%s2822_s0 + $0x54] ss:$40 sps:$4 sm:$0xff]  }
   0x8   :  { %2046 = vmatprep.subr.bf16.mxu1 %v2065_v4  ;;  %1816 = vmatprep.subr.bf16.mxu0 %v2065_v4  ;;  %v2077_v19 = vld [vmem:[%s2822_s0 + $0x140] ss:$40 sps:$4 sm:$0xff]   ;;  %v2099_v28 = vld [vmem:[%s2822_s0 + $0x194] ss:$40 sps:$4 sm:$0xff]   ;;  %v2095_v33 = vld [vmem:[%s2822_s0 + $0x50] ss:$40 sps:$4 sm:$0xff]  }
   0x9   :  { %1089 = vmatprep.mubr.bf16.mxu0 %v2083_v13  ;;  %v2081_v20 = vld [vmem:[%s2822_s0] ss:$40 sps:$4 sm:$0xff]   ;;  %v2091_v30 = vld [vmem:[%s2821_s1 + $0xd0] sm:$0xff]   ;;  %v2098_v36 = vld [vmem:[%s2821_s1 + $0xd8] sm:$0xff]  }
   0xa   :  { %v2085_v21 = vld [vmem:[%s2821_s1 + $0x140] sm:$0xff]   ;;  %v2089_v25 = vld [vmem:[%s2821_s1 + $0x148] sm:$0xff]   ;;  %v2096_v31 = vld [vmem:[%s2821_s1 + $0x150] sm:$0xff]  }
   0xb   :  { %2054 = vmatpush3.bf16.msra.mxu1 %v2066_v5  ;;  %1817 = vmatpush3.bf16.msra.mxu0 %v2066_v5  ;;  %v2084_v22 = vld [vmem:[%s2821_s1 + $0x80] sm:$0xff]   ;;  %v2088_v27 = vld [vmem:[%s2821_s1 + $0x88] sm:$0xff]   ;;  %v2094_v32 = vld [vmem:[%s2821_s1 + $0x90] sm:$0xff]  }
   0xc   :  { %2047 = vmatprep.subr.bf16.mxu1 %v2067_v6  ;;  %1818 = vmatprep.subr.bf16.mxu0 %v2067_v6  ;;  %v2086_v23 = vld [vmem:[%s2821_s1 + $0x100] sm:$0xff]   ;;  %v2090_v29 = vld [vmem:[%s2821_s1 + $0x108] sm:$0xff]   ;;  %v2102_v34 = vld [vmem:[%s2822_s0 + $0x190] ss:$40 sps:$4 sm:$0xff]   ;;  %v2241_v6 = vmov 0  }
   0xd   :  { %v2097_v35 = vld [vmem:[%s2821_s1 + $0x110] sm:$0xff]   ;;  %v2103_v37 = vld [vmem:[%s2821_s1 + $0x158] sm:$0xff]   ;;  %v2106_v40 = vld [vmem:[%s2822_s0 + $0xa4] ss:$40 sps:$4 sm:$0xff]  }
   0xe   :  { %v2101_v38 = vld [vmem:[%s2821_s1 + $0x98] sm:$0xff]   ;;  %v2105_v41 = vld [vmem:[%s2821_s1 + $0xe0] sm:$0xff]   ;;  %v2112_v48 = vld [vmem:[%s2821_s1 + $0xe8] sm:$0xff]  }
   0xf   :  { %2055 = vmatpush3.bf16.msra.mxu1 %v2068_v7  ;;  %1819 = vmatpush3.bf16.msra.mxu0 %v2068_v7  ;;  %v2104_v39 = vld [vmem:[%s2821_s1 + $0x118] sm:$0xff]   ;;  %v2110_v42 = vld [vmem:[%s2821_s1 + $0x160] sm:$0xff]   ;;  %v2117_v49 = vld [vmem:[%s2821_s1 + $0x168] sm:$0xff]  }
  0x10   :  { %2048 = vmatprep.subr.bf16.mxu1 %v2069_v8  ;;  %1820 = vmatprep.subr.bf16.mxu0 %v2069_v8  ;;  %v2113_v43 = vld [vmem:[%s2822_s0 + $0x1e4] ss:$40 sps:$4 sm:$0xff]   ;;  %v2109_v45 = vld [vmem:[%s2822_s0 + $0xa0] ss:$40 sps:$4 sm:$0xff]   ;;  %v2120_v51 = vld [vmem:[%s2822_s0 + $0xf4] ss:$40 sps:$4 sm:$0xff]  }
  0x11   :  { %v2108_v44 = vld [vmem:[%s2821_s1 + $0xa0] sm:$0xff]   ;;  %v2115_v50 = vld [vmem:[%s2821_s1 + $0xa8] sm:$0xff]   ;;  %v2119_v53 = vld [vmem:[%s2821_s1 + $0xf0] sm:$0xff]  }
  0x12   :  { %v2111_v46 = vld [vmem:[%s2821_s1 + $0x120] sm:$0xff]   ;;  %v2118_v52 = vld [vmem:[%s2821_s1 + $0x128] sm:$0xff]   ;;  %v2124_v54 = vld [vmem:[%s2821_s1 + $0x170] sm:$0xff]  }
  0x13   :  { %2056 = vmatpush3.bf16.msra.mxu1 %v2070_v9  ;;  %1821 = vmatpush3.bf16.msra.mxu0 %v2070_v9  ;;  %v2116_v47 = vld [vmem:[%s2822_s0 + $0x1e0] ss:$40 sps:$4 sm:$0xff]   ;;  %v2122_v55 = vld [vmem:[%s2821_s1 + $0xb0] sm:$0xff]   ;;  %v2126_v58 = vld [vmem:[%s2821_s1 + $0xf8] sm:$0xff]  }
  0x14   :  { %2049 = vmatprep.subr.bf16.mxu1 %v2071_v10  ;;  %1822 = vmatprep.subr.bf16.mxu0 %v2071_v10  ;;  %v2123_v56 = vld [vmem:[%s2822_s0 + $0xf0] ss:$40 sps:$4 sm:$0xff]   ;;  %v2131_v61 = vld [vmem:[%s2822_s0 + $0xc] ss:$40 sps:$4 sm:$0xff]   ;;  %v2133_v63 = vld [vmem:[%s2821_s1 + $0x1c0] sm:$0xff]  }
  0x15   :  { %v2125_v57 = vld [vmem:[%s2821_s1 + $0x130] sm:$0xff]   ;;  %v2128_v59 = vld [vmem:[%s2821_s1 + $0x178] sm:$0xff]   ;;  %v2137_v3 = vld [vmem:[%s2821_s1 + $0x180] sm:$0xff]  }
  0x16   :  { %v2127_v60 = vld [vmem:[%s2821_s1 + $0xb8] sm:$0xff]   ;;  %v2129_v0 = vld [vmem:[%s2822_s0 + $0x8] ss:$40 sps:$4 sm:$0xff]   ;;  %v2138_v4 = vld [vmem:[%s2821_s1 + $0x200] sm:$0xff]  }
  0x17   :  { %2057 = vmatpush3.bf16.msra.mxu1 %v2072_v12  ;;  %1823 = vmatpush3.bf16.msra.mxu0 %v2072_v12  ;;  %v2132_v62 = vld [vmem:[%s2821_s1 + $0x138] sm:$0xff]   ;;  %v2141_v7 = vld [vmem:[%s2821_s1 + $0x1c8] sm:$0xff]   ;;  %v2148_v12 = vld [vmem:[%s2821_s1 + $0x1d0] sm:$0xff]  }
  0x18   :  { %2050 = vmatprep.subr.bf16.mxu1 %v2073_v14  ;;  %1824 = vmatprep.subr.bf16.mxu0 %v2073_v14  ;;  %v2134_v1 = vld [vmem:[%s2822_s0 + $0x10] ss:$40 sps:$4 sm:$0xff]   ;;  %v2136_v2 = vld [vmem:[%s2822_s0 + $0x14] ss:$40 sps:$4 sm:$0xff]   ;;  %v2143_v8 = vld [vmem:[%s2821_s1 + $0x188] sm:$0xff]  }
  0x19   :  { %v2139_v5 = vld [vmem:[%s2822_s0 + $0x5c] ss:$40 sps:$4 sm:$0xff]   ;;  %v2142_v10 = vld [vmem:[%s2822_s0 + $0x58] ss:$40 sps:$4 sm:$0xff]   ;;  %v2147_v11 = vld [vmem:[%s2821_s1 + $0x208] sm:$0xff]  }
  0x1a   :  { %v2144_v9 = vld [vmem:[%s2822_s0 + $0x64] ss:$40 sps:$4 sm:$0xff]   ;;  %v2146_v13 = vld [vmem:[%s2822_s0 + $0x60] ss:$40 sps:$4 sm:$0xff]  }
  0x1b   :  { %2058 = vmatpush3.bf16.msra.mxu1 %v2074_v15  ;;  %1825 = vmatpush3.bf16.msra.mxu0 %v2074_v15  ;;  %v2149_v14 = vld [vmem:[%s2822_s0 + $0xac] ss:$40 sps:$4 sm:$0xff]  }
  0x1c   :  { %2051 = vmatprep.subr.bf16.mxu1 %v2075_v16  ;;  %1826 = vmatprep.subr.bf16.mxu0 %v2075_v16  ;;  %v2151_v15 = vld [vmem:[%s2821_s1 + $0x190] sm:$0xff]  }
  0x1d   :  { %v2153_v16 = vld [vmem:[%s2822_s0 + $0xb4] ss:$40 sps:$4 sm:$0xff]  }
  0x1f   :  { %2059 = vmatpush3.bf16.msra.mxu1 %v2076_v17  ;;  %1827 = vmatpush3.bf16.msra.mxu0 %v2076_v17  ;;  %v2155_v17 = vld [vmem:[%s2821_s1 + $0x210] sm:$0xff]  }
  0x20   :  { %1870 = vmatprep.subr.bf16.mxu1 %v2080_v18  ;;  %1928 = vmatprep.subr.bf16.mxu0 %v2085_v21  ;;  %v2157_v18 = vld [vmem:[%s2821_s1 + $0x1d8] sm:$0xff]   ;;  %v2152_v21 = vld [vmem:[%s2822_s0 + $0xa8] ss:$40 sps:$4 sm:$0xff]  }
  0x22   :  { %1122 = vmatmul.mubr.bf16.vlgmr.msra.gmra.mrb[0].mxu1 %v2077_v19  ;;  %1090 = vmatmul.mubr.bf16.vlgmr.msra.gmra.mrb[0].mxu0 %v2081_v20  ;;  %v2158_v19 = vld [vmem:[%s2821_s1 + $0x198] sm:$0xff]  }
  0x23   :  { %1871 = vmatpush3.bf16.msra.mxu1 %v2084_v22  ;;  %1929 = vmatpush3.bf16.msra.mxu0 %v2086_v23  ;;  %v2159_v20 = vld [vmem:[%s2821_s1 + $0x218] sm:$0xff]  }
  0x24   :  { %1872 = vmatprep.subr.bf16.mxu1 %v2087_v24  ;;  %1930 = vmatprep.subr.bf16.mxu0 %v2089_v25  ;;  %v2156_v22 = vld [vmem:[%s2822_s0 + $0xb0] ss:$40 sps:$4 sm:$0xff]   ;;  %v2160_v23 = vld [vmem:[%s2822_s0 + $0xfc] ss:$40 sps:$4 sm:$0xff]  }
  0x25   :  { %1097 = vmatprep.mubr.bf16.mxu0 %v2092_v26  ;;  %1129 = vmatprep.mubr.bf16.mxu1 %v2099_v28  ;;  %v2163_v24 = vld [vmem:[%s2822_s0 + $0x104] ss:$40 sps:$4 sm:$0xff]   ;;  %v2162_v28 = vld [vmem:[%s2822_s0 + $0xf8] ss:$40 sps:$4 sm:$0xff]  }
  0x26   :  { %v2166_v25 = vld [vmem:[%s2821_s1 + $0x220] sm:$0xff]  }
  0x27   :  { %1873 = vmatpush3.bf16.msra.mxu1 %v2088_v27  ;;  %1931 = vmatpush3.bf16.msra.mxu0 %v2090_v29  ;;  %v2167_v26 = vld [vmem:[%s2821_s1 + $0x1e0] sm:$0xff]  }
  0x28   :  { %1874 = vmatprep.subr.bf16.mxu1 %v2091_v30  ;;  %1932 = vmatprep.subr.bf16.mxu0 %v2096_v31  ;;  %v2168_v27 = vld [vmem:[%s2821_s1 + $0x1a0] sm:$0xff]   ;;  %v2172_v30 = vld [vmem:[%s2821_s1 + $0x228] sm:$0xff]  }
  0x29   :  { %v2165_v29 = vld [vmem:[%s2822_s0 + $0x100] ss:$40 sps:$4 sm:$0xff]   ;;  %v2169_v31 = vld [vmem:[%s2822_s0 + $0x14c] ss:$40 sps:$4 sm:$0xff]  }
  0x2a   :  { %1098 = vmatmul.mubr.bf16.gmra.mrb[4].mxu0 %v2095_v33  ;;  %1130 = vmatmul.mubr.bf16.gmra.mrb[4].mxu1 %v2102_v34  ;;  %v2176_v33 = vld [vmem:[%s2821_s1 + $0x1e8] sm:$0xff]  }
  0x2b   :  { %1875 = vmatpush3.bf16.msra.mxu1 %v2094_v32  ;;  %1933 = vmatpush3.bf16.msra.mxu0 %v2097_v35  ;;  %v2173_v32 = vld [vmem:[%s2822_s0 + $0x154] ss:$40 sps:$4 sm:$0xff]   ;;  %v2177_v34 = vld [vmem:[%s2821_s1 + $0x1a8] sm:$0xff]  }
  0x2c   :  { %1876 = vmatprep.subr.bf16.mxu1 %v2098_v36  ;;  %1934 = vmatprep.subr.bf16.mxu0 %v2103_v37  ;;  %v2178_v35 = vld [vmem:[%s2821_s1 + $0x230] sm:$0xff]  }
  0x2d   :  { %1105 = vmatprep.mubr.bf16.mxu0 %v2106_v40  ;;  %1137 = vmatprep.mubr.bf16.mxu1 %v2113_v43  ;;  %v2171_v36 = vld [vmem:[%s2822_s0 + $0x148] ss:$40 sps:$4 sm:$0xff]   ;;  %v2190_v43 = vld [vmem:[%s2821_s1 + $0x240] sm:$0xff]  }
  0x2e   :  { %v2175_v37 = vld [vmem:[%s2822_s0 + $0x150] ss:$40 sps:$4 sm:$0xff]  }
  0x2f   :  { %1877 = vmatpush3.bf16.msra.mxu1 %v2101_v38  ;;  %1935 = vmatpush3.bf16.msra.mxu0 %v2104_v39  ;;  %v2179_v38 = vld [vmem:[%s2822_s0 + $0x19c] ss:$40 sps:$4 sm:$0xff]   ;;  %v2185_v40 = vld [vmem:[%s2821_s1 + $0x1f0] sm:$0xff]  }
  0x30   :  { %1878 = vmatprep.subr.bf16.mxu1 %v2105_v41  ;;  %1936 = vmatprep.subr.bf16.mxu0 %v2110_v42  ;;  %v2182_v39 = vld [vmem:[%s2822_s0 + $0x1a4] ss:$40 sps:$4 sm:$0xff]   ;;  %v2186_v41 = vld [vmem:[%s2821_s1 + $0x238] sm:$0xff]   ;;  %v2187_v42 = vld [vmem:[%s2821_s1 + $0x1b0] sm:$0xff]  }
  0x32   :  { %1106 = vmatmul.mubr.bf16.gmra.mrb[8].mxu0 %v2109_v45  ;;  %1138 = vmatmul.mubr.bf16.gmra.mrb[8].mxu1 %v2116_v47  ;;  %v2181_v45 = vld [vmem:[%s2822_s0 + $0x198] ss:$40 sps:$4 sm:$0xff]  }
  0x33   :  { %1879 = vmatpush3.bf16.msra.mxu1 %v2108_v44  ;;  %1937 = vmatpush3.bf16.msra.mxu0 %v2111_v46  ;;  %v2194_v44 = vld [vmem:[%s2821_s1 + $0x1f8] sm:$0xff]   ;;  %v2184_v46 = vld [vmem:[%s2822_s0 + $0x1a0] ss:$40 sps:$4 sm:$0xff]  }
  0x34   :  { %1880 = vmatprep.subr.bf16.mxu1 %v2112_v48  ;;  %1938 = vmatprep.subr.bf16.mxu0 %v2117_v49  ;;  %v2196_v47 = vld [vmem:[%s2821_s1 + $0x1b8] sm:$0xff]   ;;  %v2197_v48 = vld [vmem:[%s2821_s1 + $0x248] sm:$0xff]  }
  0x35   :  { %1113 = vmatprep.mubr.bf16.mxu0 %v2120_v51  ;;  %1178 = vmatprep.mubr.bf16.mxu1 %v2131_v61  ;;  %v2188_v49 = vld [vmem:[%s2822_s0 + $0x1ec] ss:$40 sps:$4 sm:$0xff]   ;;  %v2210_v61 = vld [vmem:[%s2822_s0 + $0x70] ss:$40 sps:$4 sm:$0xff]  }
  0x36   :  { %v2201_v51 = vld [vmem:[%s2821_s1 + $0x250] sm:$0xff]  }
  0x37   :  { %1881 = vmatpush3.bf16.msra.mxu1 %v2115_v50  ;;  %1939 = vmatpush3.bf16.msra.mxu0 %v2118_v52  ;;  %v2192_v50 = vld [vmem:[%s2822_s0 + $0x1f4] ss:$40 sps:$4 sm:$0xff]   ;;  %v2191_v52 = vld [vmem:[%s2822_s0 + $0x1e8] ss:$40 sps:$4 sm:$0xff]  }
  0x38   :  { %1882 = vmatprep.subr.bf16.mxu1 %v2119_v53  ;;  %1940 = vmatprep.subr.bf16.mxu0 %v2124_v54  ;;  %v2195_v53 = vld [vmem:[%s2822_s0 + $0x1f0] ss:$40 sps:$4 sm:$0xff]   ;;  %v2200_v54 = vld [vmem:[%s2822_s0 + $0x1c] ss:$40 sps:$4 sm:$0xff]  }
  0x3a   :  { %1114 = vmatmul.mubr.bf16.gmra.mrb[12].mxu0 %v2123_v56  ;;  %v2198_v56 = vld [vmem:[%s2822_s0 + $0x18] ss:$40 sps:$4 sm:$0xff]  }
  0x3b   :  { %1883 = vmatpush3.bf16.msra.mxu1 %v2122_v55  ;;  %1941 = vmatpush3.bf16.msra.mxu0 %v2125_v57  ;;  %v2204_v55 = vld [vmem:[%s2822_s0 + $0x24] ss:$40 sps:$4 sm:$0xff]   ;;  %v2202_v57 = vld [vmem:[%s2822_s0 + $0x20] ss:$40 sps:$4 sm:$0xff]  }
  0x3c   :  { %1884 = vmatprep.subr.bf16.mxu1 %v2126_v58  ;;  %1942 = vmatprep.subr.bf16.mxu0 %v2128_v59  ;;  %v2205_v58 = vld [vmem:[%s2822_s0 + $0x6c] ss:$40 sps:$4 sm:$0xff]  }
  0x3d   :  { %1267 = vmatprep.mubr.bf16.mxu0 %v2136_v2  ;;  %v2208_v59 = vld [vmem:[%s2822_s0 + $0x74] ss:$40 sps:$4 sm:$0xff]  }
  0x3e   :  { %v2217_v2 = vld [vmem:[%s2822_s0 + $0x10c] ss:$40 sps:$4 sm:$0xff]  }
  0x3f   :  { %1885 = vmatpush3.bf16.msra.mxu1 %v2127_v60  ;;  %1943 = vmatpush3.bf16.msra.mxu0 %v2132_v62  ;;  %v2207_v60 = vld [vmem:[%s2822_s0 + $0x68] ss:$40 sps:$4 sm:$0xff]   ;;  %v2211_v62 = vld [vmem:[%s2822_s0 + $0xbc] ss:$40 sps:$4 sm:$0xff]  }
  0x40   :  { %1986 = vmatprep.subr.bf16.mxu1 %v2133_v63  ;;  %1413 = vmatprep.subr.bf16.mxu0 %v2241_v6  ;;  %v2214_v63 = vld [vmem:[%s2822_s0 + $0xc4] ss:$40 sps:$4 sm:$0xff]  }
  0x42   :  { %1179 = vmatmul.mubr.bf16.vlgmr.msra.gmra.mrb[12].mxu1 %v2129_v0  ;;  %1268 = vmatmul.mubr.bf16.vlgmr.msra.gmra.mrb[16].mxu0 %v2134_v1  ;;  %v2213_v0 = vld [vmem:[%s2822_s0 + $0xb8] ss:$40 sps:$4 sm:$0xff]  }
  0x43   :  { %1987 = vmatpush3.bf16.msra.mxu1 %v2137_v3  ;;  %1414 = vmatpush1.bf16.msra.mxu0 %v2138_v4  ;;  %v2216_v1 = vld [vmem:[%s2822_s0 + $0xc0] ss:$40 sps:$4 sm:$0xff]   ;;  %v2220_v3 = vld [vmem:[%s2822_s0 + $0x114] ss:$40 sps:$4 sm:$0xff]  }
  0x44   :  { %1186 = vmatprep.mubr.bf16.mxu1 %v2139_v5  ;;  %1988 = vmatprep.subr.bf16.mxu1 %v2141_v7  ;;  %v2219_v4 = vld [vmem:[%s2822_s0 + $0x108] ss:$40 sps:$4 sm:$0xff]   ;;  %v2226_v7 = vld [vmem:[%s2822_s0 + $0x164] ss:$40 sps:$4 sm:$0xff]  }
  0x45   :  { %1275 = vmatprep.mubr.bf16.mxu0 %v2144_v9  ;;  %1415 = vmatprep.subr.bf16.mxu0 %v2241_v6  ;;  %v2222_v5 = vld [vmem:[%s2822_s0 + $0x110] ss:$40 sps:$4 sm:$0xff]   ;;  %v2228_v9 = vld [vmem:[%s2822_s0 + $0x160] ss:$40 sps:$4 sm:$0xff]  }
  0x47   :  { %1989 = vmatpush3.bf16.msra.mxu1 %v2143_v8  ;;  %1416 = vmatpush1.bf16.msra.mxu0 %v2147_v11  ;;  %v2225_v8 = vld [vmem:[%s2822_s0 + $0x158] ss:$40 sps:$4 sm:$0xff]   ;;  %v2232_v11 = vld [vmem:[%s2822_s0 + $0x1b4] ss:$40 sps:$4 sm:$0xff]  }
  0x48   :  { %1990 = vmatprep.subr.bf16.mxu1 %v2148_v12  ;;  %1417 = vmatprep.subr.bf16.mxu0 %v2241_v6  ;;  %v2231_v12 = vld [vmem:[%s2822_s0 + $0x1a8] ss:$40 sps:$4 sm:$0xff]  }
  0x4a   :  { %1187 = vmatmul.mubr.bf16.gmra.mrb[16].mxu1 %v2142_v10  ;;  %1276 = vmatmul.mubr.bf16.gmra.mrb[20].mxu0 %v2146_v13  ;;  %v2229_v10 = vld [vmem:[%s2822_s0 + $0x1ac] ss:$40 sps:$4 sm:$0xff]   ;;  %v2234_v13 = vld [vmem:[%s2822_s0 + $0x1b0] ss:$40 sps:$4 sm:$0xff]  }
  0x4b   :  { %1194 = vmatprep.mubr.bf16.mxu1 %v2149_v14  ;;  %1991 = vmatpush3.bf16.msra.mxu1 %v2151_v15  ;;  %v2235_v14 = vld [vmem:[%s2822_s0 + $0x1fc] ss:$40 sps:$4 sm:$0xff]  }
  0x4c   :  { %1283 = vmatprep.mubr.bf16.mxu0 %v2153_v16  ;;  %1418 = vmatpush1.bf16.msra.mxu0 %v2155_v17  ;;  %v2238_v15 = vld [vmem:[%s2822_s0 + $0x204] ss:$40 sps:$4 sm:$0xff]   ;;  %v2237_v16 = vld [vmem:[%s2822_s0 + $0x1f8] ss:$40 sps:$4 sm:$0xff]  }
  0x4d   :  { %1992 = vmatprep.subr.bf16.mxu1 %v2157_v18  ;;  %1419 = vmatprep.subr.bf16.mxu0 %v2241_v6  ;;  %v2240_v17 = vld [vmem:[%s2822_s0 + $0x200] ss:$40 sps:$4 sm:$0xff]  }
  0x4f   :  { %1993 = vmatpush3.bf16.msra.mxu1 %v2158_v19 }
  0x50   :  { %1420 = vmatpush1.bf16.msra.mxu0 %v2159_v20  ;;  %1994 = vmatprep.subr.bf16.mxu1 %v2167_v26 }
  0x51   :  { %1421 = vmatprep.subr.bf16.mxu0 %v2241_v6 }
  0x52   :  { %1195 = vmatmul.mubr.bf16.gmra.mrb[20].mxu1 %v2152_v21  ;;  %1284 = vmatmul.mubr.bf16.gmra.mrb[24].mxu0 %v2156_v22 }
  0x53   :  { %1202 = vmatprep.mubr.bf16.mxu1 %v2160_v23  ;;  %1291 = vmatprep.mubr.bf16.mxu0 %v2163_v24 }
  0x54   :  { %1422 = vmatpush1.bf16.msra.mxu0 %v2166_v25  ;;  %1995 = vmatpush3.bf16.msra.mxu1 %v2168_v27 }
  0x55   :  { %1423 = vmatprep.subr.bf16.mxu0 %v2241_v6  ;;  %1996 = vmatprep.subr.bf16.mxu1 %v2176_v33 }
  0x58   :  { %1424 = vmatpush1.bf16.msra.mxu0 %v2172_v30  ;;  %1997 = vmatpush3.bf16.msra.mxu1 %v2177_v34 }
  0x59   :  { %1425 = vmatprep.subr.bf16.mxu0 %v2241_v6  ;;  %1998 = vmatprep.subr.bf16.mxu1 %v2185_v40 }
  0x5a   :  { %1203 = vmatmul.mubr.bf16.gmra.mrb[24].mxu1 %v2162_v28  ;;  %1292 = vmatmul.mubr.bf16.gmra.mrb[28].mxu0 %v2165_v29 }
  0x5b   :  { %1210 = vmatprep.mubr.bf16.mxu1 %v2169_v31  ;;  %1299 = vmatprep.mubr.bf16.mxu0 %v2173_v32 }
  0x5c   :  { %1426 = vmatpush1.bf16.msra.mxu0 %v2178_v35  ;;  %1999 = vmatpush3.bf16.msra.mxu1 %v2187_v42 }
  0x5d   :  { %1427 = vmatprep.subr.bf16.mxu0 %v2241_v6  ;;  %2000 = vmatprep.subr.bf16.mxu1 %v2194_v44 }
  0x60   :  { %1428 = vmatpush1.bf16.msra.mxu0 %v2186_v41  ;;  %2001 = vmatpush3.bf16.msra.mxu1 %v2196_v47 }
  0x61   :  { %1429 = vmatprep.subr.bf16.mxu0 %v2241_v6 }
  0x62   :  { %1211 = vmatmul.mubr.bf16.gmra.mrb[28].mxu1 %v2171_v36  ;;  %1300 = vmatmul.mubr.bf16.gmra.mrb[32].mxu0 %v2175_v37 }
  0x63   :  { %1218 = vmatprep.mubr.bf16.mxu1 %v2179_v38  ;;  %1307 = vmatprep.mubr.bf16.mxu0 %v2182_v39 }
  0x64   :  { %1430 = vmatpush1.bf16.msra.mxu0 %v2190_v43 }
  0x65   :  { %1431 = vmatprep.subr.bf16.mxu0 %v2241_v6 }
  0x68   :  { %1432 = vmatpush1.bf16.msra.mxu0 %v2197_v48 }
  0x69   :  { %1433 = vmatprep.subr.bf16.mxu0 %v2241_v6  ;;  %v2223_v6 = vld [vmem:[%s2822_s0 + $0x15c] ss:$40 sps:$4 sm:$0xff]  }
  0x6a   :  { %1219 = vmatmul.mubr.bf16.gmra.mrb[32].mxu1 %v2181_v45  ;;  %1308 = vmatmul.mubr.bf16.gmra.mrb[36].mxu0 %v2184_v46 }
  0x6b   :  { %1226 = vmatprep.mubr.bf16.mxu1 %v2188_v49  ;;  %1315 = vmatprep.mubr.bf16.mxu0 %v2192_v50 }
  0x6c   :  { %1434 = vmatpush1.bf16.msra.mxu0 %v2201_v51 }
  0x72   :  { %1227 = vmatmul.mubr.bf16.gmra.mrb[36].mxu1 %v2191_v52  ;;  %1316 = vmatmul.mubr.bf16.gmra.mrb[40].mxu0 %v2195_v53 }
  0x73   :  { %1356 = vmatprep.mubr.bf16.mxu1 %v2200_v54  ;;  %1736 = vmatprep.mubr.msk.bf16.mxu0 %vm1035_vm0, %v2204_v55 }
  0x7a   :  { %1357 = vmatmul.mubr.bf16.vlgmr.msra.gmra.mrb[40].mxu1 %v2198_v56  ;;  %1446 = vmatmul.mubr.bf16.vlgmr.msra.gmra.mrb[44].mxu0 %v2202_v57 }
  0x7b   :  { %1364 = vmatprep.mubr.bf16.mxu1 %v2205_v58  ;;  %1737 = vmatprep.mubr.msk.bf16.mxu0 %vm1035_vm0, %v2208_v59 }
  0x82   :  { %1365 = vmatmul.mubr.bf16.gmra.mrb[44].mxu1 %v2207_v60  ;;  %1454 = vmatmul.mubr.bf16.gmra.mrb[48].mxu0 %v2210_v61 }
  0x83   :  { %1372 = vmatprep.mubr.bf16.mxu1 %v2211_v62  ;;  %1738 = vmatprep.mubr.msk.bf16.mxu0 %vm1035_vm0, %v2214_v63  ;;  %v2734_v62 = vld [vmem:[%s2823_s2] ss:$0 sm:$0xff] }
  0x8a   :  { %1373 = vmatmul.mubr.bf16.gmra.mrb[48].mxu1 %v2213_v0  ;;  %1462 = vmatmul.mubr.bf16.gmra.mrb[52].mxu0 %v2216_v1 }
  0x8b   :  { %1380 = vmatprep.mubr.bf16.mxu1 %v2217_v2  ;;  %1739 = vmatprep.mubr.msk.bf16.mxu0 %vm1035_vm0, %v2220_v3 }
  0x92   :  { %1381 = vmatmul.mubr.bf16.gmra.mrb[52].mxu1 %v2219_v4  ;;  %1470 = vmatmul.mubr.bf16.gmra.mrb[56].mxu0 %v2222_v5 }
  0x93   :  { %1388 = vmatprep.mubr.bf16.mxu1 %v2223_v6  ;;  %1740 = vmatprep.mubr.msk.bf16.mxu0 %vm1035_vm0, %v2226_v7 }
  0x9a   :  { %1389 = vmatmul.mubr.bf16.gmra.mrb[56].mxu1 %v2225_v8  ;;  %1478 = vmatmul.mubr.bf16.gmra.mrb[60].mxu0 %v2228_v9 }
  0x9b   :  { %1396 = vmatprep.mubr.bf16.mxu1 %v2229_v10  ;;  %1741 = vmatprep.mubr.msk.bf16.mxu0 %vm1035_vm0, %v2232_v11 }
  0xa2   :  { %1397 = vmatmul.mubr.bf16.gmra.mrb[60].mxu1 %v2231_v12  ;;  %1486 = vmatmul.mubr.bf16.gmra.mrb[64].mxu0 %v2234_v13 }
  0xa3   :  { %1404 = vmatprep.mubr.bf16.mxu1 %v2235_v14  ;;  %1742 = vmatprep.mubr.msk.bf16.mxu0 %vm1035_vm0, %v2238_v15 }
  0xaa   :  { %1405 = vmatmul.mubr.bf16.gmra.mrb[64].mxu1 %v2237_v16  ;;  %1494 = vmatmul.mubr.bf16.gmra.mrb[68].mxu0 %v2240_v17 }
  0xf5   :  { %v1852_v18 = vpop.f32.mrb[0].mxu1  ;;  %v1828_v19 = vpop.f32.mrb[0].mxu0 }
  0xf6   :  { %v1853_v20 = vpop.f32.mrb[1].mxu1  ;;  %v1829_v21 = vpop.f32.mrb[1].mxu0 }
  0xf7   :  { %v2715_v22 = vadd.f32 %v1853_v20, %v1852_v18  ;;  %v1855_v23 = vpop.f32.mrb[2].mxu1  ;;  %v1830_v24 = vadd.f32 %v1829_v21, %v1828_v19  ;;  %v1831_v25 = vpop.f32.mrb[2].mxu0 }
  0xf8   :  { %v1856_v26 = vpop.f32.mrb[3].mxu1  ;;  %v1832_v27 = vpop.f32.mrb[3].mxu0 }
  0xf9   :  { %v2717_v28 = vadd.f32 %v1856_v26, %v1855_v23  ;;  %v1833_v29 = vadd.f32 %v1832_v27, %v1831_v25  ;;  %v1092_v1 = vadd.f32 %v1830_v24, %v2734_v62 }
  0xfb   :  { %v1095_v8 = vadd.f32 %v1833_v29, %v2734_v62 }
  0xfd   :  { %v1834_v30 = vpop.f32.mrb[4].mxu0  ;;  %v1858_v31 = vpop.f32.mrb[4].mxu1 }
  0xfe   :  { %v1835_v32 = vpop.f32.mrb[5].mxu0  ;;  %v1859_v33 = vpop.f32.mrb[5].mxu1 }
  0xff   :  { %v1836_v34 = vadd.f32 %v1835_v32, %v1834_v30  ;;  %v1837_v35 = vpop.f32.mrb[6].mxu0  ;;  %v2719_v36 = vadd.f32 %v1859_v33, %v1858_v31  ;;  %v1861_v37 = vpop.f32.mrb[6].mxu1 }
 0x100   :  { %v1838_v38 = vpop.f32.mrb[7].mxu0  ;;  %v1862_v39 = vpop.f32.mrb[7].mxu1 }
 0x101   :  { %v1839_v40 = vadd.f32 %v1838_v38, %v1837_v35  ;;  %v2721_v41 = vadd.f32 %v1862_v39, %v1861_v37  ;;  %v1100_v19 = vadd.f32 %v1836_v34, %v2734_v62 }
 0x103   :  { %v1103_v27 = vadd.f32 %v1839_v40, %v2734_v62 }
 0x105   :  { %v1840_v42 = vpop.f32.mrb[8].mxu0  ;;  %v1864_v43 = vpop.f32.mrb[8].mxu1 }
 0x106   :  { %v1841_v44 = vpop.f32.mrb[9].mxu0  ;;  %v1865_v45 = vpop.f32.mrb[9].mxu1 }
 0x107   :  { %v1842_v46 = vadd.f32 %v1841_v44, %v1840_v42  ;;  %v1843_v47 = vpop.f32.mrb[10].mxu0  ;;  %v2723_v48 = vadd.f32 %v1865_v45, %v1864_v43  ;;  %v1867_v49 = vpop.f32.mrb[10].mxu1 }
 0x108   :  { %v1844_v50 = vpop.f32.mrb[11].mxu0  ;;  %v1868_v51 = vpop.f32.mrb[11].mxu1 }
 0x109   :  { %v1845_v52 = vadd.f32 %v1844_v50, %v1843_v47  ;;  %v2725_v53 = vadd.f32 %v1868_v51, %v1867_v49  ;;  %v1108_v42 = vadd.f32 %v1842_v46, %v2734_v62 }
 0x10b   :  { %v1111_v50 = vadd.f32 %v1845_v52, %v2734_v62 }
 0x10d   :  { %v1846_v54 = vpop.f32.mrb[12].mxu0 }
 0x10e   :  { %v1847_v55 = vpop.f32.mrb[13].mxu0 }
 0x10f   :  { %v2727_v56 = vadd.f32 %v1847_v55, %v1846_v54  ;;  %v1849_v57 = vpop.f32.mrb[14].mxu0 }
 0x110   :  { %v1850_v58 = vpop.f32.mrb[15].mxu0 }
 0x111   :  { %v2729_v59 = vadd.f32 %v1850_v58, %v1849_v57 }
 0x115   :  { %v1886_v60 = vpop.f32.mrb[12].mxu1  ;;  %v1944_v61 = vpop.f32.mrb[16].mxu0 }
 0x116   :  { %v1887_v63 = vpop.f32.mrb[13].mxu1  ;;  %v1945_v0 = vpop.f32.mrb[17].mxu0 }
 0x117   :  { %v1888_v2 = vadd.f32 %v1887_v63, %v1886_v60  ;;  %v1889_v3 = vpop.f32.mrb[14].mxu1  ;;  %v1946_v4 = vadd.f32 %v1945_v0, %v1944_v61  ;;  %v1947_v5 = vpop.f32.mrb[18].mxu0 }
 0x118   :  { %v1890_v6 = vpop.f32.mrb[15].mxu1  ;;  %v1948_v7 = vpop.f32.mrb[19].mxu0 }
 0x119   :  { %v1181_v9 = vadd.f32 %v1888_v2, %v1092_v1  ;;  %v1891_v10 = vadd.f32 %v1890_v6, %v1889_v3  ;;  %v1949_v11 = vadd.f32 %v1948_v7, %v1947_v5  ;;  %v1116_v1 = vadd.f32 %v2727_v56, %v2734_v62 }
 0x11a   :  { %v1119_v7 = vadd.f32 %v2729_v59, %v2734_v62 }
 0x11b   :  { %v1184_v12 = vadd.f32 %v1891_v10, %v1095_v8  ;;  %v2738_v13 = vadd.f32 %v1946_v4, %v1181_v9 }
 0x11d   :  { %v2740_v14 = vadd.f32 %v1949_v11, %v1184_v12  ;;  %v1892_v15 = vpop.f32.mrb[16].mxu1  ;;  %v1950_v16 = vpop.f32.mrb[20].mxu0 }
 0x11e   :  { %v1893_v17 = vpop.f32.mrb[17].mxu1  ;;  %v1951_v18 = vpop.f32.mrb[21].mxu0 }
 0x11f   :  { %v1894_v20 = vadd.f32 %v1893_v17, %v1892_v15  ;;  %v1895_v21 = vpop.f32.mrb[18].mxu1  ;;  %v1952_v23 = vadd.f32 %v1951_v18, %v1950_v16  ;;  %v1953_v24 = vpop.f32.mrb[22].mxu0 }
 0x120   :  { %v1896_v25 = vpop.f32.mrb[19].mxu1  ;;  %v1954_v26 = vpop.f32.mrb[23].mxu0 }
 0x121   :  { %v1189_v29 = vadd.f32 %v1894_v20, %v1100_v19  ;;  %v1897_v30 = vadd.f32 %v1896_v25, %v1895_v21  ;;  %v1955_v31 = vadd.f32 %v1954_v26, %v1953_v24  ;;  %v1124_v19 = vadd.f32 %v2715_v22, %v2734_v62 }
 0x122   :  { %v1127_v26 = vadd.f32 %v2717_v28, %v2734_v62 }
 0x123   :  { %v1192_v32 = vadd.f32 %v1897_v30, %v1103_v27  ;;  %v2744_v33 = vadd.f32 %v1952_v23, %v1189_v29 }
 0x125   :  { %v2746_v35 = vadd.f32 %v1955_v31, %v1192_v32  ;;  %v1898_v37 = vpop.f32.mrb[20].mxu1  ;;  %v1956_v38 = vpop.f32.mrb[24].mxu0 }
 0x126   :  { %v1899_v39 = vpop.f32.mrb[21].mxu1  ;;  %v1957_v34 = vpop.f32.mrb[25].mxu0 }
 0x127   :  { %v1900_v43 = vadd.f32 %v1899_v39, %v1898_v37  ;;  %v1901_v44 = vpop.f32.mrb[22].mxu1  ;;  %v1958_v45 = vadd.f32 %v1957_v34, %v1956_v38  ;;  %v1959_v47 = vpop.f32.mrb[26].mxu0 }
 0x128   :  { %v1902_v49 = vpop.f32.mrb[23].mxu1  ;;  %v1960_v40 = vpop.f32.mrb[27].mxu0 }
 0x129   :  { %v1197_v51 = vadd.f32 %v1900_v43, %v1108_v42  ;;  %v1903_v54 = vadd.f32 %v1902_v49, %v1901_v44  ;;  %v1961_v55 = vadd.f32 %v1960_v40, %v1959_v47  ;;  %v1132_v42 = vadd.f32 %v2719_v36, %v2734_v62 }
 0x12a   :  { %v1135_v40 = vadd.f32 %v2721_v41, %v2734_v62 }
 0x12b   :  { %v1200_v57 = vadd.f32 %v1903_v54, %v1111_v50  ;;  %v2750_v58 = vadd.f32 %v1958_v45, %v1197_v51 }
 0x12d   :  { %v2752_v60 = vadd.f32 %v1961_v55, %v1200_v57  ;;  %v1904_v61 = vpop.f32.mrb[24].mxu1  ;;  %v1962_v63 = vpop.f32.mrb[28].mxu0 }
 0x12e   :  { %v1905_v0 = vpop.f32.mrb[25].mxu1  ;;  %v1963_v46 = vpop.f32.mrb[29].mxu0 }
 0x12f   :  { %v1906_v2 = vadd.f32 %v1905_v0, %v1904_v61  ;;  %v1907_v3 = vpop.f32.mrb[26].mxu1  ;;  %v1964_v4 = vadd.f32 %v1963_v46, %v1962_v63  ;;  %v1965_v5 = vpop.f32.mrb[30].mxu0 }
 0x130   :  { %v1908_v52 = vpop.f32.mrb[27].mxu1  ;;  %v1966_v6 = vpop.f32.mrb[31].mxu0 }
 0x131   :  { %v1205_v8 = vadd.f32 %v1906_v2, %v1116_v1  ;;  %v1909_v9 = vadd.f32 %v1908_v52, %v1907_v3  ;;  %v1967_v10 = vadd.f32 %v1966_v6, %v1965_v5  ;;  %v1140_v1 = vadd.f32 %v2723_v48, %v2734_v62 }
 0x132   :  { %v1143_v6 = vadd.f32 %v2725_v53, %v2734_v62 }
 0x133   :  { %v1208_v11 = vadd.f32 %v1909_v9, %v1119_v7  ;;  %v2758_v12 = vadd.f32 %v1964_v4, %v1205_v8 }
 0x135   :  { %v2760_v15 = vadd.f32 %v1967_v10, %v1208_v11  ;;  %v1910_v16 = vpop.f32.mrb[28].mxu1  ;;  %v1968_v17 = vpop.f32.mrb[32].mxu0 }
 0x136   :  { %v1911_v56 = vpop.f32.mrb[29].mxu1  ;;  %v1969_v18 = vpop.f32.mrb[33].mxu0 }
 0x137   :  { %v1912_v20 = vadd.f32 %v1911_v56, %v1910_v16  ;;  %v1913_v21 = vpop.f32.mrb[30].mxu1  ;;  %v1970_v23 = vadd.f32 %v1969_v18, %v1968_v17  ;;  %v1971_v24 = vpop.f32.mrb[34].mxu0 }
 0x138   :  { %v1914_v59 = vpop.f32.mrb[31].mxu1  ;;  %v1972_v25 = vpop.f32.mrb[35].mxu0 }
 0x139   :  { %v1213_v27 = vadd.f32 %v1912_v20, %v1124_v19  ;;  %v1915_v29 = vadd.f32 %v1914_v59, %v1913_v21  ;;  %v1973_v30 = vadd.f32 %v1972_v25, %v1971_v24 }
 0x13b   :  { %v1216_v31 = vadd.f32 %v1915_v29, %v1127_v26  ;;  %v2766_v32 = vadd.f32 %v1970_v23, %v1213_v27 }
 0x13d   :  { %v2768_v37 = vadd.f32 %v1973_v30, %v1216_v31  ;;  %v1916_v38 = vpop.f32.mrb[32].mxu1  ;;  %v1974_v39 = vpop.f32.mrb[36].mxu0 }
 0x13e   :  { %v1917_v22 = vpop.f32.mrb[33].mxu1  ;;  %v1975_v34 = vpop.f32.mrb[37].mxu0 }
 0x13f   :  { %v1918_v43 = vadd.f32 %v1917_v22, %v1916_v38  ;;  %v1919_v44 = vpop.f32.mrb[34].mxu1  ;;  %v1976_v45 = vadd.f32 %v1975_v34, %v1974_v39  ;;  %v1977_v47 = vpop.f32.mrb[38].mxu0 }
 0x140   :  { %v1920_v28 = vpop.f32.mrb[35].mxu1  ;;  %v1978_v49 = vpop.f32.mrb[39].mxu0 }
 0x141   :  { %v1221_v50 = vadd.f32 %v1918_v43, %v1132_v42  ;;  %v1921_v51 = vadd.f32 %v1920_v28, %v1919_v44  ;;  %v1979_v54 = vadd.f32 %v1978_v49, %v1977_v47 }
 0x143   :  { %v1224_v55 = vadd.f32 %v1921_v51, %v1135_v40  ;;  %v2774_v57 = vadd.f32 %v1976_v45, %v1221_v50 }
 0x145   :  { %v2776_v61 = vadd.f32 %v1979_v54, %v1224_v55  ;;  %v1922_v63 = vpop.f32.mrb[36].mxu1  ;;  %v1980_v0 = vpop.f32.mrb[40].mxu0 }
 0x146   :  { %v1923_v36 = vpop.f32.mrb[37].mxu1  ;;  %v1981_v46 = vpop.f32.mrb[41].mxu0 }
 0x147   :  { %v1924_v2 = vadd.f32 %v1923_v36, %v1922_v63  ;;  %v1925_v3 = vpop.f32.mrb[38].mxu1  ;;  %v1982_v4 = vadd.f32 %v1981_v46, %v1980_v0  ;;  %v1983_v5 = vpop.f32.mrb[42].mxu0 }
 0x148   :  { %v1926_v41 = vpop.f32.mrb[39].mxu1  ;;  %v1984_v52 = vpop.f32.mrb[43].mxu0 }
 0x149   :  { %v1229_v7 = vadd.f32 %v1924_v2, %v1140_v1  ;;  %v1927_v8 = vadd.f32 %v1926_v41, %v1925_v3  ;;  %v1985_v9 = vadd.f32 %v1984_v52, %v1983_v5 }
 0x14b   :  { %v1232_v10 = vadd.f32 %v1927_v8, %v1143_v6  ;;  %v2782_v11 = vadd.f32 %v1982_v4, %v1229_v7 }
 0x14d   :  { %v2784_v16 = vadd.f32 %v1985_v9, %v1232_v10  ;;  %v2002_v17 = vpop.f32.mrb[40].mxu1  ;;  %v1447_v56 = vpop.f32.mrb[44].mxu0 }
 0x14e   :  { %v2003_v48 = vpop.f32.mrb[41].mxu1  ;;  %v1449_v18 = vpop.f32.mrb[45].mxu0 }
 0x14f   :  { %v2004_v19 = vadd.f32 %v2003_v48, %v2002_v17  ;;  %v2005_v20 = vpop.f32.mrb[42].mxu1  ;;  %v1450_v21 = vpop.f32.mrb[46].mxu0 }
 0x150   :  { %v2006_v23 = vpop.f32.mrb[43].mxu1  ;;  %v1452_v24 = vpop.f32.mrb[47].mxu0 }
 0x151   :  { %v2007_v59 = vadd.f32 %v2006_v23, %v2005_v20  ;;  %v1359_v53 = vadd.f32 %v2004_v19, %v2738_v13 }
 0x153   :  { %v1448_v62 = vadd.f32 %v1447_v56, %v1359_v53  ;;  %v1362_v25 = vadd.f32 %v2007_v59, %v2740_v14 }
 0x155   :  { %v1451_v26 = vadd.f32 %v1450_v21, %v1362_v25  ;;  %v2008_v27 = vpop.f32.mrb[44].mxu1  ;;  %v1455_v29 = vpop.f32.mrb[48].mxu0  ;;  %v1502_v38 = vmax.f32 %v1448_v62, 0.0 }
 0x156   :  { %v2009_v30 = vpop.f32.mrb[45].mxu1  ;;  %v1457_v31 = vpop.f32.mrb[49].mxu0 }
 0x157   :  { %v1503_v39 = vmax.f32 %v1451_v26, 0.0  ;;  %v2010_v22 = vadd.f32 %v2009_v30, %v2008_v27  ;;  %v2011_v34 = vpop.f32.mrb[46].mxu1  ;;  %v1458_v42 = vpop.f32.mrb[50].mxu0 }
 0x158   :  { %v2012_v43 = vpop.f32.mrb[47].mxu1  ;;  %v1460_v44 = vpop.f32.mrb[51].mxu0 }
 0x159   :  { %v1774_v45 = vpack.c.bf16 %v1503_v39, %v1502_v38  ;;  %v2013_v47 = vadd.f32 %v2012_v43, %v2011_v34  ;;  %v1367_v28 = vadd.f32 %v2010_v22, %v2744_v33 }
 0x15b   :  { %1775 = vst [vmem:[%s2824_s3] sm:$0xff] %v1774_v45   ;;  %v1456_v13 = vadd.f32 %v1455_v29, %v1367_v28  ;;  %v1370_v14 = vadd.f32 %v2013_v47, %v2746_v35 }
 0x15d   :  { %v1459_v49 = vadd.f32 %v1458_v42, %v1370_v14  ;;  %v2014_v40 = vpop.f32.mrb[48].mxu1  ;;  %v1463_v50 = vpop.f32.mrb[52].mxu0  ;;  %v1504_v55 = vmax.f32 %v1456_v13, 0.0 }
 0x15e   :  { %v2015_v51 = vpop.f32.mrb[49].mxu1  ;;  %v1465_v54 = vpop.f32.mrb[53].mxu0 }
 0x15f   :  { %v1505_v63 = vmax.f32 %v1459_v49, 0.0  ;;  %v2016_v0 = vadd.f32 %v2015_v51, %v2014_v40  ;;  %v2017_v36 = vpop.f32.mrb[50].mxu1  ;;  %v1466_v46 = vpop.f32.mrb[54].mxu0 }
 0x160   :  { %v2018_v1 = vpop.f32.mrb[51].mxu1  ;;  %v1468_v2 = vpop.f32.mrb[55].mxu0 }
 0x161   :  { %v1779_v33 = vpack.c.bf16 %v1505_v63, %v1504_v55  ;;  %v2019_v3 = vadd.f32 %v2018_v1, %v2017_v36  ;;  %v1375_v4 = vadd.f32 %v2016_v0, %v2750_v58 }
 0x163   :  { %1806 = vst [vmem:[%s2824_s3 + $0x8] sm:$0xff] %v1779_v33   ;;  %v1464_v35 = vadd.f32 %v1463_v50, %v1375_v4  ;;  %v1378_v5 = vadd.f32 %v2019_v3, %v2752_v60 }
 0x165   :  { %v1467_v41 = vadd.f32 %v1466_v46, %v1378_v5  ;;  %v2020_v52 = vpop.f32.mrb[52].mxu1  ;;  %v1471_v6 = vpop.f32.mrb[56].mxu0  ;;  %v1506_v9 = vmax.f32 %v1464_v35, 0.0 }
 0x166   :  { %v2021_v7 = vpop.f32.mrb[53].mxu1  ;;  %v1473_v8 = vpop.f32.mrb[57].mxu0 }
 0x167   :  { %v1507_v10 = vmax.f32 %v1467_v41, 0.0  ;;  %v2022_v17 = vadd.f32 %v2021_v7, %v2020_v52  ;;  %v2023_v56 = vpop.f32.mrb[54].mxu1  ;;  %v1474_v48 = vpop.f32.mrb[58].mxu0 }
 0x168   :  { %v2024_v18 = vpop.f32.mrb[55].mxu1  ;;  %v1476_v19 = vpop.f32.mrb[59].mxu0 }
 0x169   :  { %v1784_v58 = vpack.c.bf16 %v1507_v10, %v1506_v9  ;;  %v2025_v20 = vadd.f32 %v2024_v18, %v2023_v56  ;;  %v1383_v21 = vadd.f32 %v2022_v17, %v2758_v12 }
 0x16b   :  { %1807 = vst [vmem:[%s2824_s3 + $0x10] sm:$0xff] %v1784_v58   ;;  %v1472_v60 = vadd.f32 %v1471_v6, %v1383_v21  ;;  %v1386_v23 = vadd.f32 %v2025_v20, %v2760_v15 }
 0x16d   :  { %v1475_v24 = vadd.f32 %v1474_v48, %v1386_v23  ;;  %v2026_v59 = vpop.f32.mrb[56].mxu1  ;;  %v1479_v53 = vpop.f32.mrb[60].mxu0  ;;  %v1508_v26 = vmax.f32 %v1472_v60, 0.0 }
 0x16e   :  { %v2027_v62 = vpop.f32.mrb[57].mxu1  ;;  %v1481_v25 = vpop.f32.mrb[61].mxu0 }
 0x16f   :  { %v1509_v27 = vmax.f32 %v1475_v24, 0.0  ;;  %v2028_v29 = vadd.f32 %v2027_v62, %v2026_v59  ;;  %v2029_v30 = vpop.f32.mrb[58].mxu1  ;;  %v1482_v31 = vpop.f32.mrb[62].mxu0 }
 0x170   :  { %v2030_v38 = vpop.f32.mrb[59].mxu1  ;;  %v1484_v39 = vpop.f32.mrb[63].mxu0 }
 0x171   :  { %v1789_v12 = vpack.c.bf16 %v1509_v27, %v1508_v26  ;;  %v2031_v22 = vadd.f32 %v2030_v38, %v2029_v30  ;;  %v1391_v34 = vadd.f32 %v2028_v29, %v2766_v32 }
 0x173   :  { %1808 = vst [vmem:[%s2824_s3 + $0x18] sm:$0xff] %v1789_v12   ;;  %v1480_v15 = vadd.f32 %v1479_v53, %v1391_v34  ;;  %v1394_v42 = vadd.f32 %v2031_v22, %v2768_v37 }
 0x175   :  { %v1483_v43 = vadd.f32 %v1482_v31, %v1394_v42  ;;  %v2032_v44 = vpop.f32.mrb[60].mxu1  ;;  %v1487_v45 = vpop.f32.mrb[64].mxu0  ;;  %v1510_v13 = vmax.f32 %v1480_v15, 0.0 }
 0x176   :  { %v2033_v47 = vpop.f32.mrb[61].mxu1  ;;  %v1489_v28 = vpop.f32.mrb[65].mxu0 }
 0x177   :  { %v1511_v14 = vmax.f32 %v1483_v43, 0.0  ;;  %v2034_v49 = vadd.f32 %v2033_v47, %v2032_v44  ;;  %v2035_v40 = vpop.f32.mrb[62].mxu1  ;;  %v1490_v50 = vpop.f32.mrb[66].mxu0 }
 0x178   :  { %v2036_v51 = vpop.f32.mrb[63].mxu1  ;;  %v1492_v54 = vpop.f32.mrb[67].mxu0 }
 0x179   :  { %v1794_v32 = vpack.c.bf16 %v1511_v14, %v1510_v13  ;;  %v2037_v55 = vadd.f32 %v2036_v51, %v2035_v40  ;;  %v1399_v63 = vadd.f32 %v2034_v49, %v2774_v57 }
 0x17b   :  { %1809 = vst [vmem:[%s2824_s3 + $0x20] sm:$0xff] %v1794_v32   ;;  %v1488_v37 = vadd.f32 %v1487_v45, %v1399_v63  ;;  %v1402_v0 = vadd.f32 %v2037_v55, %v2776_v61 }
 0x17d   :  { %v1491_v36 = vadd.f32 %v1490_v50, %v1402_v0  ;;  %v2038_v46 = vpop.f32.mrb[64].mxu1  ;;  %v1495_v1 = vpop.f32.mrb[68].mxu0  ;;  %v1512_v3 = vmax.f32 %v1488_v37, 0.0 }
 0x17e   :  { %v2039_v2 = vpop.f32.mrb[65].mxu1  ;;  %v1497_v33 = vpop.f32.mrb[69].mxu0 }
 0x17f   :  { %v1513_v4 = vmax.f32 %v1491_v36, 0.0  ;;  %v2040_v35 = vadd.f32 %v2039_v2, %v2038_v46  ;;  %v2041_v5 = vpop.f32.mrb[66].mxu1  ;;  %v1498_v41 = vpop.f32.mrb[70].mxu0 }
 0x180   :  { %v2042_v52 = vpop.f32.mrb[67].mxu1  ;;  %v1500_v6 = vpop.f32.mrb[71].mxu0 }
 0x181   :  { %v1799_v57 = vpack.c.bf16 %v1513_v4, %v1512_v3  ;;  %v2043_v7 = vadd.f32 %v2042_v52, %v2041_v5  ;;  %v1407_v8 = vadd.f32 %v2040_v35, %v2782_v11 }
 0x183   :  { %1810 = vst [vmem:[%s2824_s3 + $0x28] sm:$0xff] %v1799_v57   ;;  %v1496_v61 = vadd.f32 %v1495_v1, %v1407_v8  ;;  %v1410_v9 = vadd.f32 %v2043_v7, %v2784_v16 }
 0x185   :  { %v1499_v10 = vadd.f32 %v1498_v41, %v1410_v9  ;;  %v1514_v17 = vmax.f32 %v1496_v61, 0.0 }
 0x187   :  { %v1515_v56 = vmax.f32 %v1499_v10, 0.0 }
 0x189   :  { %v1804_v48 = vpack.c.bf16 %v1515_v56, %v1514_v17 }
 0x18b   :  { %1811 = vst [vmem:[%s2824_s3 + $0x30] sm:$0xff] %v1804_v48  }

// kernel: inception_transfer_forward.28
= control target key start
LH: loop header
LB: loop body
LE: loop exit
PB: predicated region body
PF: predicated region fallthrough
CT: control target
= control target key end

     0   :  { %v1310_v34 = vmov 0.0   ;;  %vm1311_vm0 = vmmov 0   ;;  %vm527_vm1 = vcmask 523264   ;;  %s1638_s1 = inlined_call_operand.vmem [shape: bf16[576,128], index: 1, kind: input, shape index: {}]   ;;  %s1639_s0 = inlined_call_operand.vmem [shape: bf16[112,576], index: 0, kind: input, shape index: {}]   ;;  %s1640_s2 = inlined_call_operand.vmem [shape: f32[1,128], index: 2, kind: input, shape index: {}]   ;;  %s1641_s3 = inlined_call_operand.vmem [shape: bf16[112,128], index: 3, kind: output, shape index: {}]  }
   0x1   :  { %v1225_v0 = vld [vmem:[%s1638_s1 + $0x40] sm:$0xff]   ;;  %v1229_v4 = vld [vmem:[%s1638_s1 + $0x48] sm:$0xff]   ;;  %v1233_v8 = vld [vmem:[%s1638_s1 + $0x50] sm:$0xff]  }
   0x2   :  { %v1226_v1 = vld [vmem:[%s1638_s1 + $0xc0] sm:$0xff]   ;;  %1052 = vmatprep.subr.bf16.mxu0 %v1225_v0  ;;  %v1230_v5 = vld [vmem:[%s1638_s1 + $0xc8] sm:$0xff]   ;;  %v1234_v9 = vld [vmem:[%s1638_s1 + $0xd0] sm:$0xff]  }
   0x3   :  { %v1227_v2 = vld [vmem:[%s1638_s1] sm:$0xff]   ;;  %1110 = vmatprep.subr.bf16.mxu1 %v1226_v1  ;;  %v1231_v6 = vld [vmem:[%s1638_s1 + $0x8] sm:$0xff]   ;;  %v1235_v10 = vld [vmem:[%s1638_s1 + $0x10] sm:$0xff]  }
   0x4   :  { %v1228_v3 = vld [vmem:[%s1638_s1 + $0x80] sm:$0xff]   ;;  %1053 = vmatpush3.bf16.msra.mxu0 %v1227_v2  ;;  %v1232_v7 = vld [vmem:[%s1638_s1 + $0x88] sm:$0xff]   ;;  %v1236_v11 = vld [vmem:[%s1638_s1 + $0x90] sm:$0xff]  }
   0x5   :  { %1111 = vmatpush3.bf16.msra.mxu1 %v1228_v3  ;;  %1054 = vmatprep.subr.bf16.mxu0 %v1229_v4  ;;  %v1237_v12 = vld [vmem:[%s1638_s1 + $0x58] sm:$0xff]   ;;  %v1241_v16 = vld [vmem:[%s1638_s1 + $0x60] sm:$0xff]   ;;  %v1245_v20 = vld [vmem:[%s1638_s1 + $0x68] sm:$0xff]  }
   0x6   :  { %1112 = vmatprep.subr.bf16.mxu1 %v1230_v5  ;;  %v1238_v13 = vld [vmem:[%s1638_s1 + $0xd8] sm:$0xff]   ;;  %v1242_v17 = vld [vmem:[%s1638_s1 + $0xe0] sm:$0xff]   ;;  %v1246_v21 = vld [vmem:[%s1638_s1 + $0xe8] sm:$0xff]  }
   0x7   :  { %v1239_v14 = vld [vmem:[%s1638_s1 + $0x18] sm:$0xff]   ;;  %v1243_v18 = vld [vmem:[%s1638_s1 + $0x20] sm:$0xff]   ;;  %v1247_v22 = vld [vmem:[%s1638_s1 + $0x28] sm:$0xff]  }
   0x8   :  { %1055 = vmatpush3.bf16.msra.mxu0 %v1231_v6  ;;  %v1240_v15 = vld [vmem:[%s1638_s1 + $0x98] sm:$0xff]   ;;  %v1244_v19 = vld [vmem:[%s1638_s1 + $0xa0] sm:$0xff]   ;;  %v1248_v23 = vld [vmem:[%s1638_s1 + $0xa8] sm:$0xff]  }
   0x9   :  { %1113 = vmatpush3.bf16.msra.mxu1 %v1232_v7  ;;  %1056 = vmatprep.subr.bf16.mxu0 %v1233_v8  ;;  %v1249_v24 = vld [vmem:[%s1638_s1 + $0x70] sm:$0xff]   ;;  %v1253_v28 = vld [vmem:[%s1638_s1 + $0x78] sm:$0xff]   ;;  %v1262_v36 = vld [vmem:[%s1639_s0 + $0xc] ss:$20 sps:$4 sm:$0xff]  }
   0xa   :  { %1114 = vmatprep.subr.bf16.mxu1 %v1234_v9  ;;  %v1250_v25 = vld [vmem:[%s1638_s1 + $0xf0] sm:$0xff]   ;;  %v1254_v29 = vld [vmem:[%s1638_s1 + $0xf8] sm:$0xff]   ;;  %v1263_v37 = vld [vmem:[%s1638_s1 + $0x100] sm:$0xff]   ;;  %670 = vmatprep.mubr.bf16.mxu1 %v1262_v36 }
   0xb   :  { %v1251_v26 = vld [vmem:[%s1638_s1 + $0x30] sm:$0xff]   ;;  %v1255_v30 = vld [vmem:[%s1638_s1 + $0x38] sm:$0xff]   ;;  %v1264_v38 = vld [vmem:[%s1639_s0 + $0x2c] ss:$20 sps:$4 sm:$0xff]  }
   0xc   :  { %1057 = vmatpush3.bf16.msra.mxu0 %v1235_v10  ;;  %v1252_v27 = vld [vmem:[%s1638_s1 + $0xb0] sm:$0xff]   ;;  %v1256_v31 = vld [vmem:[%s1638_s1 + $0xb8] sm:$0xff]   ;;  %v1274_v43 = vld [vmem:[%s1638_s1 + $0x108] sm:$0xff]  }
   0xd   :  { %1115 = vmatpush3.bf16.msra.mxu1 %v1236_v11  ;;  %1058 = vmatprep.subr.bf16.mxu0 %v1237_v12  ;;  %v1257_v32 = vld [vmem:[%s1639_s0] ss:$20 sps:$4 sm:$0xff]   ;;  %v1259_v33 = vld [vmem:[%s1639_s0 + $0x4] ss:$20 sps:$4 sm:$0xff]   ;;  %v1260_v35 = vld [vmem:[%s1639_s0 + $0x8] ss:$20 sps:$4 sm:$0xff]  }
   0xe   :  { %1116 = vmatprep.subr.bf16.mxu1 %v1238_v13  ;;  %581 = vmatprep.mubr.bf16.mxu0 %v1259_v33  ;;  %v1266_v39 = vld [vmem:[%s1639_s0 + $0x34] ss:$20 sps:$4 sm:$0xff]   ;;  %v1269_v41 = vld [vmem:[%s1639_s0 + $0x30] ss:$20 sps:$4 sm:$0xff]   ;;  %v1276_v47 = vld [vmem:[%s1639_s0 + $0x58] ss:$20 sps:$4 sm:$0xff]  }
   0xf   :  { %v1268_v40 = vld [vmem:[%s1639_s0 + $0x28] ss:$20 sps:$4 sm:$0xff]   ;;  %v1283_v45 = vld [vmem:[%s1638_s1 + $0x110] sm:$0xff]   ;;  %v1279_v49 = vld [vmem:[%s1639_s0 + $0x84] ss:$20 sps:$4 sm:$0xff]  }
  0x10   :  { %1059 = vmatpush3.bf16.msra.mxu0 %v1239_v14  ;;  %v1270_v42 = vld [vmem:[%s1639_s0 + $0x54] ss:$20 sps:$4 sm:$0xff]   ;;  %v1272_v44 = vld [vmem:[%s1639_s0 + $0x5c] ss:$20 sps:$4 sm:$0xff]   ;;  %v1281_v51 = vld [vmem:[%s1639_s0 + $0x78] ss:$20 sps:$4 sm:$0xff]  }
  0x11   :  { %1117 = vmatpush3.bf16.msra.mxu1 %v1240_v15  ;;  %1060 = vmatprep.subr.bf16.mxu0 %v1241_v16  ;;  %v1275_v46 = vld [vmem:[%s1639_s0 + $0x50] ss:$20 sps:$4 sm:$0xff]   ;;  %v1296_v50 = vld [vmem:[%s1638_s1 + $0x118] sm:$0xff]   ;;  %v1282_v52 = vld [vmem:[%s1639_s0 + $0x80] ss:$20 sps:$4 sm:$0xff]  }
  0x12   :  { %1118 = vmatprep.subr.bf16.mxu1 %v1242_v17  ;;  %v1277_v48 = vld [vmem:[%s1639_s0 + $0x7c] ss:$20 sps:$4 sm:$0xff]   ;;  %v1284_v53 = vld [vmem:[%s1639_s0 + $0xa4] ss:$20 sps:$4 sm:$0xff]   ;;  %v1286_v54 = vld [vmem:[%s1639_s0 + $0xac] ss:$20 sps:$4 sm:$0xff]  }
  0x13   :  { %v1288_v55 = vld [vmem:[%s1639_s0 + $0xa0] ss:$20 sps:$4 sm:$0xff]   ;;  %v1289_v56 = vld [vmem:[%s1639_s0 + $0xa8] ss:$20 sps:$4 sm:$0xff]   ;;  %v1295_v60 = vld [vmem:[%s1639_s0 + $0xd0] ss:$20 sps:$4 sm:$0xff]  }
  0x14   :  { %1061 = vmatpush3.bf16.msra.mxu0 %v1243_v18  ;;  %v1290_v57 = vld [vmem:[%s1639_s0 + $0xcc] ss:$20 sps:$4 sm:$0xff]   ;;  %v1292_v58 = vld [vmem:[%s1639_s0 + $0xd4] ss:$20 sps:$4 sm:$0xff]   ;;  %v1299_v62 = vld [vmem:[%s1639_s0 + $0xfc] ss:$20 sps:$4 sm:$0xff]  }
  0x15   :  { %1119 = vmatpush3.bf16.msra.mxu1 %v1244_v19  ;;  %1062 = vmatprep.subr.bf16.mxu0 %v1245_v20  ;;  %v1294_v59 = vld [vmem:[%s1639_s0 + $0xc8] ss:$20 sps:$4 sm:$0xff]   ;;  %v1301_v63 = vld [vmem:[%s1639_s0 + $0xf0] ss:$20 sps:$4 sm:$0xff]   ;;  %v1302_v0 = vld [vmem:[%s1639_s0 + $0xf8] ss:$20 sps:$4 sm:$0xff]  }
  0x16   :  { %1120 = vmatprep.subr.bf16.mxu1 %v1246_v21  ;;  %v1297_v61 = vld [vmem:[%s1639_s0 + $0xf4] ss:$20 sps:$4 sm:$0xff]   ;;  %v1303_v1 = vld [vmem:[%s1639_s0 + $0x10] ss:$20 sps:$4 sm:$0xff]   ;;  %v1305_v3 = vld [vmem:[%s1639_s0 + $0x38] ss:$20 sps:$4 sm:$0xff]  }
  0x17   :  { %v1304_v2 = vld [vmem:[%s1639_s0 + $0xb0] ss:$20 sps:$4 sm:$0xff]   ;;  %v1306_v4 = vld [vmem:[%s1639_s0 + $0xd8] ss:$20 sps:$4 sm:$0xff]   ;;  %v1307_v5 = vld [vmem:[%s1639_s0 + $0x60] ss:$20 sps:$4 sm:$0xff]  }
  0x18   :  { %1063 = vmatpush3.bf16.msra.mxu0 %v1247_v22  ;;  %v1308_v6 = vld [vmem:[%s1639_s0 + $0x100] ss:$20 sps:$4 sm:$0xff]   ;;  %v1309_v7 = vld [vmem:[%s1639_s0 + $0x88] ss:$20 sps:$4 sm:$0xff]  }
  0x19   :  { %1121 = vmatpush3.bf16.msra.mxu1 %v1248_v23  ;;  %1064 = vmatprep.subr.bf16.mxu0 %v1249_v24  ;;  %v1577_v9 = vld [vmem:[%s1640_s2] ss:$0 sm:$0xff] }
  0x1a   :  { %1122 = vmatprep.subr.bf16.mxu1 %v1250_v25 }
  0x1c   :  { %1065 = vmatpush3.bf16.msra.mxu0 %v1251_v26 }
  0x1d   :  { %1123 = vmatpush3.bf16.msra.mxu1 %v1252_v27  ;;  %1066 = vmatprep.subr.bf16.mxu0 %v1253_v28 }
  0x1e   :  { %1124 = vmatprep.subr.bf16.mxu1 %v1254_v29 }
  0x20   :  { %1067 = vmatpush3.bf16.msra.mxu0 %v1255_v30 }
  0x21   :  { %1125 = vmatpush3.bf16.msra.mxu1 %v1256_v31  ;;  %1179 = vmatprep.subr.bf16.mxu0 %v1310_v34 }
  0x22   :  { %1215 = vmatprep.subr.bf16.mxu1 %v1310_v34 }
  0x23   :  { %582 = vmatmul.mubr.bf16.vlgmr.msra.gmra.mrb[0].mxu0 %v1257_v32 }
  0x24   :  { %671 = vmatmul.mubr.bf16.vlgmr.msra.gmra.mrb[0].mxu1 %v1260_v35  ;;  %1180 = vmatpush3.bf16.msra.mxu0 %v1263_v37 }
  0x25   :  { %589 = vmatprep.mubr.bf16.mxu0 %v1264_v38  ;;  %1219 = vmatpush3.bf16.msra.mxu1 %v1263_v37 }
  0x26   :  { %678 = vmatprep.mubr.bf16.mxu1 %v1266_v39  ;;  %1181 = vmatprep.subr.bf16.mxu0 %v1310_v34 }
  0x27   :  { %1216 = vmatprep.subr.bf16.mxu1 %v1310_v34 }
  0x28   :  { %1182 = vmatpush3.bf16.msra.mxu0 %v1274_v43 }
  0x29   :  { %1220 = vmatpush3.bf16.msra.mxu1 %v1274_v43  ;;  %1183 = vmatprep.subr.bf16.mxu0 %v1310_v34 }
  0x2a   :  { %1217 = vmatprep.subr.bf16.mxu1 %v1310_v34 }
  0x2b   :  { %590 = vmatmul.mubr.bf16.gmra.mrb[4].mxu0 %v1268_v40 }
  0x2c   :  { %679 = vmatmul.mubr.bf16.gmra.mrb[4].mxu1 %v1269_v41  ;;  %597 = vmatprep.mubr.bf16.mxu0 %v1270_v42 }
  0x2d   :  { %686 = vmatprep.mubr.bf16.mxu1 %v1272_v44  ;;  %1184 = vmatpush3.bf16.msra.mxu0 %v1283_v45 }
  0x2e   :  { %1221 = vmatpush3.bf16.msra.mxu1 %v1283_v45  ;;  %1185 = vmatprep.subr.bf16.mxu0 %v1310_v34 }
  0x2f   :  { %1218 = vmatprep.subr.bf16.mxu1 %v1310_v34 }
  0x31   :  { %1186 = vmatpush3.bf16.msra.mxu0 %v1296_v50 }
  0x32   :  { %1222 = vmatpush3.bf16.msra.mxu1 %v1296_v50 }
  0x33   :  { %598 = vmatmul.mubr.bf16.gmra.mrb[8].mxu0 %v1275_v46 }
  0x34   :  { %687 = vmatmul.mubr.bf16.gmra.mrb[8].mxu1 %v1276_v47  ;;  %605 = vmatprep.mubr.bf16.mxu0 %v1277_v48 }
  0x35   :  { %694 = vmatprep.mubr.bf16.mxu1 %v1279_v49 }
  0x3b   :  { %606 = vmatmul.mubr.bf16.gmra.mrb[12].mxu0 %v1281_v51 }
  0x3c   :  { %695 = vmatmul.mubr.bf16.gmra.mrb[12].mxu1 %v1282_v52  ;;  %613 = vmatprep.mubr.bf16.mxu0 %v1284_v53 }
  0x3d   :  { %702 = vmatprep.mubr.bf16.mxu1 %v1286_v54 }
  0x43   :  { %614 = vmatmul.mubr.bf16.gmra.mrb[16].mxu0 %v1288_v55 }
  0x44   :  { %703 = vmatmul.mubr.bf16.gmra.mrb[16].mxu1 %v1289_v56  ;;  %621 = vmatprep.mubr.bf16.mxu0 %v1290_v57 }
  0x45   :  { %710 = vmatprep.mubr.bf16.mxu1 %v1292_v58 }
  0x4b   :  { %622 = vmatmul.mubr.bf16.gmra.mrb[20].mxu0 %v1294_v59 }
  0x4c   :  { %711 = vmatmul.mubr.bf16.gmra.mrb[20].mxu1 %v1295_v60  ;;  %629 = vmatprep.mubr.bf16.mxu0 %v1297_v61 }
  0x4d   :  { %718 = vmatprep.mubr.bf16.mxu1 %v1299_v62 }
  0x53   :  { %630 = vmatmul.mubr.bf16.gmra.mrb[24].mxu0 %v1301_v63 }
  0x54   :  { %719 = vmatmul.mubr.bf16.gmra.mrb[24].mxu1 %v1302_v0  ;;  %1187 = vmatprep.mubr.msk.bf16.mxu0 %vm1311_vm0, %v1310_v34 }
  0x55   :  { %1203 = vmatprep.mubr.msk.bf16.mxu1 %vm1311_vm0, %v1310_v34 }
  0x5b   :  { %1188 = vmatmul.mubr.msk.bf16.vlgmr.msra.gmra.mrb[28].mxu0 %vm527_vm1, %v1303_v1 }
  0x5c   :  { %1204 = vmatmul.mubr.msk.bf16.vlgmr.msra.gmra.mrb[28].mxu1 %vm527_vm1, %v1304_v2  ;;  %1191 = vmatprep.mubr.msk.bf16.mxu0 %vm1311_vm0, %v1310_v34 }
  0x5d   :  { %1207 = vmatprep.mubr.msk.bf16.mxu1 %vm1311_vm0, %v1310_v34 }
  0x63   :  { %1192 = vmatmul.mubr.msk.bf16.gmra.mrb[32].mxu0 %vm527_vm1, %v1305_v3 }
  0x64   :  { %1208 = vmatmul.mubr.msk.bf16.gmra.mrb[32].mxu1 %vm527_vm1, %v1306_v4  ;;  %1195 = vmatprep.mubr.msk.bf16.mxu0 %vm1311_vm0, %v1310_v34 }
  0x65   :  { %1211 = vmatprep.mubr.msk.bf16.mxu1 %vm1311_vm0, %v1310_v34 }
  0x6b   :  { %1196 = vmatmul.mubr.msk.bf16.gmra.mrb[36].mxu0 %vm527_vm1, %v1307_v5 }
  0x6c   :  { %1212 = vmatmul.mubr.msk.bf16.gmra.mrb[36].mxu1 %vm527_vm1, %v1308_v6  ;;  %1199 = vmatprep.mubr.msk.bf16.mxu0 %vm1311_vm0, %v1310_v34 }
  0x73   :  { %1200 = vmatmul.mubr.msk.bf16.gmra.mrb[40].mxu0 %vm527_vm1, %v1309_v7 }
  0xf6   :  { %v1068_v8 = vpop.f32.mrb[0].mxu0 }
  0xf7   :  { %v1069_v10 = vpop.f32.mrb[1].mxu0  ;;  %v1126_v11 = vpop.f32.mrb[0].mxu1 }
  0xf8   :  { %v1070_v12 = vadd.f32 %v1069_v10, %v1068_v8  ;;  %v1071_v13 = vpop.f32.mrb[2].mxu0  ;;  %v1127_v14 = vpop.f32.mrb[1].mxu1 }
  0xf9   :  { %v1072_v15 = vpop.f32.mrb[3].mxu0  ;;  %v1128_v16 = vadd.f32 %v1127_v14, %v1126_v11  ;;  %v1129_v17 = vpop.f32.mrb[2].mxu1 }
  0xfa   :  { %v584_v18 = vadd.f32 %v1070_v12, %v1577_v9  ;;  %v1073_v19 = vadd.f32 %v1072_v15, %v1071_v13  ;;  %v1130_v20 = vpop.f32.mrb[3].mxu1 }
  0xfb   :  { %v1131_v21 = vadd.f32 %v1130_v20, %v1129_v17 }
  0xfc   :  { %v587_v22 = vadd.f32 %v1073_v19, %v1577_v9  ;;  %v1581_v23 = vadd.f32 %v1128_v16, %v584_v18 }
  0xfe   :  { %v1074_v24 = vpop.f32.mrb[4].mxu0  ;;  %v1583_v25 = vadd.f32 %v1131_v21, %v587_v22 }
  0xff   :  { %v1075_v26 = vpop.f32.mrb[5].mxu0  ;;  %v1132_v27 = vpop.f32.mrb[4].mxu1 }
 0x100   :  { %v1076_v28 = vadd.f32 %v1075_v26, %v1074_v24  ;;  %v1077_v29 = vpop.f32.mrb[6].mxu0  ;;  %v1133_v30 = vpop.f32.mrb[5].mxu1 }
 0x101   :  { %v1078_v31 = vpop.f32.mrb[7].mxu0  ;;  %v1134_v32 = vadd.f32 %v1133_v30, %v1132_v27  ;;  %v1135_v33 = vpop.f32.mrb[6].mxu1 }
 0x102   :  { %v592_v34 = vadd.f32 %v1076_v28, %v1577_v9  ;;  %v1079_v35 = vadd.f32 %v1078_v31, %v1077_v29  ;;  %v1136_v36 = vpop.f32.mrb[7].mxu1 }
 0x103   :  { %v1137_v37 = vadd.f32 %v1136_v36, %v1135_v33 }
 0x104   :  { %v595_v38 = vadd.f32 %v1079_v35, %v1577_v9  ;;  %v1587_v39 = vadd.f32 %v1134_v32, %v592_v34 }
 0x106   :  { %v1080_v40 = vpop.f32.mrb[8].mxu0  ;;  %v1589_v41 = vadd.f32 %v1137_v37, %v595_v38 }
 0x107   :  { %v1081_v42 = vpop.f32.mrb[9].mxu0  ;;  %v1138_v43 = vpop.f32.mrb[8].mxu1 }
 0x108   :  { %v1082_v44 = vadd.f32 %v1081_v42, %v1080_v40  ;;  %v1083_v45 = vpop.f32.mrb[10].mxu0  ;;  %v1139_v46 = vpop.f32.mrb[9].mxu1 }
 0x109   :  { %v1084_v47 = vpop.f32.mrb[11].mxu0  ;;  %v1140_v48 = vadd.f32 %v1139_v46, %v1138_v43  ;;  %v1141_v49 = vpop.f32.mrb[10].mxu1 }
 0x10a   :  { %v600_v50 = vadd.f32 %v1082_v44, %v1577_v9  ;;  %v1085_v51 = vadd.f32 %v1084_v47, %v1083_v45  ;;  %v1142_v52 = vpop.f32.mrb[11].mxu1 }
 0x10b   :  { %v1143_v53 = vadd.f32 %v1142_v52, %v1141_v49 }
 0x10c   :  { %v603_v54 = vadd.f32 %v1085_v51, %v1577_v9  ;;  %v1593_v55 = vadd.f32 %v1140_v48, %v600_v50 }
 0x10e   :  { %v1086_v56 = vpop.f32.mrb[12].mxu0  ;;  %v1595_v57 = vadd.f32 %v1143_v53, %v603_v54 }
 0x10f   :  { %v1087_v58 = vpop.f32.mrb[13].mxu0  ;;  %v1144_v59 = vpop.f32.mrb[12].mxu1 }
 0x110   :  { %v1088_v60 = vadd.f32 %v1087_v58, %v1086_v56  ;;  %v1089_v61 = vpop.f32.mrb[14].mxu0  ;;  %v1145_v62 = vpop.f32.mrb[13].mxu1 }
 0x111   :  { %v1090_v63 = vpop.f32.mrb[15].mxu0  ;;  %v1146_v0 = vadd.f32 %v1145_v62, %v1144_v59  ;;  %v1147_v1 = vpop.f32.mrb[14].mxu1 }
 0x112   :  { %v608_v2 = vadd.f32 %v1088_v60, %v1577_v9  ;;  %v1091_v3 = vadd.f32 %v1090_v63, %v1089_v61  ;;  %v1148_v4 = vpop.f32.mrb[15].mxu1 }
 0x113   :  { %v1149_v5 = vadd.f32 %v1148_v4, %v1147_v1 }
 0x114   :  { %v611_v6 = vadd.f32 %v1091_v3, %v1577_v9  ;;  %v1599_v7 = vadd.f32 %v1146_v0, %v608_v2 }
 0x116   :  { %v1092_v8 = vpop.f32.mrb[16].mxu0  ;;  %v1601_v10 = vadd.f32 %v1149_v5, %v611_v6 }
 0x117   :  { %v1093_v11 = vpop.f32.mrb[17].mxu0  ;;  %v1150_v12 = vpop.f32.mrb[16].mxu1 }
 0x118   :  { %v1094_v13 = vadd.f32 %v1093_v11, %v1092_v8  ;;  %v1095_v14 = vpop.f32.mrb[18].mxu0  ;;  %v1151_v15 = vpop.f32.mrb[17].mxu1 }
 0x119   :  { %v1096_v16 = vpop.f32.mrb[19].mxu0  ;;  %v1152_v17 = vadd.f32 %v1151_v15, %v1150_v12  ;;  %v1153_v18 = vpop.f32.mrb[18].mxu1 }
 0x11a   :  { %v616_v19 = vadd.f32 %v1094_v13, %v1577_v9  ;;  %v1097_v20 = vadd.f32 %v1096_v16, %v1095_v14  ;;  %v1154_v21 = vpop.f32.mrb[19].mxu1 }
 0x11b   :  { %v1155_v22 = vadd.f32 %v1154_v21, %v1153_v18 }
 0x11c   :  { %v619_v24 = vadd.f32 %v1097_v20, %v1577_v9  ;;  %v705_v26 = vadd.f32 %v1152_v17, %v616_v19 }
 0x11e   :  { %v1098_v27 = vpop.f32.mrb[20].mxu0  ;;  %v708_v28 = vadd.f32 %v1155_v22, %v619_v24 }
 0x11f   :  { %v1099_v29 = vpop.f32.mrb[21].mxu0  ;;  %v1156_v30 = vpop.f32.mrb[20].mxu1 }
 0x120   :  { %v1100_v31 = vadd.f32 %v1099_v29, %v1098_v27  ;;  %v1101_v32 = vpop.f32.mrb[22].mxu0  ;;  %v1157_v33 = vpop.f32.mrb[21].mxu1 }
 0x121   :  { %v1102_v34 = vpop.f32.mrb[23].mxu0  ;;  %v1158_v35 = vadd.f32 %v1157_v33, %v1156_v30  ;;  %v1159_v36 = vpop.f32.mrb[22].mxu1 }
 0x122   :  { %v624_v37 = vadd.f32 %v1100_v31, %v1577_v9  ;;  %v1103_v38 = vadd.f32 %v1102_v34, %v1101_v32  ;;  %v1160_v40 = vpop.f32.mrb[23].mxu1 }
 0x123   :  { %v1161_v42 = vadd.f32 %v1160_v40, %v1159_v36 }
 0x124   :  { %v627_v43 = vadd.f32 %v1103_v38, %v1577_v9  ;;  %v713_v44 = vadd.f32 %v1158_v35, %v624_v37 }
 0x126   :  { %v1104_v45 = vpop.f32.mrb[24].mxu0  ;;  %v716_v46 = vadd.f32 %v1161_v42, %v627_v43 }
 0x127   :  { %v1105_v47 = vpop.f32.mrb[25].mxu0  ;;  %v1162_v48 = vpop.f32.mrb[24].mxu1 }
 0x128   :  { %v1106_v49 = vadd.f32 %v1105_v47, %v1104_v45  ;;  %v1107_v50 = vpop.f32.mrb[26].mxu0  ;;  %v1163_v51 = vpop.f32.mrb[25].mxu1 }
 0x129   :  { %v1108_v52 = vpop.f32.mrb[27].mxu0  ;;  %v1164_v53 = vadd.f32 %v1163_v51, %v1162_v48  ;;  %v1165_v54 = vpop.f32.mrb[26].mxu1 }
 0x12a   :  { %v632_v56 = vadd.f32 %v1106_v49, %v1577_v9  ;;  %v1109_v58 = vadd.f32 %v1108_v52, %v1107_v50  ;;  %v1166_v59 = vpop.f32.mrb[27].mxu1 }
 0x12b   :  { %v1167_v60 = vadd.f32 %v1166_v59, %v1165_v54 }
 0x12c   :  { %v635_v61 = vadd.f32 %v1109_v58, %v1577_v9  ;;  %v721_v62 = vadd.f32 %v1164_v53, %v632_v56 }
 0x12e   :  { %v761_v63 = vpop.f32.mrb[28].mxu0  ;;  %v724_v0 = vadd.f32 %v1167_v60, %v635_v61 }
 0x12f   :  { %v762_v1 = vadd.f32 %v761_v63, %v1581_v23  ;;  %v793_v2 = vpop.f32.mrb[28].mxu1  ;;  %v1189_v3 = vpop.f32.mrb[29].mxu0 }
 0x130   :  { %v794_v4 = vadd.f32 %v793_v2, %v705_v26  ;;  %v1205_v5 = vpop.f32.mrb[29].mxu1  ;;  %v764_v6 = vpop.f32.mrb[30].mxu0 }
 0x131   :  { %v765_v8 = vadd.f32 %v764_v6, %v1583_v25  ;;  %v796_v11 = vpop.f32.mrb[30].mxu1  ;;  %v1190_v12 = vpop.f32.mrb[31].mxu0  ;;  %v816_v15 = vmax.f32 %v762_v1, 0.0 }
 0x132   :  { %v797_v13 = vadd.f32 %v796_v11, %v708_v28  ;;  %v1206_v14 = vpop.f32.mrb[31].mxu1  ;;  %v824_v17 = vmax.f32 %v794_v4, 0.0 }
 0x133   :  { %v817_v16 = vmax.f32 %v765_v8, 0.0 }
 0x134   :  { %v825_v9 = vmax.f32 %v797_v13, 0.0 }
 0x135   :  { %v1014_v18 = vpack.c.bf16 %v817_v16, %v816_v15 }
 0x136   :  { %v1034_v19 = vpack.c.bf16 %v825_v9, %v824_v17  ;;  %v769_v20 = vpop.f32.mrb[32].mxu0 }
 0x137   :  { %1015 = vst [vmem:[%s1641_s3] sm:$0xff] %v1014_v18   ;;  %v770_v23 = vadd.f32 %v769_v20, %v1587_v39  ;;  %v801_v21 = vpop.f32.mrb[32].mxu1  ;;  %v1193_v22 = vpop.f32.mrb[33].mxu0 }
 0x138   :  { %1049 = vst [vmem:[%s1641_s3 + $0x20] sm:$0xff] %v1034_v19   ;;  %v802_v25 = vadd.f32 %v801_v21, %v713_v44  ;;  %v1209_v24 = vpop.f32.mrb[33].mxu1  ;;  %v772_v26 = vpop.f32.mrb[34].mxu0 }
 0x139   :  { %v773_v27 = vadd.f32 %v772_v26, %v1589_v41  ;;  %v804_v28 = vpop.f32.mrb[34].mxu1  ;;  %v1194_v29 = vpop.f32.mrb[35].mxu0  ;;  %v818_v32 = vmax.f32 %v770_v23, 0.0 }
 0x13a   :  { %v805_v30 = vadd.f32 %v804_v28, %v716_v46  ;;  %v1210_v31 = vpop.f32.mrb[35].mxu1  ;;  %v826_v34 = vmax.f32 %v802_v25, 0.0 }
 0x13b   :  { %v819_v33 = vmax.f32 %v773_v27, 0.0 }
 0x13c   :  { %v827_v35 = vmax.f32 %v805_v30, 0.0 }
 0x13d   :  { %v1019_v39 = vpack.c.bf16 %v819_v33, %v818_v32 }
 0x13e   :  { %v1039_v36 = vpack.c.bf16 %v827_v35, %v826_v34  ;;  %v777_v37 = vpop.f32.mrb[36].mxu0 }
 0x13f   :  { %1046 = vst [vmem:[%s1641_s3 + $0x8] sm:$0xff] %v1019_v39   ;;  %v778_v38 = vadd.f32 %v777_v37, %v1593_v55  ;;  %v809_v40 = vpop.f32.mrb[36].mxu1  ;;  %v1197_v42 = vpop.f32.mrb[37].mxu0 }
 0x140   :  { %1050 = vst [vmem:[%s1641_s3 + $0x28] sm:$0xff] %v1039_v36   ;;  %v810_v41 = vadd.f32 %v809_v40, %v721_v62  ;;  %v1213_v43 = vpop.f32.mrb[37].mxu1  ;;  %v780_v44 = vpop.f32.mrb[38].mxu0 }
 0x141   :  { %v781_v45 = vadd.f32 %v780_v44, %v1595_v57  ;;  %v812_v46 = vpop.f32.mrb[38].mxu1  ;;  %v1198_v47 = vpop.f32.mrb[39].mxu0  ;;  %v820_v50 = vmax.f32 %v778_v38, 0.0 }
 0x142   :  { %v813_v48 = vadd.f32 %v812_v46, %v724_v0  ;;  %v1214_v49 = vpop.f32.mrb[39].mxu1  ;;  %v828_v52 = vmax.f32 %v810_v41, 0.0 }
 0x143   :  { %v821_v51 = vmax.f32 %v781_v45, 0.0 }
 0x144   :  { %v829_v53 = vmax.f32 %v813_v48, 0.0 }
 0x145   :  { %v1024_v55 = vpack.c.bf16 %v821_v51, %v820_v50 }
 0x146   :  { %v1044_v54 = vpack.c.bf16 %v829_v53, %v828_v52  ;;  %v785_v56 = vpop.f32.mrb[40].mxu0 }
 0x147   :  { %1047 = vst [vmem:[%s1641_s3 + $0x10] sm:$0xff] %v1024_v55   ;;  %v786_v58 = vadd.f32 %v785_v56, %v1599_v7  ;;  %v1201_v59 = vpop.f32.mrb[41].mxu0 }
 0x148   :  { %1051 = vst [vmem:[%s1641_s3 + $0x30] sm:$0xff] %v1044_v54   ;;  %v788_v57 = vpop.f32.mrb[42].mxu0 }
 0x149   :  { %v789_v60 = vadd.f32 %v788_v57, %v1601_v10  ;;  %v1202_v61 = vpop.f32.mrb[43].mxu0  ;;  %v822_v62 = vmax.f32 %v786_v58, 0.0 }
 0x14b   :  { %v823_v63 = vmax.f32 %v789_v60, 0.0 }
 0x14d   :  { %v1029_v0 = vpack.c.bf16 %v823_v63, %v822_v62 }
 0x14f   :  { %1048 = vst [vmem:[%s1641_s3 + $0x18] sm:$0xff] %v1029_v0  }

// kernel: inception_transfer_forward.29
= control target key start
LH: loop header
LB: loop body
LE: loop exit
PB: predicated region body
PF: predicated region fallthrough
CT: control target
= control target key end

     0   :  { %v1754_v38 = vmov 0.0   ;;  %vm1755_vm0 = vmmov 0   ;;  %vm755_vm1 = vcmask 785408   ;;  %s2194_s1 = inlined_call_operand.vmem [shape: bf16[864,128], index: 1, kind: input, shape index: {}]   ;;  %s2195_s0 = inlined_call_operand.vmem [shape: bf16[112,864], index: 0, kind: input, shape index: {}]   ;;  %s2196_s2 = inlined_call_operand.vmem [shape: f32[1,128], index: 2, kind: input, shape index: {}]   ;;  %s2197_s3 = inlined_call_operand.vmem [shape: bf16[112,128], index: 3, kind: output, shape index: {}]  }
   0x1   :  { %v1630_v0 = vld [vmem:[%s2194_s1 + $0x40] sm:$0xff]   ;;  %v1634_v4 = vld [vmem:[%s2194_s1 + $0x48] sm:$0xff]   ;;  %v1638_v8 = vld [vmem:[%s2194_s1 + $0x50] sm:$0xff]  }
   0x2   :  { %v1631_v1 = vld [vmem:[%s2194_s1] sm:$0xff]   ;;  %1401 = vmatprep.subr.bf16.mxu0 %v1630_v0  ;;  %v1635_v5 = vld [vmem:[%s2194_s1 + $0x8] sm:$0xff]   ;;  %v1639_v9 = vld [vmem:[%s2194_s1 + $0x10] sm:$0xff]  }
   0x3   :  { %v1632_v2 = vld [vmem:[%s2194_s1 + $0xc0] sm:$0xff]   ;;  %1402 = vmatpush3.bf16.msra.mxu0 %v1631_v1  ;;  %v1636_v6 = vld [vmem:[%s2194_s1 + $0xc8] sm:$0xff]   ;;  %v1640_v10 = vld [vmem:[%s2194_s1 + $0xd0] sm:$0xff]  }
   0x4   :  { %v1633_v3 = vld [vmem:[%s2194_s1 + $0x80] sm:$0xff]   ;;  %1459 = vmatprep.subr.bf16.mxu1 %v1632_v2  ;;  %1403 = vmatprep.subr.bf16.mxu0 %v1634_v4  ;;  %v1637_v7 = vld [vmem:[%s2194_s1 + $0x88] sm:$0xff]   ;;  %v1641_v11 = vld [vmem:[%s2194_s1 + $0x90] sm:$0xff]  }
   0x5   :  { %1460 = vmatpush3.bf16.msra.mxu1 %v1633_v3  ;;  %v1642_v12 = vld [vmem:[%s2194_s1 + $0x58] sm:$0xff]   ;;  %v1646_v16 = vld [vmem:[%s2194_s1 + $0x60] sm:$0xff]   ;;  %v1650_v20 = vld [vmem:[%s2194_s1 + $0x68] sm:$0xff]  }
   0x6   :  { %1461 = vmatprep.subr.bf16.mxu1 %v1636_v6  ;;  %v1643_v13 = vld [vmem:[%s2194_s1 + $0x18] sm:$0xff]   ;;  %v1647_v17 = vld [vmem:[%s2194_s1 + $0x20] sm:$0xff]   ;;  %v1651_v21 = vld [vmem:[%s2194_s1 + $0x28] sm:$0xff]  }
   0x7   :  { %1404 = vmatpush3.bf16.msra.mxu0 %v1635_v5  ;;  %v1644_v14 = vld [vmem:[%s2194_s1 + $0xd8] sm:$0xff]   ;;  %v1648_v18 = vld [vmem:[%s2194_s1 + $0xe0] sm:$0xff]   ;;  %v1652_v22 = vld [vmem:[%s2194_s1 + $0xe8] sm:$0xff]  }
   0x8   :  { %1405 = vmatprep.subr.bf16.mxu0 %v1638_v8  ;;  %v1645_v15 = vld [vmem:[%s2194_s1 + $0x98] sm:$0xff]   ;;  %v1649_v19 = vld [vmem:[%s2194_s1 + $0xa0] sm:$0xff]   ;;  %v1653_v23 = vld [vmem:[%s2194_s1 + $0xa8] sm:$0xff]  }
   0x9   :  { %1462 = vmatpush3.bf16.msra.mxu1 %v1637_v7  ;;  %v1654_v24 = vld [vmem:[%s2194_s1 + $0x70] sm:$0xff]   ;;  %v1658_v28 = vld [vmem:[%s2194_s1 + $0x78] sm:$0xff]   ;;  %v1663_v32 = vld [vmem:[%s2195_s0 + $0x4] ss:$28 sps:$4 sm:$0xff]  }
   0xa   :  { %1463 = vmatprep.subr.bf16.mxu1 %v1640_v10  ;;  %v1655_v25 = vld [vmem:[%s2194_s1 + $0x30] sm:$0xff]   ;;  %v1659_v29 = vld [vmem:[%s2194_s1 + $0x38] sm:$0xff]   ;;  %809 = vmatprep.mubr.bf16.mxu0 %v1663_v32  ;;  %v1665_v34 = vld [vmem:[%s2194_s1 + $0x140] sm:$0xff]  }
   0xb   :  { %1406 = vmatpush3.bf16.msra.mxu0 %v1639_v9  ;;  %v1656_v26 = vld [vmem:[%s2194_s1 + $0xf0] sm:$0xff]   ;;  %v1660_v30 = vld [vmem:[%s2194_s1 + $0xf8] sm:$0xff]   ;;  %v1666_v35 = vld [vmem:[%s2195_s0 + $0x8] ss:$28 sps:$4 sm:$0xff]  }
   0xc   :  { %1407 = vmatprep.subr.bf16.mxu0 %v1642_v12  ;;  %v1657_v27 = vld [vmem:[%s2194_s1 + $0xb0] sm:$0xff]   ;;  %v1661_v31 = vld [vmem:[%s2195_s0] ss:$28 sps:$4 sm:$0xff]   ;;  %v1668_v36 = vld [vmem:[%s2195_s0 + $0xc] ss:$28 sps:$4 sm:$0xff]  }
   0xd   :  { %1464 = vmatpush3.bf16.msra.mxu1 %v1641_v11  ;;  %v1664_v33 = vld [vmem:[%s2194_s1 + $0xb8] sm:$0xff]   ;;  %v1669_v37 = vld [vmem:[%s2194_s1 + $0x100] sm:$0xff]   ;;  %898 = vmatprep.mubr.bf16.mxu1 %v1668_v36  ;;  %v1673_v41 = vld [vmem:[%s2194_s1 + $0x148] sm:$0xff]  }
   0xe   :  { %1465 = vmatprep.subr.bf16.mxu1 %v1644_v14  ;;  %v1670_v39 = vld [vmem:[%s2194_s1 + $0x180] sm:$0xff]   ;;  %v1671_v40 = vld [vmem:[%s2195_s0 + $0x3c] ss:$28 sps:$4 sm:$0xff]   ;;  %v1675_v43 = vld [vmem:[%s2194_s1 + $0x108] sm:$0xff]  }
   0xf   :  { %1408 = vmatpush3.bf16.msra.mxu0 %v1643_v13  ;;  %v1674_v42 = vld [vmem:[%s2195_s0 + $0x38] ss:$28 sps:$4 sm:$0xff]   ;;  %v1676_v44 = vld [vmem:[%s2195_s0 + $0x44] ss:$28 sps:$4 sm:$0xff]   ;;  %v1684_v49 = vld [vmem:[%s2194_s1 + $0x188] sm:$0xff]  }
  0x10   :  { %1409 = vmatprep.subr.bf16.mxu0 %v1646_v16  ;;  %v1678_v45 = vld [vmem:[%s2195_s0 + $0x40] ss:$28 sps:$4 sm:$0xff]   ;;  %v1679_v46 = vld [vmem:[%s2194_s1 + $0x150] sm:$0xff]   ;;  %v1690_v55 = vld [vmem:[%s2195_s0 + $0xac] ss:$28 sps:$4 sm:$0xff]  }
  0x11   :  { %1466 = vmatpush3.bf16.msra.mxu1 %v1645_v15  ;;  %v1680_v47 = vld [vmem:[%s2195_s0 + $0x74] ss:$28 sps:$4 sm:$0xff]   ;;  %v1685_v51 = vld [vmem:[%s2195_s0 + $0x7c] ss:$28 sps:$4 sm:$0xff]   ;;  %v1692_v57 = vld [vmem:[%s2195_s0 + $0xa8] ss:$28 sps:$4 sm:$0xff]  }
  0x12   :  { %1467 = vmatprep.subr.bf16.mxu1 %v1648_v18  ;;  %v1682_v48 = vld [vmem:[%s2194_s1 + $0x110] sm:$0xff]   ;;  %v1688_v53 = vld [vmem:[%s2194_s1 + $0x158] sm:$0xff]   ;;  %v1697_v59 = vld [vmem:[%s2194_s1 + $0x160] sm:$0xff]  }
  0x13   :  { %1410 = vmatpush3.bf16.msra.mxu0 %v1647_v17  ;;  %v1683_v50 = vld [vmem:[%s2195_s0 + $0x70] ss:$28 sps:$4 sm:$0xff]   ;;  %v1687_v52 = vld [vmem:[%s2195_s0 + $0x78] ss:$28 sps:$4 sm:$0xff]   ;;  %v1698_v60 = vld [vmem:[%s2194_s1 + $0x120] sm:$0xff]  }
  0x14   :  { %1411 = vmatprep.subr.bf16.mxu0 %v1650_v20  ;;  %v1689_v54 = vld [vmem:[%s2194_s1 + $0x118] sm:$0xff]   ;;  %v1693_v56 = vld [vmem:[%s2195_s0 + $0xb4] ss:$28 sps:$4 sm:$0xff]   ;;  %v1699_v61 = vld [vmem:[%s2195_s0 + $0xe4] ss:$28 sps:$4 sm:$0xff]  }
  0x15   :  { %1468 = vmatpush3.bf16.msra.mxu1 %v1649_v19  ;;  %v1695_v58 = vld [vmem:[%s2194_s1 + $0x190] sm:$0xff]   ;;  %v1702_v63 = vld [vmem:[%s2195_s0 + $0xec] ss:$28 sps:$4 sm:$0xff]   ;;  %v1705_v0 = vld [vmem:[%s2194_s1 + $0x198] sm:$0xff]  }
  0x16   :  { %1469 = vmatprep.subr.bf16.mxu1 %v1652_v22  ;;  %v1696_v62 = vld [vmem:[%s2195_s0 + $0xb0] ss:$28 sps:$4 sm:$0xff]   ;;  %v1701_v3 = vld [vmem:[%s2195_s0 + $0xe0] ss:$28 sps:$4 sm:$0xff]   ;;  %v1704_v5 = vld [vmem:[%s2195_s0 + $0xe8] ss:$28 sps:$4 sm:$0xff]  }
  0x17   :  { %1412 = vmatpush3.bf16.msra.mxu0 %v1651_v21  ;;  %v1706_v1 = vld [vmem:[%s2194_s1 + $0x168] sm:$0xff]   ;;  %v1708_v4 = vld [vmem:[%s2195_s0 + $0x11c] ss:$28 sps:$4 sm:$0xff]   ;;  %v1714_v6 = vld [vmem:[%s2194_s1 + $0x170] sm:$0xff]  }
  0x18   :  { %1413 = vmatprep.subr.bf16.mxu0 %v1654_v24  ;;  %v1707_v2 = vld [vmem:[%s2194_s1 + $0x128] sm:$0xff]   ;;  %v1715_v7 = vld [vmem:[%s2194_s1 + $0x130] sm:$0xff]   ;;  %v1716_v8 = vld [vmem:[%s2194_s1 + $0x1a0] sm:$0xff]  }
  0x19   :  { %1470 = vmatpush3.bf16.msra.mxu1 %v1653_v23  ;;  %v1711_v9 = vld [vmem:[%s2195_s0 + $0x124] ss:$28 sps:$4 sm:$0xff]   ;;  %v1710_v10 = vld [vmem:[%s2195_s0 + $0x118] ss:$28 sps:$4 sm:$0xff]   ;;  %v1725_v14 = vld [vmem:[%s2194_s1 + $0x1a8] sm:$0xff]  }
  0x1a   :  { %1471 = vmatprep.subr.bf16.mxu1 %v1656_v26  ;;  %v1717_v11 = vld [vmem:[%s2195_s0 + $0x154] ss:$28 sps:$4 sm:$0xff]   ;;  %v1722_v12 = vld [vmem:[%s2194_s1 + $0x178] sm:$0xff]   ;;  %v1730_v21 = vld [vmem:[%s2195_s0 + $0x4c] ss:$28 sps:$4 sm:$0xff]  }
  0x1b   :  { %1414 = vmatpush3.bf16.msra.mxu0 %v1655_v25  ;;  %v1724_v13 = vld [vmem:[%s2194_s1 + $0x138] sm:$0xff]   ;;  %v1719_v17 = vld [vmem:[%s2195_s0 + $0x150] ss:$28 sps:$4 sm:$0xff]   ;;  %v1732_v23 = vld [vmem:[%s2195_s0 + $0x48] ss:$28 sps:$4 sm:$0xff]  }
  0x1c   :  { %1415 = vmatprep.subr.bf16.mxu0 %v1658_v28  ;;  %v1713_v15 = vld [vmem:[%s2195_s0 + $0x120] ss:$28 sps:$4 sm:$0xff]   ;;  %v1728_v18 = vld [vmem:[%s2195_s0 + $0x14] ss:$28 sps:$4 sm:$0xff]   ;;  %v1737_v28 = vld [vmem:[%s2195_s0 + $0x88] ss:$28 sps:$4 sm:$0xff]  }
  0x1d   :  { %1472 = vmatpush3.bf16.msra.mxu1 %v1657_v27  ;;  %v1720_v16 = vld [vmem:[%s2195_s0 + $0x15c] ss:$28 sps:$4 sm:$0xff]   ;;  %v1726_v20 = vld [vmem:[%s2195_s0 + $0x10] ss:$28 sps:$4 sm:$0xff]   ;;  %v1734_v24 = vld [vmem:[%s2195_s0 + $0x84] ss:$28 sps:$4 sm:$0xff]  }
  0x1e   :  { %1473 = vmatprep.subr.bf16.mxu1 %v1660_v30  ;;  %v1723_v19 = vld [vmem:[%s2195_s0 + $0x158] ss:$28 sps:$4 sm:$0xff]   ;;  %v1733_v25 = vld [vmem:[%s2195_s0 + $0x50] ss:$28 sps:$4 sm:$0xff]   ;;  %v1736_v26 = vld [vmem:[%s2195_s0 + $0x80] ss:$28 sps:$4 sm:$0xff]  }
  0x1f   :  { %1416 = vmatpush3.bf16.msra.mxu0 %v1659_v29  ;;  %v1729_v22 = vld [vmem:[%s2195_s0 + $0x18] ss:$28 sps:$4 sm:$0xff]   ;;  %v1744_v32 = vld [vmem:[%s2195_s0 + $0xf0] ss:$28 sps:$4 sm:$0xff]   ;;  %v1750_v36 = vld [vmem:[%s2195_s0 + $0x164] ss:$28 sps:$4 sm:$0xff]  }
  0x20   :  { %1517 = vmatprep.subr.bf16.mxu0 %v1665_v34  ;;  %v1738_v27 = vld [vmem:[%s2195_s0 + $0xbc] ss:$28 sps:$4 sm:$0xff]   ;;  %v1742_v30 = vld [vmem:[%s2195_s0 + $0xf4] ss:$28 sps:$4 sm:$0xff]  }
  0x21   :  { %1474 = vmatpush3.bf16.msra.mxu1 %v1664_v33  ;;  %v1740_v29 = vld [vmem:[%s2195_s0 + $0xb8] ss:$28 sps:$4 sm:$0xff]   ;;  %v1746_v33 = vld [vmem:[%s2195_s0 + $0x12c] ss:$28 sps:$4 sm:$0xff]  }
  0x22   :  { %810 = vmatmul.mubr.bf16.vlgmr.msra.gmra.mrb[0].mxu0 %v1661_v31  ;;  %1588 = vmatprep.subr.bf16.mxu1 %v1754_v38  ;;  %v1741_v31 = vld [vmem:[%s2195_s0 + $0xc0] ss:$28 sps:$4 sm:$0xff]   ;;  %v1745_v34 = vld [vmem:[%s2195_s0 + $0xf8] ss:$28 sps:$4 sm:$0xff]  }
  0x23   :  { %1518 = vmatpush3.bf16.msra.mxu0 %v1669_v37  ;;  %817 = vmatprep.mubr.bf16.mxu0 %v1671_v40  ;;  %v1749_v37 = vld [vmem:[%s2195_s0 + $0x130] ss:$28 sps:$4 sm:$0xff]   ;;  %v1753_v40 = vld [vmem:[%s2195_s0 + $0x168] ss:$28 sps:$4 sm:$0xff]  }
  0x24   :  { %899 = vmatmul.mubr.bf16.vlgmr.msra.gmra.mrb[0].mxu1 %v1666_v35  ;;  %1519 = vmatprep.subr.bf16.mxu0 %v1673_v41  ;;  %v1748_v35 = vld [vmem:[%s2195_s0 + $0x128] ss:$28 sps:$4 sm:$0xff]  }
  0x25   :  { %1589 = vmatpush3.bf16.msra.mxu1 %v1670_v39  ;;  %906 = vmatprep.mubr.bf16.mxu1 %v1676_v44  ;;  %v1752_v39 = vld [vmem:[%s2195_s0 + $0x160] ss:$28 sps:$4 sm:$0xff]  }
  0x26   :  { %1590 = vmatprep.subr.bf16.mxu1 %v1754_v38 }
  0x27   :  { %1520 = vmatpush3.bf16.msra.mxu0 %v1675_v43 }
  0x28   :  { %1521 = vmatprep.subr.bf16.mxu0 %v1679_v46 }
  0x29   :  { %1591 = vmatpush3.bf16.msra.mxu1 %v1684_v49 }
  0x2a   :  { %818 = vmatmul.mubr.bf16.gmra.mrb[4].mxu0 %v1674_v42  ;;  %1592 = vmatprep.subr.bf16.mxu1 %v1754_v38  ;;  %v2115_v42 = vld [vmem:[%s2196_s2] ss:$0 sm:$0xff] }
  0x2b   :  { %825 = vmatprep.mubr.bf16.mxu0 %v1680_v47  ;;  %1522 = vmatpush3.bf16.msra.mxu0 %v1682_v48 }
  0x2c   :  { %907 = vmatmul.mubr.bf16.gmra.mrb[4].mxu1 %v1678_v45  ;;  %1523 = vmatprep.subr.bf16.mxu0 %v1688_v53 }
  0x2d   :  { %914 = vmatprep.mubr.bf16.mxu1 %v1685_v51  ;;  %1593 = vmatpush3.bf16.msra.mxu1 %v1695_v58 }
  0x2e   :  { %1594 = vmatprep.subr.bf16.mxu1 %v1754_v38 }
  0x2f   :  { %1524 = vmatpush3.bf16.msra.mxu0 %v1689_v54 }
  0x30   :  { %1525 = vmatprep.subr.bf16.mxu0 %v1697_v59 }
  0x31   :  { %1595 = vmatpush3.bf16.msra.mxu1 %v1705_v0 }
  0x32   :  { %826 = vmatmul.mubr.bf16.gmra.mrb[8].mxu0 %v1683_v50  ;;  %1596 = vmatprep.subr.bf16.mxu1 %v1754_v38 }
  0x33   :  { %833 = vmatprep.mubr.bf16.mxu0 %v1690_v55  ;;  %1526 = vmatpush3.bf16.msra.mxu0 %v1698_v60 }
  0x34   :  { %915 = vmatmul.mubr.bf16.gmra.mrb[8].mxu1 %v1687_v52  ;;  %1527 = vmatprep.subr.bf16.mxu0 %v1706_v1 }
  0x35   :  { %922 = vmatprep.mubr.bf16.mxu1 %v1693_v56  ;;  %1597 = vmatpush3.bf16.msra.mxu1 %v1716_v8 }
  0x36   :  { %1598 = vmatprep.subr.bf16.mxu1 %v1754_v38 }
  0x37   :  { %1528 = vmatpush3.bf16.msra.mxu0 %v1707_v2 }
  0x38   :  { %1529 = vmatprep.subr.bf16.mxu0 %v1714_v6 }
  0x39   :  { %1599 = vmatpush3.bf16.msra.mxu1 %v1725_v14 }
  0x3a   :  { %834 = vmatmul.mubr.bf16.gmra.mrb[12].mxu0 %v1692_v57 }
  0x3b   :  { %841 = vmatprep.mubr.bf16.mxu0 %v1699_v61  ;;  %1530 = vmatpush3.bf16.msra.mxu0 %v1715_v7 }
  0x3c   :  { %923 = vmatmul.mubr.bf16.gmra.mrb[12].mxu1 %v1696_v62  ;;  %1531 = vmatprep.subr.bf16.mxu0 %v1722_v12 }
  0x3d   :  { %930 = vmatprep.mubr.bf16.mxu1 %v1702_v63 }
  0x3f   :  { %1532 = vmatpush3.bf16.msra.mxu0 %v1724_v13 }
  0x42   :  { %842 = vmatmul.mubr.bf16.gmra.mrb[16].mxu0 %v1701_v3 }
  0x43   :  { %849 = vmatprep.mubr.bf16.mxu0 %v1708_v4 }
  0x44   :  { %931 = vmatmul.mubr.bf16.gmra.mrb[16].mxu1 %v1704_v5 }
  0x45   :  { %938 = vmatprep.mubr.bf16.mxu1 %v1711_v9 }
  0x4a   :  { %850 = vmatmul.mubr.bf16.gmra.mrb[20].mxu0 %v1710_v10 }
  0x4b   :  { %857 = vmatprep.mubr.bf16.mxu0 %v1717_v11 }
  0x4c   :  { %939 = vmatmul.mubr.bf16.gmra.mrb[20].mxu1 %v1713_v15 }
  0x4d   :  { %946 = vmatprep.mubr.bf16.mxu1 %v1720_v16 }
  0x52   :  { %858 = vmatmul.mubr.bf16.gmra.mrb[24].mxu0 %v1719_v17 }
  0x53   :  { %987 = vmatprep.mubr.bf16.mxu0 %v1728_v18 }
  0x54   :  { %947 = vmatmul.mubr.bf16.gmra.mrb[24].mxu1 %v1723_v19 }
  0x55   :  { %1600 = vmatprep.mubr.msk.bf16.mxu1 %vm1755_vm0, %v1754_v38 }
  0x5a   :  { %988 = vmatmul.mubr.bf16.vlgmr.msra.gmra.mrb[28].mxu0 %v1726_v20 }
  0x5b   :  { %995 = vmatprep.mubr.bf16.mxu0 %v1730_v21 }
  0x5c   :  { %1601 = vmatmul.mubr.msk.bf16.vlgmr.msra.gmra.mrb[28].mxu1 %vm755_vm1, %v1729_v22 }
  0x5d   :  { %1604 = vmatprep.mubr.msk.bf16.mxu1 %vm1755_vm0, %v1754_v38 }
  0x62   :  { %996 = vmatmul.mubr.bf16.gmra.mrb[32].mxu0 %v1732_v23 }
  0x63   :  { %1003 = vmatprep.mubr.bf16.mxu0 %v1734_v24 }
  0x64   :  { %1605 = vmatmul.mubr.msk.bf16.gmra.mrb[32].mxu1 %vm755_vm1, %v1733_v25 }
  0x65   :  { %1608 = vmatprep.mubr.msk.bf16.mxu1 %vm1755_vm0, %v1754_v38 }
  0x6a   :  { %1004 = vmatmul.mubr.bf16.gmra.mrb[36].mxu0 %v1736_v26 }
  0x6b   :  { %1011 = vmatprep.mubr.bf16.mxu0 %v1738_v27 }
  0x6c   :  { %1609 = vmatmul.mubr.msk.bf16.gmra.mrb[36].mxu1 %vm755_vm1, %v1737_v28 }
  0x6d   :  { %1612 = vmatprep.mubr.msk.bf16.mxu1 %vm1755_vm0, %v1754_v38 }
  0x72   :  { %1012 = vmatmul.mubr.bf16.gmra.mrb[40].mxu0 %v1740_v29 }
  0x73   :  { %1019 = vmatprep.mubr.bf16.mxu0 %v1742_v30 }
  0x74   :  { %1613 = vmatmul.mubr.msk.bf16.gmra.mrb[40].mxu1 %vm755_vm1, %v1741_v31 }
  0x75   :  { %1616 = vmatprep.mubr.msk.bf16.mxu1 %vm1755_vm0, %v1754_v38 }
  0x7a   :  { %1020 = vmatmul.mubr.bf16.gmra.mrb[44].mxu0 %v1744_v32 }
  0x7b   :  { %1027 = vmatprep.mubr.bf16.mxu0 %v1746_v33 }
  0x7c   :  { %1617 = vmatmul.mubr.msk.bf16.gmra.mrb[44].mxu1 %vm755_vm1, %v1745_v34 }
  0x7d   :  { %1620 = vmatprep.mubr.msk.bf16.mxu1 %vm1755_vm0, %v1754_v38 }
  0x82   :  { %1028 = vmatmul.mubr.bf16.gmra.mrb[48].mxu0 %v1748_v35 }
  0x83   :  { %1035 = vmatprep.mubr.bf16.mxu0 %v1750_v36 }
  0x84   :  { %1621 = vmatmul.mubr.msk.bf16.gmra.mrb[48].mxu1 %vm755_vm1, %v1749_v37 }
  0x85   :  { %1624 = vmatprep.mubr.msk.bf16.mxu1 %vm1755_vm0, %v1754_v38 }
  0x8a   :  { %1036 = vmatmul.mubr.bf16.gmra.mrb[52].mxu0 %v1752_v39 }
  0x8c   :  { %1625 = vmatmul.mubr.msk.bf16.gmra.mrb[52].mxu1 %vm755_vm1, %v1753_v40 }
  0xf5   :  { %v1417_v41 = vpop.f32.mrb[0].mxu0 }
  0xf6   :  { %v1418_v43 = vpop.f32.mrb[1].mxu0 }
  0xf7   :  { %v1419_v44 = vadd.f32 %v1418_v43, %v1417_v41  ;;  %v1420_v45 = vpop.f32.mrb[2].mxu0  ;;  %v1475_v46 = vpop.f32.mrb[0].mxu1 }
  0xf8   :  { %v1421_v47 = vpop.f32.mrb[3].mxu0  ;;  %v1476_v49 = vpop.f32.mrb[1].mxu1 }
  0xf9   :  { %v812_v38 = vadd.f32 %v1419_v44, %v2115_v42  ;;  %v1422_v48 = vadd.f32 %v1421_v47, %v1420_v45  ;;  %v1477_v50 = vadd.f32 %v1476_v49, %v1475_v46  ;;  %v1478_v51 = vpop.f32.mrb[2].mxu1 }
  0xfa   :  { %v1479_v53 = vpop.f32.mrb[3].mxu1 }
  0xfb   :  { %v815_v52 = vadd.f32 %v1422_v48, %v2115_v42  ;;  %v2119_v54 = vadd.f32 %v1477_v50, %v812_v38  ;;  %v1480_v55 = vadd.f32 %v1479_v53, %v1478_v51 }
  0xfd   :  { %v1423_v56 = vpop.f32.mrb[4].mxu0  ;;  %v2121_v57 = vadd.f32 %v1480_v55, %v815_v52 }
  0xfe   :  { %v1424_v58 = vpop.f32.mrb[5].mxu0 }
  0xff   :  { %v1425_v59 = vadd.f32 %v1424_v58, %v1423_v56  ;;  %v1426_v60 = vpop.f32.mrb[6].mxu0  ;;  %v1481_v61 = vpop.f32.mrb[4].mxu1 }
 0x100   :  { %v1427_v62 = vpop.f32.mrb[7].mxu0  ;;  %v1482_v1 = vpop.f32.mrb[5].mxu1 }
 0x101   :  { %v820_v63 = vadd.f32 %v1425_v59, %v2115_v42  ;;  %v1428_v0 = vadd.f32 %v1427_v62, %v1426_v60  ;;  %v1483_v2 = vadd.f32 %v1482_v1, %v1481_v61  ;;  %v1484_v3 = vpop.f32.mrb[6].mxu1 }
 0x102   :  { %v1485_v5 = vpop.f32.mrb[7].mxu1 }
 0x103   :  { %v823_v4 = vadd.f32 %v1428_v0, %v2115_v42  ;;  %v2125_v6 = vadd.f32 %v1483_v2, %v820_v63  ;;  %v1486_v7 = vadd.f32 %v1485_v5, %v1484_v3 }
 0x105   :  { %v1429_v8 = vpop.f32.mrb[8].mxu0  ;;  %v2127_v9 = vadd.f32 %v1486_v7, %v823_v4 }
 0x106   :  { %v1430_v10 = vpop.f32.mrb[9].mxu0 }
 0x107   :  { %v1431_v11 = vadd.f32 %v1430_v10, %v1429_v8  ;;  %v1432_v12 = vpop.f32.mrb[10].mxu0  ;;  %v1487_v13 = vpop.f32.mrb[8].mxu1 }
 0x108   :  { %v1433_v14 = vpop.f32.mrb[11].mxu0  ;;  %v1488_v17 = vpop.f32.mrb[9].mxu1 }
 0x109   :  { %v828_v15 = vadd.f32 %v1431_v11, %v2115_v42  ;;  %v1434_v16 = vadd.f32 %v1433_v14, %v1432_v12  ;;  %v1489_v18 = vadd.f32 %v1488_v17, %v1487_v13  ;;  %v1490_v19 = vpop.f32.mrb[10].mxu1 }
 0x10a   :  { %v1491_v21 = vpop.f32.mrb[11].mxu1 }
 0x10b   :  { %v831_v20 = vadd.f32 %v1434_v16, %v2115_v42  ;;  %v2131_v22 = vadd.f32 %v1489_v18, %v828_v15  ;;  %v1492_v23 = vadd.f32 %v1491_v21, %v1490_v19 }
 0x10d   :  { %v1435_v24 = vpop.f32.mrb[12].mxu0  ;;  %v2133_v25 = vadd.f32 %v1492_v23, %v831_v20 }
 0x10e   :  { %v1436_v26 = vpop.f32.mrb[13].mxu0 }
 0x10f   :  { %v1437_v27 = vadd.f32 %v1436_v26, %v1435_v24  ;;  %v1438_v28 = vpop.f32.mrb[14].mxu0  ;;  %v1493_v29 = vpop.f32.mrb[12].mxu1 }
 0x110   :  { %v1439_v30 = vpop.f32.mrb[15].mxu0  ;;  %v1494_v33 = vpop.f32.mrb[13].mxu1 }
 0x111   :  { %v836_v31 = vadd.f32 %v1437_v27, %v2115_v42  ;;  %v1440_v32 = vadd.f32 %v1439_v30, %v1438_v28  ;;  %v1495_v34 = vadd.f32 %v1494_v33, %v1493_v29  ;;  %v1496_v35 = vpop.f32.mrb[14].mxu1 }
 0x112   :  { %v1497_v37 = vpop.f32.mrb[15].mxu1 }
 0x113   :  { %v839_v36 = vadd.f32 %v1440_v32, %v2115_v42  ;;  %v2137_v39 = vadd.f32 %v1495_v34, %v836_v31  ;;  %v1498_v40 = vadd.f32 %v1497_v37, %v1496_v35 }
 0x115   :  { %v1441_v41 = vpop.f32.mrb[16].mxu0  ;;  %v2139_v43 = vadd.f32 %v1498_v40, %v839_v36 }
 0x116   :  { %v1442_v44 = vpop.f32.mrb[17].mxu0 }
 0x117   :  { %v1443_v45 = vadd.f32 %v1442_v44, %v1441_v41  ;;  %v1444_v46 = vpop.f32.mrb[18].mxu0  ;;  %v1499_v47 = vpop.f32.mrb[16].mxu1 }
 0x118   :  { %v1445_v38 = vpop.f32.mrb[19].mxu0  ;;  %v1500_v50 = vpop.f32.mrb[17].mxu1 }
 0x119   :  { %v844_v48 = vadd.f32 %v1443_v45, %v2115_v42  ;;  %v1446_v49 = vadd.f32 %v1445_v38, %v1444_v46  ;;  %v1501_v51 = vadd.f32 %v1500_v50, %v1499_v47  ;;  %v1502_v52 = vpop.f32.mrb[18].mxu1 }
 0x11a   :  { %v1503_v55 = vpop.f32.mrb[19].mxu1 }
 0x11b   :  { %v847_v53 = vadd.f32 %v1446_v49, %v2115_v42  ;;  %v2143_v56 = vadd.f32 %v1501_v51, %v844_v48  ;;  %v1504_v58 = vadd.f32 %v1503_v55, %v1502_v52 }
 0x11d   :  { %v1447_v59 = vpop.f32.mrb[20].mxu0  ;;  %v2145_v60 = vadd.f32 %v1504_v58, %v847_v53 }
 0x11e   :  { %v1448_v61 = vpop.f32.mrb[21].mxu0 }
 0x11f   :  { %v1449_v62 = vadd.f32 %v1448_v61, %v1447_v59  ;;  %v1450_v63 = vpop.f32.mrb[22].mxu0  ;;  %v1505_v0 = vpop.f32.mrb[20].mxu1 }
 0x120   :  { %v1451_v1 = vpop.f32.mrb[23].mxu0  ;;  %v1506_v4 = vpop.f32.mrb[21].mxu1 }
 0x121   :  { %v852_v2 = vadd.f32 %v1449_v62, %v2115_v42  ;;  %v1452_v3 = vadd.f32 %v1451_v1, %v1450_v63  ;;  %v1507_v5 = vadd.f32 %v1506_v4, %v1505_v0  ;;  %v1508_v7 = vpop.f32.mrb[22].mxu1 }
 0x122   :  { %v1509_v10 = vpop.f32.mrb[23].mxu1 }
 0x123   :  { %v855_v8 = vadd.f32 %v1452_v3, %v2115_v42  ;;  %v2149_v11 = vadd.f32 %v1507_v5, %v852_v2  ;;  %v1510_v12 = vadd.f32 %v1509_v10, %v1508_v7 }
 0x125   :  { %v1453_v13 = vpop.f32.mrb[24].mxu0  ;;  %v2151_v14 = vadd.f32 %v1510_v12, %v855_v8 }
 0x126   :  { %v1454_v15 = vpop.f32.mrb[25].mxu0 }
 0x127   :  { %v1455_v16 = vadd.f32 %v1454_v15, %v1453_v13  ;;  %v1456_v17 = vpop.f32.mrb[26].mxu0  ;;  %v1511_v18 = vpop.f32.mrb[24].mxu1 }
 0x128   :  { %v1457_v19 = vpop.f32.mrb[27].mxu0  ;;  %v1512_v23 = vpop.f32.mrb[25].mxu1 }
 0x129   :  { %v860_v20 = vadd.f32 %v1455_v16, %v2115_v42  ;;  %v1458_v21 = vadd.f32 %v1457_v19, %v1456_v17  ;;  %v1513_v24 = vadd.f32 %v1512_v23, %v1511_v18  ;;  %v1514_v26 = vpop.f32.mrb[26].mxu1 }
 0x12a   :  { %v1515_v28 = vpop.f32.mrb[27].mxu1 }
 0x12b   :  { %v863_v27 = vadd.f32 %v1458_v21, %v2115_v42  ;;  %v2155_v29 = vadd.f32 %v1513_v24, %v860_v20  ;;  %v1516_v30 = vadd.f32 %v1515_v28, %v1514_v26 }
 0x12d   :  { %v1533_v31 = vpop.f32.mrb[28].mxu0  ;;  %v2157_v32 = vadd.f32 %v1516_v30, %v863_v27 }
 0x12e   :  { %v1534_v33 = vpop.f32.mrb[29].mxu0 }
 0x12f   :  { %v1535_v34 = vadd.f32 %v1534_v33, %v1533_v31  ;;  %v1536_v35 = vpop.f32.mrb[30].mxu0  ;;  %v1078_v37 = vpop.f32.mrb[28].mxu1 }
 0x130   :  { %v1537_v36 = vpop.f32.mrb[31].mxu0  ;;  %v1602_v44 = vpop.f32.mrb[29].mxu1 }
 0x131   :  { %v1538_v40 = vadd.f32 %v1537_v36, %v1536_v35  ;;  %v990_v41 = vadd.f32 %v1535_v34, %v2119_v54  ;;  %v1081_v45 = vpop.f32.mrb[30].mxu1 }
 0x132   :  { %v1603_v47 = vpop.f32.mrb[31].mxu1 }
 0x133   :  { %v1079_v46 = vadd.f32 %v1078_v37, %v990_v41  ;;  %v993_v42 = vadd.f32 %v1538_v40, %v2121_v57 }
 0x135   :  { %v1082_v38 = vadd.f32 %v1081_v45, %v993_v42  ;;  %v1539_v48 = vpop.f32.mrb[32].mxu0  ;;  %v1133_v50 = vmax.f32 %v1079_v46, 0.0 }
 0x136   :  { %v1540_v49 = vpop.f32.mrb[33].mxu0 }
 0x137   :  { %v1134_v51 = vmax.f32 %v1082_v38, 0.0  ;;  %v1541_v52 = vadd.f32 %v1540_v49, %v1539_v48  ;;  %v1542_v53 = vpop.f32.mrb[34].mxu0  ;;  %v1086_v58 = vpop.f32.mrb[32].mxu1 }
 0x138   :  { %v1543_v55 = vpop.f32.mrb[35].mxu0  ;;  %v1606_v54 = vpop.f32.mrb[33].mxu1 }
 0x139   :  { %v1363_v59 = vpack.c.bf16 %v1134_v51, %v1133_v50  ;;  %v1544_v61 = vadd.f32 %v1543_v55, %v1542_v53  ;;  %v998_v62 = vadd.f32 %v1541_v52, %v2125_v6  ;;  %v1089_v63 = vpop.f32.mrb[34].mxu1 }
 0x13a   :  { %v1607_v1 = vpop.f32.mrb[35].mxu1 }
 0x13b   :  { %1364 = vst [vmem:[%s2197_s3] sm:$0xff] %v1363_v59   ;;  %v1087_v57 = vadd.f32 %v1086_v58, %v998_v62  ;;  %v1001_v0 = vadd.f32 %v1544_v61, %v2127_v9 }
 0x13d   :  { %v1090_v2 = vadd.f32 %v1089_v63, %v1001_v0  ;;  %v1545_v3 = vpop.f32.mrb[36].mxu0  ;;  %v1135_v5 = vmax.f32 %v1087_v57, 0.0 }
 0x13e   :  { %v1546_v4 = vpop.f32.mrb[37].mxu0 }
 0x13f   :  { %v1136_v7 = vmax.f32 %v1090_v2, 0.0  ;;  %v1547_v8 = vadd.f32 %v1546_v4, %v1545_v3  ;;  %v1548_v10 = vpop.f32.mrb[38].mxu0  ;;  %v1094_v13 = vpop.f32.mrb[36].mxu1 }
 0x140   :  { %v1549_v12 = vpop.f32.mrb[39].mxu0  ;;  %v1610_v17 = vpop.f32.mrb[37].mxu1 }
 0x141   :  { %v1368_v6 = vpack.c.bf16 %v1136_v7, %v1135_v5  ;;  %v1550_v15 = vadd.f32 %v1549_v12, %v1548_v10  ;;  %v1006_v16 = vadd.f32 %v1547_v8, %v2131_v22  ;;  %v1097_v18 = vpop.f32.mrb[38].mxu1 }
 0x142   :  { %v1611_v20 = vpop.f32.mrb[39].mxu1 }
 0x143   :  { %1395 = vst [vmem:[%s2197_s3 + $0x8] sm:$0xff] %v1368_v6   ;;  %v1095_v9 = vadd.f32 %v1094_v13, %v1006_v16  ;;  %v1009_v19 = vadd.f32 %v1550_v15, %v2133_v25 }
 0x145   :  { %v1098_v21 = vadd.f32 %v1097_v18, %v1009_v19  ;;  %v1551_v23 = vpop.f32.mrb[40].mxu0  ;;  %v1137_v26 = vmax.f32 %v1095_v9, 0.0 }
 0x146   :  { %v1552_v24 = vpop.f32.mrb[41].mxu0 }
 0x147   :  { %v1138_v27 = vmax.f32 %v1098_v21, 0.0  ;;  %v1553_v28 = vadd.f32 %v1552_v24, %v1551_v23  ;;  %v1554_v30 = vpop.f32.mrb[42].mxu0  ;;  %v1102_v33 = vpop.f32.mrb[40].mxu1 }
 0x148   :  { %v1555_v31 = vpop.f32.mrb[43].mxu0  ;;  %v1614_v36 = vpop.f32.mrb[41].mxu1 }
 0x149   :  { %v1373_v22 = vpack.c.bf16 %v1138_v27, %v1137_v26  ;;  %v1556_v34 = vadd.f32 %v1555_v31, %v1554_v30  ;;  %v1014_v35 = vadd.f32 %v1553_v28, %v2137_v39  ;;  %v1105_v37 = vpop.f32.mrb[42].mxu1 }
 0x14a   :  { %v1615_v41 = vpop.f32.mrb[43].mxu1 }
 0x14b   :  { %1396 = vst [vmem:[%s2197_s3 + $0x10] sm:$0xff] %v1373_v22   ;;  %v1103_v25 = vadd.f32 %v1102_v33, %v1014_v35  ;;  %v1017_v40 = vadd.f32 %v1556_v34, %v2139_v43 }
 0x14d   :  { %v1106_v44 = vadd.f32 %v1105_v37, %v1017_v40  ;;  %v1557_v45 = vpop.f32.mrb[44].mxu0  ;;  %v1139_v42 = vmax.f32 %v1103_v25, 0.0 }
 0x14e   :  { %v1558_v46 = vpop.f32.mrb[45].mxu0 }
 0x14f   :  { %v1140_v47 = vmax.f32 %v1106_v44, 0.0  ;;  %v1559_v38 = vadd.f32 %v1558_v46, %v1557_v45  ;;  %v1560_v48 = vpop.f32.mrb[46].mxu0  ;;  %v1110_v50 = vpop.f32.mrb[44].mxu1 }
 0x150   :  { %v1561_v49 = vpop.f32.mrb[47].mxu0  ;;  %v1618_v53 = vpop.f32.mrb[45].mxu1 }
 0x151   :  { %v1378_v39 = vpack.c.bf16 %v1140_v47, %v1139_v42  ;;  %v1562_v51 = vadd.f32 %v1561_v49, %v1560_v48  ;;  %v1022_v52 = vadd.f32 %v1559_v38, %v2143_v56  ;;  %v1113_v55 = vpop.f32.mrb[46].mxu1 }
 0x152   :  { %v1619_v59 = vpop.f32.mrb[47].mxu1 }
 0x153   :  { %1397 = vst [vmem:[%s2197_s3 + $0x18] sm:$0xff] %v1378_v39   ;;  %v1111_v43 = vadd.f32 %v1110_v50, %v1022_v52  ;;  %v1025_v58 = vadd.f32 %v1562_v51, %v2145_v60 }
 0x155   :  { %v1114_v61 = vadd.f32 %v1113_v55, %v1025_v58  ;;  %v1563_v62 = vpop.f32.mrb[48].mxu0  ;;  %v1141_v63 = vmax.f32 %v1111_v43, 0.0 }
 0x156   :  { %v1564_v54 = vpop.f32.mrb[49].mxu0 }
 0x157   :  { %v1142_v57 = vmax.f32 %v1114_v61, 0.0  ;;  %v1565_v0 = vadd.f32 %v1564_v54, %v1563_v62  ;;  %v1566_v1 = vpop.f32.mrb[50].mxu0  ;;  %v1118_v3 = vpop.f32.mrb[48].mxu1 }
 0x158   :  { %v1567_v2 = vpop.f32.mrb[51].mxu0  ;;  %v1622_v7 = vpop.f32.mrb[49].mxu1 }
 0x159   :  { %v1383_v56 = vpack.c.bf16 %v1142_v57, %v1141_v63  ;;  %v1568_v4 = vadd.f32 %v1567_v2, %v1566_v1  ;;  %v1030_v5 = vadd.f32 %v1565_v0, %v2149_v11  ;;  %v1121_v8 = vpop.f32.mrb[50].mxu1 }
 0x15a   :  { %v1623_v12 = vpop.f32.mrb[51].mxu1 }
 0x15b   :  { %1398 = vst [vmem:[%s2197_s3 + $0x20] sm:$0xff] %v1383_v56   ;;  %v1119_v60 = vadd.f32 %v1118_v3, %v1030_v5  ;;  %v1033_v10 = vadd.f32 %v1568_v4, %v2151_v14 }
 0x15d   :  { %v1122_v13 = vadd.f32 %v1121_v8, %v1033_v10  ;;  %v1569_v6 = vpop.f32.mrb[52].mxu0  ;;  %v1143_v16 = vmax.f32 %v1119_v60, 0.0 }
 0x15e   :  { %v1570_v15 = vpop.f32.mrb[53].mxu0 }
 0x15f   :  { %v1144_v17 = vmax.f32 %v1122_v13, 0.0  ;;  %v1571_v18 = vadd.f32 %v1570_v15, %v1569_v6  ;;  %v1572_v9 = vpop.f32.mrb[54].mxu0  ;;  %v1126_v20 = vpop.f32.mrb[52].mxu1 }
 0x160   :  { %v1573_v19 = vpop.f32.mrb[55].mxu0  ;;  %v1626_v24 = vpop.f32.mrb[53].mxu1 }
 0x161   :  { %v1388_v11 = vpack.c.bf16 %v1144_v17, %v1143_v16  ;;  %v1574_v21 = vadd.f32 %v1573_v19, %v1572_v9  ;;  %v1038_v23 = vadd.f32 %v1571_v18, %v2155_v29  ;;  %v1129_v26 = vpop.f32.mrb[54].mxu1 }
 0x162   :  { %v1627_v28 = vpop.f32.mrb[55].mxu1 }
 0x163   :  { %1399 = vst [vmem:[%s2197_s3 + $0x28] sm:$0xff] %v1388_v11   ;;  %v1127_v14 = vadd.f32 %v1126_v20, %v1038_v23  ;;  %v1041_v27 = vadd.f32 %v1574_v21, %v2157_v32 }
 0x165   :  { %v1130_v30 = vadd.f32 %v1129_v26, %v1041_v27  ;;  %v1145_v31 = vmax.f32 %v1127_v14, 0.0 }
 0x167   :  { %v1146_v33 = vmax.f32 %v1130_v30, 0.0 }
 0x169   :  { %v1393_v22 = vpack.c.bf16 %v1146_v33, %v1145_v31 }
 0x16b   :  { %1400 = vst [vmem:[%s2197_s3 + $0x30] sm:$0xff] %v1393_v22  }

// kernel: inception_transfer_forward.30
= control target key start
LH: loop header
LB: loop body
LE: loop exit
PB: predicated region body
PF: predicated region fallthrough
CT: control target
= control target key end

     0   :  { %v62_v46 = vlaneseq  ;;  %s945_s1 = inlined_call_operand.vmem [shape: bf16[256,256], index: 1, kind: input, shape index: {}]   ;;  %s946_s0 = inlined_call_operand.vmem [shape: bf16[112,256], index: 0, kind: input, shape index: {}]   ;;  %s947_s2 = inlined_call_operand.vmem [shape: f32[1,256], index: 2, kind: input, shape index: {}]   ;;  %s948_s3 = inlined_call_operand.vmem [shape: bf16[112,256], index: 3, kind: output, shape index: {}]  }
   0x1   :  { %v641_v0 = vld [vmem:[%s945_s1 + $0x4] ss:$8 sps:$4 sm:$0xff]   ;;  %v643_v1 = vld [vmem:[%s945_s1] ss:$8 sps:$4 sm:$0xff]   ;;  %v644_v2 = vld [vmem:[%s945_s1 + $0x14] ss:$8 sps:$4 sm:$0xff]  }
   0x2   :  { %302 = vmatprep.subr.bf16.mxu0 %v641_v0  ;;  %609 = vmatprep.subr.bf16.mxu1 %v641_v0  ;;  %v646_v3 = vld [vmem:[%s945_s1 + $0x10] ss:$8 sps:$4 sm:$0xff]   ;;  %v647_v4 = vld [vmem:[%s945_s1 + $0x24] ss:$8 sps:$4 sm:$0xff]   ;;  %v649_v5 = vld [vmem:[%s945_s1 + $0x20] ss:$8 sps:$4 sm:$0xff]  }
   0x3   :  { %303 = vmatpush1.bf16.msra.mxu0 %v643_v1  ;;  %625 = vmatpush1.bf16.msra.mxu1 %v643_v1  ;;  %v650_v6 = vld [vmem:[%s945_s1 + $0x34] ss:$8 sps:$4 sm:$0xff]   ;;  %v652_v7 = vld [vmem:[%s945_s1 + $0x30] ss:$8 sps:$4 sm:$0xff]   ;;  %v653_v8 = vld [vmem:[%s945_s1 + $0x44] ss:$8 sps:$4 sm:$0xff]  }
   0x4   :  { %304 = vmatprep.subr.bf16.mxu0 %v644_v2  ;;  %610 = vmatprep.subr.bf16.mxu1 %v644_v2  ;;  %v655_v9 = vld [vmem:[%s945_s1 + $0x40] ss:$8 sps:$4 sm:$0xff]   ;;  %v656_v10 = vld [vmem:[%s945_s1 + $0x54] ss:$8 sps:$4 sm:$0xff]   ;;  %v658_v11 = vld [vmem:[%s945_s1 + $0x50] ss:$8 sps:$4 sm:$0xff]  }
   0x5   :  { %v659_v12 = vld [vmem:[%s945_s1 + $0x64] ss:$8 sps:$4 sm:$0xff]   ;;  %v661_v14 = vld [vmem:[%s945_s1 + $0x60] ss:$8 sps:$4 sm:$0xff]   ;;  %v662_v16 = vld [vmem:[%s945_s1 + $0x74] ss:$8 sps:$4 sm:$0xff]  }
   0x6   :  { %v691_v13 = vld [vmem:[%s946_s0 + $0x4] ss:$8 sps:$4 sm:$0xff]   ;;  %v664_v17 = vld [vmem:[%s945_s1 + $0x70] ss:$8 sps:$4 sm:$0xff]   ;;  %v667_v19 = vld [vmem:[%s945_s1 + $0x80] ss:$8 sps:$4 sm:$0xff]  }
   0x7   :  { %305 = vmatpush1.bf16.msra.mxu0 %v646_v3  ;;  %626 = vmatpush1.bf16.msra.mxu1 %v646_v3  ;;  %v694_v15 = vld [vmem:[%s946_s0 + $0x44] ss:$8 sps:$4 sm:$0xff]   ;;  %v668_v20 = vld [vmem:[%s945_s1 + $0x94] ss:$8 sps:$4 sm:$0xff]   ;;  %v670_v21 = vld [vmem:[%s945_s1 + $0x90] ss:$8 sps:$4 sm:$0xff]  }
   0x8   :  { %306 = vmatprep.subr.bf16.mxu0 %v647_v4  ;;  %611 = vmatprep.subr.bf16.mxu1 %v647_v4  ;;  %v665_v18 = vld [vmem:[%s945_s1 + $0x84] ss:$8 sps:$4 sm:$0xff]   ;;  %v673_v23 = vld [vmem:[%s945_s1 + $0xa0] ss:$8 sps:$4 sm:$0xff]   ;;  %v674_v24 = vld [vmem:[%s945_s1 + $0xb4] ss:$8 sps:$4 sm:$0xff]  }
   0x9   :  { %334 = vmatprep.mubr.bf16.mxu0 %v691_v13  ;;  %374 = vmatprep.mubr.bf16.mxu1 %v694_v15  ;;  %v671_v22 = vld [vmem:[%s945_s1 + $0xa4] ss:$8 sps:$4 sm:$0xff]   ;;  %v676_v25 = vld [vmem:[%s945_s1 + $0xb0] ss:$8 sps:$4 sm:$0xff]   ;;  %v679_v27 = vld [vmem:[%s945_s1 + $0xc0] ss:$8 sps:$4 sm:$0xff]  }
   0xa   :  { %v677_v26 = vld [vmem:[%s945_s1 + $0xc4] ss:$8 sps:$4 sm:$0xff]   ;;  %v680_v28 = vld [vmem:[%s945_s1 + $0xd4] ss:$8 sps:$4 sm:$0xff]   ;;  %v682_v29 = vld [vmem:[%s945_s1 + $0xd0] ss:$8 sps:$4 sm:$0xff]  }
   0xb   :  { %307 = vmatpush1.bf16.msra.mxu0 %v649_v5  ;;  %627 = vmatpush1.bf16.msra.mxu1 %v649_v5  ;;  %v683_v30 = vld [vmem:[%s945_s1 + $0xe4] ss:$8 sps:$4 sm:$0xff]   ;;  %v685_v31 = vld [vmem:[%s945_s1 + $0xe0] ss:$8 sps:$4 sm:$0xff]   ;;  %v686_v32 = vld [vmem:[%s945_s1 + $0xf4] ss:$8 sps:$4 sm:$0xff]  }
   0xc   :  { %308 = vmatprep.subr.bf16.mxu0 %v650_v6  ;;  %612 = vmatprep.subr.bf16.mxu1 %v650_v6  ;;  %v688_v33 = vld [vmem:[%s945_s1 + $0xf0] ss:$8 sps:$4 sm:$0xff]   ;;  %v689_v34 = vld [vmem:[%s946_s0] ss:$8 sps:$4 sm:$0xff]   ;;  %v695_v36 = vld [vmem:[%s946_s0 + $0x14] ss:$8 sps:$4 sm:$0xff]  }
   0xd   :  { %v692_v35 = vld [vmem:[%s946_s0 + $0x40] ss:$8 sps:$4 sm:$0xff]   ;;  %v698_v37 = vld [vmem:[%s946_s0 + $0x54] ss:$8 sps:$4 sm:$0xff]   ;;  %v697_v38 = vld [vmem:[%s946_s0 + $0x10] ss:$8 sps:$4 sm:$0xff]  }
   0xe   :  { %v700_v39 = vld [vmem:[%s946_s0 + $0x50] ss:$8 sps:$4 sm:$0xff]   ;;  %v701_v40 = vld [vmem:[%s946_s0 + $0x24] ss:$8 sps:$4 sm:$0xff]   ;;  %v703_v42 = vld [vmem:[%s946_s0 + $0x20] ss:$8 sps:$4 sm:$0xff]  }
   0xf   :  { %309 = vmatpush1.bf16.msra.mxu0 %v652_v7  ;;  %628 = vmatpush1.bf16.msra.mxu1 %v652_v7  ;;  %v704_v41 = vld [vmem:[%s946_s0 + $0x64] ss:$8 sps:$4 sm:$0xff]   ;;  %v706_v43 = vld [vmem:[%s946_s0 + $0x60] ss:$8 sps:$4 sm:$0xff]   ;;  %v707_v44 = vld [vmem:[%s946_s0 + $0x34] ss:$8 sps:$4 sm:$0xff]  }
  0x10   :  { %310 = vmatprep.subr.bf16.mxu0 %v653_v8  ;;  %613 = vmatprep.subr.bf16.mxu1 %v653_v8  ;;  %v709_v45 = vld [vmem:[%s946_s0 + $0x30] ss:$8 sps:$4 sm:$0xff]   ;;  %v63_v47 = vshrl.u32 %v62_v46, 7  ;;  %v60_v49 = vld [vmem:[%s947_s2] sm:$0x3] }
  0x12   :  { %v64_v48 = vsub.s32 0, %v63_v47  ;;  %v68_v50 = vsub.s32 1, %v63_v47 }
  0x13   :  { %311 = vmatpush1.bf16.msra.mxu0 %v655_v9  ;;  %629 = vmatpush1.bf16.msra.mxu1 %v655_v9 }
  0x14   :  { %312 = vmatprep.subr.bf16.mxu0 %v656_v10  ;;  %614 = vmatprep.subr.bf16.mxu1 %v656_v10  ;;  %v871_v51 = vrot.slane %v60_v49, %v64_v48  ;;  %v873_v52 = vrot.slane %v60_v49, %v68_v50 }
  0x17   :  { %313 = vmatpush1.bf16.msra.mxu0 %v658_v11  ;;  %630 = vmatpush1.bf16.msra.mxu1 %v658_v11 }
  0x18   :  { %314 = vmatprep.subr.bf16.mxu0 %v659_v12  ;;  %615 = vmatprep.subr.bf16.mxu1 %v659_v12 }
  0x1b   :  { %315 = vmatpush1.bf16.msra.mxu0 %v661_v14  ;;  %631 = vmatpush1.bf16.msra.mxu1 %v661_v14 }
  0x1c   :  { %316 = vmatprep.subr.bf16.mxu0 %v662_v16  ;;  %616 = vmatprep.subr.bf16.mxu1 %v662_v16 }
  0x1f   :  { %317 = vmatpush1.bf16.msra.mxu0 %v664_v17  ;;  %632 = vmatpush1.bf16.msra.mxu1 %v664_v17 }
  0x20   :  { %318 = vmatprep.subr.bf16.mxu0 %v665_v18  ;;  %617 = vmatprep.subr.bf16.mxu1 %v665_v18 }
  0x23   :  { %319 = vmatpush1.bf16.msra.mxu0 %v667_v19  ;;  %633 = vmatpush1.bf16.msra.mxu1 %v667_v19 }
  0x24   :  { %320 = vmatprep.subr.bf16.mxu0 %v668_v20  ;;  %618 = vmatprep.subr.bf16.mxu1 %v668_v20 }
  0x27   :  { %321 = vmatpush1.bf16.msra.mxu0 %v670_v21  ;;  %634 = vmatpush1.bf16.msra.mxu1 %v670_v21 }
  0x28   :  { %322 = vmatprep.subr.bf16.mxu0 %v671_v22  ;;  %619 = vmatprep.subr.bf16.mxu1 %v671_v22 }
  0x2b   :  { %323 = vmatpush1.bf16.msra.mxu0 %v673_v23  ;;  %635 = vmatpush1.bf16.msra.mxu1 %v673_v23 }
  0x2c   :  { %324 = vmatprep.subr.bf16.mxu0 %v674_v24  ;;  %620 = vmatprep.subr.bf16.mxu1 %v674_v24 }
  0x2f   :  { %325 = vmatpush1.bf16.msra.mxu0 %v676_v25  ;;  %636 = vmatpush1.bf16.msra.mxu1 %v676_v25 }
  0x30   :  { %326 = vmatprep.subr.bf16.mxu0 %v677_v26  ;;  %621 = vmatprep.subr.bf16.mxu1 %v677_v26 }
  0x33   :  { %327 = vmatpush1.bf16.msra.mxu0 %v679_v27  ;;  %637 = vmatpush1.bf16.msra.mxu1 %v679_v27 }
  0x34   :  { %328 = vmatprep.subr.bf16.mxu0 %v680_v28  ;;  %622 = vmatprep.subr.bf16.mxu1 %v680_v28 }
  0x37   :  { %329 = vmatpush1.bf16.msra.mxu0 %v682_v29  ;;  %638 = vmatpush1.bf16.msra.mxu1 %v682_v29 }
  0x38   :  { %330 = vmatprep.subr.bf16.mxu0 %v683_v30  ;;  %623 = vmatprep.subr.bf16.mxu1 %v683_v30 }
  0x3b   :  { %331 = vmatpush1.bf16.msra.mxu0 %v685_v31  ;;  %639 = vmatpush1.bf16.msra.mxu1 %v685_v31 }
  0x3c   :  { %332 = vmatprep.subr.bf16.mxu0 %v686_v32  ;;  %624 = vmatprep.subr.bf16.mxu1 %v686_v32 }
  0x3f   :  { %333 = vmatpush1.bf16.msra.mxu0 %v688_v33  ;;  %640 = vmatpush1.bf16.msra.mxu1 %v688_v33 }
  0x42   :  { %335 = vmatmul.mubr.bf16.vlgmr.msra.gmra.mrb[0].mxu0 %v689_v34  ;;  %375 = vmatmul.mubr.bf16.vlgmr.msra.gmra.mrb[0].mxu1 %v692_v35 }
  0x43   :  { %344 = vmatprep.mubr.bf16.mxu0 %v695_v36  ;;  %384 = vmatprep.mubr.bf16.mxu1 %v698_v37 }
  0x4a   :  { %345 = vmatmul.mubr.bf16.gmra.mrb[4].mxu0 %v697_v38  ;;  %385 = vmatmul.mubr.bf16.gmra.mrb[4].mxu1 %v700_v39 }
  0x4b   :  { %354 = vmatprep.mubr.bf16.mxu0 %v701_v40  ;;  %394 = vmatprep.mubr.bf16.mxu1 %v704_v41 }
  0x52   :  { %355 = vmatmul.mubr.bf16.gmra.mrb[8].mxu0 %v703_v42  ;;  %395 = vmatmul.mubr.bf16.gmra.mrb[8].mxu1 %v706_v43 }
  0x53   :  { %364 = vmatprep.mubr.bf16.mxu0 %v707_v44 }
  0x5a   :  { %365 = vmatmul.mubr.bf16.gmra.mrb[12].mxu0 %v709_v45 }
 0x115   :  { %v336_v53 = vpop.f32.mrb[0].mxu0  ;;  %v376_v54 = vpop.f32.mrb[0].mxu1 }
 0x116   :  { %v337_v55 = vadd.f32 %v336_v53, %v871_v51  ;;  %v338_v56 = vpop.f32.mrb[1].mxu0  ;;  %v377_v57 = vadd.f32 %v376_v54, %v871_v51  ;;  %v378_v58 = vpop.f32.mrb[1].mxu1 }
 0x117   :  { %v339_v59 = vadd.f32 %v338_v56, %v873_v52  ;;  %v340_v60 = vpop.f32.mrb[2].mxu0  ;;  %v379_v61 = vadd.f32 %v378_v58, %v873_v52  ;;  %v380_v62 = vpop.f32.mrb[2].mxu1 }
 0x118   :  { %v405_v63 = vmax.f32 %v337_v55, 0.0  ;;  %v341_v0 = vadd.f32 %v340_v60, %v871_v51  ;;  %v342_v1 = vpop.f32.mrb[3].mxu0  ;;  %v421_v2 = vmax.f32 %v377_v57, 0.0  ;;  %v381_v3 = vadd.f32 %v380_v62, %v871_v51  ;;  %v382_v4 = vpop.f32.mrb[3].mxu1 }
 0x119   :  { %v406_v5 = vmax.f32 %v339_v59, 0.0  ;;  %v343_v6 = vadd.f32 %v342_v1, %v873_v52  ;;  %v422_v7 = vmax.f32 %v379_v61, 0.0  ;;  %v383_v8 = vadd.f32 %v382_v4, %v873_v52 }
 0x11a   :  { %v407_v9 = vmax.f32 %v341_v0, 0.0  ;;  %v423_v10 = vmax.f32 %v381_v3, 0.0 }
 0x11b   :  { %v595_v11 = vpack.c.bf16 %v406_v5, %v405_v63  ;;  %v408_v12 = vmax.f32 %v343_v6, 0.0  ;;  %v603_v13 = vpack.c.bf16 %v422_v7, %v421_v2  ;;  %v424_v14 = vmax.f32 %v383_v8, 0.0 }
 0x11d   :  { %517 = vst [vmem:[%s948_s3] sm:$0xff] %v595_v11  ;;  %v596_v15 = vpack.c.bf16 %v408_v12, %v407_v9  ;;  %525 = vst [vmem:[%s948_s3 + $0x40] sm:$0xff] %v603_v13  ;;  %v346_v16 = vpop.f32.mrb[4].mxu0  ;;  %v604_v17 = vpack.c.bf16 %v424_v14, %v423_v10  ;;  %v386_v18 = vpop.f32.mrb[4].mxu1 }
 0x11e   :  { %v347_v19 = vadd.f32 %v346_v16, %v871_v51  ;;  %v348_v20 = vpop.f32.mrb[5].mxu0  ;;  %v387_v21 = vadd.f32 %v386_v18, %v871_v51  ;;  %v388_v22 = vpop.f32.mrb[5].mxu1 }
 0x11f   :  { %518 = vst [vmem:[%s948_s3 + $0x8] sm:$0xff] %v596_v15  ;;  %526 = vst [vmem:[%s948_s3 + $0x48] sm:$0xff] %v604_v17  ;;  %v349_v23 = vadd.f32 %v348_v20, %v873_v52  ;;  %v350_v24 = vpop.f32.mrb[6].mxu0  ;;  %v389_v25 = vadd.f32 %v388_v22, %v873_v52  ;;  %v390_v26 = vpop.f32.mrb[6].mxu1 }
 0x120   :  { %v409_v27 = vmax.f32 %v347_v19, 0.0  ;;  %v351_v28 = vadd.f32 %v350_v24, %v871_v51  ;;  %v352_v29 = vpop.f32.mrb[7].mxu0  ;;  %v425_v30 = vmax.f32 %v387_v21, 0.0  ;;  %v391_v31 = vadd.f32 %v390_v26, %v871_v51  ;;  %v392_v32 = vpop.f32.mrb[7].mxu1 }
 0x121   :  { %v410_v33 = vmax.f32 %v349_v23, 0.0  ;;  %v353_v34 = vadd.f32 %v352_v29, %v873_v52  ;;  %v426_v35 = vmax.f32 %v389_v25, 0.0  ;;  %v393_v36 = vadd.f32 %v392_v32, %v873_v52 }
 0x122   :  { %v411_v37 = vmax.f32 %v351_v28, 0.0  ;;  %v427_v38 = vmax.f32 %v391_v31, 0.0 }
 0x123   :  { %v597_v39 = vpack.c.bf16 %v410_v33, %v409_v27  ;;  %v412_v40 = vmax.f32 %v353_v34, 0.0  ;;  %v605_v41 = vpack.c.bf16 %v426_v35, %v425_v30  ;;  %v428_v42 = vmax.f32 %v393_v36, 0.0 }
 0x125   :  { %519 = vst [vmem:[%s948_s3 + $0x10] sm:$0xff] %v597_v39  ;;  %v598_v43 = vpack.c.bf16 %v412_v40, %v411_v37  ;;  %527 = vst [vmem:[%s948_s3 + $0x50] sm:$0xff] %v605_v41  ;;  %v356_v44 = vpop.f32.mrb[8].mxu0  ;;  %v606_v45 = vpack.c.bf16 %v428_v42, %v427_v38  ;;  %v396_v46 = vpop.f32.mrb[8].mxu1 }
 0x126   :  { %v357_v47 = vadd.f32 %v356_v44, %v871_v51  ;;  %v358_v48 = vpop.f32.mrb[9].mxu0  ;;  %v397_v49 = vadd.f32 %v396_v46, %v871_v51  ;;  %v398_v50 = vpop.f32.mrb[9].mxu1 }
 0x127   :  { %520 = vst [vmem:[%s948_s3 + $0x18] sm:$0xff] %v598_v43  ;;  %528 = vst [vmem:[%s948_s3 + $0x58] sm:$0xff] %v606_v45  ;;  %v359_v53 = vadd.f32 %v358_v48, %v873_v52  ;;  %v360_v54 = vpop.f32.mrb[10].mxu0  ;;  %v399_v55 = vadd.f32 %v398_v50, %v873_v52  ;;  %v400_v56 = vpop.f32.mrb[10].mxu1 }
 0x128   :  { %v413_v57 = vmax.f32 %v357_v47, 0.0  ;;  %v361_v58 = vadd.f32 %v360_v54, %v871_v51  ;;  %v362_v59 = vpop.f32.mrb[11].mxu0  ;;  %v429_v60 = vmax.f32 %v397_v49, 0.0  ;;  %v401_v61 = vadd.f32 %v400_v56, %v871_v51  ;;  %v402_v62 = vpop.f32.mrb[11].mxu1 }
 0x129   :  { %v414_v63 = vmax.f32 %v359_v53, 0.0  ;;  %v363_v0 = vadd.f32 %v362_v59, %v873_v52  ;;  %v430_v1 = vmax.f32 %v399_v55, 0.0  ;;  %v403_v2 = vadd.f32 %v402_v62, %v873_v52 }
 0x12a   :  { %v415_v3 = vmax.f32 %v361_v58, 0.0  ;;  %v431_v4 = vmax.f32 %v401_v61, 0.0 }
 0x12b   :  { %v599_v5 = vpack.c.bf16 %v414_v63, %v413_v57  ;;  %v416_v6 = vmax.f32 %v363_v0, 0.0  ;;  %v607_v7 = vpack.c.bf16 %v430_v1, %v429_v60  ;;  %v432_v8 = vmax.f32 %v403_v2, 0.0 }
 0x12d   :  { %521 = vst [vmem:[%s948_s3 + $0x20] sm:$0xff] %v599_v5  ;;  %v600_v9 = vpack.c.bf16 %v416_v6, %v415_v3  ;;  %529 = vst [vmem:[%s948_s3 + $0x60] sm:$0xff] %v607_v7  ;;  %v366_v10 = vpop.f32.mrb[12].mxu0  ;;  %v608_v11 = vpack.c.bf16 %v432_v8, %v431_v4 }
 0x12e   :  { %v367_v12 = vadd.f32 %v366_v10, %v871_v51  ;;  %v368_v13 = vpop.f32.mrb[13].mxu0 }
 0x12f   :  { %522 = vst [vmem:[%s948_s3 + $0x28] sm:$0xff] %v600_v9  ;;  %530 = vst [vmem:[%s948_s3 + $0x68] sm:$0xff] %v608_v11  ;;  %v369_v14 = vadd.f32 %v368_v13, %v873_v52  ;;  %v370_v15 = vpop.f32.mrb[14].mxu0 }
 0x130   :  { %v417_v16 = vmax.f32 %v367_v12, 0.0  ;;  %v371_v17 = vadd.f32 %v370_v15, %v871_v51  ;;  %v372_v18 = vpop.f32.mrb[15].mxu0 }
 0x131   :  { %v418_v19 = vmax.f32 %v369_v14, 0.0  ;;  %v373_v20 = vadd.f32 %v372_v18, %v873_v52 }
 0x132   :  { %v419_v21 = vmax.f32 %v371_v17, 0.0 }
 0x133   :  { %v601_v22 = vpack.c.bf16 %v418_v19, %v417_v16  ;;  %v420_v23 = vmax.f32 %v373_v20, 0.0 }
 0x135   :  { %523 = vst [vmem:[%s948_s3 + $0x30] sm:$0xff] %v601_v22  ;;  %v602_v24 = vpack.c.bf16 %v420_v23, %v419_v21 }
 0x137   :  { %524 = vst [vmem:[%s948_s3 + $0x38] sm:$0xff] %v602_v24 }

// kernel: inception_transfer_forward.34
= control target key start
LH: loop header
LB: loop body
LE: loop exit
PB: predicated region body
PF: predicated region fallthrough
CT: control target
= control target key end

     0   :  { %s772_s1 = inlined_call_operand.vmem [shape: bf16[256,128], index: 1, kind: input, shape index: {}]   ;;  %s773_s0 = inlined_call_operand.vmem [shape: bf16[112,256], index: 0, kind: input, shape index: {}]   ;;  %s774_s2 = inlined_call_operand.vmem [shape: f32[1,128], index: 2, kind: input, shape index: {}]   ;;  %s775_s3 = inlined_call_operand.vmem [shape: bf16[112,128], index: 3, kind: output, shape index: {}]  }
   0x1   :  { %v585_v0 = vld [vmem:[%s772_s1 + $0x40] sm:$0xff]   ;;  %v587_v2 = vld [vmem:[%s772_s1 + $0x48] sm:$0xff]   ;;  %v589_v4 = vld [vmem:[%s772_s1 + $0x50] sm:$0xff]  }
   0x2   :  { %v586_v1 = vld [vmem:[%s772_s1] sm:$0xff]   ;;  %511 = vmatprep.subr.bf16.mxu0 %v585_v0  ;;  %569 = vmatprep.subr.bf16.mxu1 %v585_v0  ;;  %v588_v3 = vld [vmem:[%s772_s1 + $0x8] sm:$0xff]   ;;  %v590_v5 = vld [vmem:[%s772_s1 + $0x10] sm:$0xff]  }
   0x3   :  { %512 = vmatpush3.bf16.msra.mxu0 %v586_v1  ;;  %577 = vmatpush3.bf16.msra.mxu1 %v586_v1  ;;  %v591_v6 = vld [vmem:[%s772_s1 + $0x58] sm:$0xff]   ;;  %v593_v8 = vld [vmem:[%s772_s1 + $0x60] sm:$0xff]   ;;  %v595_v10 = vld [vmem:[%s772_s1 + $0x68] sm:$0xff]  }
   0x4   :  { %513 = vmatprep.subr.bf16.mxu0 %v587_v2  ;;  %570 = vmatprep.subr.bf16.mxu1 %v587_v2  ;;  %v592_v7 = vld [vmem:[%s772_s1 + $0x18] sm:$0xff]   ;;  %v594_v9 = vld [vmem:[%s772_s1 + $0x20] sm:$0xff]   ;;  %v596_v13 = vld [vmem:[%s772_s1 + $0x28] sm:$0xff]  }
   0x5   :  { %v603_v11 = vld [vmem:[%s773_s0 + $0x4] ss:$8 sps:$4 sm:$0xff]   ;;  %v597_v14 = vld [vmem:[%s772_s1 + $0x70] sm:$0xff]   ;;  %v599_v16 = vld [vmem:[%s772_s1 + $0x78] sm:$0xff]  }
   0x6   :  { %v606_v12 = vld [vmem:[%s773_s0 + $0x44] ss:$8 sps:$4 sm:$0xff]   ;;  %266 = vmatprep.mubr.bf16.mxu0 %v603_v11  ;;  %v598_v15 = vld [vmem:[%s772_s1 + $0x30] sm:$0xff]   ;;  %v600_v17 = vld [vmem:[%s772_s1 + $0x38] sm:$0xff]  }
   0x7   :  { %514 = vmatpush3.bf16.msra.mxu0 %v588_v3  ;;  %578 = vmatpush3.bf16.msra.mxu1 %v588_v3  ;;  %v601_v18 = vld [vmem:[%s773_s0] ss:$8 sps:$4 sm:$0xff]   ;;  %v607_v20 = vld [vmem:[%s773_s0 + $0x14] ss:$8 sps:$4 sm:$0xff]   ;;  %v609_v22 = vld [vmem:[%s773_s0 + $0x10] ss:$8 sps:$4 sm:$0xff]  }
   0x8   :  { %515 = vmatprep.subr.bf16.mxu0 %v589_v4  ;;  %571 = vmatprep.subr.bf16.mxu1 %v589_v4  ;;  %v604_v19 = vld [vmem:[%s773_s0 + $0x40] ss:$8 sps:$4 sm:$0xff]   ;;  %v610_v21 = vld [vmem:[%s773_s0 + $0x54] ss:$8 sps:$4 sm:$0xff]   ;;  %v612_v23 = vld [vmem:[%s773_s0 + $0x50] ss:$8 sps:$4 sm:$0xff]  }
   0x9   :  { %298 = vmatprep.mubr.bf16.mxu1 %v606_v12  ;;  %v613_v24 = vld [vmem:[%s773_s0 + $0x24] ss:$8 sps:$4 sm:$0xff]   ;;  %v615_v26 = vld [vmem:[%s773_s0 + $0x20] ss:$8 sps:$4 sm:$0xff]   ;;  %v619_v28 = vld [vmem:[%s773_s0 + $0x34] ss:$8 sps:$4 sm:$0xff]  }
   0xa   :  { %v616_v25 = vld [vmem:[%s773_s0 + $0x64] ss:$8 sps:$4 sm:$0xff]   ;;  %v618_v27 = vld [vmem:[%s773_s0 + $0x60] ss:$8 sps:$4 sm:$0xff]   ;;  %v621_v29 = vld [vmem:[%s773_s0 + $0x30] ss:$8 sps:$4 sm:$0xff]  }
   0xb   :  { %516 = vmatpush3.bf16.msra.mxu0 %v590_v5  ;;  %579 = vmatpush3.bf16.msra.mxu1 %v590_v5  ;;  %v735_v32 = vld [vmem:[%s774_s2] ss:$0 sm:$0xff] }
   0xc   :  { %517 = vmatprep.subr.bf16.mxu0 %v591_v6  ;;  %572 = vmatprep.subr.bf16.mxu1 %v591_v6 }
   0xf   :  { %518 = vmatpush3.bf16.msra.mxu0 %v592_v7  ;;  %580 = vmatpush3.bf16.msra.mxu1 %v592_v7 }
  0x10   :  { %519 = vmatprep.subr.bf16.mxu0 %v593_v8  ;;  %573 = vmatprep.subr.bf16.mxu1 %v593_v8 }
  0x13   :  { %520 = vmatpush3.bf16.msra.mxu0 %v594_v9  ;;  %581 = vmatpush3.bf16.msra.mxu1 %v594_v9 }
  0x14   :  { %521 = vmatprep.subr.bf16.mxu0 %v595_v10  ;;  %574 = vmatprep.subr.bf16.mxu1 %v595_v10 }
  0x17   :  { %522 = vmatpush3.bf16.msra.mxu0 %v596_v13  ;;  %582 = vmatpush3.bf16.msra.mxu1 %v596_v13 }
  0x18   :  { %523 = vmatprep.subr.bf16.mxu0 %v597_v14  ;;  %575 = vmatprep.subr.bf16.mxu1 %v597_v14 }
  0x1b   :  { %524 = vmatpush3.bf16.msra.mxu0 %v598_v15  ;;  %583 = vmatpush3.bf16.msra.mxu1 %v598_v15 }
  0x1c   :  { %525 = vmatprep.subr.bf16.mxu0 %v599_v16  ;;  %576 = vmatprep.subr.bf16.mxu1 %v599_v16 }
  0x1f   :  { %526 = vmatpush3.bf16.msra.mxu0 %v600_v17  ;;  %584 = vmatpush3.bf16.msra.mxu1 %v600_v17 }
  0x22   :  { %267 = vmatmul.mubr.bf16.vlgmr.msra.gmra.mrb[0].mxu0 %v601_v18  ;;  %299 = vmatmul.mubr.bf16.vlgmr.msra.gmra.mrb[0].mxu1 %v604_v19 }
  0x23   :  { %274 = vmatprep.mubr.bf16.mxu0 %v607_v20  ;;  %306 = vmatprep.mubr.bf16.mxu1 %v610_v21 }
  0x2a   :  { %275 = vmatmul.mubr.bf16.gmra.mrb[4].mxu0 %v609_v22  ;;  %307 = vmatmul.mubr.bf16.gmra.mrb[4].mxu1 %v612_v23 }
  0x2b   :  { %282 = vmatprep.mubr.bf16.mxu0 %v613_v24  ;;  %314 = vmatprep.mubr.bf16.mxu1 %v616_v25 }
  0x32   :  { %283 = vmatmul.mubr.bf16.gmra.mrb[8].mxu0 %v615_v26  ;;  %315 = vmatmul.mubr.bf16.gmra.mrb[8].mxu1 %v618_v27 }
  0x33   :  { %290 = vmatprep.mubr.bf16.mxu0 %v619_v28 }
  0x3a   :  { %291 = vmatmul.mubr.bf16.gmra.mrb[12].mxu0 %v621_v29 }
  0xf5   :  { %v527_v30 = vpop.f32.mrb[0].mxu0  ;;  %v551_v31 = vpop.f32.mrb[0].mxu1 }
  0xf6   :  { %v528_v33 = vpop.f32.mrb[1].mxu0  ;;  %v552_v34 = vpop.f32.mrb[1].mxu1 }
  0xf7   :  { %v529_v35 = vadd.f32 %v528_v33, %v527_v30  ;;  %v530_v36 = vpop.f32.mrb[2].mxu0  ;;  %v553_v37 = vadd.f32 %v552_v34, %v551_v31  ;;  %v554_v38 = vpop.f32.mrb[2].mxu1 }
  0xf8   :  { %v531_v39 = vpop.f32.mrb[3].mxu0  ;;  %v555_v40 = vpop.f32.mrb[3].mxu1 }
  0xf9   :  { %v269_v41 = vadd.f32 %v529_v35, %v735_v32  ;;  %v532_v42 = vadd.f32 %v531_v39, %v530_v36  ;;  %v301_v43 = vadd.f32 %v553_v37, %v735_v32  ;;  %v556_v44 = vadd.f32 %v555_v40, %v554_v38 }
  0xfb   :  { %v272_v45 = vadd.f32 %v532_v42, %v735_v32  ;;  %v331_v46 = vmax.f32 %v301_v43, 0.0  ;;  %v304_v47 = vadd.f32 %v556_v44, %v735_v32  ;;  %v323_v48 = vmax.f32 %v269_v41, 0.0 }
  0xfd   :  { %v324_v49 = vmax.f32 %v272_v45, 0.0  ;;  %v533_v50 = vpop.f32.mrb[4].mxu0  ;;  %v332_v51 = vmax.f32 %v304_v47, 0.0  ;;  %v557_v52 = vpop.f32.mrb[4].mxu1 }
  0xfe   :  { %v534_v53 = vpop.f32.mrb[5].mxu0  ;;  %v558_v54 = vpop.f32.mrb[5].mxu1 }
  0xff   :  { %v473_v55 = vpack.c.bf16 %v324_v49, %v323_v48  ;;  %v493_v56 = vpack.c.bf16 %v332_v51, %v331_v46  ;;  %v535_v57 = vadd.f32 %v534_v53, %v533_v50  ;;  %v536_v58 = vpop.f32.mrb[6].mxu0  ;;  %v559_v59 = vadd.f32 %v558_v54, %v557_v52  ;;  %v560_v60 = vpop.f32.mrb[6].mxu1 }
 0x100   :  { %v537_v61 = vpop.f32.mrb[7].mxu0  ;;  %v561_v62 = vpop.f32.mrb[7].mxu1 }
 0x101   :  { %474 = vst [vmem:[%s775_s3] sm:$0xff] %v473_v55   ;;  %508 = vst [vmem:[%s775_s3 + $0x20] sm:$0xff] %v493_v56   ;;  %v277_v63 = vadd.f32 %v535_v57, %v735_v32  ;;  %v538_v0 = vadd.f32 %v537_v61, %v536_v58  ;;  %v309_v1 = vadd.f32 %v559_v59, %v735_v32 }
 0x102   :  { %v562_v2 = vadd.f32 %v561_v62, %v560_v60 }
 0x103   :  { %v280_v3 = vadd.f32 %v538_v0, %v735_v32  ;;  %v333_v4 = vmax.f32 %v309_v1, 0.0  ;;  %v325_v6 = vmax.f32 %v277_v63, 0.0 }
 0x104   :  { %v312_v5 = vadd.f32 %v562_v2, %v735_v32 }
 0x105   :  { %v326_v7 = vmax.f32 %v280_v3, 0.0  ;;  %v539_v8 = vpop.f32.mrb[8].mxu0  ;;  %v563_v10 = vpop.f32.mrb[8].mxu1 }
 0x106   :  { %v334_v9 = vmax.f32 %v312_v5, 0.0  ;;  %v540_v11 = vpop.f32.mrb[9].mxu0  ;;  %v564_v12 = vpop.f32.mrb[9].mxu1 }
 0x107   :  { %v478_v13 = vpack.c.bf16 %v326_v7, %v325_v6  ;;  %v541_v15 = vadd.f32 %v540_v11, %v539_v8  ;;  %v542_v16 = vpop.f32.mrb[10].mxu0  ;;  %v565_v17 = vadd.f32 %v564_v12, %v563_v10  ;;  %v566_v18 = vpop.f32.mrb[10].mxu1 }
 0x108   :  { %v498_v14 = vpack.c.bf16 %v334_v9, %v333_v4  ;;  %v543_v19 = vpop.f32.mrb[11].mxu0  ;;  %v567_v20 = vpop.f32.mrb[11].mxu1 }
 0x109   :  { %505 = vst [vmem:[%s775_s3 + $0x8] sm:$0xff] %v478_v13   ;;  %v285_v21 = vadd.f32 %v541_v15, %v735_v32  ;;  %v544_v22 = vadd.f32 %v543_v19, %v542_v16  ;;  %v317_v23 = vadd.f32 %v565_v17, %v735_v32  ;;  %v568_v24 = vadd.f32 %v567_v20, %v566_v18 }
 0x10a   :  { %509 = vst [vmem:[%s775_s3 + $0x28] sm:$0xff] %v498_v14  }
 0x10b   :  { %v288_v25 = vadd.f32 %v544_v22, %v735_v32  ;;  %v335_v26 = vmax.f32 %v317_v23, 0.0  ;;  %v320_v27 = vadd.f32 %v568_v24, %v735_v32  ;;  %v327_v28 = vmax.f32 %v285_v21, 0.0 }
 0x10d   :  { %v328_v29 = vmax.f32 %v288_v25, 0.0  ;;  %v545_v30 = vpop.f32.mrb[12].mxu0  ;;  %v336_v31 = vmax.f32 %v320_v27, 0.0 }
 0x10e   :  { %v546_v33 = vpop.f32.mrb[13].mxu0 }
 0x10f   :  { %v483_v34 = vpack.c.bf16 %v328_v29, %v327_v28  ;;  %v503_v35 = vpack.c.bf16 %v336_v31, %v335_v26  ;;  %v547_v36 = vadd.f32 %v546_v33, %v545_v30  ;;  %v548_v37 = vpop.f32.mrb[14].mxu0 }
 0x110   :  { %v549_v38 = vpop.f32.mrb[15].mxu0 }
 0x111   :  { %506 = vst [vmem:[%s775_s3 + $0x10] sm:$0xff] %v483_v34   ;;  %510 = vst [vmem:[%s775_s3 + $0x30] sm:$0xff] %v503_v35   ;;  %v293_v39 = vadd.f32 %v547_v36, %v735_v32  ;;  %v550_v40 = vadd.f32 %v549_v38, %v548_v37 }
 0x113   :  { %v296_v41 = vadd.f32 %v550_v40, %v735_v32  ;;  %v329_v42 = vmax.f32 %v293_v39, 0.0 }
 0x115   :  { %v330_v43 = vmax.f32 %v296_v41, 0.0 }
 0x117   :  { %v488_v44 = vpack.c.bf16 %v330_v43, %v329_v42 }
 0x119   :  { %507 = vst [vmem:[%s775_s3 + $0x18] sm:$0xff] %v488_v44  }

// kernel: inception_transfer_forward.35
= control target key start
LH: loop header
LB: loop body
LE: loop exit
PB: predicated region body
PF: predicated region fallthrough
CT: control target
= control target key end

     0   :  { %v965_v1 = vmov 0   ;;  %vm376_vm0 = vcmask 261120   ;;  %s1308_s1 = inlined_call_operand.vmem [shape: bf16[288,256], index: 1, kind: input, shape index: {}]   ;;  %s1309_s0 = inlined_call_operand.vmem [shape: bf16[112,288], index: 0, kind: input, shape index: {}]   ;;  %s1310_s2 = inlined_call_operand.vmem [shape: f32[1,256], index: 2, kind: input, shape index: {}]   ;;  %s1311_s3 = inlined_call_operand.vmem [shape: bf16[112,256], index: 3, kind: output, shape index: {}]  }
   0x1   :  { %v883_v0 = vld [vmem:[%s1308_s1 + $0x4] ss:$8 sps:$4 sm:$0xff]   ;;  %533 = vmatprep.mubr.bf16.mxu0 %v965_v1  ;;  %v885_v2 = vld [vmem:[%s1308_s1] ss:$8 sps:$4 sm:$0xff]   ;;  %v886_v3 = vld [vmem:[%s1308_s1 + $0x14] ss:$8 sps:$4 sm:$0xff]  }
   0x2   :  { %398 = vmatprep.subr.bf16.mxu1 %v883_v0  ;;  %v888_v4 = vld [vmem:[%s1308_s1 + $0x10] ss:$8 sps:$4 sm:$0xff]   ;;  %v889_v5 = vld [vmem:[%s1308_s1 + $0x24] ss:$8 sps:$4 sm:$0xff]   ;;  %v891_v6 = vld [vmem:[%s1308_s1 + $0x20] ss:$8 sps:$4 sm:$0xff]  }
   0x3   :  { %399 = vmatpush1.bf16.msra.mxu1 %v885_v2  ;;  %v892_v7 = vld [vmem:[%s1308_s1 + $0x34] ss:$8 sps:$4 sm:$0xff]   ;;  %v894_v8 = vld [vmem:[%s1308_s1 + $0x30] ss:$8 sps:$4 sm:$0xff]   ;;  %v895_v9 = vld [vmem:[%s1308_s1 + $0x44] ss:$8 sps:$4 sm:$0xff]  }
   0x4   :  { %400 = vmatprep.subr.bf16.mxu1 %v886_v3  ;;  %v897_v10 = vld [vmem:[%s1308_s1 + $0x40] ss:$8 sps:$4 sm:$0xff]   ;;  %v898_v11 = vld [vmem:[%s1308_s1 + $0x54] ss:$8 sps:$4 sm:$0xff]   ;;  %v900_v12 = vld [vmem:[%s1308_s1 + $0x50] ss:$8 sps:$4 sm:$0xff]  }
   0x5   :  { %v925_v13 = vld [vmem:[%s1308_s1 + $0x104] ss:$8 sps:$4 sm:$0xff]   ;;  %v929_v15 = vld [vmem:[%s1308_s1 + $0x100] ss:$8 sps:$4 sm:$0xff]   ;;  %v931_v16 = vld [vmem:[%s1308_s1 + $0x114] ss:$8 sps:$4 sm:$0xff]  }
   0x6   :  { %v901_v14 = vld [vmem:[%s1308_s1 + $0x64] ss:$8 sps:$4 sm:$0xff]   ;;  %501 = vmatprep.subr.bf16.mxu0 %v925_v13  ;;  %v903_v17 = vld [vmem:[%s1308_s1 + $0x60] ss:$8 sps:$4 sm:$0xff]   ;;  %v935_v18 = vld [vmem:[%s1308_s1 + $0x110] ss:$8 sps:$4 sm:$0xff]  }
   0x7   :  { %401 = vmatpush1.bf16.msra.mxu1 %v888_v4  ;;  %502 = vmatpush1.bf16.msra.mxu0 %v929_v15  ;;  %v904_v19 = vld [vmem:[%s1308_s1 + $0x74] ss:$8 sps:$4 sm:$0xff]   ;;  %v939_v20 = vld [vmem:[%s1309_s0 + $0x4] ss:$12 sps:$4 sm:$0xff]   ;;  %v909_v24 = vld [vmem:[%s1308_s1 + $0x80] ss:$8 sps:$4 sm:$0xff]  }
   0x8   :  { %402 = vmatprep.subr.bf16.mxu1 %v889_v5  ;;  %503 = vmatprep.subr.bf16.mxu0 %v931_v16  ;;  %v940_v21 = vld [vmem:[%s1309_s0 + $0x8] ss:$12 sps:$4 sm:$0xff]   ;;  %v906_v22 = vld [vmem:[%s1308_s1 + $0x70] ss:$8 sps:$4 sm:$0xff]   ;;  %v907_v23 = vld [vmem:[%s1308_s1 + $0x84] ss:$8 sps:$4 sm:$0xff]  }
   0x9   :  { %430 = vmatprep.mubr.bf16.mxu1 %v939_v20  ;;  %v910_v25 = vld [vmem:[%s1308_s1 + $0x94] ss:$8 sps:$4 sm:$0xff]   ;;  %v943_v26 = vld [vmem:[%s1309_s0 + $0x20] ss:$12 sps:$4 sm:$0xff]   ;;  %v912_v27 = vld [vmem:[%s1308_s1 + $0x90] ss:$8 sps:$4 sm:$0xff]  }
   0xa   :  { %v913_v28 = vld [vmem:[%s1308_s1 + $0xa4] ss:$8 sps:$4 sm:$0xff]   ;;  %v915_v29 = vld [vmem:[%s1308_s1 + $0xa0] ss:$8 sps:$4 sm:$0xff]   ;;  %v916_v30 = vld [vmem:[%s1308_s1 + $0xb4] ss:$8 sps:$4 sm:$0xff]  }
   0xb   :  { %403 = vmatpush1.bf16.msra.mxu1 %v891_v6  ;;  %504 = vmatpush1.bf16.msra.mxu0 %v935_v18  ;;  %v947_v31 = vld [vmem:[%s1309_s0 + $0x38] ss:$12 sps:$4 sm:$0xff]   ;;  %v921_v34 = vld [vmem:[%s1308_s1 + $0xc0] ss:$8 sps:$4 sm:$0xff]   ;;  %v922_v35 = vld [vmem:[%s1308_s1 + $0xd4] ss:$8 sps:$4 sm:$0xff]   ;;  %v81_v6 = vlaneseq }
   0xc   :  { %404 = vmatprep.subr.bf16.mxu1 %v892_v7  ;;  %v918_v32 = vld [vmem:[%s1308_s1 + $0xb0] ss:$8 sps:$4 sm:$0xff]   ;;  %v919_v33 = vld [vmem:[%s1308_s1 + $0xc4] ss:$8 sps:$4 sm:$0xff]   ;;  %v930_v39 = vld [vmem:[%s1308_s1 + $0xe0] ss:$8 sps:$4 sm:$0xff]  }
   0xd   :  { %v951_v36 = vld [vmem:[%s1309_s0 + $0x50] ss:$12 sps:$4 sm:$0xff]   ;;  %v927_v38 = vld [vmem:[%s1308_s1 + $0xe4] ss:$8 sps:$4 sm:$0xff]   ;;  %v955_v41 = vld [vmem:[%s1309_s0 + $0x68] ss:$12 sps:$4 sm:$0xff]  }
   0xe   :  { %791 = vmatmul.mubr.msk.bf16.vlgmr.msra.gmra.mrb[0].mxu0 %vm376_vm0, %v940_v21  ;;  %v924_v37 = vld [vmem:[%s1308_s1 + $0xd0] ss:$8 sps:$4 sm:$0xff]   ;;  %v933_v40 = vld [vmem:[%s1308_s1 + $0xf4] ss:$8 sps:$4 sm:$0xff]   ;;  %v937_v43 = vld [vmem:[%s1309_s0] ss:$12 sps:$4 sm:$0xff]  }
   0xf   :  { %405 = vmatpush1.bf16.msra.mxu1 %v894_v8  ;;  %543 = vmatprep.mubr.bf16.mxu0 %v965_v1  ;;  %v936_v42 = vld [vmem:[%s1308_s1 + $0xf0] ss:$8 sps:$4 sm:$0xff]   ;;  %v941_v44 = vld [vmem:[%s1309_s0 + $0x1c] ss:$12 sps:$4 sm:$0xff]   ;;  %v959_v45 = vld [vmem:[%s1309_s0 + $0x80] ss:$12 sps:$4 sm:$0xff]  }
  0x10   :  { %406 = vmatprep.subr.bf16.mxu1 %v895_v9  ;;  %v944_v46 = vld [vmem:[%s1309_s0 + $0x18] ss:$12 sps:$4 sm:$0xff]   ;;  %v945_v47 = vld [vmem:[%s1309_s0 + $0x34] ss:$12 sps:$4 sm:$0xff]   ;;  %v948_v49 = vld [vmem:[%s1309_s0 + $0x30] ss:$12 sps:$4 sm:$0xff]  }
  0x11   :  { %v963_v48 = vld [vmem:[%s1309_s0 + $0x98] ss:$12 sps:$4 sm:$0xff]   ;;  %v952_v51 = vld [vmem:[%s1309_s0 + $0x48] ss:$12 sps:$4 sm:$0xff]   ;;  %v956_v53 = vld [vmem:[%s1309_s0 + $0x60] ss:$12 sps:$4 sm:$0xff]  }
  0x12   :  { %v949_v50 = vld [vmem:[%s1309_s0 + $0x4c] ss:$12 sps:$4 sm:$0xff]   ;;  %v953_v52 = vld [vmem:[%s1309_s0 + $0x64] ss:$12 sps:$4 sm:$0xff]   ;;  %v957_v54 = vld [vmem:[%s1309_s0 + $0x7c] ss:$12 sps:$4 sm:$0xff]  }
  0x13   :  { %407 = vmatpush1.bf16.msra.mxu1 %v897_v10  ;;  %v960_v55 = vld [vmem:[%s1309_s0 + $0x78] ss:$12 sps:$4 sm:$0xff]   ;;  %v961_v56 = vld [vmem:[%s1309_s0 + $0x94] ss:$12 sps:$4 sm:$0xff]   ;;  %v964_v57 = vld [vmem:[%s1309_s0 + $0x90] ss:$12 sps:$4 sm:$0xff]  }
  0x14   :  { %408 = vmatprep.subr.bf16.mxu1 %v898_v11  ;;  %v82_v9 = vshrl.u32 %v81_v6, 7  ;;  %v79_v13 = vld [vmem:[%s1310_s2] sm:$0x3] }
  0x16   :  { %792 = vmatmul.mubr.msk.bf16.gmra.mrb[4].mxu0 %vm376_vm0, %v943_v26 }
  0x17   :  { %409 = vmatpush1.bf16.msra.mxu1 %v900_v12  ;;  %553 = vmatprep.mubr.bf16.mxu0 %v965_v1  ;;  %v83_v12 = vsub.s32 0, %v82_v9 }
  0x18   :  { %410 = vmatprep.subr.bf16.mxu1 %v901_v14  ;;  %v87_v14 = vsub.s32 1, %v82_v9 }
  0x1b   :  { %411 = vmatpush1.bf16.msra.mxu1 %v903_v17  ;;  %v1194_v17 = vrot.slane %v79_v13, %v83_v12 }
  0x1c   :  { %412 = vmatprep.subr.bf16.mxu1 %v904_v19  ;;  %v1198_v19 = vrot.slane %v79_v13, %v87_v14 }
  0x1e   :  { %793 = vmatmul.mubr.msk.bf16.gmra.mrb[8].mxu0 %vm376_vm0, %v947_v31 }
  0x1f   :  { %413 = vmatpush1.bf16.msra.mxu1 %v906_v22  ;;  %563 = vmatprep.mubr.bf16.mxu0 %v965_v1 }
  0x20   :  { %414 = vmatprep.subr.bf16.mxu1 %v907_v23 }
  0x23   :  { %415 = vmatpush1.bf16.msra.mxu1 %v909_v24 }
  0x24   :  { %416 = vmatprep.subr.bf16.mxu1 %v910_v25 }
  0x26   :  { %794 = vmatmul.mubr.msk.bf16.gmra.mrb[12].mxu0 %vm376_vm0, %v951_v36 }
  0x27   :  { %417 = vmatpush1.bf16.msra.mxu1 %v912_v27  ;;  %573 = vmatprep.mubr.bf16.mxu0 %v965_v1 }
  0x28   :  { %418 = vmatprep.subr.bf16.mxu1 %v913_v28 }
  0x2b   :  { %419 = vmatpush1.bf16.msra.mxu1 %v915_v29 }
  0x2c   :  { %420 = vmatprep.subr.bf16.mxu1 %v916_v30 }
  0x2e   :  { %795 = vmatmul.mubr.msk.bf16.gmra.mrb[16].mxu0 %vm376_vm0, %v955_v41 }
  0x2f   :  { %421 = vmatpush1.bf16.msra.mxu1 %v918_v32  ;;  %583 = vmatprep.mubr.bf16.mxu0 %v965_v1 }
  0x30   :  { %422 = vmatprep.subr.bf16.mxu1 %v919_v33 }
  0x33   :  { %423 = vmatpush1.bf16.msra.mxu1 %v921_v34 }
  0x34   :  { %424 = vmatprep.subr.bf16.mxu1 %v922_v35 }
  0x36   :  { %796 = vmatmul.mubr.msk.bf16.gmra.mrb[20].mxu0 %vm376_vm0, %v959_v45 }
  0x37   :  { %425 = vmatpush1.bf16.msra.mxu1 %v924_v37  ;;  %593 = vmatprep.mubr.bf16.mxu0 %v965_v1 }
  0x38   :  { %426 = vmatprep.subr.bf16.mxu1 %v927_v38 }
  0x3b   :  { %427 = vmatpush1.bf16.msra.mxu1 %v930_v39 }
  0x3c   :  { %428 = vmatprep.subr.bf16.mxu1 %v933_v40 }
  0x3e   :  { %797 = vmatmul.mubr.msk.bf16.gmra.mrb[24].mxu0 %vm376_vm0, %v963_v48 }
  0x3f   :  { %429 = vmatpush1.bf16.msra.mxu1 %v936_v42 }
  0x42   :  { %431 = vmatmul.mubr.bf16.vlgmr.msra.gmra.mrb[0].mxu1 %v937_v43 }
  0x43   :  { %440 = vmatprep.mubr.bf16.mxu1 %v941_v44 }
  0x4a   :  { %441 = vmatmul.mubr.bf16.gmra.mrb[4].mxu1 %v944_v46 }
  0x4b   :  { %450 = vmatprep.mubr.bf16.mxu1 %v945_v47 }
  0x52   :  { %451 = vmatmul.mubr.bf16.gmra.mrb[8].mxu1 %v948_v49 }
  0x53   :  { %460 = vmatprep.mubr.bf16.mxu1 %v949_v50 }
  0x5a   :  { %461 = vmatmul.mubr.bf16.gmra.mrb[12].mxu1 %v952_v51 }
  0x5b   :  { %470 = vmatprep.mubr.bf16.mxu1 %v953_v52 }
  0x62   :  { %471 = vmatmul.mubr.bf16.gmra.mrb[16].mxu1 %v956_v53 }
  0x63   :  { %480 = vmatprep.mubr.bf16.mxu1 %v957_v54 }
  0x6a   :  { %481 = vmatmul.mubr.bf16.gmra.mrb[20].mxu1 %v960_v55 }
  0x6b   :  { %490 = vmatprep.mubr.bf16.mxu1 %v961_v56 }
  0x72   :  { %491 = vmatmul.mubr.bf16.gmra.mrb[24].mxu1 %v964_v57 }
  0xe1   :  { %v535_v58 = vpop.f32.mrb[0].mxu0 }
  0xe2   :  { %v537_v59 = vpop.f32.mrb[1].mxu0 }
  0xe3   :  { %v539_v60 = vpop.f32.mrb[2].mxu0 }
  0xe4   :  { %v541_v61 = vpop.f32.mrb[3].mxu0 }
  0xe9   :  { %v545_v62 = vpop.f32.mrb[4].mxu0 }
  0xea   :  { %v547_v63 = vpop.f32.mrb[5].mxu0 }
  0xeb   :  { %v549_v0 = vpop.f32.mrb[6].mxu0 }
  0xec   :  { %v551_v1 = vpop.f32.mrb[7].mxu0 }
  0xf1   :  { %v1171_v2 = vpop.f32.mrb[8].mxu0 }
  0xf2   :  { %v1173_v3 = vpop.f32.mrb[9].mxu0 }
  0xf3   :  { %v1175_v4 = vpop.f32.mrb[10].mxu0 }
  0xf4   :  { %v1177_v5 = vpop.f32.mrb[11].mxu0 }
  0xf9   :  { %v1179_v7 = vpop.f32.mrb[12].mxu0 }
  0xfa   :  { %v1181_v8 = vpop.f32.mrb[13].mxu0 }
  0xfb   :  { %v1183_v10 = vpop.f32.mrb[14].mxu0 }
  0xfc   :  { %v1185_v11 = vpop.f32.mrb[15].mxu0 }
 0x101   :  { %v1190_v15 = vpop.f32.mrb[16].mxu0 }
 0x102   :  { %v1192_v16 = vpop.f32.mrb[17].mxu0 }
 0x103   :  { %v1196_v18 = vpop.f32.mrb[18].mxu0 }
 0x104   :  { %v1200_v20 = vpop.f32.mrb[19].mxu0 }
 0x109   :  { %v1205_v29 = vpop.f32.mrb[20].mxu0 }
 0x10a   :  { %v1208_v32 = vpop.f32.mrb[21].mxu0 }
 0x10b   :  { %v1210_v35 = vpop.f32.mrb[22].mxu0 }
 0x10c   :  { %v1212_v38 = vpop.f32.mrb[23].mxu0 }
 0x111   :  { %v1220_v51 = vpop.f32.mrb[24].mxu0 }
 0x112   :  { %v1226_v54 = vpop.f32.mrb[25].mxu0 }
 0x113   :  { %v1228_v57 = vpop.f32.mrb[26].mxu0 }
 0x115   :  { %v432_v21 = vpop.f32.mrb[0].mxu1 }
 0x116   :  { %v433_v22 = vadd.f32 %v432_v21, %v1194_v17  ;;  %v434_v23 = vpop.f32.mrb[1].mxu1 }
 0x117   :  { %v435_v24 = vadd.f32 %v434_v23, %v1198_v19  ;;  %v436_v25 = vpop.f32.mrb[2].mxu1 }
 0x118   :  { %v536_v26 = vadd.f32 %v535_v58, %v433_v22  ;;  %v437_v27 = vadd.f32 %v436_v25, %v1194_v17  ;;  %v438_v28 = vpop.f32.mrb[3].mxu1 }
 0x119   :  { %v538_v30 = vadd.f32 %v537_v59, %v435_v24  ;;  %v439_v31 = vadd.f32 %v438_v28, %v1198_v19 }
 0x11a   :  { %v604_v33 = vmax.f32 %v536_v26, 0.0  ;;  %v540_v34 = vadd.f32 %v539_v60, %v437_v27  ;;  %v1230_v60 = vpop.f32.mrb[27].mxu0 }
 0x11b   :  { %v605_v36 = vmax.f32 %v538_v30, 0.0  ;;  %v542_v37 = vadd.f32 %v541_v61, %v439_v31 }
 0x11c   :  { %v606_v39 = vmax.f32 %v540_v34, 0.0 }
 0x11d   :  { %v812_v40 = vpack.c.bf16 %v605_v36, %v604_v33  ;;  %v607_v41 = vmax.f32 %v542_v37, 0.0  ;;  %v442_v42 = vpop.f32.mrb[4].mxu1 }
 0x11e   :  { %v443_v43 = vadd.f32 %v442_v42, %v1194_v17  ;;  %v444_v44 = vpop.f32.mrb[5].mxu1 }
 0x11f   :  { %716 = vst [vmem:[%s1311_s3] sm:$0xff] %v812_v40  ;;  %v813_v45 = vpack.c.bf16 %v607_v41, %v606_v39  ;;  %v445_v46 = vadd.f32 %v444_v44, %v1198_v19  ;;  %v446_v47 = vpop.f32.mrb[6].mxu1 }
 0x120   :  { %v546_v48 = vadd.f32 %v545_v62, %v443_v43  ;;  %v447_v49 = vadd.f32 %v446_v47, %v1194_v17  ;;  %v448_v50 = vpop.f32.mrb[7].mxu1 }
 0x121   :  { %717 = vst [vmem:[%s1311_s3 + $0x8] sm:$0xff] %v813_v45  ;;  %v548_v52 = vadd.f32 %v547_v63, %v445_v46  ;;  %v449_v53 = vadd.f32 %v448_v50, %v1198_v19 }
 0x122   :  { %v608_v55 = vmax.f32 %v546_v48, 0.0  ;;  %v550_v56 = vadd.f32 %v549_v0, %v447_v49 }
 0x123   :  { %v609_v58 = vmax.f32 %v548_v52, 0.0  ;;  %v552_v59 = vadd.f32 %v551_v1, %v449_v53 }
 0x124   :  { %v610_v61 = vmax.f32 %v550_v56, 0.0 }
 0x125   :  { %v814_v62 = vpack.c.bf16 %v609_v58, %v608_v55  ;;  %v611_v6 = vmax.f32 %v552_v59, 0.0  ;;  %v452_v9 = vpop.f32.mrb[8].mxu1 }
 0x126   :  { %v453_v12 = vadd.f32 %v452_v9, %v1194_v17  ;;  %v454_v13 = vpop.f32.mrb[9].mxu1 }
 0x127   :  { %718 = vst [vmem:[%s1311_s3 + $0x10] sm:$0xff] %v814_v62  ;;  %v815_v63 = vpack.c.bf16 %v611_v6, %v610_v61  ;;  %v455_v0 = vadd.f32 %v454_v13, %v1198_v19  ;;  %v456_v14 = vpop.f32.mrb[10].mxu1 }
 0x128   :  { %v556_v21 = vadd.f32 %v1171_v2, %v453_v12  ;;  %v457_v1 = vadd.f32 %v456_v14, %v1194_v17  ;;  %v458_v22 = vpop.f32.mrb[11].mxu1 }
 0x129   :  { %719 = vst [vmem:[%s1311_s3 + $0x18] sm:$0xff] %v815_v63  ;;  %v558_v23 = vadd.f32 %v1173_v3, %v455_v0  ;;  %v459_v24 = vadd.f32 %v458_v22, %v1198_v19 }
 0x12a   :  { %v612_v25 = vmax.f32 %v556_v21, 0.0  ;;  %v560_v26 = vadd.f32 %v1175_v4, %v457_v1 }
 0x12b   :  { %v613_v27 = vmax.f32 %v558_v23, 0.0  ;;  %v562_v28 = vadd.f32 %v1177_v5, %v459_v24 }
 0x12c   :  { %v614_v30 = vmax.f32 %v560_v26, 0.0 }
 0x12d   :  { %v816_v31 = vpack.c.bf16 %v613_v27, %v612_v25  ;;  %v615_v2 = vmax.f32 %v562_v28, 0.0  ;;  %v462_v33 = vpop.f32.mrb[12].mxu1 }
 0x12e   :  { %v463_v34 = vadd.f32 %v462_v33, %v1194_v17  ;;  %v464_v36 = vpop.f32.mrb[13].mxu1 }
 0x12f   :  { %720 = vst [vmem:[%s1311_s3 + $0x20] sm:$0xff] %v816_v31  ;;  %v817_v3 = vpack.c.bf16 %v615_v2, %v614_v30  ;;  %v465_v37 = vadd.f32 %v464_v36, %v1198_v19  ;;  %v466_v39 = vpop.f32.mrb[14].mxu1 }
 0x130   :  { %v566_v4 = vadd.f32 %v1179_v7, %v463_v34  ;;  %v467_v40 = vadd.f32 %v466_v39, %v1194_v17  ;;  %v468_v5 = vpop.f32.mrb[15].mxu1 }
 0x131   :  { %721 = vst [vmem:[%s1311_s3 + $0x28] sm:$0xff] %v817_v3  ;;  %v568_v41 = vadd.f32 %v1181_v8, %v465_v37  ;;  %v469_v42 = vadd.f32 %v468_v5, %v1198_v19 }
 0x132   :  { %v616_v43 = vmax.f32 %v566_v4, 0.0  ;;  %v570_v44 = vadd.f32 %v1183_v10, %v467_v40 }
 0x133   :  { %v617_v45 = vmax.f32 %v568_v41, 0.0  ;;  %v572_v46 = vadd.f32 %v1185_v11, %v469_v42 }
 0x134   :  { %v618_v47 = vmax.f32 %v570_v44, 0.0 }
 0x135   :  { %v818_v48 = vpack.c.bf16 %v617_v45, %v616_v43  ;;  %v619_v7 = vmax.f32 %v572_v46, 0.0  ;;  %v472_v49 = vpop.f32.mrb[16].mxu1 }
 0x136   :  { %v473_v50 = vadd.f32 %v472_v49, %v1194_v17  ;;  %v474_v52 = vpop.f32.mrb[17].mxu1 }
 0x137   :  { %722 = vst [vmem:[%s1311_s3 + $0x30] sm:$0xff] %v818_v48  ;;  %v819_v8 = vpack.c.bf16 %v619_v7, %v618_v47  ;;  %v475_v53 = vadd.f32 %v474_v52, %v1198_v19  ;;  %v476_v55 = vpop.f32.mrb[18].mxu1 }
 0x138   :  { %v576_v10 = vadd.f32 %v1190_v15, %v473_v50  ;;  %v477_v56 = vadd.f32 %v476_v55, %v1194_v17  ;;  %v478_v11 = vpop.f32.mrb[19].mxu1 }
 0x139   :  { %723 = vst [vmem:[%s1311_s3 + $0x38] sm:$0xff] %v819_v8  ;;  %v578_v58 = vadd.f32 %v1192_v16, %v475_v53  ;;  %v479_v59 = vadd.f32 %v478_v11, %v1198_v19 }
 0x13a   :  { %v620_v61 = vmax.f32 %v576_v10, 0.0  ;;  %v580_v62 = vadd.f32 %v1196_v18, %v477_v56 }
 0x13b   :  { %v621_v6 = vmax.f32 %v578_v58, 0.0  ;;  %v582_v9 = vadd.f32 %v1200_v20, %v479_v59 }
 0x13c   :  { %v622_v12 = vmax.f32 %v580_v62, 0.0 }
 0x13d   :  { %v820_v13 = vpack.c.bf16 %v621_v6, %v620_v61  ;;  %v623_v15 = vmax.f32 %v582_v9, 0.0  ;;  %v482_v63 = vpop.f32.mrb[20].mxu1 }
 0x13e   :  { %v483_v0 = vadd.f32 %v482_v63, %v1194_v17  ;;  %v484_v14 = vpop.f32.mrb[21].mxu1 }
 0x13f   :  { %724 = vst [vmem:[%s1311_s3 + $0x40] sm:$0xff] %v820_v13  ;;  %v821_v16 = vpack.c.bf16 %v623_v15, %v622_v12  ;;  %v485_v21 = vadd.f32 %v484_v14, %v1198_v19  ;;  %v486_v1 = vpop.f32.mrb[22].mxu1 }
 0x140   :  { %v586_v18 = vadd.f32 %v1205_v29, %v483_v0  ;;  %v487_v22 = vadd.f32 %v486_v1, %v1194_v17  ;;  %v488_v20 = vpop.f32.mrb[23].mxu1 }
 0x141   :  { %725 = vst [vmem:[%s1311_s3 + $0x48] sm:$0xff] %v821_v16  ;;  %v588_v23 = vadd.f32 %v1208_v32, %v485_v21  ;;  %v489_v24 = vadd.f32 %v488_v20, %v1198_v19 }
 0x142   :  { %v624_v25 = vmax.f32 %v586_v18, 0.0  ;;  %v590_v26 = vadd.f32 %v1210_v35, %v487_v22 }
 0x143   :  { %v625_v27 = vmax.f32 %v588_v23, 0.0  ;;  %v592_v28 = vadd.f32 %v1212_v38, %v489_v24 }
 0x144   :  { %v626_v30 = vmax.f32 %v590_v26, 0.0 }
 0x145   :  { %v822_v31 = vpack.c.bf16 %v625_v27, %v624_v25  ;;  %v627_v29 = vmax.f32 %v592_v28, 0.0  ;;  %v492_v2 = vpop.f32.mrb[24].mxu1 }
 0x146   :  { %v493_v33 = vadd.f32 %v492_v2, %v1194_v17  ;;  %v494_v34 = vpop.f32.mrb[25].mxu1 }
 0x147   :  { %726 = vst [vmem:[%s1311_s3 + $0x50] sm:$0xff] %v822_v31  ;;  %v823_v32 = vpack.c.bf16 %v627_v29, %v626_v30  ;;  %v495_v36 = vadd.f32 %v494_v34, %v1198_v19  ;;  %v496_v3 = vpop.f32.mrb[26].mxu1 }
 0x148   :  { %v596_v35 = vadd.f32 %v1220_v51, %v493_v33  ;;  %v497_v37 = vadd.f32 %v496_v3, %v1194_v17  ;;  %v498_v38 = vpop.f32.mrb[27].mxu1 }
 0x149   :  { %727 = vst [vmem:[%s1311_s3 + $0x58] sm:$0xff] %v823_v32  ;;  %v598_v39 = vadd.f32 %v1226_v54, %v495_v36  ;;  %v499_v4 = vadd.f32 %v498_v38, %v1198_v19 }
 0x14a   :  { %v628_v40 = vmax.f32 %v596_v35, 0.0  ;;  %v600_v5 = vadd.f32 %v1228_v57, %v497_v37 }
 0x14b   :  { %v629_v41 = vmax.f32 %v598_v39, 0.0  ;;  %v602_v42 = vadd.f32 %v1230_v60, %v499_v4 }
 0x14c   :  { %v630_v43 = vmax.f32 %v600_v5, 0.0 }
 0x14d   :  { %v824_v44 = vpack.c.bf16 %v629_v41, %v628_v40  ;;  %v631_v51 = vmax.f32 %v602_v42, 0.0 }
 0x14f   :  { %728 = vst [vmem:[%s1311_s3 + $0x60] sm:$0xff] %v824_v44  ;;  %v825_v17 = vpack.c.bf16 %v631_v51, %v630_v43 }
 0x151   :  { %729 = vst [vmem:[%s1311_s3 + $0x68] sm:$0xff] %v825_v17 }

// kernel: inception_transfer_forward.39
= control target key start
LH: loop header
LB: loop body
LE: loop exit
PB: predicated region body
PF: predicated region fallthrough
CT: control target
= control target key end

     0   :  { %v850_v1 = vmov 0.0   ;;  %vm851_vm0 = vmmov 0   ;;  %vm299_vm1 = vcmask 261120   ;;  %s1052_s1 = inlined_call_operand.vmem [shape: bf16[288,128], index: 1, kind: input, shape index: {}]   ;;  %s1053_s0 = inlined_call_operand.vmem [shape: bf16[112,288], index: 0, kind: input, shape index: {}]   ;;  %s1054_s2 = inlined_call_operand.vmem [shape: f32[1,128], index: 2, kind: input, shape index: {}]   ;;  %s1055_s3 = inlined_call_operand.vmem [shape: bf16[112,128], index: 3, kind: output, shape index: {}]  }
   0x1   :  { %v804_v0 = vld [vmem:[%s1052_s1 + $0x40] sm:$0xff]   ;;  %770 = vmatprep.subr.bf16.mxu1 %v850_v1  ;;  %774 = vmatprep.mubr.msk.bf16.mxu1 %vm851_vm0, %v850_v1  ;;  %v806_v3 = vld [vmem:[%s1052_s1 + $0x48] sm:$0xff]   ;;  %v808_v5 = vld [vmem:[%s1052_s1 + $0x50] sm:$0xff]  }
   0x2   :  { %v805_v2 = vld [vmem:[%s1052_s1] sm:$0xff]   ;;  %703 = vmatprep.subr.bf16.mxu0 %v804_v0  ;;  %v807_v4 = vld [vmem:[%s1052_s1 + $0x8] sm:$0xff]   ;;  %v809_v6 = vld [vmem:[%s1052_s1 + $0x10] sm:$0xff]  }
   0x3   :  { %704 = vmatpush3.bf16.msra.mxu0 %v805_v2  ;;  %v810_v7 = vld [vmem:[%s1052_s1 + $0x58] sm:$0xff]   ;;  %v812_v9 = vld [vmem:[%s1052_s1 + $0x60] sm:$0xff]   ;;  %v814_v12 = vld [vmem:[%s1052_s1 + $0x68] sm:$0xff]  }
   0x4   :  { %705 = vmatprep.subr.bf16.mxu0 %v806_v3  ;;  %v811_v8 = vld [vmem:[%s1052_s1 + $0x18] sm:$0xff]   ;;  %v818_v10 = vld [vmem:[%s1052_s1 + $0x80] sm:$0xff]   ;;  %v815_v13 = vld [vmem:[%s1052_s1 + $0x28] sm:$0xff]  }
   0x5   :  { %v813_v11 = vld [vmem:[%s1052_s1 + $0x20] sm:$0xff]   ;;  %771 = vmatpush3.bf16.msra.mxu1 %v818_v10  ;;  %v816_v14 = vld [vmem:[%s1052_s1 + $0x70] sm:$0xff]   ;;  %v824_v16 = vld [vmem:[%s1052_s1 + $0x88] sm:$0xff]  }
   0x6   :  { %772 = vmatprep.subr.bf16.mxu1 %v850_v1  ;;  %v823_v15 = vld [vmem:[%s1053_s0 + $0x4] ss:$12 sps:$4 sm:$0xff]   ;;  %v825_v17 = vld [vmem:[%s1053_s0 + $0x8] ss:$12 sps:$4 sm:$0xff]   ;;  %v819_v19 = vld [vmem:[%s1052_s1 + $0x78] sm:$0xff]  }
   0x7   :  { %706 = vmatpush3.bf16.msra.mxu0 %v807_v4  ;;  %353 = vmatprep.mubr.bf16.mxu0 %v823_v15  ;;  %v817_v18 = vld [vmem:[%s1052_s1 + $0x30] sm:$0xff]   ;;  %v820_v20 = vld [vmem:[%s1052_s1 + $0x38] sm:$0xff]   ;;  %v829_v21 = vld [vmem:[%s1053_s0 + $0x20] ss:$12 sps:$4 sm:$0xff]  }
   0x8   :  { %707 = vmatprep.subr.bf16.mxu0 %v808_v5  ;;  %v821_v22 = vld [vmem:[%s1053_s0] ss:$12 sps:$4 sm:$0xff]   ;;  %v826_v23 = vld [vmem:[%s1053_s0 + $0x1c] ss:$12 sps:$4 sm:$0xff]   ;;  %v833_v24 = vld [vmem:[%s1053_s0 + $0x38] ss:$12 sps:$4 sm:$0xff]  }
   0x9   :  { %773 = vmatpush3.bf16.msra.mxu1 %v824_v16  ;;  %v828_v25 = vld [vmem:[%s1053_s0 + $0x18] ss:$12 sps:$4 sm:$0xff]   ;;  %v830_v26 = vld [vmem:[%s1053_s0 + $0x34] ss:$12 sps:$4 sm:$0xff]   ;;  %v837_v27 = vld [vmem:[%s1053_s0 + $0x50] ss:$12 sps:$4 sm:$0xff]  }
   0xa   :  { %v832_v28 = vld [vmem:[%s1053_s0 + $0x30] ss:$12 sps:$4 sm:$0xff]   ;;  %v834_v29 = vld [vmem:[%s1053_s0 + $0x4c] ss:$12 sps:$4 sm:$0xff]   ;;  %v841_v30 = vld [vmem:[%s1053_s0 + $0x68] ss:$12 sps:$4 sm:$0xff]  }
   0xb   :  { %708 = vmatpush3.bf16.msra.mxu0 %v809_v6  ;;  %v836_v31 = vld [vmem:[%s1053_s0 + $0x48] ss:$12 sps:$4 sm:$0xff]   ;;  %v838_v32 = vld [vmem:[%s1053_s0 + $0x64] ss:$12 sps:$4 sm:$0xff]   ;;  %v845_v33 = vld [vmem:[%s1053_s0 + $0x80] ss:$12 sps:$4 sm:$0xff]  }
   0xc   :  { %709 = vmatprep.subr.bf16.mxu0 %v810_v7  ;;  %775 = vmatmul.mubr.msk.bf16.vlgmr.msra.gmra.mrb[0].mxu1 %vm299_vm1, %v825_v17  ;;  %v840_v34 = vld [vmem:[%s1053_s0 + $0x60] ss:$12 sps:$4 sm:$0xff]   ;;  %v842_v35 = vld [vmem:[%s1053_s0 + $0x7c] ss:$12 sps:$4 sm:$0xff]   ;;  %v849_v36 = vld [vmem:[%s1053_s0 + $0x98] ss:$12 sps:$4 sm:$0xff]  }
   0xd   :  { %778 = vmatprep.mubr.msk.bf16.mxu1 %vm851_vm0, %v850_v1  ;;  %v844_v37 = vld [vmem:[%s1053_s0 + $0x78] ss:$12 sps:$4 sm:$0xff]   ;;  %v846_v38 = vld [vmem:[%s1053_s0 + $0x94] ss:$12 sps:$4 sm:$0xff]   ;;  %v848_v39 = vld [vmem:[%s1053_s0 + $0x90] ss:$12 sps:$4 sm:$0xff]  }
   0xe   :  { %v1015_v49 = vld [vmem:[%s1054_s2] ss:$0 sm:$0xff] }
   0xf   :  { %710 = vmatpush3.bf16.msra.mxu0 %v811_v8 }
  0x10   :  { %711 = vmatprep.subr.bf16.mxu0 %v812_v9 }
  0x13   :  { %712 = vmatpush3.bf16.msra.mxu0 %v813_v11 }
  0x14   :  { %713 = vmatprep.subr.bf16.mxu0 %v814_v12  ;;  %779 = vmatmul.mubr.msk.bf16.gmra.mrb[4].mxu1 %vm299_vm1, %v829_v21 }
  0x15   :  { %782 = vmatprep.mubr.msk.bf16.mxu1 %vm851_vm0, %v850_v1 }
  0x17   :  { %714 = vmatpush3.bf16.msra.mxu0 %v815_v13 }
  0x18   :  { %715 = vmatprep.subr.bf16.mxu0 %v816_v14 }
  0x1b   :  { %716 = vmatpush3.bf16.msra.mxu0 %v817_v18 }
  0x1c   :  { %717 = vmatprep.subr.bf16.mxu0 %v819_v19  ;;  %783 = vmatmul.mubr.msk.bf16.gmra.mrb[8].mxu1 %vm299_vm1, %v833_v24 }
  0x1d   :  { %786 = vmatprep.mubr.msk.bf16.mxu1 %vm851_vm0, %v850_v1 }
  0x1f   :  { %718 = vmatpush3.bf16.msra.mxu0 %v820_v20 }
  0x22   :  { %354 = vmatmul.mubr.bf16.vlgmr.msra.gmra.mrb[0].mxu0 %v821_v22 }
  0x23   :  { %361 = vmatprep.mubr.bf16.mxu0 %v826_v23 }
  0x24   :  { %787 = vmatmul.mubr.msk.bf16.gmra.mrb[12].mxu1 %vm299_vm1, %v837_v27 }
  0x25   :  { %790 = vmatprep.mubr.msk.bf16.mxu1 %vm851_vm0, %v850_v1 }
  0x2a   :  { %362 = vmatmul.mubr.bf16.gmra.mrb[4].mxu0 %v828_v25 }
  0x2b   :  { %369 = vmatprep.mubr.bf16.mxu0 %v830_v26 }
  0x2c   :  { %791 = vmatmul.mubr.msk.bf16.gmra.mrb[16].mxu1 %vm299_vm1, %v841_v30 }
  0x2d   :  { %794 = vmatprep.mubr.msk.bf16.mxu1 %vm851_vm0, %v850_v1 }
  0x32   :  { %370 = vmatmul.mubr.bf16.gmra.mrb[8].mxu0 %v832_v28 }
  0x33   :  { %377 = vmatprep.mubr.bf16.mxu0 %v834_v29 }
  0x34   :  { %795 = vmatmul.mubr.msk.bf16.gmra.mrb[20].mxu1 %vm299_vm1, %v845_v33 }
  0x35   :  { %798 = vmatprep.mubr.msk.bf16.mxu1 %vm851_vm0, %v850_v1 }
  0x3a   :  { %378 = vmatmul.mubr.bf16.gmra.mrb[12].mxu0 %v836_v31 }
  0x3b   :  { %385 = vmatprep.mubr.bf16.mxu0 %v838_v32 }
  0x3c   :  { %799 = vmatmul.mubr.msk.bf16.gmra.mrb[24].mxu1 %vm299_vm1, %v849_v36 }
  0x42   :  { %386 = vmatmul.mubr.bf16.gmra.mrb[16].mxu0 %v840_v34 }
  0x43   :  { %393 = vmatprep.mubr.bf16.mxu0 %v842_v35 }
  0x4a   :  { %394 = vmatmul.mubr.bf16.gmra.mrb[20].mxu0 %v844_v37 }
  0x4b   :  { %401 = vmatprep.mubr.bf16.mxu0 %v846_v38 }
  0x52   :  { %402 = vmatmul.mubr.bf16.gmra.mrb[24].mxu0 %v848_v39 }
  0xdf   :  { %v444_v40 = vpop.f32.mrb[0].mxu1 }
  0xe0   :  { %v776_v41 = vpop.f32.mrb[1].mxu1 }
  0xe1   :  { %v447_v42 = vpop.f32.mrb[2].mxu1 }
  0xe2   :  { %v777_v43 = vpop.f32.mrb[3].mxu1 }
  0xe7   :  { %v452_v44 = vpop.f32.mrb[4].mxu1 }
  0xe8   :  { %v780_v45 = vpop.f32.mrb[5].mxu1 }
  0xe9   :  { %v455_v47 = vpop.f32.mrb[6].mxu1 }
  0xea   :  { %v781_v50 = vpop.f32.mrb[7].mxu1 }
  0xef   :  { %v460_v58 = vpop.f32.mrb[8].mxu1 }
  0xf0   :  { %v784_v59 = vpop.f32.mrb[9].mxu1 }
  0xf1   :  { %v463_v62 = vpop.f32.mrb[10].mxu1 }
  0xf2   :  { %v785_v0 = vpop.f32.mrb[11].mxu1 }
  0xf5   :  { %v719_v46 = vpop.f32.mrb[0].mxu0 }
  0xf6   :  { %v720_v48 = vpop.f32.mrb[1].mxu0 }
  0xf7   :  { %v721_v51 = vadd.f32 %v720_v48, %v719_v46  ;;  %v722_v52 = vpop.f32.mrb[2].mxu0  ;;  %v468_v11 = vpop.f32.mrb[12].mxu1 }
  0xf8   :  { %v723_v53 = vpop.f32.mrb[3].mxu0  ;;  %v788_v12 = vpop.f32.mrb[13].mxu1 }
  0xf9   :  { %v356_v54 = vadd.f32 %v721_v51, %v1015_v49  ;;  %v724_v55 = vadd.f32 %v723_v53, %v722_v52  ;;  %v471_v15 = vpop.f32.mrb[14].mxu1 }
  0xfa   :  { %v789_v17 = vpop.f32.mrb[15].mxu1 }
  0xfb   :  { %v445_v56 = vadd.f32 %v444_v40, %v356_v54  ;;  %v359_v57 = vadd.f32 %v724_v55, %v1015_v49 }
  0xfd   :  { %v448_v60 = vadd.f32 %v447_v42, %v359_v57  ;;  %v725_v61 = vpop.f32.mrb[4].mxu0  ;;  %v499_v1 = vmax.f32 %v445_v56, 0.0 }
  0xfe   :  { %v726_v63 = vpop.f32.mrb[5].mxu0 }
  0xff   :  { %v500_v2 = vmax.f32 %v448_v60, 0.0  ;;  %v727_v3 = vadd.f32 %v726_v63, %v725_v61  ;;  %v728_v4 = vpop.f32.mrb[6].mxu0  ;;  %v476_v28 = vpop.f32.mrb[16].mxu1 }
 0x100   :  { %v729_v5 = vpop.f32.mrb[7].mxu0  ;;  %v792_v29 = vpop.f32.mrb[17].mxu1 }
 0x101   :  { %v665_v6 = vpack.c.bf16 %v500_v2, %v499_v1  ;;  %v364_v7 = vadd.f32 %v727_v3, %v1015_v49  ;;  %v730_v8 = vadd.f32 %v729_v5, %v728_v4  ;;  %v479_v32 = vpop.f32.mrb[18].mxu1 }
 0x102   :  { %v793_v34 = vpop.f32.mrb[19].mxu1 }
 0x103   :  { %666 = vst [vmem:[%s1055_s3] sm:$0xff] %v665_v6   ;;  %v453_v9 = vadd.f32 %v452_v44, %v364_v7  ;;  %v367_v10 = vadd.f32 %v730_v8, %v1015_v49 }
 0x105   :  { %v456_v13 = vadd.f32 %v455_v47, %v367_v10  ;;  %v731_v14 = vpop.f32.mrb[8].mxu0  ;;  %v501_v18 = vmax.f32 %v453_v9, 0.0 }
 0x106   :  { %v732_v16 = vpop.f32.mrb[9].mxu0 }
 0x107   :  { %v502_v19 = vmax.f32 %v456_v13, 0.0  ;;  %v733_v20 = vadd.f32 %v732_v16, %v731_v14  ;;  %v734_v21 = vpop.f32.mrb[10].mxu0  ;;  %v484_v45 = vpop.f32.mrb[20].mxu1 }
 0x108   :  { %v735_v22 = vpop.f32.mrb[11].mxu0  ;;  %v796_v46 = vpop.f32.mrb[21].mxu1 }
 0x109   :  { %v670_v23 = vpack.c.bf16 %v502_v19, %v501_v18  ;;  %v372_v24 = vadd.f32 %v733_v20, %v1015_v49  ;;  %v736_v25 = vadd.f32 %v735_v22, %v734_v21  ;;  %v487_v50 = vpop.f32.mrb[22].mxu1 }
 0x10a   :  { %v797_v52 = vpop.f32.mrb[23].mxu1 }
 0x10b   :  { %697 = vst [vmem:[%s1055_s3 + $0x8] sm:$0xff] %v670_v23   ;;  %v461_v26 = vadd.f32 %v460_v58, %v372_v24  ;;  %v375_v27 = vadd.f32 %v736_v25, %v1015_v49 }
 0x10d   :  { %v464_v30 = vadd.f32 %v463_v62, %v375_v27  ;;  %v737_v31 = vpop.f32.mrb[12].mxu0  ;;  %v503_v35 = vmax.f32 %v461_v26, 0.0 }
 0x10e   :  { %v738_v33 = vpop.f32.mrb[13].mxu0 }
 0x10f   :  { %v504_v36 = vmax.f32 %v464_v30, 0.0  ;;  %v739_v37 = vadd.f32 %v738_v33, %v737_v31  ;;  %v740_v38 = vpop.f32.mrb[14].mxu0  ;;  %v492_v63 = vpop.f32.mrb[24].mxu1 }
 0x110   :  { %v741_v39 = vpop.f32.mrb[15].mxu0  ;;  %v800_v0 = vpop.f32.mrb[25].mxu1 }
 0x111   :  { %v675_v40 = vpack.c.bf16 %v504_v36, %v503_v35  ;;  %v380_v41 = vadd.f32 %v739_v37, %v1015_v49  ;;  %v742_v42 = vadd.f32 %v741_v39, %v740_v38  ;;  %v495_v3 = vpop.f32.mrb[26].mxu1 }
 0x112   :  { %v801_v5 = vpop.f32.mrb[27].mxu1 }
 0x113   :  { %698 = vst [vmem:[%s1055_s3 + $0x10] sm:$0xff] %v675_v40   ;;  %v469_v43 = vadd.f32 %v468_v11, %v380_v41  ;;  %v383_v44 = vadd.f32 %v742_v42, %v1015_v49 }
 0x115   :  { %v472_v47 = vadd.f32 %v471_v15, %v383_v44  ;;  %v743_v48 = vpop.f32.mrb[16].mxu0  ;;  %v505_v53 = vmax.f32 %v469_v43, 0.0 }
 0x116   :  { %v744_v51 = vpop.f32.mrb[17].mxu0 }
 0x117   :  { %v506_v54 = vmax.f32 %v472_v47, 0.0  ;;  %v745_v55 = vadd.f32 %v744_v51, %v743_v48  ;;  %v746_v56 = vpop.f32.mrb[18].mxu0 }
 0x118   :  { %v747_v57 = vpop.f32.mrb[19].mxu0 }
 0x119   :  { %v680_v58 = vpack.c.bf16 %v506_v54, %v505_v53  ;;  %v388_v59 = vadd.f32 %v745_v55, %v1015_v49  ;;  %v748_v60 = vadd.f32 %v747_v57, %v746_v56 }
 0x11b   :  { %699 = vst [vmem:[%s1055_s3 + $0x18] sm:$0xff] %v680_v58   ;;  %v477_v61 = vadd.f32 %v476_v28, %v388_v59  ;;  %v391_v62 = vadd.f32 %v748_v60, %v1015_v49 }
 0x11d   :  { %v480_v1 = vadd.f32 %v479_v32, %v391_v62  ;;  %v749_v2 = vpop.f32.mrb[20].mxu0  ;;  %v507_v6 = vmax.f32 %v477_v61, 0.0 }
 0x11e   :  { %v750_v4 = vpop.f32.mrb[21].mxu0 }
 0x11f   :  { %v508_v7 = vmax.f32 %v480_v1, 0.0  ;;  %v751_v8 = vadd.f32 %v750_v4, %v749_v2  ;;  %v752_v9 = vpop.f32.mrb[22].mxu0 }
 0x120   :  { %v753_v10 = vpop.f32.mrb[23].mxu0 }
 0x121   :  { %v685_v11 = vpack.c.bf16 %v508_v7, %v507_v6  ;;  %v396_v12 = vadd.f32 %v751_v8, %v1015_v49  ;;  %v754_v13 = vadd.f32 %v753_v10, %v752_v9 }
 0x123   :  { %700 = vst [vmem:[%s1055_s3 + $0x20] sm:$0xff] %v685_v11   ;;  %v485_v14 = vadd.f32 %v484_v45, %v396_v12  ;;  %v399_v15 = vadd.f32 %v754_v13, %v1015_v49 }
 0x125   :  { %v488_v16 = vadd.f32 %v487_v50, %v399_v15  ;;  %v755_v17 = vpop.f32.mrb[24].mxu0  ;;  %v509_v19 = vmax.f32 %v485_v14, 0.0 }
 0x126   :  { %v756_v18 = vpop.f32.mrb[25].mxu0 }
 0x127   :  { %v510_v20 = vmax.f32 %v488_v16, 0.0  ;;  %v757_v21 = vadd.f32 %v756_v18, %v755_v17  ;;  %v758_v22 = vpop.f32.mrb[26].mxu0 }
 0x128   :  { %v759_v23 = vpop.f32.mrb[27].mxu0 }
 0x129   :  { %v690_v24 = vpack.c.bf16 %v510_v20, %v509_v19  ;;  %v404_v25 = vadd.f32 %v757_v21, %v1015_v49  ;;  %v760_v26 = vadd.f32 %v759_v23, %v758_v22 }
 0x12b   :  { %701 = vst [vmem:[%s1055_s3 + $0x28] sm:$0xff] %v690_v24   ;;  %v493_v27 = vadd.f32 %v492_v63, %v404_v25  ;;  %v407_v28 = vadd.f32 %v760_v26, %v1015_v49 }
 0x12d   :  { %v496_v29 = vadd.f32 %v495_v3, %v407_v28  ;;  %v511_v30 = vmax.f32 %v493_v27, 0.0 }
 0x12f   :  { %v512_v31 = vmax.f32 %v496_v29, 0.0 }
 0x131   :  { %v695_v32 = vpack.c.bf16 %v512_v31, %v511_v30 }
 0x133   :  { %702 = vst [vmem:[%s1055_s3 + $0x30] sm:$0xff] %v695_v32  }

</bundles_post_ra>
